<compile_context>
chip_gen: v7x
topology: tpu7x:2x2x1
jax: 0.10.0
libtpu: 0.0.40
codegen_flags: <defaults>
</compile_context>

<pallas_src>
import functools

import jax
import jax.numpy as jnp
from jax.experimental import pallas as pl
from jax.experimental.pallas import tpu as pltpu


# ---------------------------------------------------------------------------
# Fused Linear (+ bias, optional ReLU) Pallas kernel.
# Grid = (N_out tiles,); the full K dimension is contracted in one jnp.dot.
# ---------------------------------------------------------------------------
def _linear_kernel(x_ref, w_ref, b_ref, o_ref, *, apply_relu):
    r = jnp.dot(x_ref[...], w_ref[...], preferred_element_type=jnp.float32)
    r = r + b_ref[...]
    if apply_relu:
        r = jnp.maximum(r, 0.0)
    o_ref[...] = r.astype(o_ref.dtype)


def pallas_linear(x, w_t, b, *, apply_relu, tn):
    """y = x @ w_t + b with w_t in (K, N) layout (bf16), f32 accumulation."""
    M, K = x.shape
    Kw, N = w_t.shape
    assert K == Kw and N % tn == 0, (x.shape, w_t.shape, tn)
    b2 = b.reshape(1, N).astype(jnp.float32)

    return pl.pallas_call(
        functools.partial(_linear_kernel, apply_relu=apply_relu),
        out_shape=jax.ShapeDtypeStruct((M, N), jnp.float32),
        grid_spec=pltpu.PrefetchScalarGridSpec(
            num_scalar_prefetch=0,
            grid=(N // tn,),
            in_specs=[
                pl.BlockSpec((M, K), lambda j: (0, 0)),    # activations (full K)
                pl.BlockSpec((K, tn), lambda j: (0, j)),   # bf16 weights (K, N)
                pl.BlockSpec((1, tn), lambda j: (0, j)),   # bias
            ],
            out_specs=pl.BlockSpec((M, tn), lambda j: (0, j)),
        ),
        compiler_params=pltpu.CompilerParams(
            dimension_semantics=("parallel",),
            # 8 MiB bf16 weight tile x2 double-buffer + small activation/bias/
            # output buffers ~= 16.1 MiB; 40 MiB leaves headroom on every
            # generation (v5e scoped default is only 16 MiB, so set explicitly;
            # v7x physical VMEM is 64 MiB so stay well below it).
            vmem_limit_bytes=40 * 1024 * 1024,
        ),
    )(x, w_t, b2)


def _round_up(x, m):
    return (x + m - 1) // m * m


# ---------------------------------------------------------------------------
# AlexNet classifier parameters (deterministic init) and forward.
# Classifier: Dropout -> Linear(3072, 4096) -> ReLU -> Dropout ->
#             Linear(4096, 4096) -> ReLU -> Linear(4096, num_class)
# ---------------------------------------------------------------------------
def init_params(key, num_class=10):
    k1, k2, k3 = jax.random.split(key, 3)

    def lin(k, fan_in, fan_out):
        kw, kb = jax.random.split(k)
        bound = 1.0 / jnp.sqrt(fan_in)
        w = jax.random.uniform(kw, (fan_out, fan_in), jnp.float32, -bound, bound)
        b = jax.random.uniform(kb, (fan_out,), jnp.float32, -bound, bound)
        return w, b

    w1, b1 = lin(k1, 3072, 4096)
    w2, b2 = lin(k2, 4096, 4096)
    w3, b3 = lin(k3, 4096, num_class)

    # Pre-transpose ONCE to (in, out) and store in bf16 (streamed weights).
    # Final layer is zero-padded to 128 output lanes for lane-dense stores.
    n_pad = _round_up(num_class, 128)
    w3t_p = jnp.zeros((4096, n_pad), jnp.float32).at[:, :num_class].set(w3.T)
    b3_p = jnp.zeros((n_pad,), jnp.float32).at[:num_class].set(b3)

    return {
        "w1_t": w1.T.astype(jnp.bfloat16), "b1": b1,
        "w2_t": w2.T.astype(jnp.bfloat16), "b2": b2,
        "w3_t": w3t_p.astype(jnp.bfloat16), "b3": b3_p,
    }


def alexnet_forward(params, inputs, num_class=10):
    # `self.features(inputs)` is dead code in the reference forward, skipped.
    n = inputs.shape[0]
    x = inputs.reshape(n, -1).astype(jnp.bfloat16)                  # (N, 3072)

    # Dropout (eval) -> Linear + ReLU
    h1 = pallas_linear(x, params["w1_t"], params["b1"],
                       apply_relu=True, tn=1024)                    # (N, 4096) f32
    # Dropout (eval) -> Linear + ReLU
    h2 = pallas_linear(h1.astype(jnp.bfloat16), params["w2_t"], params["b2"],
                       apply_relu=True, tn=1024)                    # (N, 4096) f32
    # Final Linear (no ReLU), padded to 128 lanes, single grid step.
    out = pallas_linear(h2.astype(jnp.bfloat16), params["w3_t"], params["b3"],
                        apply_relu=False, tn=128)                   # (N, 128) f32
    return out[:, :num_class]


def alexnet_reference(params, inputs, num_class=10):
    """Pure-JAX reference with the same bf16 weights / f32 accumulation."""
    n = inputs.shape[0]
    x = inputs.reshape(n, -1).astype(jnp.bfloat16)
    h1 = jnp.maximum(
        jnp.dot(x, params["w1_t"], preferred_element_type=jnp.float32)
        + params["b1"], 0.0)
    h2 = jnp.maximum(
        jnp.dot(h1.astype(jnp.bfloat16), params["w2_t"],
                preferred_element_type=jnp.float32) + params["b2"], 0.0)
    out = jnp.dot(h2.astype(jnp.bfloat16), params["w3_t"],
                  preferred_element_type=jnp.float32) + params["b3"]
    return out[:, :num_class]


if __name__ == "__main__":
    key = jax.random.PRNGKey(0)
    kp, kx = jax.random.split(key)

    params = init_params(kp, num_class=10)
    # Spatial must be 32x32 so that flatten(N, 3*32*32) == 3072, matching
    # nn.Linear(3072, 4096).
    x = jax.random.normal(kx, (2, 3, 32, 32), dtype=jnp.float32)

    out = alexnet_forward(params, x, num_class=10)
    out = jax.block_until_ready(out)

    ref = alexnet_reference(params, x, num_class=10)
    assert out.shape == (2, 10), out.shape
    assert jnp.allclose(out, ref, rtol=1e-2, atol=1e-2), (
        float(jnp.max(jnp.abs(out - ref)))
    )
    print("KERNEL_OK")
</pallas_src>

<mosaic_0001>
module attributes {stable_mosaic.version = 11 : i64} {
  func.func @_linear_kernel(%arg0: i32, %arg1: memref<2x3072xbf16, #tpu.memory_space<vmem>>, %arg2: memref<3072x1024xbf16, #tpu.memory_space<vmem>>, %arg3: memref<1x1024xf32, #tpu.memory_space<vmem>>, %arg4: memref<2x1024xf32, #tpu.memory_space<vmem>>) attributes {dimension_semantics = [#tpu.dimension_semantics<parallel>], iteration_bounds = array<i64: 4>, scalar_prefetch = 0 : i64, scratch_operands = 0 : i64, tpu.core_type = #tpu.core_type<tc>, window_params = [{pipeline_mode = #tpu.pipeline_mode<synchronous>, transform_indices = @transform_0, window_bounds = array<i64: 2, 3072>}, {transform_indices = @transform_1, window_bounds = array<i64: 3072, 1024>}, {transform_indices = @transform_2, window_bounds = array<i64: 1, 1024>}, {transform_indices = @transform_3, window_bounds = array<i64: 2, 1024>}]} {
    %c0 = arith.constant 0 : index
    %c0_0 = arith.constant 0 : index
    %0 = vector.load %arg1[%c0, %c0_0] : memref<2x3072xbf16, #tpu.memory_space<vmem>>, vector<2x3072xbf16>
    %c0_1 = arith.constant 0 : index
    %c0_2 = arith.constant 0 : index
    %1 = vector.load %arg2[%c0_1, %c0_2] : memref<3072x1024xbf16, #tpu.memory_space<vmem>>, vector<3072x1024xbf16>
    %cst = arith.constant dense<0.000000e+00> : vector<2x1024xf32>
    %2 = tpu.matmul %0, %1, %cst {dimension_numbers = #tpu.dot_dimension_numbers<[1], [0], [0], [1], [0, 0, 1, 1], [], []>} : vector<2x3072xbf16>, vector<3072x1024xbf16>, vector<2x1024xf32> -> vector<2x1024xf32>
    %c0_3 = arith.constant 0 : index
    %c0_4 = arith.constant 0 : index
    %3 = vector.load %arg3[%c0_3, %c0_4] : memref<1x1024xf32, #tpu.memory_space<vmem>>, vector<1x1024xf32>
    %4 = vector.broadcast %3 : vector<1x1024xf32> to vector<2x1024xf32>
    %5 = arith.addf %2, %4 : vector<2x1024xf32>
    %cst_5 = arith.constant 0.000000e+00 : f32
    %6 = vector.broadcast %cst_5 : f32 to vector<2x1024xf32>
    %7 = arith.maximumf %5, %6 : vector<2x1024xf32>
    %c0_6 = arith.constant 0 : index
    %c0_7 = arith.constant 0 : index
    %8 = vector.load %arg4[%c0_6, %c0_7] : memref<2x1024xf32, #tpu.memory_space<vmem>>, vector<2x1024xf32>
    tpu.vector_store %arg4[%c0_6, %c0_7], %7 {strides = array<i32>} : memref<2x1024xf32, #tpu.memory_space<vmem>>, vector<2x1024xf32>,
    return
  }
  func.func @transform_0(%arg0: i32) -> (i32, i32) {
    %c0_i32 = arith.constant 0 : i32
    %c0_i32_0 = arith.constant 0 : i32
    %c0_i32_1 = arith.constant 0 : i32
    return %c0_i32, %c0_i32_0 : i32, i32
  }
  func.func @transform_1(%arg0: i32) -> (i32, i32) {
    %c0_i32 = arith.constant 0 : i32
    %c0_i32_0 = arith.constant 0 : i32
    return %c0_i32, %arg0 : i32, i32
  }
  func.func @transform_2(%arg0: i32) -> (i32, i32) {
    %c0_i32 = arith.constant 0 : i32
    %c0_i32_0 = arith.constant 0 : i32
    return %c0_i32, %arg0 : i32, i32
  }
  func.func @transform_3(%arg0: i32) -> (i32, i32) {
    %c0_i32 = arith.constant 0 : i32
    %c0_i32_0 = arith.constant 0 : i32
    return %c0_i32, %arg0 : i32, i32
  }
}

</mosaic_0001>

<bundles_post_ra>
// kernel: tpu_custom_call.1
= control target key start
LH: loop header
LB: loop body
LE: loop exit
PB: predicated region body
PF: predicated region fallthrough
CT: control target
= control target key end

     0   :  { %8 = vsyncpa [#allocation3], 0  ;;  %s15848_s0 = inlined_call_operand.hbm [shape: bf16[2,3072], index: 0, kind: input, shape index: {}]   ;;  %s15849_s1 = inlined_call_operand.hbm [shape: bf16[3072,4096], index: 1, kind: input, shape index: {}]   ;;  %s15850_s2 = inlined_call_operand.hbm [shape: f32[1,4096], index: 2, kind: input, shape index: {}]   ;;  %s15851_s3 = inlined_call_operand.hbm [shape: f32[2,4096], index: 3, kind: output, shape index: {}]  }
   0x1   :  { %9 = vsyncpa [#allocation6], 0 }
   0x2   :  { %11 = vsyncpa [#allocation6 + $0x1], 0 }
   0x3   :  { %12 = vsyncpa [#allocation4], 0 }
   0x4   :  { %14 = vsyncpa [#allocation4 + $0x1], 0  ;;  %s13817_s12 = smov 0   ;;  %s13819_s13 = smov 0  }
   0x5   :  { %s13821_s14 = smov 0   ;;  %s13823_s15 = smov 0  }
   0x6 LB: > { %s13838_s16 = sadd.s32 1, %s13786_s15   ;;  %s48_s17 = sadd.s32 1, %s13782_s14  ;;  %s13786_s15 = sphi %s13823_s15, %s15877_s15   ;;  %s13782_s14 = sphi %s13821_s14, %s15876_s14   ;;  %s13778_s13 = sphi %s13819_s13, %s15875_s13   ;;  %s13774_s12 = sphi %s13817_s12, %s15874_s12  }
   0x7   : > { %s45_s18 = ssub.s32 %s13786_s15, %s13838_s16  ;;  %p55_p0 = scmp.ne.s32.totalorder %s13782_s14, %s13778_s13 }
   0x8   : > { %p46_p1 = scmp.eq.s32.totalorder %s45_s18, 0  ;;  %p56_p2 = scmp.eq.s32.totalorder %s13786_s15, 0 }
   0x9   : > { %p13583_p3 = scmp.lt.s32.totalorder %s13786_s15, 4  ;;  %s148_s20 = sand.u32 1, %s13786_s15  }
   0xa   : > { %s13848_s19 = scalar_select %p46_p1, %s13782_s14, %s48_s17  }
   0xb   : > { %p57_p4 = por %p56_p2, %p55_p0  ;;  %s150_s21 = sand.u32 1, %s13782_s14  }
   0xc   : > { %s13555_s22 = smul.u32 12288, %s150_s21  ;;  %s13368_s23 = sshll.u32 %s13786_s15, 9 }
   0xd   : > { %s13861_s26 = scalar_lea.hbm %s15849_s1, %s13368_s23  ;;  %p13863_p5 = pnand %p13583_p3, %p57_p4 }
   0xe   : > { %s152_s28 = scalar_lea.vmem [#allocation5], %s13555_s22  ;;  %s13869_s30 = scalar_lea.sflag [#allocation6], %s148_s20 }
   0xf   : > { %s15859_s27 = scalar_select %p13863_p5, 1, 0 }
  0x10   : > { %s159_s29 = sshll.u32 %s152_s28, 4  ;;  %s13628_s4 = scalar_lea.hbm %s13861_s26, 196608  ;;  %s13867_s29 = int_to_ptr.vmem [resolvable:$true] %s159_s29 }
  0x11   : > { %p13629_p6 = scmp.ne.s32.totalorder %s13861_s26, %s13628_s4  ;;  %p15853_p7 = pneg %p13863_p5 }
  0x12   : > { %s13633_s7 = scalar_lea.hbm %s15849_s1, 786432  ;;  %p13634_p10 = scmp.lt.u32.totalorder %s13861_s26, %s15849_s1 }
  0x13   : > { %p13631_p8 = pnand %p15853_p7, %p13629_p6  ;;  %p13635_p11 = scmp.lt.u32.totalorder %s13633_s7, %s13628_s4 }
  0x14   : > { %p13637_p13 = scmp.lt.u32.totalorder %s13628_s4, %s13861_s26 }
  0x15   : > { %p13632_p9 = pneg %p13631_p8  ;;  %p13636_p12 = por %p13635_p11, %p13634_p10 }
  0x17   : > { %p13638_p1 = por %p13637_p13, %p13636_p12 }
  0x19   : > { %p13639_p2 = pnand %p13638_p1, %p13632_p9 }
  0x1b   : > { %13642 = shalt.err (!%p13639_p2)
}
  0x1c   : > { %s13643_s10 = scalar_lea.vmem %s13867_s29, 196608  ;;  %s13788_s11 = smov [#allocation5]  }
  0x1d   : > { %p13644_p3 = scmp.ne.s32.totalorder %s13867_s29, %s13643_s10  ;;  %s13648_s17 = sshll.u32 %s13788_s11, 4  ;;  %s13649_s17 = int_to_ptr.vmem [resolvable:$false] %s13648_s17 }
  0x1e   : > { %s13650_s18 = scalar_lea.vmem %s13649_s17, 393216  ;;  %p13651_p8 = scmp.lt.s32.totalorder %s13867_s29, %s13649_s17 }
  0x1f   : > { %p13646_p4 = pnand %p13644_p3, %p15853_p7  ;;  %p13652_p10 = scmp.lt.s32.totalorder %s13650_s18, %s13643_s10 }
  0x21   : > { %p13647_p6 = pneg %p13646_p4  ;;  %p13653_p11 = por %p13652_p10, %p13651_p8 }
  0x23   : > { %p13654_p12 = pnand %p13653_p11, %p13647_p6 }
  0x25   : > { %13657 = shalt.err (!%p13654_p12)
}
  0x26   : > { %s13789_s20 = smov 2048   ;;  %s13790_s22 = smov 512  }
  0x27   : > { %s13791_s23 = smov 32   ;;  %s13898_s24 = sadd.s32 4294967295, %s13786_s15  }
  0x28   : > { %13574 = dma.hbm_to_vmem [thread:$0]  (!%p13863_p5), %s13861_s26, 196608, %s13867_s29, %s13869_s30, %s13789_s20, %s13790_s22, %s13791_s23  }
  0x29   : > { %s11814_s25 = sadd.s32 4294967294, %s13786_s15   ;;  %p61_p9 = scmp.ne.s32.totalorder %s13778_s13, %s13774_s12 }
  0x2a   : > { %p15852_p13 = scmp.eq.s32.totalorder %s13898_s24, 0  ;;  %p111_p1 = scmp.eq.s32.totalorder %s13898_s24, 3 }
  0x2b   : > { %p117_p2 = scmp.eq.s32.totalorder %s11814_s25, 3  ;;  %p11815_p3 = scmp.ge.s32.totalorder %s13786_s15, 1 }
  0x2c   : > { %p13908_p4 = por %p15852_p13, %p61_p9  ;;  %p13915_p6 = por %p111_p1, %p55_p0 }
  0x2d   : > { %p13919_p8 = por %p117_p2, %p61_p9  ;;  %p124_p10 = scmp.lt.s32.totalorder %s13786_s15, 5 }
  0x2e   : > { %s15860_s28 = scalar_select %p13908_p4, 1, 0 }
  0x2f   : > { %s15861_s26 = scalar_select %p13915_p6, 1, 0 }
  0x30   : > { %s15862_s29 = scalar_select %p13919_p8, 1, 0 }
  0x31   : > { %p13924_p11 = pnand %p11815_p3, %p124_p10  ;;  %s13792_s5 = smov [#allocation2]  }
  0x32   : > { %s137_s6 = sshll.u32 %s13792_s5, 4  ;;  %s11820_s7 = sshll.u32 %s150_s21, 3  ;;  %s138_s6 = int_to_ptr.vmem [resolvable:$true] %s137_s6 }
  0x33   : > { %s15863_s4 = scalar_select %p13924_p11, 1, 0 }
  0x34   : > { %p13567_p12 = pneg %p13924_p11  ;;  %s13369_s8 = sshll.u32 %s13786_s15, 7 }
  0x35   : > { %s173_s9 = scalar_lea.vmem [#allocation7], %s11820_s7  ;;  %s13942_s20 = scalar_lea.hbm %s15850_s2, %s13369_s8 }
  0x36   : > { %s181_s10 = sshll.u32 %s173_s9, 4  ;;  %p13935_p0 = pnand %p13567_p12, %p15852_p13  ;;  %s13944_s10 = int_to_ptr.vmem [resolvable:$true] %s181_s10 }
  0x37   : > { %s13658_s23 = scalar_lea.hbm %s15848_s0, 384 }
  0x38   : > { %p13659_p9 = scmp.ne.s32.totalorder %s15848_s0, %s13658_s23  ;;  %p13660_p1 = pneg %p13935_p0 }
  0x39   : > { %p13665_p10 = scmp.lt.u32.totalorder %s13658_s23, %s15848_s0 }
  0x3a   : > { %p13661_p2 = pnand %p13660_p1, %p13659_p9 }
  0x3c   : > { %p13662_p3 = pneg %p13661_p2 }
  0x3e   : > { %p13667_p12 = pnand %p13665_p10, %p13662_p3 }
  0x40   : > { %13670 = shalt.err (!%p13667_p12)
}
  0x41   : > { %s13671_s8 = scalar_lea.vmem %s138_s6, 384  ;;  %p13679_p6 = scmp.lt.s32.totalorder %s138_s6, %s138_s6 }
  0x42   : > { %p13672_p13 = scmp.ne.s32.totalorder %s138_s6, %s13671_s8  ;;  %p13680_p4 = scmp.lt.s32.totalorder %s13671_s8, %s13671_s8 }
  0x44   : > { %p13674_p7 = pnand %p13672_p13, %p13660_p1  ;;  %p13681_p11 = por %p13680_p4, %p13679_p6 }
  0x46   : > { %p13675_p8 = pneg %p13674_p7 }
  0x48   : > { %p13682_p5 = pnand %p13681_p11, %p13675_p8 }
  0x4a   : > { %13685 = shalt.err (!%p13682_p5)
}
  0x4b   : > { %13570 = dma.hbm_to_vmem [thread:$0]  (!%p13935_p0), %s15848_s0, 384, %s138_s6, [#allocation3]  }
  0x4c   : > { %s13686_s21 = scalar_lea.hbm %s13942_s20, 128  ;;  %p15865_p13 = scmp.ne.s32.totalorder %s15859_s27, 0 }
  0x4d   : > { %p13687_p9 = scmp.ne.s32.totalorder %s13942_s20, %s13686_s21  ;;  %s13691_s25 = scalar_lea.hbm %s15850_s2, 512 }
  0x4e   : > { %p15866_p7 = pneg %p15865_p13  ;;  %p13692_p5 = scmp.lt.u32.totalorder %s13942_s20, %s15850_s2 }
  0x4f   : > { %p13693_p4 = scmp.lt.u32.totalorder %s13691_s25, %s13686_s21  ;;  %p13695_p8 = scmp.lt.u32.totalorder %s13686_s21, %s13942_s20 }
  0x50   : > { %p13689_p1 = pnand %p13687_p9, %p15866_p7 }
  0x51   : > { %p13694_p6 = por %p13693_p4, %p13692_p5 }
  0x52   : > { %p13690_p2 = pneg %p13689_p1 }
  0x53   : > { %p13696_p11 = por %p13695_p8, %p13694_p6 }
  0x55   : > { %p13697_p3 = pnand %p13696_p11, %p13690_p2 }
  0x57   : > { %13700 = shalt.err (!%p13697_p3)
}
  0x58   : > { %s13701_s6 = scalar_lea.vmem %s13944_s10, 128  ;;  %p15867_p10 = pmov %p15866_p7 }
  0x59   : > { %p13702_p0 = scmp.ne.s32.totalorder %s13944_s10, %s13701_s6  ;;  %s13793_s7 = smov [#allocation7]  }
  0x5a   : > { %s13706_s9 = sshll.u32 %s13793_s7, 4  ;;  %s13707_s9 = int_to_ptr.vmem [resolvable:$false] %s13706_s9 }
  0x5b   : > { %p13704_p12 = pnand %p13702_p0, %p15867_p10  ;;  %s13708_s8 = scalar_lea.vmem %s13707_s9, 256 }
  0x5c   : > { %p13709_p7 = scmp.lt.s32.totalorder %s13944_s10, %s13707_s9  ;;  %p13710_p1 = scmp.lt.s32.totalorder %s13708_s8, %s13701_s6 }
  0x5d   : > { %p13705_p9 = pneg %p13704_p12 }
  0x5e   : > { %p13711_p5 = por %p13710_p1, %p13709_p7 }
  0x60   : > { %p13712_p4 = pnand %p13711_p5, %p13705_p9 }
  0x62   : > { %13715 = shalt.err (!%p13712_p4)
}
  0x63   : > { %13577 = dma.hbm_to_vmem [thread:$0]  (!%p15865_p13), %s13942_s20, 128, %s13944_s10, %s13869_s30  }
  0x64   : > { %p15868_p2 = scmp.ne.s32.totalorder %s15863_s4, 0 }
  0x65   : > { %p15869_p6 = scmp.eq.s32.totalorder (!%p15868_p2), %s13898_s24, 0 }
  0x66   : > { %190 = sbr.rel (%p15868_p2) target bundleno = 1892 (0x764), region = 32 }
  0x6d   : > { %13761 = dma.done.wait (%p15869_p6), [#allocation3], 384   ;;  %p15870_p8 = pmov %p15869_p6 }
  0x6e   : > { %s196_s17 = sand.u32 1, %s13898_s24   ;;  %s13994_s18 = sand.u32 1, %s13778_s13  }
  0x6f   : > { %13763 = vsyncadd (%p15870_p8), [#allocation3], 4294966912  ;;  %s13556_s27 = smul.u32 12288, %s13994_s18  ;;  %s197_s21 = scalar_lea.sflag [#allocation6], %s196_s17 }
  0x70   : > { %p15871_p13 = scmp.ne.s32.totalorder %s15860_s28, 0 }
  0x71   : > { %s13997_s22 = scalar_lea.vmem [#allocation5], %s13556_s27 }
  0x72   : > { %13765 = dma.done.wait (%p15871_p13), %s197_s21, 196736  }
  0x73   : > { %13767 = vsyncadd (%p15871_p13), %s197_s21, 4294770560  ;;  %v243_v0 = vld [vmem:[%s13997_s22] sm:$0xff]  ;;  %v244_v2 = vld [vmem:[%s13997_s22 + $0x8] sm:$0xff]  ;;  %v1781_v32 = vlaneseq  ;;  %v13794_v33 = vmov 1966171168   ;;  %s11825_s30 = sshll.u32 %s13994_s18, 3 }
  0x74   : > { %v247_v1 = vld [vmem:[%s13997_s22 + $0x20] sm:$0xff]  ;;  %v248_v4 = vld [vmem:[%s13997_s22 + $0x28] sm:$0xff]  ;;  %v1826_v34 = vunpack.c.l.s4 %v13794_v33  ;;  %s15191_s28 = scalar_lea.vmem [#allocation7], %s11825_s30  ;;  %s11826_s4 = sshll.u32 %s13994_s18, 4 }
  0x75   : > { %v11828_v3 = vcombine.high %v243_v0, %v247_v1  ;;  %v11827_v5 = vcombine.low %v243_v0, %v247_v1  ;;  %v251_v6 = vld [vmem:[%s13997_s22 + $0x40] sm:$0xff]  ;;  %v11830_v8 = vcombine.high %v244_v2, %v248_v4  ;;  %v11829_v9 = vcombine.low %v244_v2, %v248_v4  ;;  %v252_v11 = vld [vmem:[%s13997_s22 + $0x48] sm:$0xff]  ;;  %s15223_s10 = scalar_lea.vmem [#allocation8], %s11826_s4  ;;  %s13370_s20 = sshll.u32 %s13898_s24, 8 }
  0x76   : > { %v255_v7 = vld [vmem:[%s13997_s22 + $0x60] sm:$0xff]  ;;  %v256_v12 = vld [vmem:[%s13997_s22 + $0x68] sm:$0xff]  ;;  %v14025_v43 = vshrl.u32 %v1781_v32, 7  ;;  %v1827_v44 = vunpack.c.0.s8 %v1826_v34  ;;  %s11712_s23 = sshll.u32 %s15223_s10, 4  ;;  %s15804_s5 = scalar_lea.hbm %s15851_s3, %s13370_s20  ;;  %s15806_s23 = int_to_ptr.vmem [resolvable:$true] %s11712_s23 }
  0x77   : > { %v11836_v10 = vcombine.high %v251_v6, %v255_v7  ;;  %v259_v13 = vld [vmem:[%s13997_s22 + $0x80] sm:$0xff]  ;;  %9675 = vmatprep.subr.bf16.mxu0 %v11828_v3  ;;  %v11838_v14 = vcombine.high %v252_v11, %v256_v12  ;;  %v260_v16 = vld [vmem:[%s13997_s22 + $0x88] sm:$0xff]  ;;  %10167 = vmatprep.subr.bf16.mxu1 %v11830_v8  ;;  %v11835_v18 = vcombine.low %v251_v6, %v255_v7  ;;  %s11698_s6 = scalar_lea.sflag [#allocation4], %s13994_s18  ;;  %s13716_s7 = scalar_lea.vmem %s15806_s23, 256 }
  0x78   : > { %v263_v15 = vld [vmem:[%s13997_s22 + $0xa0] sm:$0xff]  ;;  %v264_v17 = vld [vmem:[%s13997_s22 + $0xa8] sm:$0xff]  ;;  %9676 = vmatpush1.bf16.msra.mxu0 %v11827_v5  ;;  %10168 = vmatpush1.bf16.msra.mxu1 %v11829_v9  ;;  %v11837_v19 = vcombine.low %v252_v11, %v256_v12  ;;  %v14032_v53 = vsub.s32 %v1827_v44, %v14025_v43  ;;  %p13717_p11 = scmp.ne.s32.totalorder %s15806_s23, %s13716_s7  ;;  %p15872_p3 = scmp.ne.s32.totalorder %s15861_s26, 0 }
  0x79   : > { %9677 = vmatprep.subr.bf16.mxu0 %v11836_v10  ;;  %v11844_v20 = vcombine.high %v259_v13, %v263_v15  ;;  %10169 = vmatprep.subr.bf16.mxu1 %v11838_v14  ;;  %v11846_v21 = vcombine.high %v260_v16, %v264_v17  ;;  %v267_v22 = vld [vmem:[%s13997_s22 + $0xc0] sm:$0xff]  ;;  %v268_v24 = vld [vmem:[%s13997_s22 + $0xc8] sm:$0xff]  ;;  %v11843_v26 = vcombine.low %v259_v13, %v263_v15  ;;  %s13796_s24 = smov [#allocation8]  }
  0x7a   : > { %v271_v23 = vld [vmem:[%s13997_s22 + $0xe0] sm:$0xff]  ;;  %v272_v25 = vld [vmem:[%s13997_s22 + $0xe8] sm:$0xff]  ;;  %v11845_v27 = vcombine.low %v260_v16, %v264_v17  ;;  %p13718_p0 = pnand %p13717_p11, %p15872_p3  ;;  %s13720_s9 = sshll.u32 %s13796_s24, 4  ;;  %s13721_s9 = int_to_ptr.vmem [resolvable:$false] %s13720_s9 }
  0x7b   : > { %v11852_v28 = vcombine.high %v267_v22, %v271_v23  ;;  %v11854_v29 = vcombine.high %v268_v24, %v272_v25  ;;  %v275_v30 = vld [vmem:[%s13997_s22 + $0x100] sm:$0xff]  ;;  %v276_v35 = vld [vmem:[%s13997_s22 + $0x108] sm:$0xff]  ;;  %v11851_v37 = vcombine.low %v267_v22, %v271_v23  ;;  %v11853_v38 = vcombine.low %v268_v24, %v272_v25  ;;  %s13722_s8 = scalar_lea.vmem %s13721_s9, 512  ;;  %p13723_p12 = scmp.lt.s32.totalorder %s15806_s23, %s13721_s9 }
  0x7c   : > { %9678 = vmatpush1.bf16.msra.mxu0 %v11835_v18  ;;  %10170 = vmatpush1.bf16.msra.mxu1 %v11837_v19  ;;  %v279_v31 = vld [vmem:[%s13997_s22 + $0x120] sm:$0xff]  ;;  %v280_v36 = vld [vmem:[%s13997_s22 + $0x128] sm:$0xff]  ;;  %p13719_p10 = pneg %p13718_p0  ;;  %p13724_p9 = scmp.lt.s32.totalorder %s13722_s8, %s13716_s7 }
  0x7d   : > { %9679 = vmatprep.subr.bf16.mxu0 %v11844_v20  ;;  %10171 = vmatprep.subr.bf16.mxu1 %v11846_v21  ;;  %v11860_v39 = vcombine.high %v275_v30, %v279_v31  ;;  %v11862_v40 = vcombine.high %v276_v35, %v280_v36  ;;  %v283_v41 = vld [vmem:[%s13997_s22 + $0x140] sm:$0xff]  ;;  %v284_v45 = vld [vmem:[%s13997_s22 + $0x148] sm:$0xff]  ;;  %v11859_v47 = vcombine.low %v275_v30, %v279_v31 }
  0x7e   : > { %v287_v42 = vld [vmem:[%s13997_s22 + $0x160] sm:$0xff]  ;;  %v288_v46 = vld [vmem:[%s13997_s22 + $0x168] sm:$0xff]  ;;  %v11861_v48 = vcombine.low %v276_v35, %v280_v36  ;;  %p13725_p7 = por %p13724_p9, %p13723_p12 }
  0x7f   : > { %v11868_v49 = vcombine.high %v283_v41, %v287_v42  ;;  %v11870_v50 = vcombine.high %v284_v45, %v288_v46  ;;  %v291_v51 = vld [vmem:[%s13997_s22 + $0x180] sm:$0xff]  ;;  %v292_v54 = vld [vmem:[%s13997_s22 + $0x188] sm:$0xff]  ;;  %v11867_v56 = vcombine.low %v283_v41, %v287_v42  ;;  %v11869_v57 = vcombine.low %v284_v45, %v288_v46 }
  0x80   : > { %9680 = vmatpush1.bf16.msra.mxu0 %v11843_v26  ;;  %10172 = vmatpush1.bf16.msra.mxu1 %v11845_v27  ;;  %v295_v52 = vld [vmem:[%s13997_s22 + $0x1a0] sm:$0xff]  ;;  %v296_v55 = vld [vmem:[%s13997_s22 + $0x1a8] sm:$0xff]  ;;  %p13726_p1 = pnand %p13725_p7, %p13719_p10 }
  0x81   : > { %9681 = vmatprep.subr.bf16.mxu0 %v11852_v28  ;;  %10173 = vmatprep.subr.bf16.mxu1 %v11854_v29  ;;  %v11876_v58 = vcombine.high %v291_v51, %v295_v52  ;;  %v14036_v59 = vld [vmem:[#allocation2] sm:$0xff]  ;;  %v11878_v60 = vcombine.high %v292_v54, %v296_v55  ;;  %v299_v61 = vld [vmem:[%s13997_s22 + $0x1c0] sm:$0xff]  ;;  %v11875_v2 = vcombine.low %v291_v51, %v295_v52 }
  0x82   : > { %v303_v62 = vld [vmem:[%s13997_s22 + $0x1e0] sm:$0xff]  ;;  %v14042_v63 = vrot.slane %v14036_v59, %v14032_v53  ;;  %v300_v0 = vld [vmem:[%s13997_s22 + $0x1c8] sm:$0xff]  ;;  %v11877_v4 = vcombine.low %v292_v54, %v296_v55 }
  0x83   : > { %v304_v1 = vld [vmem:[%s13997_s22 + $0x1e8] sm:$0xff]  ;;  %v11884_v5 = vcombine.high %v299_v61, %v303_v62  ;;  %v307_v7 = vld [vmem:[%s13997_s22 + $0x200] sm:$0xff]  ;;  %v11883_v12 = vcombine.low %v299_v61, %v303_v62 }
  0x84   : > { %9682 = vmatpush1.bf16.msra.mxu0 %v11851_v37  ;;  %10174 = vmatpush1.bf16.msra.mxu1 %v11853_v38  ;;  %v1839_v3 = vcombine.high %v14042_v63, %v14042_v63  ;;  %v11886_v6 = vcombine.high %v300_v0, %v304_v1  ;;  %v311_v8 = vld [vmem:[%s13997_s22 + $0x220] sm:$0xff]  ;;  %v308_v10 = vld [vmem:[%s13997_s22 + $0x208] sm:$0xff]  ;;  %v11885_v13 = vcombine.low %v300_v0, %v304_v1 }
  0x85   : > { %9683 = vmatprep.subr.bf16.mxu0 %v11860_v39  ;;  %10175 = vmatprep.subr.bf16.mxu1 %v11862_v40  ;;  %v312_v11 = vld [vmem:[%s13997_s22 + $0x228] sm:$0xff]  ;;  %v11892_v14 = vcombine.high %v307_v7, %v311_v8  ;;  %v315_v16 = vld [vmem:[%s13997_s22 + $0x240] sm:$0xff]  ;;  %v11891_v20 = vcombine.low %v307_v7, %v311_v8 }
  0x86   : > { %v14051_v9 = vrot.slane %v1839_v3, %v14032_v53  ;;  %v11894_v15 = vcombine.high %v308_v10, %v312_v11  ;;  %v319_v17 = vld [vmem:[%s13997_s22 + $0x260] sm:$0xff]  ;;  %v316_v18 = vld [vmem:[%s13997_s22 + $0x248] sm:$0xff]  ;;  %v11893_v21 = vcombine.low %v308_v10, %v312_v11 }
  0x87   : > { %v320_v19 = vld [vmem:[%s13997_s22 + $0x268] sm:$0xff]  ;;  %v11900_v22 = vcombine.high %v315_v16, %v319_v17  ;;  %v323_v24 = vld [vmem:[%s13997_s22 + $0x280] sm:$0xff]  ;;  %v11899_v28 = vcombine.low %v315_v16, %v319_v17 }
  0x88   : > { %9684 = vmatpush1.bf16.msra.mxu0 %v11859_v47  ;;  %10176 = vmatpush1.bf16.msra.mxu1 %v11861_v48  ;;  %v11902_v23 = vcombine.high %v316_v18, %v320_v19  ;;  %v327_v25 = vld [vmem:[%s13997_s22 + $0x2a0] sm:$0xff]  ;;  %v324_v26 = vld [vmem:[%s13997_s22 + $0x288] sm:$0xff]  ;;  %v11901_v29 = vcombine.low %v316_v18, %v320_v19 }
  0x89   : > { %9685 = vmatprep.subr.bf16.mxu0 %v11868_v49  ;;  %10177 = vmatprep.subr.bf16.mxu1 %v11870_v50  ;;  %v328_v27 = vld [vmem:[%s13997_s22 + $0x2a8] sm:$0xff]  ;;  %v11908_v30 = vcombine.high %v323_v24, %v327_v25  ;;  %v331_v32 = vld [vmem:[%s13997_s22 + $0x2c0] sm:$0xff]  ;;  %v11907_v36 = vcombine.low %v323_v24, %v327_v25 }
  0x8a   : > { %9707 = vmatprep.mubr.bf16.mxu0 %v14051_v9  ;;  %10199 = vmatprep.mubr.bf16.mxu1 %v14051_v9  ;;  %v11910_v31 = vcombine.high %v324_v26, %v328_v27  ;;  %v335_v33 = vld [vmem:[%s13997_s22 + $0x2e0] sm:$0xff]  ;;  %v332_v34 = vld [vmem:[%s13997_s22 + $0x2c8] sm:$0xff]  ;;  %v11909_v37 = vcombine.low %v324_v26, %v328_v27 }
  0x8b   : > { %v336_v35 = vld [vmem:[%s13997_s22 + $0x2e8] sm:$0xff]  ;;  %v11916_v38 = vcombine.high %v331_v32, %v335_v33  ;;  %v339_v40 = vld [vmem:[%s13997_s22 + $0x300] sm:$0xff]  ;;  %v11915_v45 = vcombine.low %v331_v32, %v335_v33  ;;  %v14101_v32 = vcombine.high %v14051_v9, %v14051_v9 }
  0x8c   : > { %9686 = vmatpush1.bf16.msra.mxu0 %v11867_v56  ;;  %10178 = vmatpush1.bf16.msra.mxu1 %v11869_v57  ;;  %v11918_v39 = vcombine.high %v332_v34, %v336_v35  ;;  %v343_v41 = vld [vmem:[%s13997_s22 + $0x320] sm:$0xff]  ;;  %v340_v42 = vld [vmem:[%s13997_s22 + $0x308] sm:$0xff]  ;;  %v11917_v46 = vcombine.low %v332_v34, %v336_v35 }
  0x8d   : > { %9687 = vmatprep.subr.bf16.mxu0 %v11876_v58  ;;  %10179 = vmatprep.subr.bf16.mxu1 %v11878_v60  ;;  %v344_v44 = vld [vmem:[%s13997_s22 + $0x328] sm:$0xff]  ;;  %v11924_v47 = vcombine.high %v339_v40, %v343_v41  ;;  %v347_v49 = vld [vmem:[%s13997_s22 + $0x340] sm:$0xff]  ;;  %v11923_v54 = vcombine.low %v339_v40, %v343_v41 }
  0x8e   : > { %v11926_v48 = vcombine.high %v340_v42, %v344_v44  ;;  %v351_v50 = vld [vmem:[%s13997_s22 + $0x360] sm:$0xff]  ;;  %v348_v51 = vld [vmem:[%s13997_s22 + $0x348] sm:$0xff]  ;;  %v11925_v55 = vcombine.low %v340_v42, %v344_v44 }
  0x8f   : > { %v352_v52 = vld [vmem:[%s13997_s22 + $0x368] sm:$0xff]  ;;  %v11932_v56 = vcombine.high %v347_v49, %v351_v50  ;;  %v355_v58 = vld [vmem:[%s13997_s22 + $0x380] sm:$0xff]  ;;  %v11931_v0 = vcombine.low %v347_v49, %v351_v50 }
  0x90   : > { %9688 = vmatpush1.bf16.msra.mxu0 %v11875_v2  ;;  %10180 = vmatpush1.bf16.msra.mxu1 %v11877_v4  ;;  %v11934_v57 = vcombine.high %v348_v51, %v352_v52  ;;  %v359_v60 = vld [vmem:[%s13997_s22 + $0x3a0] sm:$0xff]  ;;  %v356_v61 = vld [vmem:[%s13997_s22 + $0x388] sm:$0xff]  ;;  %v11933_v1 = vcombine.low %v348_v51, %v352_v52 }
  0x91   : > { %9689 = vmatprep.subr.bf16.mxu0 %v11884_v5  ;;  %10181 = vmatprep.subr.bf16.mxu1 %v11886_v6  ;;  %v360_v62 = vld [vmem:[%s13997_s22 + $0x3a8] sm:$0xff]  ;;  %v11940_v2 = vcombine.high %v355_v58, %v359_v60  ;;  %v363_v4 = vld [vmem:[%s13997_s22 + $0x3c0] sm:$0xff]  ;;  %v11939_v8 = vcombine.low %v355_v58, %v359_v60 }
  0x92   : > { %v11942_v3 = vcombine.high %v356_v61, %v360_v62  ;;  %v367_v5 = vld [vmem:[%s13997_s22 + $0x3e0] sm:$0xff]  ;;  %v364_v6 = vld [vmem:[%s13997_s22 + $0x3c8] sm:$0xff]  ;;  %v11941_v10 = vcombine.low %v356_v61, %v360_v62 }
  0x93   : > { %v368_v7 = vld [vmem:[%s13997_s22 + $0x3e8] sm:$0xff]  ;;  %v11948_v11 = vcombine.high %v363_v4, %v367_v5  ;;  %v11947_v17 = vcombine.low %v363_v4, %v367_v5 }
  0x94   : > { %9690 = vmatpush1.bf16.msra.mxu0 %v11883_v12  ;;  %10182 = vmatpush1.bf16.msra.mxu1 %v11885_v13  ;;  %v11950_v12 = vcombine.high %v364_v6, %v368_v7  ;;  %v371_v13 = vld [vmem:[%s13997_s22 + $0x400] sm:$0xff]  ;;  %v376_v16 = vld [vmem:[%s13997_s22 + $0x428] sm:$0xff]  ;;  %v11949_v18 = vcombine.low %v364_v6, %v368_v7 }
  0x95   : > { %9691 = vmatprep.subr.bf16.mxu0 %v11892_v14  ;;  %10183 = vmatprep.subr.bf16.mxu1 %v11894_v15  ;;  %v375_v14 = vld [vmem:[%s13997_s22 + $0x420] sm:$0xff]  ;;  %v372_v15 = vld [vmem:[%s13997_s22 + $0x408] sm:$0xff] }
  0x96   : > { %v11956_v19 = vcombine.high %v371_v13, %v375_v14  ;;  %v380_v24 = vld [vmem:[%s13997_s22 + $0x448] sm:$0xff]  ;;  %v11955_v26 = vcombine.low %v371_v13, %v375_v14  ;;  %v11957_v27 = vcombine.low %v372_v15, %v376_v16 }
  0x97   : > { %v384_v25 = vld [vmem:[%s13997_s22 + $0x468] sm:$0xff] }
  0x98   : > { %9692 = vmatpush1.bf16.msra.mxu0 %v11891_v20  ;;  %10184 = vmatpush1.bf16.msra.mxu1 %v11893_v21  ;;  %v11958_v20 = vcombine.high %v372_v15, %v376_v16  ;;  %v379_v21 = vld [vmem:[%s13997_s22 + $0x440] sm:$0xff]  ;;  %v392_v33 = vld [vmem:[%s13997_s22 + $0x4a8] sm:$0xff]  ;;  %v11965_v35 = vcombine.low %v380_v24, %v384_v25 }
  0x99   : > { %9693 = vmatprep.subr.bf16.mxu0 %v11900_v22  ;;  %10185 = vmatprep.subr.bf16.mxu1 %v11902_v23  ;;  %v383_v22 = vld [vmem:[%s13997_s22 + $0x460] sm:$0xff]  ;;  %v14093_v23 = vrot.slane %v14042_v63, %v14032_v53  ;;  %v388_v63 = vld [vmem:[%s13997_s22 + $0x488] sm:$0xff] }
  0x9a   : > { %v11963_v34 = vcombine.low %v379_v21, %v383_v22  ;;  %v396_v40 = vld [vmem:[%s13997_s22 + $0x4c8] sm:$0xff]  ;;  %v11973_v44 = vcombine.low %v388_v63, %v392_v33 }
  0x9b   : > { %v400_v41 = vld [vmem:[%s13997_s22 + $0x4e8] sm:$0xff] }
  0x9c   : > { %9694 = vmatpush1.bf16.msra.mxu0 %v11899_v28  ;;  %10186 = vmatpush1.bf16.msra.mxu1 %v11901_v29  ;;  %v11964_v28 = vcombine.high %v379_v21, %v383_v22  ;;  %v11966_v29 = vcombine.high %v380_v24, %v384_v25  ;;  %v404_v49 = vld [vmem:[%s13997_s22 + $0x508] sm:$0xff]  ;;  %v11981_v52 = vcombine.low %v396_v40, %v400_v41 }
  0x9d   : > { %9695 = vmatprep.subr.bf16.mxu0 %v11908_v30  ;;  %10187 = vmatprep.subr.bf16.mxu1 %v11910_v31  ;;  %v387_v30 = vld [vmem:[%s13997_s22 + $0x480] sm:$0xff]  ;;  %v408_v50 = vld [vmem:[%s13997_s22 + $0x528] sm:$0xff] }
  0x9e   : > { %v391_v31 = vld [vmem:[%s13997_s22 + $0x4a0] sm:$0xff]  ;;  %v412_v58 = vld [vmem:[%s13997_s22 + $0x548] sm:$0xff]  ;;  %v11989_v62 = vcombine.low %v404_v49, %v408_v50 }
  0x9f   : > { %v11971_v42 = vcombine.low %v387_v30, %v391_v31  ;;  %v416_v60 = vld [vmem:[%s13997_s22 + $0x568] sm:$0xff] }
  0xa0   : > { %9696 = vmatpush1.bf16.msra.mxu0 %v11907_v36  ;;  %10188 = vmatpush1.bf16.msra.mxu1 %v11909_v37  ;;  %v11972_v36 = vcombine.high %v387_v30, %v391_v31  ;;  %v11974_v37 = vcombine.high %v388_v63, %v392_v33  ;;  %v420_v4 = vld [vmem:[%s13997_s22 + $0x588] sm:$0xff]  ;;  %v11997_v7 = vcombine.low %v412_v58, %v416_v60 }
  0xa1   : > { %9697 = vmatprep.subr.bf16.mxu0 %v11916_v38  ;;  %10189 = vmatprep.subr.bf16.mxu1 %v11918_v39  ;;  %v395_v38 = vld [vmem:[%s13997_s22 + $0x4c0] sm:$0xff]  ;;  %v424_v5 = vld [vmem:[%s13997_s22 + $0x5a8] sm:$0xff] }
  0xa2   : > { %v399_v39 = vld [vmem:[%s13997_s22 + $0x4e0] sm:$0xff]  ;;  %v428_v13 = vld [vmem:[%s13997_s22 + $0x5c8] sm:$0xff]  ;;  %v12005_v16 = vcombine.low %v420_v4, %v424_v5 }
  0xa3   : > { %v11979_v51 = vcombine.low %v395_v38, %v399_v39  ;;  %v432_v14 = vld [vmem:[%s13997_s22 + $0x5e8] sm:$0xff] }
  0xa4   : > { %9698 = vmatpush1.bf16.msra.mxu0 %v11915_v45  ;;  %10190 = vmatpush1.bf16.msra.mxu1 %v11917_v46  ;;  %v11980_v45 = vcombine.high %v395_v38, %v399_v39  ;;  %v11982_v46 = vcombine.high %v396_v40, %v400_v41  ;;  %v436_v21 = vld [vmem:[%s13997_s22 + $0x608] sm:$0xff]  ;;  %v12013_v25 = vcombine.low %v428_v13, %v432_v14 }
  0xa5   : > { %9699 = vmatprep.subr.bf16.mxu0 %v11924_v47  ;;  %10191 = vmatprep.subr.bf16.mxu1 %v11926_v48  ;;  %v403_v47 = vld [vmem:[%s13997_s22 + $0x500] sm:$0xff]  ;;  %v440_v22 = vld [vmem:[%s13997_s22 + $0x628] sm:$0xff] }
  0xa6   : > { %v407_v48 = vld [vmem:[%s13997_s22 + $0x520] sm:$0xff]  ;;  %v444_v30 = vld [vmem:[%s13997_s22 + $0x648] sm:$0xff]  ;;  %v12021_v33 = vcombine.low %v436_v21, %v440_v22 }
  0xa7   : > { %v11987_v61 = vcombine.low %v403_v47, %v407_v48  ;;  %v448_v31 = vld [vmem:[%s13997_s22 + $0x668] sm:$0xff] }
  0xa8   : > { %9700 = vmatpush1.bf16.msra.mxu0 %v11923_v54  ;;  %10192 = vmatpush1.bf16.msra.mxu1 %v11925_v55  ;;  %v11988_v54 = vcombine.high %v403_v47, %v407_v48  ;;  %v11990_v55 = vcombine.high %v404_v49, %v408_v50  ;;  %v452_v38 = vld [vmem:[%s13997_s22 + $0x688] sm:$0xff]  ;;  %v12029_v41 = vcombine.low %v444_v30, %v448_v31 }
  0xa9   : > { %9701 = vmatprep.subr.bf16.mxu0 %v11932_v56  ;;  %10193 = vmatprep.subr.bf16.mxu1 %v11934_v57  ;;  %v411_v56 = vld [vmem:[%s13997_s22 + $0x540] sm:$0xff]  ;;  %v456_v39 = vld [vmem:[%s13997_s22 + $0x6a8] sm:$0xff] }
  0xaa   : > { %v415_v57 = vld [vmem:[%s13997_s22 + $0x560] sm:$0xff]  ;;  %v460_v47 = vld [vmem:[%s13997_s22 + $0x6c8] sm:$0xff]  ;;  %v12037_v50 = vcombine.low %v452_v38, %v456_v39 }
  0xab   : > { %v11995_v6 = vcombine.low %v411_v56, %v415_v57  ;;  %v464_v48 = vld [vmem:[%s13997_s22 + $0x6e8] sm:$0xff] }
  0xac   : > { %9702 = vmatpush1.bf16.msra.mxu0 %v11931_v0  ;;  %10194 = vmatpush1.bf16.msra.mxu1 %v11933_v1  ;;  %v11996_v0 = vcombine.high %v411_v56, %v415_v57  ;;  %v11998_v1 = vcombine.high %v412_v58, %v416_v60  ;;  %v468_v56 = vld [vmem:[%s13997_s22 + $0x708] sm:$0xff]  ;;  %v12045_v60 = vcombine.low %v460_v47, %v464_v48 }
  0xad   : > { %9703 = vmatprep.subr.bf16.mxu0 %v11940_v2  ;;  %10195 = vmatprep.subr.bf16.mxu1 %v11942_v3  ;;  %v419_v2 = vld [vmem:[%s13997_s22 + $0x580] sm:$0xff]  ;;  %v472_v57 = vld [vmem:[%s13997_s22 + $0x728] sm:$0xff] }
  0xae   : > { %v423_v3 = vld [vmem:[%s13997_s22 + $0x5a0] sm:$0xff] }
  0xaf   : > { %v12003_v15 = vcombine.low %v419_v2, %v423_v3 }
  0xb0   : > { %9704 = vmatpush1.bf16.msra.mxu0 %v11939_v8  ;;  %10196 = vmatpush1.bf16.msra.mxu1 %v11941_v10  ;;  %v12004_v8 = vcombine.high %v419_v2, %v423_v3  ;;  %v12006_v10 = vcombine.high %v420_v4, %v424_v5  ;;  %v476_v2 = vld [vmem:[%s13997_s22 + $0x748] sm:$0xff]  ;;  %v12053_v5 = vcombine.low %v468_v56, %v472_v57 }
  0xb1   : > { %9705 = vmatprep.subr.bf16.mxu0 %v11948_v11  ;;  %10197 = vmatprep.subr.bf16.mxu1 %v11950_v12  ;;  %v427_v11 = vld [vmem:[%s13997_s22 + $0x5c0] sm:$0xff]  ;;  %v480_v3 = vld [vmem:[%s13997_s22 + $0x768] sm:$0xff] }
  0xb2   : > { %v431_v12 = vld [vmem:[%s13997_s22 + $0x5e0] sm:$0xff] }
  0xb3   : > { %v12011_v24 = vcombine.low %v427_v11, %v431_v12 }
  0xb4   : > { %9706 = vmatpush1.bf16.msra.mxu0 %v11947_v17  ;;  %10198 = vmatpush1.bf16.msra.mxu1 %v11949_v18  ;;  %v12012_v17 = vcombine.high %v427_v11, %v431_v12  ;;  %v12014_v18 = vcombine.high %v428_v13, %v432_v14  ;;  %v484_v11 = vld [vmem:[%s13997_s22 + $0x788] sm:$0xff]  ;;  %v12061_v14 = vcombine.low %v476_v2, %v480_v3 }
  0xb5   : > { %9716 = vmatprep.subr.bf16.mxu0 %v11956_v19  ;;  %10208 = vmatprep.subr.bf16.mxu1 %v11958_v20  ;;  %v435_v19 = vld [vmem:[%s13997_s22 + $0x600] sm:$0xff]  ;;  %v488_v12 = vld [vmem:[%s13997_s22 + $0x7a8] sm:$0xff] }
  0xb6   : > { %v439_v20 = vld [vmem:[%s13997_s22 + $0x620] sm:$0xff] }
  0xb7   : > { %9708 = vmatmul.mubr.bf16.vlgmr.msra.gmra.mrb[0].mxu0 %v14093_v23  ;;  %10200 = vmatmul.mubr.bf16.vlgmr.msra.gmra.mrb[0].mxu1 %v14093_v23  ;;  %v12019_v63 = vcombine.low %v435_v19, %v439_v20 }
  0xb8   : > { %9717 = vmatpush1.bf16.msra.mxu0 %v11955_v26  ;;  %10209 = vmatpush1.bf16.msra.mxu1 %v11957_v27  ;;  %v12020_v26 = vcombine.high %v435_v19, %v439_v20  ;;  %v12022_v27 = vcombine.high %v436_v21, %v440_v22  ;;  %v1824_v19 = vcombine.high %v14036_v59, %v14036_v59  ;;  %v492_v20 = vld [vmem:[%s13997_s22 + $0x7c8] sm:$0xff] }
  0xb9   : > { %9718 = vmatprep.subr.bf16.mxu0 %v11964_v28  ;;  %10210 = vmatprep.subr.bf16.mxu1 %v11966_v29  ;;  %v443_v28 = vld [vmem:[%s13997_s22 + $0x640] sm:$0xff]  ;;  %v496_v21 = vld [vmem:[%s13997_s22 + $0x7e8] sm:$0xff] }
  0xba   : > { %9748 = vmatprep.mubr.bf16.mxu0 %v14101_v32  ;;  %10240 = vmatprep.mubr.bf16.mxu1 %v14101_v32  ;;  %v447_v29 = vld [vmem:[%s13997_s22 + $0x660] sm:$0xff]  ;;  %v500_v59 = vld [vmem:[%s13997_s22 + $0x808] sm:$0xff] }
  0xbb   : > { %v12027_v40 = vcombine.low %v443_v28, %v447_v29 }
  0xbc   : > { %9719 = vmatpush1.bf16.msra.mxu0 %v11963_v34  ;;  %10211 = vmatpush1.bf16.msra.mxu1 %v11965_v35  ;;  %v12028_v34 = vcombine.high %v443_v28, %v447_v29  ;;  %v12030_v35 = vcombine.high %v444_v30, %v448_v31  ;;  %v503_v28 = vld [vmem:[%s13997_s22 + $0x820] sm:$0xff]  ;;  %v14166_v29 = vrot.slane %v1824_v19, %v14032_v53  ;;  %v504_v30 = vld [vmem:[%s13997_s22 + $0x828] sm:$0xff] }
  0xbd   : > { %9720 = vmatprep.subr.bf16.mxu0 %v11972_v36  ;;  %10212 = vmatprep.subr.bf16.mxu1 %v11974_v37  ;;  %v451_v36 = vld [vmem:[%s13997_s22 + $0x680] sm:$0xff] }
  0xbe   : > { %v455_v37 = vld [vmem:[%s13997_s22 + $0x6a0] sm:$0xff] }
  0xbf   : > { %v12035_v49 = vcombine.low %v451_v36, %v455_v37  ;;  %v547_v19 = vld [vmem:[%s13997_s22 + $0x980] sm:$0xff] }
  0xc0   : > { %9721 = vmatpush1.bf16.msra.mxu0 %v11971_v42  ;;  %10213 = vmatpush1.bf16.msra.mxu1 %v11973_v44  ;;  %v12036_v42 = vcombine.high %v451_v36, %v455_v37  ;;  %v12038_v44 = vcombine.high %v452_v38, %v456_v39  ;;  %v511_v36 = vld [vmem:[%s13997_s22 + $0x860] sm:$0xff]  ;;  %v1840_v37 = vcombine.high %v14166_v29, %v14166_v29  ;;  %v508_v39 = vld [vmem:[%s13997_s22 + $0x848] sm:$0xff] }
  0xc1   : > { %9722 = vmatprep.subr.bf16.mxu0 %v11980_v45  ;;  %10214 = vmatprep.subr.bf16.mxu1 %v11982_v46  ;;  %v459_v45 = vld [vmem:[%s13997_s22 + $0x6c0] sm:$0xff]  ;;  %v14176_v38 = vcombine.high %v14093_v23, %v14093_v23 }
  0xc2   : > { %v463_v46 = vld [vmem:[%s13997_s22 + $0x6e0] sm:$0xff] }
  0xc3   : > { %v12043_v58 = vcombine.low %v459_v45, %v463_v46 }
  0xc4   : > { %9723 = vmatpush1.bf16.msra.mxu0 %v11979_v51  ;;  %10215 = vmatpush1.bf16.msra.mxu1 %v11981_v52  ;;  %v12044_v51 = vcombine.high %v459_v45, %v463_v46  ;;  %v12046_v52 = vcombine.high %v460_v47, %v464_v48  ;;  %v515_v46 = vld [vmem:[%s13997_s22 + $0x880] sm:$0xff]  ;;  %v14183_v48 = vrot.slane %v1840_v37, %v14032_v53 }
  0xc5   : > { %9724 = vmatprep.subr.bf16.mxu0 %v11988_v54  ;;  %10216 = vmatprep.subr.bf16.mxu1 %v11990_v55  ;;  %v467_v54 = vld [vmem:[%s13997_s22 + $0x700] sm:$0xff] }
  0xc6   : > { %v471_v55 = vld [vmem:[%s13997_s22 + $0x720] sm:$0xff] }
  0xc7   : > { %v12051_v4 = vcombine.low %v467_v54, %v471_v55  ;;  %v519_v47 = vld [vmem:[%s13997_s22 + $0x8a0] sm:$0xff] }
  0xc8   : > { %9725 = vmatpush1.bf16.msra.mxu0 %v11987_v61  ;;  %10217 = vmatpush1.bf16.msra.mxu1 %v11989_v62  ;;  %v12052_v61 = vcombine.high %v467_v54, %v471_v55  ;;  %v12054_v62 = vcombine.high %v468_v56, %v472_v57  ;;  %v12100_v54 = vcombine.high %v515_v46, %v519_v47  ;;  %v523_v56 = vld [vmem:[%s13997_s22 + $0x8c0] sm:$0xff] }
  0xc9   : > { %9726 = vmatprep.subr.bf16.mxu0 %v11996_v0  ;;  %10218 = vmatprep.subr.bf16.mxu1 %v11998_v1  ;;  %v475_v0 = vld [vmem:[%s13997_s22 + $0x740] sm:$0xff] }
  0xca   : > { %v479_v1 = vld [vmem:[%s13997_s22 + $0x760] sm:$0xff] }
  0xcb   : > { %v12059_v13 = vcombine.low %v475_v0, %v479_v1  ;;  %v527_v57 = vld [vmem:[%s13997_s22 + $0x8e0] sm:$0xff] }
  0xcc   : > { %9727 = vmatpush1.bf16.msra.mxu0 %v11995_v6  ;;  %10219 = vmatpush1.bf16.msra.mxu1 %v11997_v7  ;;  %v12060_v6 = vcombine.high %v475_v0, %v479_v1  ;;  %v12062_v7 = vcombine.high %v476_v2, %v480_v3  ;;  %v12108_v0 = vcombine.high %v523_v56, %v527_v57  ;;  %v531_v2 = vld [vmem:[%s13997_s22 + $0x900] sm:$0xff] }
  0xcd   : > { %9728 = vmatprep.subr.bf16.mxu0 %v12004_v8  ;;  %10220 = vmatprep.subr.bf16.mxu1 %v12006_v10  ;;  %v483_v8 = vld [vmem:[%s13997_s22 + $0x780] sm:$0xff] }
  0xce   : > { %v487_v10 = vld [vmem:[%s13997_s22 + $0x7a0] sm:$0xff] }
  0xcf   : > { %v12067_v22 = vcombine.low %v483_v8, %v487_v10  ;;  %v535_v3 = vld [vmem:[%s13997_s22 + $0x920] sm:$0xff] }
  0xd0   : > { %9729 = vmatpush1.bf16.msra.mxu0 %v12003_v15  ;;  %10221 = vmatpush1.bf16.msra.mxu1 %v12005_v16  ;;  %v12068_v15 = vcombine.high %v483_v8, %v487_v10  ;;  %v12070_v16 = vcombine.high %v484_v11, %v488_v12  ;;  %v12116_v8 = vcombine.high %v531_v2, %v535_v3  ;;  %v567_v37 = vld [vmem:[%s13997_s22 + $0xa20] sm:$0xff] }
  0xd1   : > { %9730 = vmatprep.subr.bf16.mxu0 %v12012_v17  ;;  %10222 = vmatprep.subr.bf16.mxu1 %v12014_v18  ;;  %v491_v17 = vld [vmem:[%s13997_s22 + $0x7c0] sm:$0xff] }
  0xd2   : > { %v495_v18 = vld [vmem:[%s13997_s22 + $0x7e0] sm:$0xff] }
  0xd3   : > { %v12075_v31 = vcombine.low %v491_v17, %v495_v18 }
  0xd4   : > { %9731 = vmatpush1.bf16.msra.mxu0 %v12011_v24  ;;  %10223 = vmatpush1.bf16.msra.mxu1 %v12013_v25  ;;  %v12069_v24 = vcombine.low %v484_v11, %v488_v12  ;;  %v12076_v25 = vcombine.high %v491_v17, %v495_v18  ;;  %v539_v11 = vld [vmem:[%s13997_s22 + $0x940] sm:$0xff] }
  0xd5   : > { %9732 = vmatprep.subr.bf16.mxu0 %v12020_v26  ;;  %10224 = vmatprep.subr.bf16.mxu1 %v12022_v27  ;;  %v12078_v26 = vcombine.high %v492_v20, %v496_v21  ;;  %v499_v27 = vld [vmem:[%s13997_s22 + $0x800] sm:$0xff] }
  0xd6   : > { %v543_v12 = vld [vmem:[%s13997_s22 + $0x960] sm:$0xff] }
  0xd7   : > { %v12124_v17 = vcombine.high %v539_v11, %v543_v12 }
  0xd8   : > { %9733 = vmatpush1.bf16.msra.mxu0 %v12019_v63  ;;  %10225 = vmatpush1.bf16.msra.mxu1 %v12021_v33  ;;  %v12077_v63 = vcombine.low %v492_v20, %v496_v21  ;;  %v12084_v33 = vcombine.high %v499_v27, %v503_v28  ;;  %v551_v20 = vld [vmem:[%s13997_s22 + $0x9a0] sm:$0xff]  ;;  %v548_v21 = vld [vmem:[%s13997_s22 + $0x988] sm:$0xff] }
  0xd9   : > { %9734 = vmatprep.subr.bf16.mxu0 %v12028_v34  ;;  %10226 = vmatprep.subr.bf16.mxu1 %v12030_v35  ;;  %v12086_v34 = vcombine.high %v500_v59, %v504_v30  ;;  %v507_v35 = vld [vmem:[%s13997_s22 + $0x840] sm:$0xff] }
  0xdc   : > { %9735 = vmatpush1.bf16.msra.mxu0 %v12027_v40  ;;  %10227 = vmatpush1.bf16.msra.mxu1 %v12029_v41  ;;  %v512_v40 = vld [vmem:[%s13997_s22 + $0x868] sm:$0xff]  ;;  %v12083_v41 = vcombine.low %v499_v27, %v503_v28  ;;  %v555_v28 = vld [vmem:[%s13997_s22 + $0x9c0] sm:$0xff] }
  0xdd   : > { %9736 = vmatprep.subr.bf16.mxu0 %v12036_v42  ;;  %10228 = vmatprep.subr.bf16.mxu1 %v12038_v44  ;;  %v12085_v42 = vcombine.low %v500_v59, %v504_v30  ;;  %v12092_v44 = vcombine.high %v507_v35, %v511_v36  ;;  %v12094_v45 = vcombine.high %v508_v39, %v512_v40  ;;  %v559_v59 = vld [vmem:[%s13997_s22 + $0x9e0] sm:$0xff]  ;;  %v556_v30 = vld [vmem:[%s13997_s22 + $0x9c8] sm:$0xff] }
  0xe0   : > { %9737 = vmatpush1.bf16.msra.mxu0 %v12035_v49  ;;  %10229 = vmatpush1.bf16.msra.mxu1 %v12037_v50  ;;  %v516_v49 = vld [vmem:[%s13997_s22 + $0x888] sm:$0xff] }
  0xe1   : > { %9738 = vmatprep.subr.bf16.mxu0 %v12044_v51  ;;  %10230 = vmatprep.subr.bf16.mxu1 %v12046_v52  ;;  %v520_v50 = vld [vmem:[%s13997_s22 + $0x8a8] sm:$0xff]  ;;  %v12091_v51 = vcombine.low %v507_v35, %v511_v36  ;;  %v12093_v52 = vcombine.low %v508_v39, %v512_v40  ;;  %v563_v36 = vld [vmem:[%s13997_s22 + $0xa00] sm:$0xff] }
  0xe2   : > { %v12102_v55 = vcombine.high %v516_v49, %v520_v50  ;;  %v564_v39 = vld [vmem:[%s13997_s22 + $0xa08] sm:$0xff] }
  0xe3   : > { %v568_v40 = vld [vmem:[%s13997_s22 + $0xa28] sm:$0xff] }
  0xe4   : > { %9739 = vmatpush1.bf16.msra.mxu0 %v12043_v58  ;;  %10231 = vmatpush1.bf16.msra.mxu1 %v12045_v60  ;;  %v524_v58 = vld [vmem:[%s13997_s22 + $0x8c8] sm:$0xff] }
  0xe5   : > { %9740 = vmatprep.subr.bf16.mxu0 %v12052_v61  ;;  %10232 = vmatprep.subr.bf16.mxu1 %v12054_v62  ;;  %v528_v60 = vld [vmem:[%s13997_s22 + $0x8e8] sm:$0xff]  ;;  %v12099_v61 = vcombine.low %v515_v46, %v519_v47  ;;  %v12101_v62 = vcombine.low %v516_v49, %v520_v50  ;;  %v571_v46 = vld [vmem:[%s13997_s22 + $0xa40] sm:$0xff] }
  0xe6   : > { %v12110_v1 = vcombine.high %v524_v58, %v528_v60  ;;  %v575_v47 = vld [vmem:[%s13997_s22 + $0xa60] sm:$0xff]  ;;  %v572_v49 = vld [vmem:[%s13997_s22 + $0xa48] sm:$0xff] }
  0xe7   : > { %v576_v50 = vld [vmem:[%s13997_s22 + $0xa68] sm:$0xff] }
  0xe8   : > { %9741 = vmatpush1.bf16.msra.mxu0 %v12051_v4  ;;  %10233 = vmatpush1.bf16.msra.mxu1 %v12053_v5  ;;  %v532_v4 = vld [vmem:[%s13997_s22 + $0x908] sm:$0xff] }
  0xe9   : > { %9742 = vmatprep.subr.bf16.mxu0 %v12060_v6  ;;  %10234 = vmatprep.subr.bf16.mxu1 %v12062_v7  ;;  %v536_v5 = vld [vmem:[%s13997_s22 + $0x928] sm:$0xff]  ;;  %v12107_v6 = vcombine.low %v523_v56, %v527_v57  ;;  %v12109_v7 = vcombine.low %v524_v58, %v528_v60  ;;  %v579_v56 = vld [vmem:[%s13997_s22 + $0xa80] sm:$0xff] }
  0xea   : > { %v12118_v10 = vcombine.high %v532_v4, %v536_v5  ;;  %v583_v57 = vld [vmem:[%s13997_s22 + $0xaa0] sm:$0xff]  ;;  %v580_v58 = vld [vmem:[%s13997_s22 + $0xa88] sm:$0xff] }
  0xeb   : > { %v584_v60 = vld [vmem:[%s13997_s22 + $0xaa8] sm:$0xff] }
  0xec   : > { %9743 = vmatpush1.bf16.msra.mxu0 %v12059_v13  ;;  %10235 = vmatpush1.bf16.msra.mxu1 %v12061_v14  ;;  %v540_v13 = vld [vmem:[%s13997_s22 + $0x948] sm:$0xff] }
  0xed   : > { %9744 = vmatprep.subr.bf16.mxu0 %v12068_v15  ;;  %10236 = vmatprep.subr.bf16.mxu1 %v12070_v16  ;;  %v544_v14 = vld [vmem:[%s13997_s22 + $0x968] sm:$0xff]  ;;  %v12115_v15 = vcombine.low %v531_v2, %v535_v3  ;;  %v12117_v16 = vcombine.low %v532_v4, %v536_v5  ;;  %v587_v2 = vld [vmem:[%s13997_s22 + $0xac0] sm:$0xff] }
  0xee   : > { %v12126_v18 = vcombine.high %v540_v13, %v544_v14  ;;  %v591_v3 = vld [vmem:[%s13997_s22 + $0xae0] sm:$0xff]  ;;  %v588_v4 = vld [vmem:[%s13997_s22 + $0xac8] sm:$0xff] }
  0xef   : > { %v592_v5 = vld [vmem:[%s13997_s22 + $0xae8] sm:$0xff] }
  0xf0   : > { %9745 = vmatpush1.bf16.msra.mxu0 %v12067_v22  ;;  %10237 = vmatpush1.bf16.msra.mxu1 %v12069_v24  ;;  %v552_v22 = vld [vmem:[%s13997_s22 + $0x9a8] sm:$0xff]  ;;  %v12123_v24 = vcombine.low %v539_v11, %v543_v12  ;;  %v595_v11 = vld [vmem:[%s13997_s22 + $0xb00] sm:$0xff] }
  0xf1   : > { %9746 = vmatprep.subr.bf16.mxu0 %v12076_v25  ;;  %10238 = vmatprep.subr.bf16.mxu1 %v12078_v26  ;;  %v12125_v25 = vcombine.low %v540_v13, %v544_v14  ;;  %v12132_v26 = vcombine.high %v547_v19, %v551_v20  ;;  %v12134_v27 = vcombine.high %v548_v21, %v552_v22  ;;  %v599_v12 = vld [vmem:[%s13997_s22 + $0xb20] sm:$0xff]  ;;  %v596_v13 = vld [vmem:[%s13997_s22 + $0xb08] sm:$0xff] }
  0xf2   : > { %v600_v14 = vld [vmem:[%s13997_s22 + $0xb28] sm:$0xff] }
  0xf4   : > { %9747 = vmatpush1.bf16.msra.mxu0 %v12075_v31  ;;  %10239 = vmatpush1.bf16.msra.mxu1 %v12077_v63  ;;  %v560_v31 = vld [vmem:[%s13997_s22 + $0x9e8] sm:$0xff]  ;;  %v12131_v63 = vcombine.low %v547_v19, %v551_v20  ;;  %v603_v19 = vld [vmem:[%s13997_s22 + $0xb40] sm:$0xff] }
  0xf5   : > { %9757 = vmatprep.subr.bf16.mxu0 %v12084_v33  ;;  %10249 = vmatprep.subr.bf16.mxu1 %v12086_v34  ;;  %v12133_v33 = vcombine.low %v548_v21, %v552_v22  ;;  %v12140_v34 = vcombine.high %v555_v28, %v559_v59  ;;  %v12142_v35 = vcombine.high %v556_v30, %v560_v31  ;;  %v607_v20 = vld [vmem:[%s13997_s22 + $0xb60] sm:$0xff]  ;;  %v604_v21 = vld [vmem:[%s13997_s22 + $0xb48] sm:$0xff] }
  0xf6   : > { %v608_v22 = vld [vmem:[%s13997_s22 + $0xb68] sm:$0xff] }
  0xf7   : > { %9749 = vmatmul.mubr.bf16.vlgmr.msra.gmra.mrb[0].mxu0 %v14176_v38  ;;  %10241 = vmatmul.mubr.bf16.vlgmr.msra.gmra.mrb[0].mxu1 %v14176_v38 }
  0xf8   : > { %9758 = vmatpush1.bf16.msra.mxu0 %v12083_v41  ;;  %10250 = vmatpush1.bf16.msra.mxu1 %v12085_v42  ;;  %v12139_v41 = vcombine.low %v555_v28, %v559_v59  ;;  %v12141_v42 = vcombine.low %v556_v30, %v560_v31  ;;  %v611_v28 = vld [vmem:[%s13997_s22 + $0xb80] sm:$0xff]  ;;  %v612_v30 = vld [vmem:[%s13997_s22 + $0xb88] sm:$0xff] }
  0xf9   : > { %9759 = vmatprep.subr.bf16.mxu0 %v12092_v44  ;;  %10251 = vmatprep.subr.bf16.mxu1 %v12094_v45  ;;  %v12148_v44 = vcombine.high %v563_v36, %v567_v37  ;;  %v12150_v45 = vcombine.high %v564_v39, %v568_v40  ;;  %v615_v59 = vld [vmem:[%s13997_s22 + $0xba0] sm:$0xff]  ;;  %v616_v31 = vld [vmem:[%s13997_s22 + $0xba8] sm:$0xff] }
  0xfa   : > { %9789 = vmatprep.mubr.bf16.mxu0 %v14183_v48  ;;  %10281 = vmatprep.mubr.bf16.mxu1 %v14183_v48 }
  0xfc   : > { %9760 = vmatpush1.bf16.msra.mxu0 %v12091_v51  ;;  %10252 = vmatpush1.bf16.msra.mxu1 %v12093_v52  ;;  %v12147_v51 = vcombine.low %v563_v36, %v567_v37  ;;  %v12149_v52 = vcombine.low %v564_v39, %v568_v40  ;;  %v619_v36 = vld [vmem:[%s13997_s22 + $0xbc0] sm:$0xff]  ;;  %v620_v39 = vld [vmem:[%s13997_s22 + $0xbc8] sm:$0xff] }
  0xfd   : > { %9761 = vmatprep.subr.bf16.mxu0 %v12100_v54  ;;  %10253 = vmatprep.subr.bf16.mxu1 %v12102_v55  ;;  %v12156_v54 = vcombine.high %v571_v46, %v575_v47  ;;  %v12158_v55 = vcombine.high %v572_v49, %v576_v50  ;;  %v623_v37 = vld [vmem:[%s13997_s22 + $0xbe0] sm:$0xff]  ;;  %v624_v40 = vld [vmem:[%s13997_s22 + $0xbe8] sm:$0xff] }
 0x100   : > { %9762 = vmatpush1.bf16.msra.mxu0 %v12099_v61  ;;  %10254 = vmatpush1.bf16.msra.mxu1 %v12101_v62  ;;  %v12155_v61 = vcombine.low %v571_v46, %v575_v47  ;;  %v12157_v62 = vcombine.low %v572_v49, %v576_v50  ;;  %v627_v46 = vld [vmem:[%s13997_s22 + $0xc00] sm:$0xff]  ;;  %v628_v49 = vld [vmem:[%s13997_s22 + $0xc08] sm:$0xff] }
 0x101   : > { %9763 = vmatprep.subr.bf16.mxu0 %v12108_v0  ;;  %10255 = vmatprep.subr.bf16.mxu1 %v12110_v1  ;;  %v12164_v0 = vcombine.high %v579_v56, %v583_v57  ;;  %v12166_v1 = vcombine.high %v580_v58, %v584_v60  ;;  %v631_v47 = vld [vmem:[%s13997_s22 + $0xc20] sm:$0xff]  ;;  %v632_v50 = vld [vmem:[%s13997_s22 + $0xc28] sm:$0xff] }
 0x104   : > { %9764 = vmatpush1.bf16.msra.mxu0 %v12107_v6  ;;  %10256 = vmatpush1.bf16.msra.mxu1 %v12109_v7  ;;  %v12163_v6 = vcombine.low %v579_v56, %v583_v57  ;;  %v12165_v7 = vcombine.low %v580_v58, %v584_v60  ;;  %v635_v56 = vld [vmem:[%s13997_s22 + $0xc40] sm:$0xff]  ;;  %v14251_v58 = vrot.slane %v14166_v29, %v14032_v53  ;;  %v636_v60 = vld [vmem:[%s13997_s22 + $0xc48] sm:$0xff] }
 0x105   : > { %9765 = vmatprep.subr.bf16.mxu0 %v12116_v8  ;;  %10257 = vmatprep.subr.bf16.mxu1 %v12118_v10  ;;  %v12172_v8 = vcombine.high %v587_v2, %v591_v3  ;;  %v12174_v10 = vcombine.high %v588_v4, %v592_v5  ;;  %v639_v57 = vld [vmem:[%s13997_s22 + $0xc60] sm:$0xff]  ;;  %v644_v29 = vld [vmem:[%s13997_s22 + $0xc88] sm:$0xff] }
 0x108   : > { %9766 = vmatpush1.bf16.msra.mxu0 %v12115_v15  ;;  %10258 = vmatpush1.bf16.msra.mxu1 %v12117_v16  ;;  %v12171_v15 = vcombine.low %v587_v2, %v591_v3  ;;  %v12173_v16 = vcombine.low %v588_v4, %v592_v5  ;;  %v643_v3 = vld [vmem:[%s13997_s22 + $0xc80] sm:$0xff]  ;;  %v14259_v5 = vcombine.high %v14183_v48, %v14183_v48 }
 0x109   : > { %9767 = vmatprep.subr.bf16.mxu0 %v12124_v17  ;;  %10259 = vmatprep.subr.bf16.mxu1 %v12126_v18  ;;  %v12180_v17 = vcombine.high %v595_v11, %v599_v12  ;;  %v12182_v18 = vcombine.high %v596_v13, %v600_v14  ;;  %v647_v4 = vld [vmem:[%s13997_s22 + $0xca0] sm:$0xff] }
 0x10c   : > { %9768 = vmatpush1.bf16.msra.mxu0 %v12123_v24  ;;  %10260 = vmatpush1.bf16.msra.mxu1 %v12125_v25  ;;  %v12179_v24 = vcombine.low %v595_v11, %v599_v12  ;;  %v12181_v25 = vcombine.low %v596_v13, %v600_v14  ;;  %v651_v12 = vld [vmem:[%s13997_s22 + $0xcc0] sm:$0xff]  ;;  %v652_v14 = vld [vmem:[%s13997_s22 + $0xcc8] sm:$0xff] }
 0x10d   : > { %9769 = vmatprep.subr.bf16.mxu0 %v12132_v26  ;;  %10261 = vmatprep.subr.bf16.mxu1 %v12134_v27  ;;  %v12188_v26 = vcombine.high %v603_v19, %v607_v20  ;;  %v12190_v27 = vcombine.high %v604_v21, %v608_v22  ;;  %v655_v13 = vld [vmem:[%s13997_s22 + $0xce0] sm:$0xff] }
 0x110   : > { %9770 = vmatpush1.bf16.msra.mxu0 %v12131_v63  ;;  %10262 = vmatpush1.bf16.msra.mxu1 %v12133_v33  ;;  %v12187_v63 = vcombine.low %v603_v19, %v607_v20  ;;  %v12189_v33 = vcombine.low %v604_v21, %v608_v22  ;;  %v659_v20 = vld [vmem:[%s13997_s22 + $0xd00] sm:$0xff]  ;;  %v660_v22 = vld [vmem:[%s13997_s22 + $0xd08] sm:$0xff] }
 0x111   : > { %9771 = vmatprep.subr.bf16.mxu0 %v12140_v34  ;;  %10263 = vmatprep.subr.bf16.mxu1 %v12142_v35  ;;  %v12196_v34 = vcombine.high %v611_v28, %v615_v59  ;;  %v12198_v35 = vcombine.high %v612_v30, %v616_v31  ;;  %v663_v21 = vld [vmem:[%s13997_s22 + $0xd20] sm:$0xff] }
 0x114   : > { %9772 = vmatpush1.bf16.msra.mxu0 %v12139_v41  ;;  %10264 = vmatpush1.bf16.msra.mxu1 %v12141_v42  ;;  %v12195_v41 = vcombine.low %v611_v28, %v615_v59  ;;  %v12197_v42 = vcombine.low %v612_v30, %v616_v31  ;;  %v667_v59 = vld [vmem:[%s13997_s22 + $0xd40] sm:$0xff]  ;;  %v668_v31 = vld [vmem:[%s13997_s22 + $0xd48] sm:$0xff] }
 0x115   : > { %9773 = vmatprep.subr.bf16.mxu0 %v12148_v44  ;;  %10265 = vmatprep.subr.bf16.mxu1 %v12150_v45  ;;  %v12204_v44 = vcombine.high %v619_v36, %v623_v37  ;;  %v12206_v45 = vcombine.high %v620_v39, %v624_v40  ;;  %v671_v30 = vld [vmem:[%s13997_s22 + $0xd60] sm:$0xff] }
 0x118   : > { %9774 = vmatpush1.bf16.msra.mxu0 %v12147_v51  ;;  %10266 = vmatpush1.bf16.msra.mxu1 %v12149_v52  ;;  %v12203_v51 = vcombine.low %v619_v36, %v623_v37  ;;  %v12205_v52 = vcombine.low %v620_v39, %v624_v40  ;;  %v675_v37 = vld [vmem:[%s13997_s22 + $0xd80] sm:$0xff]  ;;  %v676_v40 = vld [vmem:[%s13997_s22 + $0xd88] sm:$0xff] }
 0x119   : > { %9775 = vmatprep.subr.bf16.mxu0 %v12156_v54  ;;  %10267 = vmatprep.subr.bf16.mxu1 %v12158_v55  ;;  %v12212_v54 = vcombine.high %v627_v46, %v631_v47  ;;  %v12214_v55 = vcombine.high %v628_v49, %v632_v50  ;;  %v679_v39 = vld [vmem:[%s13997_s22 + $0xda0] sm:$0xff] }
 0x11c   : > { %9776 = vmatpush1.bf16.msra.mxu0 %v12155_v61  ;;  %10268 = vmatpush1.bf16.msra.mxu1 %v12157_v62  ;;  %v640_v61 = vld [vmem:[%s13997_s22 + $0xc68] sm:$0xff]  ;;  %v12211_v62 = vcombine.low %v627_v46, %v631_v47  ;;  %v683_v47 = vld [vmem:[%s13997_s22 + $0xdc0] sm:$0xff] }
 0x11d   : > { %9777 = vmatprep.subr.bf16.mxu0 %v12164_v0  ;;  %10269 = vmatprep.subr.bf16.mxu1 %v12166_v1  ;;  %v12213_v0 = vcombine.low %v628_v49, %v632_v50  ;;  %v12220_v1 = vcombine.high %v635_v56, %v639_v57  ;;  %v12222_v2 = vcombine.high %v636_v60, %v640_v61  ;;  %v687_v49 = vld [vmem:[%s13997_s22 + $0xde0] sm:$0xff]  ;;  %v684_v50 = vld [vmem:[%s13997_s22 + $0xdc8] sm:$0xff] }
 0x120   : > { %9778 = vmatpush1.bf16.msra.mxu0 %v12163_v6  ;;  %10270 = vmatpush1.bf16.msra.mxu1 %v12165_v7  ;;  %v648_v6 = vld [vmem:[%s13997_s22 + $0xca8] sm:$0xff]  ;;  %v12219_v7 = vcombine.low %v635_v56, %v639_v57  ;;  %v691_v57 = vld [vmem:[%s13997_s22 + $0xe00] sm:$0xff] }
 0x121   : > { %9779 = vmatprep.subr.bf16.mxu0 %v12172_v8  ;;  %10271 = vmatprep.subr.bf16.mxu1 %v12174_v10  ;;  %v12221_v8 = vcombine.low %v636_v60, %v640_v61  ;;  %v12228_v10 = vcombine.high %v643_v3, %v647_v4  ;;  %v12230_v11 = vcombine.high %v644_v29, %v648_v6  ;;  %v695_v60 = vld [vmem:[%s13997_s22 + $0xe20] sm:$0xff]  ;;  %v692_v61 = vld [vmem:[%s13997_s22 + $0xe08] sm:$0xff] }
 0x124   : > { %9780 = vmatpush1.bf16.msra.mxu0 %v12171_v15  ;;  %10272 = vmatpush1.bf16.msra.mxu1 %v12173_v16  ;;  %v656_v15 = vld [vmem:[%s13997_s22 + $0xce8] sm:$0xff]  ;;  %v12227_v16 = vcombine.low %v643_v3, %v647_v4  ;;  %v699_v4 = vld [vmem:[%s13997_s22 + $0xe40] sm:$0xff] }
 0x125   : > { %9781 = vmatprep.subr.bf16.mxu0 %v12180_v17  ;;  %10273 = vmatprep.subr.bf16.mxu1 %v12182_v18  ;;  %v12229_v17 = vcombine.low %v644_v29, %v648_v6  ;;  %v12236_v18 = vcombine.high %v651_v12, %v655_v13  ;;  %v12238_v19 = vcombine.high %v652_v14, %v656_v15  ;;  %v703_v29 = vld [vmem:[%s13997_s22 + $0xe60] sm:$0xff]  ;;  %v700_v6 = vld [vmem:[%s13997_s22 + $0xe48] sm:$0xff] }
 0x128   : > { %9782 = vmatpush1.bf16.msra.mxu0 %v12179_v24  ;;  %10274 = vmatpush1.bf16.msra.mxu1 %v12181_v25  ;;  %v664_v24 = vld [vmem:[%s13997_s22 + $0xd28] sm:$0xff]  ;;  %v12235_v25 = vcombine.low %v651_v12, %v655_v13  ;;  %v707_v13 = vld [vmem:[%s13997_s22 + $0xe80] sm:$0xff] }
 0x129   : > { %9783 = vmatprep.subr.bf16.mxu0 %v12188_v26  ;;  %10275 = vmatprep.subr.bf16.mxu1 %v12190_v27  ;;  %v12237_v26 = vcombine.low %v652_v14, %v656_v15  ;;  %v12244_v27 = vcombine.high %v659_v20, %v663_v21  ;;  %v12246_v28 = vcombine.high %v660_v22, %v664_v24  ;;  %v711_v14 = vld [vmem:[%s13997_s22 + $0xea0] sm:$0xff]  ;;  %v708_v15 = vld [vmem:[%s13997_s22 + $0xe88] sm:$0xff] }
 0x12c   : > { %9784 = vmatpush1.bf16.msra.mxu0 %v12187_v63  ;;  %10276 = vmatpush1.bf16.msra.mxu1 %v12189_v33  ;;  %v672_v63 = vld [vmem:[%s13997_s22 + $0xd68] sm:$0xff]  ;;  %v12243_v33 = vcombine.low %v659_v20, %v663_v21  ;;  %v715_v21 = vld [vmem:[%s13997_s22 + $0xec0] sm:$0xff] }
 0x12d   : > { %9785 = vmatprep.subr.bf16.mxu0 %v12196_v34  ;;  %10277 = vmatprep.subr.bf16.mxu1 %v12198_v35  ;;  %v12245_v34 = vcombine.low %v660_v22, %v664_v24  ;;  %v12252_v35 = vcombine.high %v667_v59, %v671_v30  ;;  %v12254_v36 = vcombine.high %v668_v31, %v672_v63  ;;  %v719_v22 = vld [vmem:[%s13997_s22 + $0xee0] sm:$0xff]  ;;  %v716_v24 = vld [vmem:[%s13997_s22 + $0xec8] sm:$0xff] }
 0x130   : > { %9786 = vmatpush1.bf16.msra.mxu0 %v12195_v41  ;;  %10278 = vmatpush1.bf16.msra.mxu1 %v12197_v42  ;;  %v680_v41 = vld [vmem:[%s13997_s22 + $0xda8] sm:$0xff]  ;;  %v12251_v42 = vcombine.low %v667_v59, %v671_v30  ;;  %v723_v30 = vld [vmem:[%s13997_s22 + $0xf00] sm:$0xff] }
 0x131   : > { %9787 = vmatprep.subr.bf16.mxu0 %v12204_v44  ;;  %10279 = vmatprep.subr.bf16.mxu1 %v12206_v45  ;;  %v12253_v44 = vcombine.low %v668_v31, %v672_v63  ;;  %v12260_v45 = vcombine.high %v675_v37, %v679_v39  ;;  %v12262_v46 = vcombine.high %v676_v40, %v680_v41  ;;  %v727_v31 = vld [vmem:[%s13997_s22 + $0xf20] sm:$0xff]  ;;  %v724_v63 = vld [vmem:[%s13997_s22 + $0xf08] sm:$0xff] }
 0x134   : > { %9788 = vmatpush1.bf16.msra.mxu0 %v12203_v51  ;;  %10280 = vmatpush1.bf16.msra.mxu1 %v12205_v52  ;;  %v688_v51 = vld [vmem:[%s13997_s22 + $0xde8] sm:$0xff]  ;;  %v12259_v52 = vcombine.low %v675_v37, %v679_v39  ;;  %v731_v39 = vld [vmem:[%s13997_s22 + $0xf40] sm:$0xff] }
 0x135   : > { %9798 = vmatprep.subr.bf16.mxu0 %v12212_v54  ;;  %10290 = vmatprep.subr.bf16.mxu1 %v12214_v55  ;;  %v12261_v54 = vcombine.low %v676_v40, %v680_v41  ;;  %v12268_v55 = vcombine.high %v683_v47, %v687_v49  ;;  %v12270_v56 = vcombine.high %v684_v50, %v688_v51  ;;  %v735_v40 = vld [vmem:[%s13997_s22 + $0xf60] sm:$0xff]  ;;  %v732_v41 = vld [vmem:[%s13997_s22 + $0xf48] sm:$0xff] }
 0x137   : > { %9790 = vmatmul.mubr.bf16.vlgmr.msra.gmra.mrb[0].mxu0 %v14251_v58  ;;  %10282 = vmatmul.mubr.bf16.vlgmr.msra.gmra.mrb[0].mxu1 %v14251_v58 }
 0x138   : > { %9799 = vmatpush1.bf16.msra.mxu0 %v12211_v62  ;;  %10291 = vmatpush1.bf16.msra.mxu1 %v12213_v0  ;;  %v696_v62 = vld [vmem:[%s13997_s22 + $0xe28] sm:$0xff]  ;;  %v12267_v0 = vcombine.low %v683_v47, %v687_v49  ;;  %v739_v49 = vld [vmem:[%s13997_s22 + $0xf80] sm:$0xff] }
 0x139   : > { %9800 = vmatprep.subr.bf16.mxu0 %v12220_v1  ;;  %10292 = vmatprep.subr.bf16.mxu1 %v12222_v2  ;;  %v12269_v1 = vcombine.low %v684_v50, %v688_v51  ;;  %v12276_v2 = vcombine.high %v691_v57, %v695_v60  ;;  %v12278_v3 = vcombine.high %v692_v61, %v696_v62  ;;  %v743_v50 = vld [vmem:[%s13997_s22 + $0xfa0] sm:$0xff]  ;;  %v740_v51 = vld [vmem:[%s13997_s22 + $0xf88] sm:$0xff] }
 0x13a   : > { %9830 = vmatprep.mubr.bf16.mxu0 %v14259_v5  ;;  %10322 = vmatprep.mubr.bf16.mxu1 %v14259_v5 }
 0x13c   : > { %9801 = vmatpush1.bf16.msra.mxu0 %v12219_v7  ;;  %10293 = vmatpush1.bf16.msra.mxu1 %v12221_v8  ;;  %v704_v7 = vld [vmem:[%s13997_s22 + $0xe68] sm:$0xff]  ;;  %v12275_v8 = vcombine.low %v691_v57, %v695_v60  ;;  %v747_v60 = vld [vmem:[%s13997_s22 + $0xfc0] sm:$0xff] }
 0x13d   : > { %9802 = vmatprep.subr.bf16.mxu0 %v12228_v10  ;;  %10294 = vmatprep.subr.bf16.mxu1 %v12230_v11  ;;  %v12277_v10 = vcombine.low %v692_v61, %v696_v62  ;;  %v12284_v11 = vcombine.high %v699_v4, %v703_v29  ;;  %v12286_v12 = vcombine.high %v700_v6, %v704_v7  ;;  %v751_v61 = vld [vmem:[%s13997_s22 + $0xfe0] sm:$0xff]  ;;  %v748_v62 = vld [vmem:[%s13997_s22 + $0xfc8] sm:$0xff] }
 0x140   : > { %9803 = vmatpush1.bf16.msra.mxu0 %v12227_v16  ;;  %10295 = vmatpush1.bf16.msra.mxu1 %v12229_v17  ;;  %v712_v16 = vld [vmem:[%s13997_s22 + $0xea8] sm:$0xff]  ;;  %v12283_v17 = vcombine.low %v699_v4, %v703_v29  ;;  %v12332_v4 = vcombine.high %v747_v60, %v751_v61 }
 0x141   : > { %9804 = vmatprep.subr.bf16.mxu0 %v12236_v18  ;;  %10296 = vmatprep.subr.bf16.mxu1 %v12238_v19  ;;  %v12285_v18 = vcombine.low %v700_v6, %v704_v7  ;;  %v12292_v19 = vcombine.high %v707_v13, %v711_v14  ;;  %v12294_v20 = vcombine.high %v708_v15, %v712_v16  ;;  %v755_v6 = vld [vmem:[%s13997_s22 + $0x1000] sm:$0xff] }
 0x142   : > { %v759_v7 = vld [vmem:[%s13997_s22 + $0x1020] sm:$0xff] }
 0x144   : > { %9805 = vmatpush1.bf16.msra.mxu0 %v12235_v25  ;;  %10297 = vmatpush1.bf16.msra.mxu1 %v12237_v26  ;;  %v720_v25 = vld [vmem:[%s13997_s22 + $0xee8] sm:$0xff]  ;;  %v12291_v26 = vcombine.low %v707_v13, %v711_v14  ;;  %v12340_v14 = vcombine.high %v755_v6, %v759_v7 }
 0x145   : > { %9806 = vmatprep.subr.bf16.mxu0 %v12244_v27  ;;  %10298 = vmatprep.subr.bf16.mxu1 %v12246_v28  ;;  %v12293_v27 = vcombine.low %v708_v15, %v712_v16  ;;  %v12300_v28 = vcombine.high %v715_v21, %v719_v22  ;;  %v12302_v59 = vcombine.high %v716_v24, %v720_v25  ;;  %v763_v16 = vld [vmem:[%s13997_s22 + $0x1040] sm:$0xff] }
 0x148   : > { %9807 = vmatpush1.bf16.msra.mxu0 %v12243_v33  ;;  %10299 = vmatpush1.bf16.msra.mxu1 %v12245_v34  ;;  %v728_v33 = vld [vmem:[%s13997_s22 + $0xf28] sm:$0xff]  ;;  %v12299_v34 = vcombine.low %v715_v21, %v719_v22  ;;  %v12339_v22 = vcombine.low %v755_v6, %v759_v7 }
 0x149   : > { %9808 = vmatprep.subr.bf16.mxu0 %v12252_v35  ;;  %10300 = vmatprep.subr.bf16.mxu1 %v12254_v36  ;;  %v12301_v35 = vcombine.low %v716_v24, %v720_v25  ;;  %v12308_v36 = vcombine.high %v723_v30, %v727_v31  ;;  %v12310_v37 = vcombine.high %v724_v63, %v728_v33  ;;  %v768_v21 = vld [vmem:[%s13997_s22 + $0x1068] sm:$0xff] }
 0x14a   : > { %v804_v6 = vld [vmem:[%s13997_s22 + $0x1188] sm:$0xff] }
 0x14b   : > { %v808_v7 = vld [vmem:[%s13997_s22 + $0x11a8] sm:$0xff] }
 0x14c   : > { %9809 = vmatpush1.bf16.msra.mxu0 %v12251_v42  ;;  %10301 = vmatpush1.bf16.msra.mxu1 %v12253_v44  ;;  %v736_v42 = vld [vmem:[%s13997_s22 + $0xf68] sm:$0xff]  ;;  %v12307_v44 = vcombine.low %v723_v30, %v727_v31 }
 0x14d   : > { %9810 = vmatprep.subr.bf16.mxu0 %v12260_v45  ;;  %10302 = vmatprep.subr.bf16.mxu1 %v12262_v46  ;;  %v12309_v45 = vcombine.low %v724_v63, %v728_v33  ;;  %v12316_v46 = vcombine.high %v731_v39, %v735_v40  ;;  %v12318_v47 = vcombine.high %v732_v41, %v736_v42  ;;  %v772_v30 = vld [vmem:[%s13997_s22 + $0x1088] sm:$0xff] }
 0x14e   : > { %v776_v31 = vld [vmem:[%s13997_s22 + $0x10a8] sm:$0xff] }
 0x150   : > { %9811 = vmatpush1.bf16.msra.mxu0 %v12259_v52  ;;  %10303 = vmatpush1.bf16.msra.mxu1 %v12261_v54  ;;  %v744_v52 = vld [vmem:[%s13997_s22 + $0xfa8] sm:$0xff]  ;;  %v12315_v54 = vcombine.low %v731_v39, %v735_v40 }
 0x151   : > { %9812 = vmatprep.subr.bf16.mxu0 %v12268_v55  ;;  %10304 = vmatprep.subr.bf16.mxu1 %v12270_v56  ;;  %v12317_v55 = vcombine.low %v732_v41, %v736_v42  ;;  %v12324_v56 = vcombine.high %v739_v49, %v743_v50  ;;  %v12326_v57 = vcombine.high %v740_v51, %v744_v52  ;;  %v780_v39 = vld [vmem:[%s13997_s22 + $0x10c8] sm:$0xff] }
 0x152   : > { %v784_v40 = vld [vmem:[%s13997_s22 + $0x10e8] sm:$0xff]  ;;  %v12357_v42 = vcombine.low %v772_v30, %v776_v31 }
 0x154   : > { %9813 = vmatpush1.bf16.msra.mxu0 %v12267_v0  ;;  %10305 = vmatpush1.bf16.msra.mxu1 %v12269_v1  ;;  %v752_v0 = vld [vmem:[%s13997_s22 + $0xfe8] sm:$0xff]  ;;  %v14319_v1 = vld [vmem:[#allocation2 + $0x8] sm:$0xff] }
 0x155   : > { %9814 = vmatprep.subr.bf16.mxu0 %v12276_v2  ;;  %10306 = vmatprep.subr.bf16.mxu1 %v12278_v3  ;;  %v12323_v2 = vcombine.low %v739_v49, %v743_v50  ;;  %v12325_v3 = vcombine.low %v740_v51, %v744_v52  ;;  %v12334_v29 = vcombine.high %v748_v62, %v752_v0  ;;  %v788_v49 = vld [vmem:[%s13997_s22 + $0x1108] sm:$0xff] }
 0x156   : > { %v12333_v13 = vcombine.low %v748_v62, %v752_v0  ;;  %v792_v50 = vld [vmem:[%s13997_s22 + $0x1128] sm:$0xff]  ;;  %v12365_v52 = vcombine.low %v780_v39, %v784_v40 }
 0x157   : > { %v12373_v0 = vcombine.low %v788_v49, %v792_v50 }
 0x158   : > { %9815 = vmatpush1.bf16.msra.mxu0 %v12275_v8  ;;  %10307 = vmatpush1.bf16.msra.mxu1 %v12277_v10  ;;  %v14325_v8 = vrot.slane %v14319_v1, %v14032_v53  ;;  %v756_v10 = vld [vmem:[%s13997_s22 + $0x1008] sm:$0xff] }
 0x159   : > { %9816 = vmatprep.subr.bf16.mxu0 %v12284_v11  ;;  %10308 = vmatprep.subr.bf16.mxu1 %v12286_v12  ;;  %v760_v11 = vld [vmem:[%s13997_s22 + $0x1028] sm:$0xff]  ;;  %v12331_v12 = vcombine.low %v747_v60, %v751_v61 }
 0x15a   : > { %v12342_v15 = vcombine.high %v756_v10, %v760_v11  ;;  %v12341_v24 = vcombine.low %v756_v10, %v760_v11  ;;  %v796_v60 = vld [vmem:[%s13997_s22 + $0x1148] sm:$0xff] }
 0x15b   : > { %v800_v61 = vld [vmem:[%s13997_s22 + $0x1168] sm:$0xff] }
 0x15c   : > { %9817 = vmatpush1.bf16.msra.mxu0 %v12283_v17  ;;  %10309 = vmatpush1.bf16.msra.mxu1 %v12285_v18  ;;  %v767_v17 = vld [vmem:[%s13997_s22 + $0x1060] sm:$0xff]  ;;  %v1888_v18 = vcombine.high %v14325_v8, %v14325_v8  ;;  %v12381_v11 = vcombine.low %v796_v60, %v800_v61 }
 0x15d   : > { %9818 = vmatprep.subr.bf16.mxu0 %v12292_v19  ;;  %10310 = vmatprep.subr.bf16.mxu1 %v12294_v20  ;;  %v14335_v19 = vcombine.high %v14251_v58, %v14251_v58  ;;  %v764_v20 = vld [vmem:[%s13997_s22 + $0x1048] sm:$0xff]  ;;  %v12348_v25 = vcombine.high %v763_v16, %v767_v17  ;;  %v12347_v63 = vcombine.low %v763_v16, %v767_v17 }
 0x15e   : > { %v12349_v33 = vcombine.low %v764_v20, %v768_v21  ;;  %v812_v16 = vld [vmem:[%s13997_s22 + $0x11c8] sm:$0xff] }
 0x15f   : > { %v816_v17 = vld [vmem:[%s13997_s22 + $0x11e8] sm:$0xff] }
 0x160   : > { %9819 = vmatpush1.bf16.msra.mxu0 %v12291_v26  ;;  %10311 = vmatpush1.bf16.msra.mxu1 %v12293_v27  ;;  %v12350_v26 = vcombine.high %v764_v20, %v768_v21  ;;  %v771_v27 = vld [vmem:[%s13997_s22 + $0x1080] sm:$0xff]  ;;  %v12389_v20 = vcombine.low %v804_v6, %v808_v7 }
 0x161   : > { %9820 = vmatprep.subr.bf16.mxu0 %v12300_v28  ;;  %10312 = vmatprep.subr.bf16.mxu1 %v12302_v59  ;;  %v775_v28 = vld [vmem:[%s13997_s22 + $0x10a0] sm:$0xff]  ;;  %v14342_v59 = vrot.slane %v1888_v18, %v14032_v53 }
 0x162   : > { %v12355_v41 = vcombine.low %v771_v27, %v775_v28 }
 0x164   : > { %9821 = vmatpush1.bf16.msra.mxu0 %v12299_v34  ;;  %10313 = vmatpush1.bf16.msra.mxu1 %v12301_v35  ;;  %v12356_v34 = vcombine.high %v771_v27, %v775_v28  ;;  %v12358_v35 = vcombine.high %v772_v30, %v776_v31  ;;  %v824_v27 = vld [vmem:[%s13997_s22 + $0x1228] sm:$0xff]  ;;  %v12397_v30 = vcombine.low %v812_v16, %v816_v17 }
 0x165   : > { %9822 = vmatprep.subr.bf16.mxu0 %v12308_v36  ;;  %10314 = vmatprep.subr.bf16.mxu1 %v12310_v37  ;;  %v779_v36 = vld [vmem:[%s13997_s22 + $0x10c0] sm:$0xff] }
 0x166   : > { %v783_v37 = vld [vmem:[%s13997_s22 + $0x10e0] sm:$0xff] }
 0x167   : > { %v12363_v51 = vcombine.low %v779_v36, %v783_v37 }
 0x168   : > { %9823 = vmatpush1.bf16.msra.mxu0 %v12307_v44  ;;  %10315 = vmatpush1.bf16.msra.mxu1 %v12309_v45  ;;  %v12364_v44 = vcombine.high %v779_v36, %v783_v37  ;;  %v12366_v45 = vcombine.high %v780_v39, %v784_v40  ;;  %v832_v36 = vld [vmem:[%s13997_s22 + $0x1268] sm:$0xff] }
 0x169   : > { %9824 = vmatprep.subr.bf16.mxu0 %v12316_v46  ;;  %10316 = vmatprep.subr.bf16.mxu1 %v12318_v47  ;;  %v787_v46 = vld [vmem:[%s13997_s22 + $0x1100] sm:$0xff] }
 0x16a   : > { %v791_v47 = vld [vmem:[%s13997_s22 + $0x1120] sm:$0xff] }
 0x16b   : > { %v12371_v62 = vcombine.low %v787_v46, %v791_v47 }
 0x16c   : > { %9825 = vmatpush1.bf16.msra.mxu0 %v12315_v54  ;;  %10317 = vmatpush1.bf16.msra.mxu1 %v12317_v55  ;;  %v12372_v54 = vcombine.high %v787_v46, %v791_v47  ;;  %v12374_v55 = vcombine.high %v788_v49, %v792_v50  ;;  %v840_v46 = vld [vmem:[%s13997_s22 + $0x12a8] sm:$0xff] }
 0x16d   : > { %9826 = vmatprep.subr.bf16.mxu0 %v12324_v56  ;;  %10318 = vmatprep.subr.bf16.mxu1 %v12326_v57  ;;  %v795_v56 = vld [vmem:[%s13997_s22 + $0x1140] sm:$0xff] }
 0x16e   : > { %v799_v57 = vld [vmem:[%s13997_s22 + $0x1160] sm:$0xff] }
 0x16f   : > { %v12379_v10 = vcombine.low %v795_v56, %v799_v57 }
 0x170   : > { %9827 = vmatpush1.bf16.msra.mxu0 %v12323_v2  ;;  %10319 = vmatpush1.bf16.msra.mxu1 %v12325_v3  ;;  %v12380_v2 = vcombine.high %v795_v56, %v799_v57  ;;  %v12382_v3 = vcombine.high %v796_v60, %v800_v61  ;;  %v848_v56 = vld [vmem:[%s13997_s22 + $0x12e8] sm:$0xff] }
 0x171   : > { %9828 = vmatprep.subr.bf16.mxu0 %v12332_v4  ;;  %10320 = vmatprep.subr.bf16.mxu1 %v12334_v29  ;;  %v803_v4 = vld [vmem:[%s13997_s22 + $0x1180] sm:$0xff] }
 0x172   : > { %v807_v29 = vld [vmem:[%s13997_s22 + $0x11a0] sm:$0xff] }
 0x173   : > { %v12387_v18 = vcombine.low %v803_v4, %v807_v29 }
 0x174   : > { %9829 = vmatpush1.bf16.msra.mxu0 %v12331_v12  ;;  %10321 = vmatpush1.bf16.msra.mxu1 %v12333_v13  ;;  %v12388_v12 = vcombine.high %v803_v4, %v807_v29  ;;  %v12390_v13 = vcombine.high %v804_v6, %v808_v7  ;;  %v856_v4 = vld [vmem:[%s13997_s22 + $0x1328] sm:$0xff] }
 0x175   : > { %9839 = vmatprep.subr.bf16.mxu0 %v12340_v14  ;;  %10331 = vmatprep.subr.bf16.mxu1 %v12342_v15  ;;  %v811_v14 = vld [vmem:[%s13997_s22 + $0x11c0] sm:$0xff] }
 0x176   : > { %v815_v15 = vld [vmem:[%s13997_s22 + $0x11e0] sm:$0xff] }
 0x177   : > { %9831 = vmatmul.mubr.bf16.vlgmr.msra.gmra.mrb[0].mxu0 %v14335_v19  ;;  %10323 = vmatmul.mubr.bf16.vlgmr.msra.gmra.mrb[0].mxu1 %v14335_v19  ;;  %v12396_v21 = vcombine.high %v811_v14, %v815_v15  ;;  %v12395_v28 = vcombine.low %v811_v14, %v815_v15  ;;  %v864_v14 = vld [vmem:[%s13997_s22 + $0x1368] sm:$0xff] }
 0x178   : > { %9840 = vmatpush1.bf16.msra.mxu0 %v12339_v22  ;;  %10332 = vmatpush1.bf16.msra.mxu1 %v12341_v24  ;;  %v12398_v22 = vcombine.high %v812_v16, %v816_v17  ;;  %v819_v24 = vld [vmem:[%s13997_s22 + $0x1200] sm:$0xff] }
 0x179   : > { %9841 = vmatprep.subr.bf16.mxu0 %v12348_v25  ;;  %10333 = vmatprep.subr.bf16.mxu1 %v12350_v26  ;;  %v823_v25 = vld [vmem:[%s13997_s22 + $0x1220] sm:$0xff]  ;;  %v820_v26 = vld [vmem:[%s13997_s22 + $0x1208] sm:$0xff] }
 0x17a   : > { %9871 = vmatprep.mubr.bf16.mxu0 %v14342_v59  ;;  %10363 = vmatprep.mubr.bf16.mxu1 %v14342_v59  ;;  %v12404_v31 = vcombine.high %v819_v24, %v823_v25  ;;  %v12403_v37 = vcombine.low %v819_v24, %v823_v25  ;;  %v12405_v39 = vcombine.low %v820_v26, %v824_v27  ;;  %v872_v24 = vld [vmem:[%s13997_s22 + $0x13a8] sm:$0xff] }
 0x17c   : > { %9842 = vmatpush1.bf16.msra.mxu0 %v12347_v63  ;;  %10334 = vmatpush1.bf16.msra.mxu1 %v12349_v33  ;;  %v12406_v63 = vcombine.high %v820_v26, %v824_v27  ;;  %v827_v33 = vld [vmem:[%s13997_s22 + $0x1240] sm:$0xff] }
 0x17d   : > { %9843 = vmatprep.subr.bf16.mxu0 %v12356_v34  ;;  %10335 = vmatprep.subr.bf16.mxu1 %v12358_v35  ;;  %v831_v34 = vld [vmem:[%s13997_s22 + $0x1260] sm:$0xff]  ;;  %v828_v35 = vld [vmem:[%s13997_s22 + $0x1248] sm:$0xff] }
 0x17e   : > { %v12412_v40 = vcombine.high %v827_v33, %v831_v34  ;;  %v12411_v47 = vcombine.low %v827_v33, %v831_v34  ;;  %v12413_v49 = vcombine.low %v828_v35, %v832_v36  ;;  %v880_v33 = vld [vmem:[%s13997_s22 + $0x13e8] sm:$0xff] }
 0x180   : > { %9844 = vmatpush1.bf16.msra.mxu0 %v12355_v41  ;;  %10336 = vmatpush1.bf16.msra.mxu1 %v12357_v42  ;;  %v12414_v41 = vcombine.high %v828_v35, %v832_v36  ;;  %v835_v42 = vld [vmem:[%s13997_s22 + $0x1280] sm:$0xff] }
 0x181   : > { %9845 = vmatprep.subr.bf16.mxu0 %v12364_v44  ;;  %10337 = vmatprep.subr.bf16.mxu1 %v12366_v45  ;;  %v839_v44 = vld [vmem:[%s13997_s22 + $0x12a0] sm:$0xff]  ;;  %v836_v45 = vld [vmem:[%s13997_s22 + $0x1288] sm:$0xff] }
 0x182   : > { %v12420_v50 = vcombine.high %v835_v42, %v839_v44  ;;  %v12419_v57 = vcombine.low %v835_v42, %v839_v44  ;;  %v12421_v60 = vcombine.low %v836_v45, %v840_v46  ;;  %v888_v42 = vld [vmem:[%s13997_s22 + $0x1428] sm:$0xff] }
 0x184   : > { %9846 = vmatpush1.bf16.msra.mxu0 %v12363_v51  ;;  %10338 = vmatpush1.bf16.msra.mxu1 %v12365_v52  ;;  %v12422_v51 = vcombine.high %v836_v45, %v840_v46  ;;  %v843_v52 = vld [vmem:[%s13997_s22 + $0x12c0] sm:$0xff] }
 0x185   : > { %9847 = vmatprep.subr.bf16.mxu0 %v12372_v54  ;;  %10339 = vmatprep.subr.bf16.mxu1 %v12374_v55  ;;  %v847_v54 = vld [vmem:[%s13997_s22 + $0x12e0] sm:$0xff]  ;;  %v844_v55 = vld [vmem:[%s13997_s22 + $0x12c8] sm:$0xff] }
 0x186   : > { %v12428_v61 = vcombine.high %v843_v52, %v847_v54  ;;  %v12427_v29 = vcombine.low %v843_v52, %v847_v54  ;;  %v12429_v6 = vcombine.low %v844_v55, %v848_v56  ;;  %v892_v52 = vld [vmem:[%s13997_s22 + $0x1448] sm:$0xff] }
 0x187   : > { %v896_v54 = vld [vmem:[%s13997_s22 + $0x1468] sm:$0xff] }
 0x188   : > { %9848 = vmatpush1.bf16.msra.mxu0 %v12371_v62  ;;  %10340 = vmatpush1.bf16.msra.mxu1 %v12373_v0  ;;  %v12430_v62 = vcombine.high %v844_v55, %v848_v56  ;;  %v851_v0 = vld [vmem:[%s13997_s22 + $0x1300] sm:$0xff] }
 0x189   : > { %9849 = vmatprep.subr.bf16.mxu0 %v12380_v2  ;;  %10341 = vmatprep.subr.bf16.mxu1 %v12382_v3  ;;  %v855_v2 = vld [vmem:[%s13997_s22 + $0x1320] sm:$0xff]  ;;  %v852_v3 = vld [vmem:[%s13997_s22 + $0x1308] sm:$0xff] }
 0x18a   : > { %v12436_v7 = vcombine.high %v851_v0, %v855_v2  ;;  %v12435_v15 = vcombine.low %v851_v0, %v855_v2  ;;  %v12437_v16 = vcombine.low %v852_v3, %v856_v4  ;;  %v14418_v0 = vcombine.high %v14342_v59, %v14342_v59  ;;  %v904_v2 = vld [vmem:[%s13997_s22 + $0x14a8] sm:$0xff] }
 0x18c   : > { %9850 = vmatpush1.bf16.msra.mxu0 %v12379_v10  ;;  %10342 = vmatpush1.bf16.msra.mxu1 %v12381_v11  ;;  %v12438_v10 = vcombine.high %v852_v3, %v856_v4  ;;  %v859_v11 = vld [vmem:[%s13997_s22 + $0x1340] sm:$0xff]  ;;  %v12477_v4 = vcombine.low %v892_v52, %v896_v54 }
 0x18d   : > { %9851 = vmatprep.subr.bf16.mxu0 %v12388_v12  ;;  %10343 = vmatprep.subr.bf16.mxu1 %v12390_v13  ;;  %v863_v12 = vld [vmem:[%s13997_s22 + $0x1360] sm:$0xff]  ;;  %v860_v13 = vld [vmem:[%s13997_s22 + $0x1348] sm:$0xff] }
 0x18e   : > { %v12444_v17 = vcombine.high %v859_v11, %v863_v12  ;;  %v12443_v25 = vcombine.low %v859_v11, %v863_v12  ;;  %v12445_v26 = vcombine.low %v860_v13, %v864_v14  ;;  %v908_v11 = vld [vmem:[%s13997_s22 + $0x14c8] sm:$0xff] }
 0x18f   : > { %v912_v12 = vld [vmem:[%s13997_s22 + $0x14e8] sm:$0xff] }
 0x190   : > { %9852 = vmatpush1.bf16.msra.mxu0 %v12387_v18  ;;  %10344 = vmatpush1.bf16.msra.mxu1 %v12389_v20  ;;  %v12446_v18 = vcombine.high %v860_v13, %v864_v14  ;;  %v867_v20 = vld [vmem:[%s13997_s22 + $0x1380] sm:$0xff] }
 0x191   : > { %9853 = vmatprep.subr.bf16.mxu0 %v12396_v21  ;;  %10345 = vmatprep.subr.bf16.mxu1 %v12398_v22  ;;  %v871_v21 = vld [vmem:[%s13997_s22 + $0x13a0] sm:$0xff]  ;;  %v868_v22 = vld [vmem:[%s13997_s22 + $0x1388] sm:$0xff] }
 0x192   : > { %v12452_v27 = vcombine.high %v867_v20, %v871_v21  ;;  %v12451_v34 = vcombine.low %v867_v20, %v871_v21  ;;  %v12453_v35 = vcombine.low %v868_v22, %v872_v24  ;;  %v916_v20 = vld [vmem:[%s13997_s22 + $0x1508] sm:$0xff] }
 0x193   : > { %v920_v21 = vld [vmem:[%s13997_s22 + $0x1528] sm:$0xff] }
 0x194   : > { %9854 = vmatpush1.bf16.msra.mxu0 %v12395_v28  ;;  %10346 = vmatpush1.bf16.msra.mxu1 %v12397_v30  ;;  %v12454_v28 = vcombine.high %v868_v22, %v872_v24  ;;  %v875_v30 = vld [vmem:[%s13997_s22 + $0x13c0] sm:$0xff]  ;;  %v12493_v24 = vcombine.low %v908_v11, %v912_v12 }
 0x195   : > { %9855 = vmatprep.subr.bf16.mxu0 %v12404_v31  ;;  %10347 = vmatprep.subr.bf16.mxu1 %v12406_v63  ;;  %v879_v31 = vld [vmem:[%s13997_s22 + $0x13e0] sm:$0xff]  ;;  %v876_v63 = vld [vmem:[%s13997_s22 + $0x13c8] sm:$0xff] }
 0x196   : > { %v12460_v36 = vcombine.high %v875_v30, %v879_v31  ;;  %v12459_v44 = vcombine.low %v875_v30, %v879_v31  ;;  %v12461_v45 = vcombine.low %v876_v63, %v880_v33  ;;  %v924_v30 = vld [vmem:[%s13997_s22 + $0x1548] sm:$0xff] }
 0x197   : > { %v928_v31 = vld [vmem:[%s13997_s22 + $0x1568] sm:$0xff] }
 0x198   : > { %9856 = vmatpush1.bf16.msra.mxu0 %v12403_v37  ;;  %10348 = vmatpush1.bf16.msra.mxu1 %v12405_v39  ;;  %v12462_v37 = vcombine.high %v876_v63, %v880_v33  ;;  %v883_v39 = vld [vmem:[%s13997_s22 + $0x1400] sm:$0xff]  ;;  %v12501_v33 = vcombine.low %v916_v20, %v920_v21 }
 0x199   : > { %9857 = vmatprep.subr.bf16.mxu0 %v12412_v40  ;;  %10349 = vmatprep.subr.bf16.mxu1 %v12414_v41  ;;  %v887_v40 = vld [vmem:[%s13997_s22 + $0x1420] sm:$0xff]  ;;  %v884_v41 = vld [vmem:[%s13997_s22 + $0x1408] sm:$0xff] }
 0x19a   : > { %v12468_v46 = vcombine.high %v883_v39, %v887_v40  ;;  %v12467_v55 = vcombine.low %v883_v39, %v887_v40  ;;  %v12469_v56 = vcombine.low %v884_v41, %v888_v42  ;;  %v932_v39 = vld [vmem:[%s13997_s22 + $0x1588] sm:$0xff] }
 0x19b   : > { %v936_v40 = vld [vmem:[%s13997_s22 + $0x15a8] sm:$0xff] }
 0x19c   : > { %9858 = vmatpush1.bf16.msra.mxu0 %v12411_v47  ;;  %10350 = vmatpush1.bf16.msra.mxu1 %v12413_v49  ;;  %v12470_v47 = vcombine.high %v884_v41, %v888_v42  ;;  %v891_v49 = vld [vmem:[%s13997_s22 + $0x1440] sm:$0xff]  ;;  %v12509_v42 = vcombine.low %v924_v30, %v928_v31 }
 0x19d   : > { %9859 = vmatprep.subr.bf16.mxu0 %v12420_v50  ;;  %10351 = vmatprep.subr.bf16.mxu1 %v12422_v51  ;;  %v895_v50 = vld [vmem:[%s13997_s22 + $0x1460] sm:$0xff]  ;;  %v14410_v51 = vrot.slane %v14325_v8, %v14032_v53  ;;  %v900_v8 = vld [vmem:[%s13997_s22 + $0x1488] sm:$0xff] }
 0x19e   : > { %v12475_v3 = vcombine.low %v891_v49, %v895_v50  ;;  %v12485_v14 = vcombine.low %v900_v8, %v904_v2 }
 0x1a0   : > { %9860 = vmatpush1.bf16.msra.mxu0 %v12419_v57  ;;  %10352 = vmatpush1.bf16.msra.mxu1 %v12421_v60  ;;  %v12476_v57 = vcombine.high %v891_v49, %v895_v50  ;;  %v12478_v60 = vcombine.high %v892_v52, %v896_v54  ;;  %v940_v49 = vld [vmem:[%s13997_s22 + $0x15c8] sm:$0xff]  ;;  %v12517_v54 = vcombine.low %v932_v39, %v936_v40 }
 0x1a1   : > { %9861 = vmatprep.subr.bf16.mxu0 %v12428_v61  ;;  %10353 = vmatprep.subr.bf16.mxu1 %v12430_v62  ;;  %v899_v61 = vld [vmem:[%s13997_s22 + $0x1480] sm:$0xff]  ;;  %v944_v50 = vld [vmem:[%s13997_s22 + $0x15e8] sm:$0xff] }
 0x1a2   : > { %v903_v62 = vld [vmem:[%s13997_s22 + $0x14a0] sm:$0xff] }
 0x1a3   : > { %v12483_v13 = vcombine.low %v899_v61, %v903_v62 }
 0x1a4   : > { %9862 = vmatpush1.bf16.msra.mxu0 %v12427_v29  ;;  %10354 = vmatpush1.bf16.msra.mxu1 %v12429_v6  ;;  %v12484_v29 = vcombine.high %v899_v61, %v903_v62  ;;  %v12486_v6 = vcombine.high %v900_v8, %v904_v2  ;;  %v948_v61 = vld [vmem:[%s13997_s22 + $0x1608] sm:$0xff]  ;;  %v12525_v2 = vcombine.low %v940_v49, %v944_v50 }
 0x1a5   : > { %9863 = vmatprep.subr.bf16.mxu0 %v12436_v7  ;;  %10355 = vmatprep.subr.bf16.mxu1 %v12438_v10  ;;  %v907_v7 = vld [vmem:[%s13997_s22 + $0x14c0] sm:$0xff]  ;;  %v952_v62 = vld [vmem:[%s13997_s22 + $0x1628] sm:$0xff] }
 0x1a6   : > { %v911_v10 = vld [vmem:[%s13997_s22 + $0x14e0] sm:$0xff] }
 0x1a7   : > { %v12491_v22 = vcombine.low %v907_v7, %v911_v10 }
 0x1a8   : > { %9864 = vmatpush1.bf16.msra.mxu0 %v12435_v15  ;;  %10356 = vmatpush1.bf16.msra.mxu1 %v12437_v16  ;;  %v12492_v15 = vcombine.high %v907_v7, %v911_v10  ;;  %v12494_v16 = vcombine.high %v908_v11, %v912_v12  ;;  %v956_v7 = vld [vmem:[%s13997_s22 + $0x1648] sm:$0xff]  ;;  %v12533_v12 = vcombine.low %v948_v61, %v952_v62 }
 0x1a9   : > { %9865 = vmatprep.subr.bf16.mxu0 %v12444_v17  ;;  %10357 = vmatprep.subr.bf16.mxu1 %v12446_v18  ;;  %v915_v17 = vld [vmem:[%s13997_s22 + $0x1500] sm:$0xff]  ;;  %v960_v10 = vld [vmem:[%s13997_s22 + $0x1668] sm:$0xff] }
 0x1aa   : > { %v919_v18 = vld [vmem:[%s13997_s22 + $0x1520] sm:$0xff] }
 0x1ab   : > { %v12499_v63 = vcombine.low %v915_v17, %v919_v18 }
 0x1ac   : > { %9866 = vmatpush1.bf16.msra.mxu0 %v12443_v25  ;;  %10358 = vmatpush1.bf16.msra.mxu1 %v12445_v26  ;;  %v12500_v25 = vcombine.high %v915_v17, %v919_v18  ;;  %v12502_v26 = vcombine.high %v916_v20, %v920_v21  ;;  %v964_v17 = vld [vmem:[%s13997_s22 + $0x1688] sm:$0xff]  ;;  %v12541_v21 = vcombine.low %v956_v7, %v960_v10 }
 0x1ad   : > { %9867 = vmatprep.subr.bf16.mxu0 %v12452_v27  ;;  %10359 = vmatprep.subr.bf16.mxu1 %v12454_v28  ;;  %v923_v27 = vld [vmem:[%s13997_s22 + $0x1540] sm:$0xff]  ;;  %v968_v18 = vld [vmem:[%s13997_s22 + $0x16a8] sm:$0xff] }
 0x1ae   : > { %v927_v28 = vld [vmem:[%s13997_s22 + $0x1560] sm:$0xff] }
 0x1af   : > { %v12507_v41 = vcombine.low %v923_v27, %v927_v28 }
 0x1b0   : > { %9868 = vmatpush1.bf16.msra.mxu0 %v12451_v34  ;;  %10360 = vmatpush1.bf16.msra.mxu1 %v12453_v35  ;;  %v12508_v34 = vcombine.high %v923_v27, %v927_v28  ;;  %v12510_v35 = vcombine.high %v924_v30, %v928_v31  ;;  %v972_v27 = vld [vmem:[%s13997_s22 + $0x16c8] sm:$0xff]  ;;  %v12549_v31 = vcombine.low %v964_v17, %v968_v18 }
 0x1b1   : > { %9869 = vmatprep.subr.bf16.mxu0 %v12460_v36  ;;  %10361 = vmatprep.subr.bf16.mxu1 %v12462_v37  ;;  %v931_v36 = vld [vmem:[%s13997_s22 + $0x1580] sm:$0xff]  ;;  %v976_v28 = vld [vmem:[%s13997_s22 + $0x16e8] sm:$0xff] }
 0x1b2   : > { %v935_v37 = vld [vmem:[%s13997_s22 + $0x15a0] sm:$0xff] }
 0x1b3   : > { %v12515_v52 = vcombine.low %v931_v36, %v935_v37 }
 0x1b4   : > { %9870 = vmatpush1.bf16.msra.mxu0 %v12459_v44  ;;  %10362 = vmatpush1.bf16.msra.mxu1 %v12461_v45  ;;  %v12516_v44 = vcombine.high %v931_v36, %v935_v37  ;;  %v12518_v45 = vcombine.high %v932_v39, %v936_v40  ;;  %v980_v36 = vld [vmem:[%s13997_s22 + $0x1708] sm:$0xff]  ;;  %v12557_v40 = vcombine.low %v972_v27, %v976_v28 }
 0x1b5   : > { %9880 = vmatprep.subr.bf16.mxu0 %v12468_v46  ;;  %10372 = vmatprep.subr.bf16.mxu1 %v12470_v47  ;;  %v939_v46 = vld [vmem:[%s13997_s22 + $0x15c0] sm:$0xff]  ;;  %v984_v37 = vld [vmem:[%s13997_s22 + $0x1728] sm:$0xff] }
 0x1b6   : > { %v943_v47 = vld [vmem:[%s13997_s22 + $0x15e0] sm:$0xff] }
 0x1b7   : > { %9872 = vmatmul.mubr.bf16.vlgmr.msra.gmra.mrb[0].mxu0 %v14410_v51  ;;  %10364 = vmatmul.mubr.bf16.vlgmr.msra.gmra.mrb[0].mxu1 %v14410_v51  ;;  %v12523_v8 = vcombine.low %v939_v46, %v943_v47 }
 0x1b8   : > { %9881 = vmatpush1.bf16.msra.mxu0 %v12467_v55  ;;  %10373 = vmatpush1.bf16.msra.mxu1 %v12469_v56  ;;  %v12524_v55 = vcombine.high %v939_v46, %v943_v47  ;;  %v12526_v56 = vcombine.high %v940_v49, %v944_v50  ;;  %v988_v46 = vld [vmem:[%s13997_s22 + $0x1748] sm:$0xff]  ;;  %v12565_v50 = vcombine.low %v980_v36, %v984_v37 }
 0x1b9   : > { %9882 = vmatprep.subr.bf16.mxu0 %v12476_v57  ;;  %10374 = vmatprep.subr.bf16.mxu1 %v12478_v60  ;;  %v947_v57 = vld [vmem:[%s13997_s22 + $0x1600] sm:$0xff]  ;;  %v992_v47 = vld [vmem:[%s13997_s22 + $0x1768] sm:$0xff] }
 0x1ba   : > { %9912 = vmatprep.mubr.bf16.mxu0 %v14418_v0  ;;  %10404 = vmatprep.mubr.bf16.mxu1 %v14418_v0  ;;  %v951_v60 = vld [vmem:[%s13997_s22 + $0x1620] sm:$0xff] }
 0x1bb   : > { %v12531_v11 = vcombine.low %v947_v57, %v951_v60 }
 0x1bc   : > { %9883 = vmatpush1.bf16.msra.mxu0 %v12475_v3  ;;  %10375 = vmatpush1.bf16.msra.mxu1 %v12477_v4  ;;  %v12532_v3 = vcombine.high %v947_v57, %v951_v60  ;;  %v12534_v4 = vcombine.high %v948_v61, %v952_v62  ;;  %v996_v57 = vld [vmem:[%s13997_s22 + $0x1788] sm:$0xff]  ;;  %v12573_v62 = vcombine.low %v988_v46, %v992_v47 }
 0x1bd   : > { %9884 = vmatprep.subr.bf16.mxu0 %v12484_v29  ;;  %10376 = vmatprep.subr.bf16.mxu1 %v12486_v6  ;;  %v955_v29 = vld [vmem:[%s13997_s22 + $0x1640] sm:$0xff]  ;;  %v1000_v60 = vld [vmem:[%s13997_s22 + $0x17a8] sm:$0xff] }
 0x1be   : > { %v959_v6 = vld [vmem:[%s13997_s22 + $0x1660] sm:$0xff] }
 0x1bf   : > { %v12539_v20 = vcombine.low %v955_v29, %v959_v6 }
 0x1c0   : > { %9885 = vmatpush1.bf16.msra.mxu0 %v12483_v13  ;;  %10377 = vmatpush1.bf16.msra.mxu1 %v12485_v14  ;;  %v12540_v13 = vcombine.high %v955_v29, %v959_v6  ;;  %v12542_v14 = vcombine.high %v956_v7, %v960_v10  ;;  %v1873_v29 = vcombine.high %v14319_v1, %v14319_v1  ;;  %v1004_v6 = vld [vmem:[%s13997_s22 + $0x17c8] sm:$0xff] }
 0x1c1   : > { %9886 = vmatprep.subr.bf16.mxu0 %v12492_v15  ;;  %10378 = vmatprep.subr.bf16.mxu1 %v12494_v16  ;;  %v963_v15 = vld [vmem:[%s13997_s22 + $0x1680] sm:$0xff]  ;;  %v1008_v7 = vld [vmem:[%s13997_s22 + $0x17e8] sm:$0xff] }
 0x1c2   : > { %v967_v16 = vld [vmem:[%s13997_s22 + $0x16a0] sm:$0xff]  ;;  %v1012_v1 = vld [vmem:[%s13997_s22 + $0x1808] sm:$0xff] }
 0x1c3   : > { %v12547_v30 = vcombine.low %v963_v15, %v967_v16 }
 0x1c4   : > { %9887 = vmatpush1.bf16.msra.mxu0 %v12491_v22  ;;  %10379 = vmatpush1.bf16.msra.mxu1 %v12493_v24  ;;  %v12548_v22 = vcombine.high %v963_v15, %v967_v16  ;;  %v12550_v24 = vcombine.high %v964_v17, %v968_v18  ;;  %v1015_v15 = vld [vmem:[%s13997_s22 + $0x1820] sm:$0xff]  ;;  %v14483_v16 = vrot.slane %v1873_v29, %v14032_v53  ;;  %v1016_v17 = vld [vmem:[%s13997_s22 + $0x1828] sm:$0xff] }
 0x1c5   : > { %9888 = vmatprep.subr.bf16.mxu0 %v12500_v25  ;;  %10380 = vmatprep.subr.bf16.mxu1 %v12502_v26  ;;  %v971_v25 = vld [vmem:[%s13997_s22 + $0x16c0] sm:$0xff] }
 0x1c6   : > { %v975_v26 = vld [vmem:[%s13997_s22 + $0x16e0] sm:$0xff] }
 0x1c7   : > { %v12555_v39 = vcombine.low %v971_v25, %v975_v26  ;;  %v1051_v29 = vld [vmem:[%s13997_s22 + $0x1940] sm:$0xff] }
 0x1c8   : > { %9889 = vmatpush1.bf16.msra.mxu0 %v12499_v63  ;;  %10381 = vmatpush1.bf16.msra.mxu1 %v12501_v33  ;;  %v12556_v63 = vcombine.high %v971_v25, %v975_v26  ;;  %v12558_v33 = vcombine.high %v972_v27, %v976_v28  ;;  %v1023_v25 = vld [vmem:[%s13997_s22 + $0x1860] sm:$0xff]  ;;  %v1889_v26 = vcombine.high %v14483_v16, %v14483_v16  ;;  %v1020_v28 = vld [vmem:[%s13997_s22 + $0x1848] sm:$0xff] }
 0x1c9   : > { %9890 = vmatprep.subr.bf16.mxu0 %v12508_v34  ;;  %10382 = vmatprep.subr.bf16.mxu1 %v12510_v35  ;;  %v979_v34 = vld [vmem:[%s13997_s22 + $0x1700] sm:$0xff]  ;;  %v14493_v27 = vcombine.high %v14410_v51, %v14410_v51 }
 0x1ca   : > { %v983_v35 = vld [vmem:[%s13997_s22 + $0x1720] sm:$0xff] }
 0x1cb   : > { %v12563_v49 = vcombine.low %v979_v34, %v983_v35 }
 0x1cc   : > { %9891 = vmatpush1.bf16.msra.mxu0 %v12507_v41  ;;  %10383 = vmatpush1.bf16.msra.mxu1 %v12509_v42  ;;  %v12564_v41 = vcombine.high %v979_v34, %v983_v35  ;;  %v12566_v42 = vcombine.high %v980_v36, %v984_v37  ;;  %v1027_v35 = vld [vmem:[%s13997_s22 + $0x1880] sm:$0xff]  ;;  %v14500_v37 = vrot.slane %v1889_v26, %v14032_v53 }
 0x1cd   : > { %9892 = vmatprep.subr.bf16.mxu0 %v12516_v44  ;;  %10384 = vmatprep.subr.bf16.mxu1 %v12518_v45  ;;  %v987_v44 = vld [vmem:[%s13997_s22 + $0x1740] sm:$0xff] }
 0x1ce   : > { %v991_v45 = vld [vmem:[%s13997_s22 + $0x1760] sm:$0xff] }
 0x1cf   : > { %v12571_v61 = vcombine.low %v987_v44, %v991_v45  ;;  %v1031_v36 = vld [vmem:[%s13997_s22 + $0x18a0] sm:$0xff] }
 0x1d0   : > { %9893 = vmatpush1.bf16.msra.mxu0 %v12515_v52  ;;  %10385 = vmatpush1.bf16.msra.mxu1 %v12517_v54  ;;  %v12572_v52 = vcombine.high %v987_v44, %v991_v45  ;;  %v12574_v54 = vcombine.high %v988_v46, %v992_v47  ;;  %v12612_v44 = vcombine.high %v1027_v35, %v1031_v36  ;;  %v1035_v46 = vld [vmem:[%s13997_s22 + $0x18c0] sm:$0xff] }
 0x1d1   : > { %9894 = vmatprep.subr.bf16.mxu0 %v12524_v55  ;;  %10386 = vmatprep.subr.bf16.mxu1 %v12526_v56  ;;  %v995_v55 = vld [vmem:[%s13997_s22 + $0x1780] sm:$0xff] }
 0x1d2   : > { %v999_v56 = vld [vmem:[%s13997_s22 + $0x17a0] sm:$0xff] }
 0x1d3   : > { %v12579_v10 = vcombine.low %v995_v55, %v999_v56  ;;  %v1039_v47 = vld [vmem:[%s13997_s22 + $0x18e0] sm:$0xff] }
 0x1d4   : > { %9895 = vmatpush1.bf16.msra.mxu0 %v12523_v8  ;;  %10387 = vmatpush1.bf16.msra.mxu1 %v12525_v2  ;;  %v12580_v8 = vcombine.high %v995_v55, %v999_v56  ;;  %v12582_v2 = vcombine.high %v996_v57, %v1000_v60  ;;  %v12620_v55 = vcombine.high %v1035_v46, %v1039_v47  ;;  %v1071_v26 = vld [vmem:[%s13997_s22 + $0x19e0] sm:$0xff] }
 0x1d5   : > { %9896 = vmatprep.subr.bf16.mxu0 %v12532_v3  ;;  %10388 = vmatprep.subr.bf16.mxu1 %v12534_v4  ;;  %v1003_v3 = vld [vmem:[%s13997_s22 + $0x17c0] sm:$0xff] }
 0x1d6   : > { %v1007_v4 = vld [vmem:[%s13997_s22 + $0x17e0] sm:$0xff] }
 0x1d7   : > { %v12587_v18 = vcombine.low %v1003_v3, %v1007_v4 }
 0x1d8   : > { %9897 = vmatpush1.bf16.msra.mxu0 %v12531_v11  ;;  %10389 = vmatpush1.bf16.msra.mxu1 %v12533_v12  ;;  %v12581_v11 = vcombine.low %v996_v57, %v1000_v60  ;;  %v12588_v12 = vcombine.high %v1003_v3, %v1007_v4  ;;  %v1043_v57 = vld [vmem:[%s13997_s22 + $0x1900] sm:$0xff] }
 0x1d9   : > { %9898 = vmatprep.subr.bf16.mxu0 %v12540_v13  ;;  %10390 = vmatprep.subr.bf16.mxu1 %v12542_v14  ;;  %v12590_v13 = vcombine.high %v1004_v6, %v1008_v7  ;;  %v1011_v14 = vld [vmem:[%s13997_s22 + $0x1800] sm:$0xff] }
 0x1da   : > { %v1047_v60 = vld [vmem:[%s13997_s22 + $0x1920] sm:$0xff] }
 0x1db   : > { %v12628_v3 = vcombine.high %v1043_v57, %v1047_v60 }
 0x1dc   : > { %9899 = vmatpush1.bf16.msra.mxu0 %v12539_v20  ;;  %10391 = vmatpush1.bf16.msra.mxu1 %v12541_v21  ;;  %v12589_v20 = vcombine.low %v1004_v6, %v1008_v7  ;;  %v12596_v21 = vcombine.high %v1011_v14, %v1015_v15  ;;  %v1055_v6 = vld [vmem:[%s13997_s22 + $0x1960] sm:$0xff]  ;;  %v1052_v7 = vld [vmem:[%s13997_s22 + $0x1948] sm:$0xff] }
 0x1dd   : > { %9900 = vmatprep.subr.bf16.mxu0 %v12548_v22  ;;  %10392 = vmatprep.subr.bf16.mxu1 %v12550_v24  ;;  %v12598_v22 = vcombine.high %v1012_v1, %v1016_v17  ;;  %v1019_v24 = vld [vmem:[%s13997_s22 + $0x1840] sm:$0xff] }
 0x1e0   : > { %9901 = vmatpush1.bf16.msra.mxu0 %v12547_v30  ;;  %10393 = vmatpush1.bf16.msra.mxu1 %v12549_v31  ;;  %v1024_v30 = vld [vmem:[%s13997_s22 + $0x1868] sm:$0xff]  ;;  %v12595_v31 = vcombine.low %v1011_v14, %v1015_v15  ;;  %v1059_v15 = vld [vmem:[%s13997_s22 + $0x1980] sm:$0xff] }
 0x1e1   : > { %9902 = vmatprep.subr.bf16.mxu0 %v12556_v63  ;;  %10394 = vmatprep.subr.bf16.mxu1 %v12558_v33  ;;  %v12597_v63 = vcombine.low %v1012_v1, %v1016_v17  ;;  %v12604_v33 = vcombine.high %v1019_v24, %v1023_v25  ;;  %v12606_v34 = vcombine.high %v1020_v28, %v1024_v30  ;;  %v1063_v1 = vld [vmem:[%s13997_s22 + $0x19a0] sm:$0xff]  ;;  %v1060_v17 = vld [vmem:[%s13997_s22 + $0x1988] sm:$0xff] }
 0x1e4   : > { %9903 = vmatpush1.bf16.msra.mxu0 %v12555_v39  ;;  %10395 = vmatpush1.bf16.msra.mxu1 %v12557_v40  ;;  %v1028_v39 = vld [vmem:[%s13997_s22 + $0x1888] sm:$0xff] }
 0x1e5   : > { %9904 = vmatprep.subr.bf16.mxu0 %v12564_v41  ;;  %10396 = vmatprep.subr.bf16.mxu1 %v12566_v42  ;;  %v1032_v40 = vld [vmem:[%s13997_s22 + $0x18a8] sm:$0xff]  ;;  %v12603_v41 = vcombine.low %v1019_v24, %v1023_v25  ;;  %v12605_v42 = vcombine.low %v1020_v28, %v1024_v30  ;;  %v1067_v25 = vld [vmem:[%s13997_s22 + $0x19c0] sm:$0xff] }
 0x1e6   : > { %v12614_v45 = vcombine.high %v1028_v39, %v1032_v40  ;;  %v1068_v28 = vld [vmem:[%s13997_s22 + $0x19c8] sm:$0xff] }
 0x1e7   : > { %v1072_v30 = vld [vmem:[%s13997_s22 + $0x19e8] sm:$0xff] }
 0x1e8   : > { %9905 = vmatpush1.bf16.msra.mxu0 %v12563_v49  ;;  %10397 = vmatpush1.bf16.msra.mxu1 %v12565_v50  ;;  %v1036_v49 = vld [vmem:[%s13997_s22 + $0x18c8] sm:$0xff] }
 0x1e9   : > { %9906 = vmatprep.subr.bf16.mxu0 %v12572_v52  ;;  %10398 = vmatprep.subr.bf16.mxu1 %v12574_v54  ;;  %v1040_v50 = vld [vmem:[%s13997_s22 + $0x18e8] sm:$0xff]  ;;  %v12611_v52 = vcombine.low %v1027_v35, %v1031_v36  ;;  %v12613_v54 = vcombine.low %v1028_v39, %v1032_v40  ;;  %v1075_v35 = vld [vmem:[%s13997_s22 + $0x1a00] sm:$0xff] }
 0x1ea   : > { %v12622_v56 = vcombine.high %v1036_v49, %v1040_v50  ;;  %v1079_v36 = vld [vmem:[%s13997_s22 + $0x1a20] sm:$0xff]  ;;  %v1076_v39 = vld [vmem:[%s13997_s22 + $0x1a08] sm:$0xff] }
 0x1eb   : > { %v1080_v40 = vld [vmem:[%s13997_s22 + $0x1a28] sm:$0xff] }
 0x1ec   : > { %9907 = vmatpush1.bf16.msra.mxu0 %v12571_v61  ;;  %10399 = vmatpush1.bf16.msra.mxu1 %v12573_v62  ;;  %v1044_v61 = vld [vmem:[%s13997_s22 + $0x1908] sm:$0xff] }
 0x1ed   : > { %9908 = vmatprep.subr.bf16.mxu0 %v12580_v8  ;;  %10400 = vmatprep.subr.bf16.mxu1 %v12582_v2  ;;  %v1048_v62 = vld [vmem:[%s13997_s22 + $0x1928] sm:$0xff]  ;;  %v12619_v8 = vcombine.low %v1035_v46, %v1039_v47  ;;  %v12621_v2 = vcombine.low %v1036_v49, %v1040_v50  ;;  %v1083_v46 = vld [vmem:[%s13997_s22 + $0x1a40] sm:$0xff] }
 0x1ee   : > { %v12630_v4 = vcombine.high %v1044_v61, %v1048_v62  ;;  %v1087_v47 = vld [vmem:[%s13997_s22 + $0x1a60] sm:$0xff]  ;;  %v1084_v49 = vld [vmem:[%s13997_s22 + $0x1a48] sm:$0xff] }
 0x1ef   : > { %v1088_v50 = vld [vmem:[%s13997_s22 + $0x1a68] sm:$0xff] }
 0x1f0   : > { %9909 = vmatpush1.bf16.msra.mxu0 %v12579_v10  ;;  %10401 = vmatpush1.bf16.msra.mxu1 %v12581_v11  ;;  %v1056_v10 = vld [vmem:[%s13997_s22 + $0x1968] sm:$0xff]  ;;  %v12627_v11 = vcombine.low %v1043_v57, %v1047_v60  ;;  %v1091_v57 = vld [vmem:[%s13997_s22 + $0x1a80] sm:$0xff] }
 0x1f1   : > { %9910 = vmatprep.subr.bf16.mxu0 %v12588_v12  ;;  %10402 = vmatprep.subr.bf16.mxu1 %v12590_v13  ;;  %v12629_v12 = vcombine.low %v1044_v61, %v1048_v62  ;;  %v12636_v13 = vcombine.high %v1051_v29, %v1055_v6  ;;  %v12638_v14 = vcombine.high %v1052_v7, %v1056_v10  ;;  %v1095_v60 = vld [vmem:[%s13997_s22 + $0x1aa0] sm:$0xff]  ;;  %v1092_v61 = vld [vmem:[%s13997_s22 + $0x1a88] sm:$0xff] }
 0x1f2   : > { %v1096_v62 = vld [vmem:[%s13997_s22 + $0x1aa8] sm:$0xff] }
 0x1f4   : > { %9911 = vmatpush1.bf16.msra.mxu0 %v12587_v18  ;;  %10403 = vmatpush1.bf16.msra.mxu1 %v12589_v20  ;;  %v1064_v18 = vld [vmem:[%s13997_s22 + $0x19a8] sm:$0xff]  ;;  %v12635_v20 = vcombine.low %v1051_v29, %v1055_v6  ;;  %v1099_v29 = vld [vmem:[%s13997_s22 + $0x1ac0] sm:$0xff] }
 0x1f5   : > { %9921 = vmatprep.subr.bf16.mxu0 %v12596_v21  ;;  %10413 = vmatprep.subr.bf16.mxu1 %v12598_v22  ;;  %v12637_v21 = vcombine.low %v1052_v7, %v1056_v10  ;;  %v12644_v22 = vcombine.high %v1059_v15, %v1063_v1  ;;  %v12646_v24 = vcombine.high %v1060_v17, %v1064_v18  ;;  %v1103_v6 = vld [vmem:[%s13997_s22 + $0x1ae0] sm:$0xff]  ;;  %v1100_v7 = vld [vmem:[%s13997_s22 + $0x1ac8] sm:$0xff] }
 0x1f6   : > { %v1104_v10 = vld [vmem:[%s13997_s22 + $0x1ae8] sm:$0xff] }
 0x1f7   : > { %9913 = vmatmul.mubr.bf16.vlgmr.msra.gmra.mrb[0].mxu0 %v14493_v27  ;;  %10405 = vmatmul.mubr.bf16.vlgmr.msra.gmra.mrb[0].mxu1 %v14493_v27 }
 0x1f8   : > { %9922 = vmatpush1.bf16.msra.mxu0 %v12595_v31  ;;  %10414 = vmatpush1.bf16.msra.mxu1 %v12597_v63  ;;  %v12643_v31 = vcombine.low %v1059_v15, %v1063_v1  ;;  %v12645_v63 = vcombine.low %v1060_v17, %v1064_v18  ;;  %v1107_v15 = vld [vmem:[%s13997_s22 + $0x1b00] sm:$0xff]  ;;  %v1108_v17 = vld [vmem:[%s13997_s22 + $0x1b08] sm:$0xff] }
 0x1f9   : > { %9923 = vmatprep.subr.bf16.mxu0 %v12604_v33  ;;  %10415 = vmatprep.subr.bf16.mxu1 %v12606_v34  ;;  %v12652_v33 = vcombine.high %v1067_v25, %v1071_v26  ;;  %v12654_v34 = vcombine.high %v1068_v28, %v1072_v30  ;;  %v1111_v1 = vld [vmem:[%s13997_s22 + $0x1b20] sm:$0xff]  ;;  %v1112_v18 = vld [vmem:[%s13997_s22 + $0x1b28] sm:$0xff] }
 0x1fa   : > { %9953 = vmatprep.mubr.bf16.mxu0 %v14500_v37  ;;  %10445 = vmatprep.mubr.bf16.mxu1 %v14500_v37 }
 0x1fc   : > { %9924 = vmatpush1.bf16.msra.mxu0 %v12603_v41  ;;  %10416 = vmatpush1.bf16.msra.mxu1 %v12605_v42  ;;  %v12651_v41 = vcombine.low %v1067_v25, %v1071_v26  ;;  %v12653_v42 = vcombine.low %v1068_v28, %v1072_v30  ;;  %v1115_v25 = vld [vmem:[%s13997_s22 + $0x1b40] sm:$0xff]  ;;  %v1116_v28 = vld [vmem:[%s13997_s22 + $0x1b48] sm:$0xff] }
 0x1fd   : > { %9925 = vmatprep.subr.bf16.mxu0 %v12612_v44  ;;  %10417 = vmatprep.subr.bf16.mxu1 %v12614_v45  ;;  %v12660_v44 = vcombine.high %v1075_v35, %v1079_v36  ;;  %v12662_v45 = vcombine.high %v1076_v39, %v1080_v40  ;;  %v1119_v26 = vld [vmem:[%s13997_s22 + $0x1b60] sm:$0xff]  ;;  %v1120_v30 = vld [vmem:[%s13997_s22 + $0x1b68] sm:$0xff] }
 0x200   : > { %9926 = vmatpush1.bf16.msra.mxu0 %v12611_v52  ;;  %10418 = vmatpush1.bf16.msra.mxu1 %v12613_v54  ;;  %v12659_v52 = vcombine.low %v1075_v35, %v1079_v36  ;;  %v12661_v54 = vcombine.low %v1076_v39, %v1080_v40  ;;  %v1123_v35 = vld [vmem:[%s13997_s22 + $0x1b80] sm:$0xff]  ;;  %v1124_v39 = vld [vmem:[%s13997_s22 + $0x1b88] sm:$0xff] }
 0x201   : > { %9927 = vmatprep.subr.bf16.mxu0 %v12620_v55  ;;  %10419 = vmatprep.subr.bf16.mxu1 %v12622_v56  ;;  %v12668_v55 = vcombine.high %v1083_v46, %v1087_v47  ;;  %v12670_v56 = vcombine.high %v1084_v49, %v1088_v50  ;;  %v1127_v36 = vld [vmem:[%s13997_s22 + $0x1ba0] sm:$0xff]  ;;  %v1128_v40 = vld [vmem:[%s13997_s22 + $0x1ba8] sm:$0xff] }
 0x204   : > { %9928 = vmatpush1.bf16.msra.mxu0 %v12619_v8  ;;  %10420 = vmatpush1.bf16.msra.mxu1 %v12621_v2  ;;  %v12667_v8 = vcombine.low %v1083_v46, %v1087_v47  ;;  %v12669_v2 = vcombine.low %v1084_v49, %v1088_v50  ;;  %v1131_v46 = vld [vmem:[%s13997_s22 + $0x1bc0] sm:$0xff]  ;;  %v1132_v49 = vld [vmem:[%s13997_s22 + $0x1bc8] sm:$0xff] }
 0x205   : > { %9929 = vmatprep.subr.bf16.mxu0 %v12628_v3  ;;  %10421 = vmatprep.subr.bf16.mxu1 %v12630_v4  ;;  %v12676_v3 = vcombine.high %v1091_v57, %v1095_v60  ;;  %v12678_v4 = vcombine.high %v1092_v61, %v1096_v62  ;;  %v1135_v47 = vld [vmem:[%s13997_s22 + $0x1be0] sm:$0xff]  ;;  %v1136_v50 = vld [vmem:[%s13997_s22 + $0x1be8] sm:$0xff] }
 0x208   : > { %9930 = vmatpush1.bf16.msra.mxu0 %v12627_v11  ;;  %10422 = vmatpush1.bf16.msra.mxu1 %v12629_v12  ;;  %v12675_v11 = vcombine.low %v1091_v57, %v1095_v60  ;;  %v12677_v12 = vcombine.low %v1092_v61, %v1096_v62  ;;  %v1139_v57 = vld [vmem:[%s13997_s22 + $0x1c00] sm:$0xff]  ;;  %v1140_v61 = vld [vmem:[%s13997_s22 + $0x1c08] sm:$0xff] }
 0x209   : > { %9931 = vmatprep.subr.bf16.mxu0 %v12636_v13  ;;  %10423 = vmatprep.subr.bf16.mxu1 %v12638_v14  ;;  %v12684_v13 = vcombine.high %v1099_v29, %v1103_v6  ;;  %v12686_v14 = vcombine.high %v1100_v7, %v1104_v10  ;;  %v1143_v60 = vld [vmem:[%s13997_s22 + $0x1c20] sm:$0xff]  ;;  %v1144_v62 = vld [vmem:[%s13997_s22 + $0x1c28] sm:$0xff] }
 0x20c   : > { %9932 = vmatpush1.bf16.msra.mxu0 %v12635_v20  ;;  %10424 = vmatpush1.bf16.msra.mxu1 %v12637_v21  ;;  %v12683_v20 = vcombine.low %v1099_v29, %v1103_v6  ;;  %v12685_v21 = vcombine.low %v1100_v7, %v1104_v10  ;;  %v1147_v29 = vld [vmem:[%s13997_s22 + $0x1c40] sm:$0xff]  ;;  %v14568_v7 = vrot.slane %v14483_v16, %v14032_v53  ;;  %v1148_v10 = vld [vmem:[%s13997_s22 + $0x1c48] sm:$0xff] }
 0x20d   : > { %9933 = vmatprep.subr.bf16.mxu0 %v12644_v22  ;;  %10425 = vmatprep.subr.bf16.mxu1 %v12646_v24  ;;  %v12692_v22 = vcombine.high %v1107_v15, %v1111_v1  ;;  %v12694_v24 = vcombine.high %v1108_v17, %v1112_v18  ;;  %v1151_v6 = vld [vmem:[%s13997_s22 + $0x1c60] sm:$0xff]  ;;  %v1156_v16 = vld [vmem:[%s13997_s22 + $0x1c88] sm:$0xff] }
 0x210   : > { %9934 = vmatpush1.bf16.msra.mxu0 %v12643_v31  ;;  %10426 = vmatpush1.bf16.msra.mxu1 %v12645_v63  ;;  %v12691_v31 = vcombine.low %v1107_v15, %v1111_v1  ;;  %v12693_v63 = vcombine.low %v1108_v17, %v1112_v18  ;;  %v1155_v1 = vld [vmem:[%s13997_s22 + $0x1c80] sm:$0xff]  ;;  %v14576_v18 = vcombine.high %v14500_v37, %v14500_v37 }
 0x211   : > { %9935 = vmatprep.subr.bf16.mxu0 %v12652_v33  ;;  %10427 = vmatprep.subr.bf16.mxu1 %v12654_v34  ;;  %v12700_v33 = vcombine.high %v1115_v25, %v1119_v26  ;;  %v12702_v34 = vcombine.high %v1116_v28, %v1120_v30  ;;  %v1159_v17 = vld [vmem:[%s13997_s22 + $0x1ca0] sm:$0xff] }
 0x214   : > { %9936 = vmatpush1.bf16.msra.mxu0 %v12651_v41  ;;  %10428 = vmatpush1.bf16.msra.mxu1 %v12653_v42  ;;  %v12699_v41 = vcombine.low %v1115_v25, %v1119_v26  ;;  %v12701_v42 = vcombine.low %v1116_v28, %v1120_v30  ;;  %v1163_v26 = vld [vmem:[%s13997_s22 + $0x1cc0] sm:$0xff]  ;;  %v1164_v30 = vld [vmem:[%s13997_s22 + $0x1cc8] sm:$0xff] }
 0x215   : > { %9937 = vmatprep.subr.bf16.mxu0 %v12660_v44  ;;  %10429 = vmatprep.subr.bf16.mxu1 %v12662_v45  ;;  %v12708_v44 = vcombine.high %v1123_v35, %v1127_v36  ;;  %v12710_v45 = vcombine.high %v1124_v39, %v1128_v40  ;;  %v1167_v28 = vld [vmem:[%s13997_s22 + $0x1ce0] sm:$0xff] }
 0x218   : > { %9938 = vmatpush1.bf16.msra.mxu0 %v12659_v52  ;;  %10430 = vmatpush1.bf16.msra.mxu1 %v12661_v54  ;;  %v12707_v52 = vcombine.low %v1123_v35, %v1127_v36  ;;  %v12709_v54 = vcombine.low %v1124_v39, %v1128_v40  ;;  %v1171_v36 = vld [vmem:[%s13997_s22 + $0x1d00] sm:$0xff]  ;;  %v1172_v40 = vld [vmem:[%s13997_s22 + $0x1d08] sm:$0xff] }
 0x219   : > { %9939 = vmatprep.subr.bf16.mxu0 %v12668_v55  ;;  %10431 = vmatprep.subr.bf16.mxu1 %v12670_v56  ;;  %v12716_v55 = vcombine.high %v1131_v46, %v1135_v47  ;;  %v12718_v56 = vcombine.high %v1132_v49, %v1136_v50  ;;  %v1175_v39 = vld [vmem:[%s13997_s22 + $0x1d20] sm:$0xff] }
 0x21c   : > { %9940 = vmatpush1.bf16.msra.mxu0 %v12667_v8  ;;  %10432 = vmatpush1.bf16.msra.mxu1 %v12669_v2  ;;  %v12715_v8 = vcombine.low %v1131_v46, %v1135_v47  ;;  %v12717_v2 = vcombine.low %v1132_v49, %v1136_v50  ;;  %v1179_v47 = vld [vmem:[%s13997_s22 + $0x1d40] sm:$0xff]  ;;  %v1180_v50 = vld [vmem:[%s13997_s22 + $0x1d48] sm:$0xff] }
 0x21d   : > { %9941 = vmatprep.subr.bf16.mxu0 %v12676_v3  ;;  %10433 = vmatprep.subr.bf16.mxu1 %v12678_v4  ;;  %v12724_v3 = vcombine.high %v1139_v57, %v1143_v60  ;;  %v12726_v4 = vcombine.high %v1140_v61, %v1144_v62  ;;  %v1183_v49 = vld [vmem:[%s13997_s22 + $0x1d60] sm:$0xff] }
 0x220   : > { %9942 = vmatpush1.bf16.msra.mxu0 %v12675_v11  ;;  %10434 = vmatpush1.bf16.msra.mxu1 %v12677_v12  ;;  %v1152_v11 = vld [vmem:[%s13997_s22 + $0x1c68] sm:$0xff]  ;;  %v12723_v12 = vcombine.low %v1139_v57, %v1143_v60  ;;  %v1187_v60 = vld [vmem:[%s13997_s22 + $0x1d80] sm:$0xff] }
 0x221   : > { %9943 = vmatprep.subr.bf16.mxu0 %v12684_v13  ;;  %10435 = vmatprep.subr.bf16.mxu1 %v12686_v14  ;;  %v12725_v13 = vcombine.low %v1140_v61, %v1144_v62  ;;  %v12732_v14 = vcombine.high %v1147_v29, %v1151_v6  ;;  %v12734_v15 = vcombine.high %v1148_v10, %v1152_v11  ;;  %v1191_v61 = vld [vmem:[%s13997_s22 + $0x1da0] sm:$0xff]  ;;  %v1188_v62 = vld [vmem:[%s13997_s22 + $0x1d88] sm:$0xff] }
 0x224   : > { %9944 = vmatpush1.bf16.msra.mxu0 %v12683_v20  ;;  %10436 = vmatpush1.bf16.msra.mxu1 %v12685_v21  ;;  %v1160_v20 = vld [vmem:[%s13997_s22 + $0x1ca8] sm:$0xff]  ;;  %v12731_v21 = vcombine.low %v1147_v29, %v1151_v6  ;;  %v1195_v6 = vld [vmem:[%s13997_s22 + $0x1dc0] sm:$0xff] }
 0x225   : > { %9945 = vmatprep.subr.bf16.mxu0 %v12692_v22  ;;  %10437 = vmatprep.subr.bf16.mxu1 %v12694_v24  ;;  %v12733_v22 = vcombine.low %v1148_v10, %v1152_v11  ;;  %v12740_v24 = vcombine.high %v1155_v1, %v1159_v17  ;;  %v12742_v25 = vcombine.high %v1156_v16, %v1160_v20  ;;  %v1199_v10 = vld [vmem:[%s13997_s22 + $0x1de0] sm:$0xff]  ;;  %v1196_v11 = vld [vmem:[%s13997_s22 + $0x1dc8] sm:$0xff] }
 0x228   : > { %9946 = vmatpush1.bf16.msra.mxu0 %v12691_v31  ;;  %10438 = vmatpush1.bf16.msra.mxu1 %v12693_v63  ;;  %v1168_v31 = vld [vmem:[%s13997_s22 + $0x1ce8] sm:$0xff]  ;;  %v12739_v63 = vcombine.low %v1155_v1, %v1159_v17  ;;  %v1203_v17 = vld [vmem:[%s13997_s22 + $0x1e00] sm:$0xff] }
 0x229   : > { %9947 = vmatprep.subr.bf16.mxu0 %v12700_v33  ;;  %10439 = vmatprep.subr.bf16.mxu1 %v12702_v34  ;;  %v12741_v33 = vcombine.low %v1156_v16, %v1160_v20  ;;  %v12748_v34 = vcombine.high %v1163_v26, %v1167_v28  ;;  %v12750_v35 = vcombine.high %v1164_v30, %v1168_v31  ;;  %v1207_v16 = vld [vmem:[%s13997_s22 + $0x1e20] sm:$0xff]  ;;  %v1204_v20 = vld [vmem:[%s13997_s22 + $0x1e08] sm:$0xff] }
 0x22c   : > { %9948 = vmatpush1.bf16.msra.mxu0 %v12699_v41  ;;  %10440 = vmatpush1.bf16.msra.mxu1 %v12701_v42  ;;  %v1176_v41 = vld [vmem:[%s13997_s22 + $0x1d28] sm:$0xff]  ;;  %v12747_v42 = vcombine.low %v1163_v26, %v1167_v28  ;;  %v1211_v28 = vld [vmem:[%s13997_s22 + $0x1e40] sm:$0xff] }
 0x22d   : > { %9949 = vmatprep.subr.bf16.mxu0 %v12708_v44  ;;  %10441 = vmatprep.subr.bf16.mxu1 %v12710_v45  ;;  %v12749_v44 = vcombine.low %v1164_v30, %v1168_v31  ;;  %v12756_v45 = vcombine.high %v1171_v36, %v1175_v39  ;;  %v12758_v46 = vcombine.high %v1172_v40, %v1176_v41  ;;  %v1215_v30 = vld [vmem:[%s13997_s22 + $0x1e60] sm:$0xff]  ;;  %v1212_v31 = vld [vmem:[%s13997_s22 + $0x1e48] sm:$0xff] }
 0x230   : > { %9950 = vmatpush1.bf16.msra.mxu0 %v12707_v52  ;;  %10442 = vmatpush1.bf16.msra.mxu1 %v12709_v54  ;;  %v1184_v52 = vld [vmem:[%s13997_s22 + $0x1d68] sm:$0xff]  ;;  %v12755_v54 = vcombine.low %v1171_v36, %v1175_v39  ;;  %v1219_v39 = vld [vmem:[%s13997_s22 + $0x1e80] sm:$0xff] }
 0x231   : > { %9951 = vmatprep.subr.bf16.mxu0 %v12716_v55  ;;  %10443 = vmatprep.subr.bf16.mxu1 %v12718_v56  ;;  %v12757_v55 = vcombine.low %v1172_v40, %v1176_v41  ;;  %v12764_v56 = vcombine.high %v1179_v47, %v1183_v49  ;;  %v12766_v57 = vcombine.high %v1180_v50, %v1184_v52  ;;  %v1223_v40 = vld [vmem:[%s13997_s22 + $0x1ea0] sm:$0xff]  ;;  %v1220_v41 = vld [vmem:[%s13997_s22 + $0x1e88] sm:$0xff] }
 0x234   : > { %9952 = vmatpush1.bf16.msra.mxu0 %v12715_v8  ;;  %10444 = vmatpush1.bf16.msra.mxu1 %v12717_v2  ;;  %v1192_v8 = vld [vmem:[%s13997_s22 + $0x1da8] sm:$0xff]  ;;  %v12763_v2 = vcombine.low %v1179_v47, %v1183_v49  ;;  %v1227_v49 = vld [vmem:[%s13997_s22 + $0x1ec0] sm:$0xff] }
 0x235   : > { %9962 = vmatprep.subr.bf16.mxu0 %v12724_v3  ;;  %10454 = vmatprep.subr.bf16.mxu1 %v12726_v4  ;;  %v12765_v3 = vcombine.low %v1180_v50, %v1184_v52  ;;  %v12772_v4 = vcombine.high %v1187_v60, %v1191_v61  ;;  %v12774_v29 = vcombine.high %v1188_v62, %v1192_v8  ;;  %v1231_v50 = vld [vmem:[%s13997_s22 + $0x1ee0] sm:$0xff]  ;;  %v1228_v52 = vld [vmem:[%s13997_s22 + $0x1ec8] sm:$0xff] }
 0x237   : > { %9954 = vmatmul.mubr.bf16.vlgmr.msra.gmra.mrb[0].mxu0 %v14568_v7  ;;  %10446 = vmatmul.mubr.bf16.vlgmr.msra.gmra.mrb[0].mxu1 %v14568_v7 }
 0x238   : > { %9963 = vmatpush1.bf16.msra.mxu0 %v12723_v12  ;;  %10455 = vmatpush1.bf16.msra.mxu1 %v12725_v13  ;;  %v1200_v12 = vld [vmem:[%s13997_s22 + $0x1de8] sm:$0xff]  ;;  %v12771_v13 = vcombine.low %v1187_v60, %v1191_v61  ;;  %v1235_v61 = vld [vmem:[%s13997_s22 + $0x1f00] sm:$0xff] }
 0x239   : > { %9964 = vmatprep.subr.bf16.mxu0 %v12732_v14  ;;  %10456 = vmatprep.subr.bf16.mxu1 %v12734_v15  ;;  %v12773_v14 = vcombine.low %v1188_v62, %v1192_v8  ;;  %v12780_v15 = vcombine.high %v1195_v6, %v1199_v10  ;;  %v12782_v1 = vcombine.high %v1196_v11, %v1200_v12  ;;  %v1239_v62 = vld [vmem:[%s13997_s22 + $0x1f20] sm:$0xff]  ;;  %v1236_v8 = vld [vmem:[%s13997_s22 + $0x1f08] sm:$0xff] }
 0x23a   : > { %9994 = vmatprep.mubr.bf16.mxu0 %v14576_v18  ;;  %10486 = vmatprep.mubr.bf16.mxu1 %v14576_v18 }
 0x23c   : > { %9965 = vmatpush1.bf16.msra.mxu0 %v12731_v21  ;;  %10457 = vmatpush1.bf16.msra.mxu1 %v12733_v22  ;;  %v1208_v21 = vld [vmem:[%s13997_s22 + $0x1e28] sm:$0xff]  ;;  %v12779_v22 = vcombine.low %v1195_v6, %v1199_v10  ;;  %v1243_v10 = vld [vmem:[%s13997_s22 + $0x1f40] sm:$0xff] }
 0x23d   : > { %9966 = vmatprep.subr.bf16.mxu0 %v12740_v24  ;;  %10458 = vmatprep.subr.bf16.mxu1 %v12742_v25  ;;  %v12781_v24 = vcombine.low %v1196_v11, %v1200_v12  ;;  %v12788_v25 = vcombine.high %v1203_v17, %v1207_v16  ;;  %v12790_v26 = vcombine.high %v1204_v20, %v1208_v21  ;;  %v1247_v11 = vld [vmem:[%s13997_s22 + $0x1f60] sm:$0xff]  ;;  %v1244_v12 = vld [vmem:[%s13997_s22 + $0x1f48] sm:$0xff] }
 0x240   : > { %9967 = vmatpush1.bf16.msra.mxu0 %v12739_v63  ;;  %10459 = vmatpush1.bf16.msra.mxu1 %v12741_v33  ;;  %v1216_v63 = vld [vmem:[%s13997_s22 + $0x1e68] sm:$0xff]  ;;  %v12787_v33 = vcombine.low %v1203_v17, %v1207_v16  ;;  %v1251_v16 = vld [vmem:[%s13997_s22 + $0x1f80] sm:$0xff] }
 0x241   : > { %9968 = vmatprep.subr.bf16.mxu0 %v12748_v34  ;;  %10460 = vmatprep.subr.bf16.mxu1 %v12750_v35  ;;  %v12789_v34 = vcombine.low %v1204_v20, %v1208_v21  ;;  %v12796_v35 = vcombine.high %v1211_v28, %v1215_v30  ;;  %v12798_v36 = vcombine.high %v1212_v31, %v1216_v63  ;;  %v1255_v20 = vld [vmem:[%s13997_s22 + $0x1fa0] sm:$0xff]  ;;  %v1252_v21 = vld [vmem:[%s13997_s22 + $0x1f88] sm:$0xff] }
 0x244   : > { %9969 = vmatpush1.bf16.msra.mxu0 %v12747_v42  ;;  %10461 = vmatpush1.bf16.msra.mxu1 %v12749_v44  ;;  %v1224_v42 = vld [vmem:[%s13997_s22 + $0x1ea8] sm:$0xff]  ;;  %v12795_v44 = vcombine.low %v1211_v28, %v1215_v30  ;;  %v1259_v30 = vld [vmem:[%s13997_s22 + $0x1fc0] sm:$0xff] }
 0x245   : > { %9970 = vmatprep.subr.bf16.mxu0 %v12756_v45  ;;  %10462 = vmatprep.subr.bf16.mxu1 %v12758_v46  ;;  %v12797_v45 = vcombine.low %v1212_v31, %v1216_v63  ;;  %v12804_v46 = vcombine.high %v1219_v39, %v1223_v40  ;;  %v12806_v47 = vcombine.high %v1220_v41, %v1224_v42  ;;  %v1263_v31 = vld [vmem:[%s13997_s22 + $0x1fe0] sm:$0xff]  ;;  %v1260_v63 = vld [vmem:[%s13997_s22 + $0x1fc8] sm:$0xff] }
 0x248   : > { %9971 = vmatpush1.bf16.msra.mxu0 %v12755_v54  ;;  %10463 = vmatpush1.bf16.msra.mxu1 %v12757_v55  ;;  %v1232_v54 = vld [vmem:[%s13997_s22 + $0x1ee8] sm:$0xff]  ;;  %v12803_v55 = vcombine.low %v1219_v39, %v1223_v40  ;;  %v12844_v39 = vcombine.high %v1259_v30, %v1263_v31 }
 0x249   : > { %9972 = vmatprep.subr.bf16.mxu0 %v12764_v56  ;;  %10464 = vmatprep.subr.bf16.mxu1 %v12766_v57  ;;  %v12805_v56 = vcombine.low %v1220_v41, %v1224_v42  ;;  %v12812_v57 = vcombine.high %v1227_v49, %v1231_v50  ;;  %v12814_v60 = vcombine.high %v1228_v52, %v1232_v54  ;;  %v1267_v41 = vld [vmem:[%s13997_s22 + $0x2000] sm:$0xff] }
 0x24a   : > { %v1271_v42 = vld [vmem:[%s13997_s22 + $0x2020] sm:$0xff] }
 0x24c   : > { %9973 = vmatpush1.bf16.msra.mxu0 %v12763_v2  ;;  %10465 = vmatpush1.bf16.msra.mxu1 %v12765_v3  ;;  %v1240_v2 = vld [vmem:[%s13997_s22 + $0x1f28] sm:$0xff]  ;;  %v12811_v3 = vcombine.low %v1227_v49, %v1231_v50  ;;  %v12852_v50 = vcombine.high %v1267_v41, %v1271_v42 }
 0x24d   : > { %9974 = vmatprep.subr.bf16.mxu0 %v12772_v4  ;;  %10466 = vmatprep.subr.bf16.mxu1 %v12774_v29  ;;  %v12813_v4 = vcombine.low %v1228_v52, %v1232_v54  ;;  %v12820_v29 = vcombine.high %v1235_v61, %v1239_v62  ;;  %v12822_v6 = vcombine.high %v1236_v8, %v1240_v2  ;;  %v1275_v54 = vld [vmem:[%s13997_s22 + $0x2040] sm:$0xff] }
 0x250   : > { %9975 = vmatpush1.bf16.msra.mxu0 %v12771_v13  ;;  %10467 = vmatpush1.bf16.msra.mxu1 %v12773_v14  ;;  %v1248_v13 = vld [vmem:[%s13997_s22 + $0x1f68] sm:$0xff]  ;;  %v12819_v14 = vcombine.low %v1235_v61, %v1239_v62  ;;  %v12851_v62 = vcombine.low %v1267_v41, %v1271_v42 }
 0x251   : > { %9976 = vmatprep.subr.bf16.mxu0 %v12780_v15  ;;  %10468 = vmatprep.subr.bf16.mxu1 %v12782_v1  ;;  %v12821_v15 = vcombine.low %v1236_v8, %v1240_v2  ;;  %v12828_v1 = vcombine.high %v1243_v10, %v1247_v11  ;;  %v12830_v17 = vcombine.high %v1244_v12, %v1248_v13  ;;  %v1280_v61 = vld [vmem:[%s13997_s22 + $0x2068] sm:$0xff] }
 0x252   : > { %v1308_v41 = vld [vmem:[%s13997_s22 + $0x2148] sm:$0xff] }
 0x253   : > { %v1312_v42 = vld [vmem:[%s13997_s22 + $0x2168] sm:$0xff] }
 0x254   : > { %9977 = vmatpush1.bf16.msra.mxu0 %v12779_v22  ;;  %10469 = vmatpush1.bf16.msra.mxu1 %v12781_v24  ;;  %v1256_v22 = vld [vmem:[%s13997_s22 + $0x1fa8] sm:$0xff]  ;;  %v12827_v24 = vcombine.low %v1243_v10, %v1247_v11 }
 0x255   : > { %9978 = vmatprep.subr.bf16.mxu0 %v12788_v25  ;;  %10470 = vmatprep.subr.bf16.mxu1 %v12790_v26  ;;  %v12829_v25 = vcombine.low %v1244_v12, %v1248_v13  ;;  %v12836_v26 = vcombine.high %v1251_v16, %v1255_v20  ;;  %v12838_v28 = vcombine.high %v1252_v21, %v1256_v22  ;;  %v1284_v10 = vld [vmem:[%s13997_s22 + $0x2088] sm:$0xff] }
 0x256   : > { %v1288_v11 = vld [vmem:[%s13997_s22 + $0x20a8] sm:$0xff] }
 0x258   : > { %9979 = vmatpush1.bf16.msra.mxu0 %v12787_v33  ;;  %10471 = vmatpush1.bf16.msra.mxu1 %v12789_v34  ;;  %v1264_v33 = vld [vmem:[%s13997_s22 + $0x1fe8] sm:$0xff]  ;;  %v14636_v34 = vld [vmem:[#allocation2 + $0x10] sm:$0xff] }
 0x259   : > { %9980 = vmatprep.subr.bf16.mxu0 %v12796_v35  ;;  %10472 = vmatprep.subr.bf16.mxu1 %v12798_v36  ;;  %v12835_v35 = vcombine.low %v1251_v16, %v1255_v20  ;;  %v12837_v36 = vcombine.low %v1252_v21, %v1256_v22  ;;  %v12846_v40 = vcombine.high %v1260_v63, %v1264_v33  ;;  %v1292_v16 = vld [vmem:[%s13997_s22 + $0x20c8] sm:$0xff] }
 0x25a   : > { %v12845_v49 = vcombine.low %v1260_v63, %v1264_v33  ;;  %v1296_v20 = vld [vmem:[%s13997_s22 + $0x20e8] sm:$0xff]  ;;  %v12869_v22 = vcombine.low %v1284_v10, %v1288_v11 }
 0x25b   : > { %v12877_v33 = vcombine.low %v1292_v16, %v1296_v20 }
 0x25c   : > { %9981 = vmatpush1.bf16.msra.mxu0 %v12795_v44  ;;  %10473 = vmatpush1.bf16.msra.mxu1 %v12797_v45  ;;  %v14642_v44 = vrot.slane %v14636_v34, %v14032_v53  ;;  %v1268_v45 = vld [vmem:[%s13997_s22 + $0x2008] sm:$0xff] }
 0x25d   : > { %9982 = vmatprep.subr.bf16.mxu0 %v12804_v46  ;;  %10474 = vmatprep.subr.bf16.mxu1 %v12806_v47  ;;  %v1272_v46 = vld [vmem:[%s13997_s22 + $0x2028] sm:$0xff]  ;;  %v12843_v47 = vcombine.low %v1259_v30, %v1263_v31 }
 0x25e   : > { %v12854_v52 = vcombine.high %v1268_v45, %v1272_v46  ;;  %v12853_v8 = vcombine.low %v1268_v45, %v1272_v46  ;;  %v1300_v30 = vld [vmem:[%s13997_s22 + $0x2108] sm:$0xff] }
 0x25f   : > { %v1304_v31 = vld [vmem:[%s13997_s22 + $0x2128] sm:$0xff] }
 0x260   : > { %9983 = vmatpush1.bf16.msra.mxu0 %v12803_v55  ;;  %10475 = vmatpush1.bf16.msra.mxu1 %v12805_v56  ;;  %v1279_v55 = vld [vmem:[%s13997_s22 + $0x2060] sm:$0xff]  ;;  %v1937_v56 = vcombine.high %v14642_v44, %v14642_v44  ;;  %v12885_v46 = vcombine.low %v1300_v30, %v1304_v31 }
 0x261   : > { %9984 = vmatprep.subr.bf16.mxu0 %v12812_v57  ;;  %10476 = vmatprep.subr.bf16.mxu1 %v12814_v60  ;;  %v14652_v57 = vcombine.high %v14568_v7, %v14568_v7  ;;  %v1276_v60 = vld [vmem:[%s13997_s22 + $0x2048] sm:$0xff]  ;;  %v12860_v2 = vcombine.high %v1275_v54, %v1279_v55  ;;  %v12859_v12 = vcombine.low %v1275_v54, %v1279_v55 }
 0x262   : > { %v12861_v13 = vcombine.low %v1276_v60, %v1280_v61  ;;  %v1316_v54 = vld [vmem:[%s13997_s22 + $0x2188] sm:$0xff] }
 0x263   : > { %v1320_v55 = vld [vmem:[%s13997_s22 + $0x21a8] sm:$0xff] }
 0x264   : > { %9985 = vmatpush1.bf16.msra.mxu0 %v12811_v3  ;;  %10477 = vmatpush1.bf16.msra.mxu1 %v12813_v4  ;;  %v12862_v3 = vcombine.high %v1276_v60, %v1280_v61  ;;  %v1283_v4 = vld [vmem:[%s13997_s22 + $0x2080] sm:$0xff]  ;;  %v12893_v60 = vcombine.low %v1308_v41, %v1312_v42 }
 0x265   : > { %9986 = vmatprep.subr.bf16.mxu0 %v12820_v29  ;;  %10478 = vmatprep.subr.bf16.mxu1 %v12822_v6  ;;  %v1287_v29 = vld [vmem:[%s13997_s22 + $0x20a0] sm:$0xff]  ;;  %v14659_v6 = vrot.slane %v1937_v56, %v14032_v53 }
 0x266   : > { %v12867_v21 = vcombine.low %v1283_v4, %v1287_v29 }
 0x268   : > { %9987 = vmatpush1.bf16.msra.mxu0 %v12819_v14  ;;  %10479 = vmatpush1.bf16.msra.mxu1 %v12821_v15  ;;  %v12868_v14 = vcombine.high %v1283_v4, %v1287_v29  ;;  %v12870_v15 = vcombine.high %v1284_v10, %v1288_v11  ;;  %v1328_v4 = vld [vmem:[%s13997_s22 + $0x21e8] sm:$0xff]  ;;  %v12901_v10 = vcombine.low %v1316_v54, %v1320_v55 }
 0x269   : > { %9988 = vmatprep.subr.bf16.mxu0 %v12828_v1  ;;  %10480 = vmatprep.subr.bf16.mxu1 %v12830_v17  ;;  %v1291_v1 = vld [vmem:[%s13997_s22 + $0x20c0] sm:$0xff] }
 0x26a   : > { %v1295_v17 = vld [vmem:[%s13997_s22 + $0x20e0] sm:$0xff] }
 0x26b   : > { %v12875_v63 = vcombine.low %v1291_v1, %v1295_v17 }
 0x26c   : > { %9989 = vmatpush1.bf16.msra.mxu0 %v12827_v24  ;;  %10481 = vmatpush1.bf16.msra.mxu1 %v12829_v25  ;;  %v12876_v24 = vcombine.high %v1291_v1, %v1295_v17  ;;  %v12878_v25 = vcombine.high %v1292_v16, %v1296_v20  ;;  %v1336_v1 = vld [vmem:[%s13997_s22 + $0x2228] sm:$0xff] }
 0x26d   : > { %9990 = vmatprep.subr.bf16.mxu0 %v12836_v26  ;;  %10482 = vmatprep.subr.bf16.mxu1 %v12838_v28  ;;  %v1299_v26 = vld [vmem:[%s13997_s22 + $0x2100] sm:$0xff] }
 0x26e   : > { %v1303_v28 = vld [vmem:[%s13997_s22 + $0x2120] sm:$0xff] }
 0x26f   : > { %v12883_v45 = vcombine.low %v1299_v26, %v1303_v28 }
 0x270   : > { %9991 = vmatpush1.bf16.msra.mxu0 %v12835_v35  ;;  %10483 = vmatpush1.bf16.msra.mxu1 %v12837_v36  ;;  %v12884_v35 = vcombine.high %v1299_v26, %v1303_v28  ;;  %v12886_v36 = vcombine.high %v1300_v30, %v1304_v31  ;;  %v1344_v26 = vld [vmem:[%s13997_s22 + $0x2268] sm:$0xff] }
 0x271   : > { %9992 = vmatprep.subr.bf16.mxu0 %v12844_v39  ;;  %10484 = vmatprep.subr.bf16.mxu1 %v12846_v40  ;;  %v1307_v39 = vld [vmem:[%s13997_s22 + $0x2140] sm:$0xff] }
 0x272   : > { %v1311_v40 = vld [vmem:[%s13997_s22 + $0x2160] sm:$0xff] }
 0x273   : > { %v12891_v56 = vcombine.low %v1307_v39, %v1311_v40 }
 0x274   : > { %9993 = vmatpush1.bf16.msra.mxu0 %v12843_v47  ;;  %10485 = vmatpush1.bf16.msra.mxu1 %v12845_v49  ;;  %v12892_v47 = vcombine.high %v1307_v39, %v1311_v40  ;;  %v12894_v49 = vcombine.high %v1308_v41, %v1312_v42  ;;  %v1352_v39 = vld [vmem:[%s13997_s22 + $0x22a8] sm:$0xff] }
 0x275   : > { %10003 = vmatprep.subr.bf16.mxu0 %v12852_v50  ;;  %10495 = vmatprep.subr.bf16.mxu1 %v12854_v52  ;;  %v1315_v50 = vld [vmem:[%s13997_s22 + $0x2180] sm:$0xff] }
 0x276   : > { %v1319_v52 = vld [vmem:[%s13997_s22 + $0x21a0] sm:$0xff] }
 0x277   : > { %9995 = vmatmul.mubr.bf16.vlgmr.msra.gmra.mrb[0].mxu0 %v14652_v57  ;;  %10487 = vmatmul.mubr.bf16.vlgmr.msra.gmra.mrb[0].mxu1 %v14652_v57  ;;  %v12900_v61 = vcombine.high %v1315_v50, %v1319_v52  ;;  %v12899_v29 = vcombine.low %v1315_v50, %v1319_v52  ;;  %v1360_v50 = vld [vmem:[%s13997_s22 + $0x22e8] sm:$0xff] }
 0x278   : > { %10004 = vmatpush1.bf16.msra.mxu0 %v12851_v62  ;;  %10496 = vmatpush1.bf16.msra.mxu1 %v12853_v8  ;;  %v12902_v62 = vcombine.high %v1316_v54, %v1320_v55  ;;  %v1323_v8 = vld [vmem:[%s13997_s22 + $0x21c0] sm:$0xff] }
 0x279   : > { %10005 = vmatprep.subr.bf16.mxu0 %v12860_v2  ;;  %10497 = vmatprep.subr.bf16.mxu1 %v12862_v3  ;;  %v1327_v2 = vld [vmem:[%s13997_s22 + $0x21e0] sm:$0xff]  ;;  %v1324_v3 = vld [vmem:[%s13997_s22 + $0x21c8] sm:$0xff] }
 0x27a   : > { %10035 = vmatprep.mubr.bf16.mxu0 %v14659_v6  ;;  %10527 = vmatprep.mubr.bf16.mxu1 %v14659_v6  ;;  %v12908_v11 = vcombine.high %v1323_v8, %v1327_v2  ;;  %v12907_v17 = vcombine.low %v1323_v8, %v1327_v2  ;;  %v12909_v16 = vcombine.low %v1324_v3, %v1328_v4  ;;  %v1368_v8 = vld [vmem:[%s13997_s22 + $0x2328] sm:$0xff] }
 0x27c   : > { %10006 = vmatpush1.bf16.msra.mxu0 %v12859_v12  ;;  %10498 = vmatpush1.bf16.msra.mxu1 %v12861_v13  ;;  %v12910_v12 = vcombine.high %v1324_v3, %v1328_v4  ;;  %v1331_v13 = vld [vmem:[%s13997_s22 + $0x2200] sm:$0xff] }
 0x27d   : > { %10007 = vmatprep.subr.bf16.mxu0 %v12868_v14  ;;  %10499 = vmatprep.subr.bf16.mxu1 %v12870_v15  ;;  %v1335_v14 = vld [vmem:[%s13997_s22 + $0x2220] sm:$0xff]  ;;  %v1332_v15 = vld [vmem:[%s13997_s22 + $0x2208] sm:$0xff] }
 0x27e   : > { %v12916_v20 = vcombine.high %v1331_v13, %v1335_v14  ;;  %v12915_v28 = vcombine.low %v1331_v13, %v1335_v14  ;;  %v12917_v30 = vcombine.low %v1332_v15, %v1336_v1  ;;  %v1376_v13 = vld [vmem:[%s13997_s22 + $0x2368] sm:$0xff] }
 0x280   : > { %10008 = vmatpush1.bf16.msra.mxu0 %v12867_v21  ;;  %10500 = vmatpush1.bf16.msra.mxu1 %v12869_v22  ;;  %v12918_v21 = vcombine.high %v1332_v15, %v1336_v1  ;;  %v1339_v22 = vld [vmem:[%s13997_s22 + $0x2240] sm:$0xff] }
 0x281   : > { %10009 = vmatprep.subr.bf16.mxu0 %v12876_v24  ;;  %10501 = vmatprep.subr.bf16.mxu1 %v12878_v25  ;;  %v1343_v24 = vld [vmem:[%s13997_s22 + $0x2260] sm:$0xff]  ;;  %v1340_v25 = vld [vmem:[%s13997_s22 + $0x2248] sm:$0xff] }
 0x282   : > { %v12924_v31 = vcombine.high %v1339_v22, %v1343_v24  ;;  %v12923_v40 = vcombine.low %v1339_v22, %v1343_v24  ;;  %v12925_v41 = vcombine.low %v1340_v25, %v1344_v26  ;;  %v1384_v22 = vld [vmem:[%s13997_s22 + $0x23a8] sm:$0xff] }
 0x284   : > { %10010 = vmatpush1.bf16.msra.mxu0 %v12875_v63  ;;  %10502 = vmatpush1.bf16.msra.mxu1 %v12877_v33  ;;  %v12926_v63 = vcombine.high %v1340_v25, %v1344_v26  ;;  %v1347_v33 = vld [vmem:[%s13997_s22 + $0x2280] sm:$0xff] }
 0x285   : > { %10011 = vmatprep.subr.bf16.mxu0 %v12884_v35  ;;  %10503 = vmatprep.subr.bf16.mxu1 %v12886_v36  ;;  %v1351_v35 = vld [vmem:[%s13997_s22 + $0x22a0] sm:$0xff]  ;;  %v1348_v36 = vld [vmem:[%s13997_s22 + $0x2288] sm:$0xff] }
 0x286   : > { %v12932_v42 = vcombine.high %v1347_v33, %v1351_v35  ;;  %v12931_v52 = vcombine.low %v1347_v33, %v1351_v35  ;;  %v12933_v54 = vcombine.low %v1348_v36, %v1352_v39  ;;  %v1392_v33 = vld [vmem:[%s13997_s22 + $0x23e8] sm:$0xff] }
 0x288   : > { %10012 = vmatpush1.bf16.msra.mxu0 %v12883_v45  ;;  %10504 = vmatpush1.bf16.msra.mxu1 %v12885_v46  ;;  %v12934_v45 = vcombine.high %v1348_v36, %v1352_v39  ;;  %v1355_v46 = vld [vmem:[%s13997_s22 + $0x22c0] sm:$0xff] }
 0x289   : > { %10013 = vmatprep.subr.bf16.mxu0 %v12892_v47  ;;  %10505 = vmatprep.subr.bf16.mxu1 %v12894_v49  ;;  %v1359_v47 = vld [vmem:[%s13997_s22 + $0x22e0] sm:$0xff]  ;;  %v1356_v49 = vld [vmem:[%s13997_s22 + $0x22c8] sm:$0xff] }
 0x28a   : > { %v12940_v55 = vcombine.high %v1355_v46, %v1359_v47  ;;  %v12939_v2 = vcombine.low %v1355_v46, %v1359_v47  ;;  %v12941_v3 = vcombine.low %v1356_v49, %v1360_v50  ;;  %v1400_v46 = vld [vmem:[%s13997_s22 + $0x2428] sm:$0xff] }
 0x28c   : > { %10014 = vmatpush1.bf16.msra.mxu0 %v12891_v56  ;;  %10506 = vmatpush1.bf16.msra.mxu1 %v12893_v60  ;;  %v12942_v56 = vcombine.high %v1356_v49, %v1360_v50  ;;  %v1363_v60 = vld [vmem:[%s13997_s22 + $0x2300] sm:$0xff] }
 0x28d   : > { %10015 = vmatprep.subr.bf16.mxu0 %v12900_v61  ;;  %10507 = vmatprep.subr.bf16.mxu1 %v12902_v62  ;;  %v1367_v61 = vld [vmem:[%s13997_s22 + $0x2320] sm:$0xff]  ;;  %v1364_v62 = vld [vmem:[%s13997_s22 + $0x2308] sm:$0xff] }
 0x28e   : > { %v12948_v4 = vcombine.high %v1363_v60, %v1367_v61  ;;  %v12947_v14 = vcombine.low %v1363_v60, %v1367_v61  ;;  %v12949_v15 = vcombine.low %v1364_v62, %v1368_v8  ;;  %v1404_v60 = vld [vmem:[%s13997_s22 + $0x2448] sm:$0xff] }
 0x28f   : > { %v1408_v61 = vld [vmem:[%s13997_s22 + $0x2468] sm:$0xff] }
 0x290   : > { %10016 = vmatpush1.bf16.msra.mxu0 %v12899_v29  ;;  %10508 = vmatpush1.bf16.msra.mxu1 %v12901_v10  ;;  %v12950_v29 = vcombine.high %v1364_v62, %v1368_v8  ;;  %v1371_v10 = vld [vmem:[%s13997_s22 + $0x2340] sm:$0xff] }
 0x291   : > { %10017 = vmatprep.subr.bf16.mxu0 %v12908_v11  ;;  %10509 = vmatprep.subr.bf16.mxu1 %v12910_v12  ;;  %v1375_v11 = vld [vmem:[%s13997_s22 + $0x2360] sm:$0xff]  ;;  %v1372_v12 = vld [vmem:[%s13997_s22 + $0x2348] sm:$0xff] }
 0x292   : > { %v12956_v1 = vcombine.high %v1371_v10, %v1375_v11  ;;  %v12955_v24 = vcombine.low %v1371_v10, %v1375_v11  ;;  %v12957_v25 = vcombine.low %v1372_v12, %v1376_v13  ;;  %v14735_v10 = vcombine.high %v14659_v6, %v14659_v6  ;;  %v1416_v11 = vld [vmem:[%s13997_s22 + $0x24a8] sm:$0xff] }
 0x294   : > { %10018 = vmatpush1.bf16.msra.mxu0 %v12907_v17  ;;  %10510 = vmatpush1.bf16.msra.mxu1 %v12909_v16  ;;  %v12958_v17 = vcombine.high %v1372_v12, %v1376_v13  ;;  %v1379_v16 = vld [vmem:[%s13997_s22 + $0x2380] sm:$0xff]  ;;  %v12989_v13 = vcombine.low %v1404_v60, %v1408_v61 }
 0x295   : > { %10019 = vmatprep.subr.bf16.mxu0 %v12916_v20  ;;  %10511 = vmatprep.subr.bf16.mxu1 %v12918_v21  ;;  %v1383_v20 = vld [vmem:[%s13997_s22 + $0x23a0] sm:$0xff]  ;;  %v1380_v21 = vld [vmem:[%s13997_s22 + $0x2388] sm:$0xff] }
 0x296   : > { %v12964_v26 = vcombine.high %v1379_v16, %v1383_v20  ;;  %v12963_v35 = vcombine.low %v1379_v16, %v1383_v20  ;;  %v12965_v36 = vcombine.low %v1380_v21, %v1384_v22  ;;  %v1420_v16 = vld [vmem:[%s13997_s22 + $0x24c8] sm:$0xff] }
 0x297   : > { %v1424_v20 = vld [vmem:[%s13997_s22 + $0x24e8] sm:$0xff] }
 0x298   : > { %10020 = vmatpush1.bf16.msra.mxu0 %v12915_v28  ;;  %10512 = vmatpush1.bf16.msra.mxu1 %v12917_v30  ;;  %v12966_v28 = vcombine.high %v1380_v21, %v1384_v22  ;;  %v1387_v30 = vld [vmem:[%s13997_s22 + $0x23c0] sm:$0xff] }
 0x299   : > { %10021 = vmatprep.subr.bf16.mxu0 %v12924_v31  ;;  %10513 = vmatprep.subr.bf16.mxu1 %v12926_v63  ;;  %v1391_v31 = vld [vmem:[%s13997_s22 + $0x23e0] sm:$0xff]  ;;  %v1388_v63 = vld [vmem:[%s13997_s22 + $0x23c8] sm:$0xff] }
 0x29a   : > { %v12972_v39 = vcombine.high %v1387_v30, %v1391_v31  ;;  %v12971_v47 = vcombine.low %v1387_v30, %v1391_v31  ;;  %v12973_v49 = vcombine.low %v1388_v63, %v1392_v33  ;;  %v1428_v30 = vld [vmem:[%s13997_s22 + $0x2508] sm:$0xff] }
 0x29b   : > { %v1432_v31 = vld [vmem:[%s13997_s22 + $0x2528] sm:$0xff] }
 0x29c   : > { %10022 = vmatpush1.bf16.msra.mxu0 %v12923_v40  ;;  %10514 = vmatpush1.bf16.msra.mxu1 %v12925_v41  ;;  %v12974_v40 = vcombine.high %v1388_v63, %v1392_v33  ;;  %v1395_v41 = vld [vmem:[%s13997_s22 + $0x2400] sm:$0xff]  ;;  %v13005_v33 = vcombine.low %v1420_v16, %v1424_v20 }
 0x29d   : > { %10023 = vmatprep.subr.bf16.mxu0 %v12932_v42  ;;  %10515 = vmatprep.subr.bf16.mxu1 %v12934_v45  ;;  %v1399_v42 = vld [vmem:[%s13997_s22 + $0x2420] sm:$0xff]  ;;  %v1396_v45 = vld [vmem:[%s13997_s22 + $0x2408] sm:$0xff] }
 0x29e   : > { %v12980_v50 = vcombine.high %v1395_v41, %v1399_v42  ;;  %v12979_v62 = vcombine.low %v1395_v41, %v1399_v42  ;;  %v12981_v8 = vcombine.low %v1396_v45, %v1400_v46  ;;  %v1436_v41 = vld [vmem:[%s13997_s22 + $0x2548] sm:$0xff] }
 0x29f   : > { %v1440_v42 = vld [vmem:[%s13997_s22 + $0x2568] sm:$0xff] }
 0x2a0   : > { %10024 = vmatpush1.bf16.msra.mxu0 %v12931_v52  ;;  %10516 = vmatpush1.bf16.msra.mxu1 %v12933_v54  ;;  %v12982_v52 = vcombine.high %v1396_v45, %v1400_v46  ;;  %v1403_v54 = vld [vmem:[%s13997_s22 + $0x2440] sm:$0xff]  ;;  %v13013_v46 = vcombine.low %v1428_v30, %v1432_v31 }
 0x2a1   : > { %10025 = vmatprep.subr.bf16.mxu0 %v12940_v55  ;;  %10517 = vmatprep.subr.bf16.mxu1 %v12942_v56  ;;  %v1407_v55 = vld [vmem:[%s13997_s22 + $0x2460] sm:$0xff]  ;;  %v14727_v56 = vrot.slane %v14642_v44, %v14032_v53  ;;  %v1412_v44 = vld [vmem:[%s13997_s22 + $0x2488] sm:$0xff] }
 0x2a2   : > { %v12987_v12 = vcombine.low %v1403_v54, %v1407_v55  ;;  %v12997_v22 = vcombine.low %v1412_v44, %v1416_v11 }
 0x2a4   : > { %10026 = vmatpush1.bf16.msra.mxu0 %v12939_v2  ;;  %10518 = vmatpush1.bf16.msra.mxu1 %v12941_v3  ;;  %v12988_v2 = vcombine.high %v1403_v54, %v1407_v55  ;;  %v12990_v3 = vcombine.high %v1404_v60, %v1408_v61  ;;  %v1444_v54 = vld [vmem:[%s13997_s22 + $0x2588] sm:$0xff]  ;;  %v13021_v61 = vcombine.low %v1436_v41, %v1440_v42 }
 0x2a5   : > { %10027 = vmatprep.subr.bf16.mxu0 %v12948_v4  ;;  %10519 = vmatprep.subr.bf16.mxu1 %v12950_v29  ;;  %v1411_v4 = vld [vmem:[%s13997_s22 + $0x2480] sm:$0xff]  ;;  %v1448_v55 = vld [vmem:[%s13997_s22 + $0x25a8] sm:$0xff] }
 0x2a6   : > { %v1415_v29 = vld [vmem:[%s13997_s22 + $0x24a0] sm:$0xff] }
 0x2a7   : > { %v12995_v21 = vcombine.low %v1411_v4, %v1415_v29 }
 0x2a8   : > { %10028 = vmatpush1.bf16.msra.mxu0 %v12947_v14  ;;  %10520 = vmatpush1.bf16.msra.mxu1 %v12949_v15  ;;  %v12996_v14 = vcombine.high %v1411_v4, %v1415_v29  ;;  %v12998_v15 = vcombine.high %v1412_v44, %v1416_v11  ;;  %v1452_v4 = vld [vmem:[%s13997_s22 + $0x25c8] sm:$0xff]  ;;  %v13029_v11 = vcombine.low %v1444_v54, %v1448_v55 }
 0x2a9   : > { %10029 = vmatprep.subr.bf16.mxu0 %v12956_v1  ;;  %10521 = vmatprep.subr.bf16.mxu1 %v12958_v17  ;;  %v1419_v1 = vld [vmem:[%s13997_s22 + $0x24c0] sm:$0xff]  ;;  %v1456_v29 = vld [vmem:[%s13997_s22 + $0x25e8] sm:$0xff] }
 0x2aa   : > { %v1423_v17 = vld [vmem:[%s13997_s22 + $0x24e0] sm:$0xff] }
 0x2ab   : > { %v13003_v63 = vcombine.low %v1419_v1, %v1423_v17 }
 0x2ac   : > { %10030 = vmatpush1.bf16.msra.mxu0 %v12955_v24  ;;  %10522 = vmatpush1.bf16.msra.mxu1 %v12957_v25  ;;  %v13004_v24 = vcombine.high %v1419_v1, %v1423_v17  ;;  %v13006_v25 = vcombine.high %v1420_v16, %v1424_v20  ;;  %v1460_v1 = vld [vmem:[%s13997_s22 + $0x2608] sm:$0xff]  ;;  %v13037_v20 = vcombine.low %v1452_v4, %v1456_v29 }
 0x2ad   : > { %10031 = vmatprep.subr.bf16.mxu0 %v12964_v26  ;;  %10523 = vmatprep.subr.bf16.mxu1 %v12966_v28  ;;  %v1427_v26 = vld [vmem:[%s13997_s22 + $0x2500] sm:$0xff]  ;;  %v1464_v17 = vld [vmem:[%s13997_s22 + $0x2628] sm:$0xff] }
 0x2ae   : > { %v1431_v28 = vld [vmem:[%s13997_s22 + $0x2520] sm:$0xff] }
 0x2af   : > { %v13011_v45 = vcombine.low %v1427_v26, %v1431_v28 }
 0x2b0   : > { %10032 = vmatpush1.bf16.msra.mxu0 %v12963_v35  ;;  %10524 = vmatpush1.bf16.msra.mxu1 %v12965_v36  ;;  %v13012_v35 = vcombine.high %v1427_v26, %v1431_v28  ;;  %v13014_v36 = vcombine.high %v1428_v30, %v1432_v31  ;;  %v1468_v26 = vld [vmem:[%s13997_s22 + $0x2648] sm:$0xff]  ;;  %v13045_v31 = vcombine.low %v1460_v1, %v1464_v17 }
 0x2b1   : > { %10033 = vmatprep.subr.bf16.mxu0 %v12972_v39  ;;  %10525 = vmatprep.subr.bf16.mxu1 %v12974_v40  ;;  %v1435_v39 = vld [vmem:[%s13997_s22 + $0x2540] sm:$0xff]  ;;  %v1472_v28 = vld [vmem:[%s13997_s22 + $0x2668] sm:$0xff] }
 0x2b2   : > { %v1439_v40 = vld [vmem:[%s13997_s22 + $0x2560] sm:$0xff] }
 0x2b3   : > { %v13019_v60 = vcombine.low %v1435_v39, %v1439_v40 }
 0x2b4   : > { %10034 = vmatpush1.bf16.msra.mxu0 %v12971_v47  ;;  %10526 = vmatpush1.bf16.msra.mxu1 %v12973_v49  ;;  %v13020_v47 = vcombine.high %v1435_v39, %v1439_v40  ;;  %v13022_v49 = vcombine.high %v1436_v41, %v1440_v42  ;;  %v1476_v39 = vld [vmem:[%s13997_s22 + $0x2688] sm:$0xff]  ;;  %v13053_v42 = vcombine.low %v1468_v26, %v1472_v28 }
 0x2b5   : > { %10044 = vmatprep.subr.bf16.mxu0 %v12980_v50  ;;  %10536 = vmatprep.subr.bf16.mxu1 %v12982_v52  ;;  %v1443_v50 = vld [vmem:[%s13997_s22 + $0x2580] sm:$0xff]  ;;  %v1480_v40 = vld [vmem:[%s13997_s22 + $0x26a8] sm:$0xff] }
 0x2b6   : > { %v1447_v52 = vld [vmem:[%s13997_s22 + $0x25a0] sm:$0xff] }
 0x2b7   : > { %10036 = vmatmul.mubr.bf16.vlgmr.msra.gmra.mrb[0].mxu0 %v14727_v56  ;;  %10528 = vmatmul.mubr.bf16.vlgmr.msra.gmra.mrb[0].mxu1 %v14727_v56  ;;  %v13027_v44 = vcombine.low %v1443_v50, %v1447_v52 }
 0x2b8   : > { %10045 = vmatpush1.bf16.msra.mxu0 %v12979_v62  ;;  %10537 = vmatpush1.bf16.msra.mxu1 %v12981_v8  ;;  %v13028_v62 = vcombine.high %v1443_v50, %v1447_v52  ;;  %v13030_v8 = vcombine.high %v1444_v54, %v1448_v55  ;;  %v1484_v50 = vld [vmem:[%s13997_s22 + $0x26c8] sm:$0xff]  ;;  %v13061_v55 = vcombine.low %v1476_v39, %v1480_v40 }
 0x2b9   : > { %10046 = vmatprep.subr.bf16.mxu0 %v12988_v2  ;;  %10538 = vmatprep.subr.bf16.mxu1 %v12990_v3  ;;  %v1451_v2 = vld [vmem:[%s13997_s22 + $0x25c0] sm:$0xff]  ;;  %v1488_v52 = vld [vmem:[%s13997_s22 + $0x26e8] sm:$0xff] }
 0x2ba   : > { %10076 = vmatprep.mubr.bf16.mxu0 %v14735_v10  ;;  %10568 = vmatprep.mubr.bf16.mxu1 %v14735_v10  ;;  %v1455_v3 = vld [vmem:[%s13997_s22 + $0x25e0] sm:$0xff] }
 0x2bb   : > { %v13035_v16 = vcombine.low %v1451_v2, %v1455_v3 }
 0x2bc   : > { %10047 = vmatpush1.bf16.msra.mxu0 %v12987_v12  ;;  %10539 = vmatpush1.bf16.msra.mxu1 %v12989_v13  ;;  %v13036_v12 = vcombine.high %v1451_v2, %v1455_v3  ;;  %v13038_v13 = vcombine.high %v1452_v4, %v1456_v29  ;;  %v1492_v2 = vld [vmem:[%s13997_s22 + $0x2708] sm:$0xff]  ;;  %v13069_v29 = vcombine.low %v1484_v50, %v1488_v52 }
 0x2bd   : > { %10048 = vmatprep.subr.bf16.mxu0 %v12996_v14  ;;  %10540 = vmatprep.subr.bf16.mxu1 %v12998_v15  ;;  %v1459_v14 = vld [vmem:[%s13997_s22 + $0x2600] sm:$0xff]  ;;  %v1496_v3 = vld [vmem:[%s13997_s22 + $0x2728] sm:$0xff] }
 0x2be   : > { %v1463_v15 = vld [vmem:[%s13997_s22 + $0x2620] sm:$0xff] }
 0x2bf   : > { %v13043_v30 = vcombine.low %v1459_v14, %v1463_v15 }
 0x2c0   : > { %10049 = vmatpush1.bf16.msra.mxu0 %v12995_v21  ;;  %10541 = vmatpush1.bf16.msra.mxu1 %v12997_v22  ;;  %v13044_v21 = vcombine.high %v1459_v14, %v1463_v15  ;;  %v13046_v22 = vcombine.high %v1460_v1, %v1464_v17  ;;  %v1500_v14 = vld [vmem:[%s13997_s22 + $0x2748] sm:$0xff]  ;;  %v13077_v17 = vcombine.low %v1492_v2, %v1496_v3 }
 0x2c1   : > { %10050 = vmatprep.subr.bf16.mxu0 %v13004_v24  ;;  %10542 = vmatprep.subr.bf16.mxu1 %v13006_v25  ;;  %v1467_v24 = vld [vmem:[%s13997_s22 + $0x2640] sm:$0xff]  ;;  %v1504_v15 = vld [vmem:[%s13997_s22 + $0x2768] sm:$0xff] }
 0x2c2   : > { %v1471_v25 = vld [vmem:[%s13997_s22 + $0x2660] sm:$0xff] }
 0x2c3   : > { %v13051_v41 = vcombine.low %v1467_v24, %v1471_v25 }
 0x2c4   : > { %10051 = vmatpush1.bf16.msra.mxu0 %v13003_v63  ;;  %10543 = vmatpush1.bf16.msra.mxu1 %v13005_v33  ;;  %v13052_v63 = vcombine.high %v1467_v24, %v1471_v25  ;;  %v13054_v33 = vcombine.high %v1468_v26, %v1472_v28  ;;  %v1508_v24 = vld [vmem:[%s13997_s22 + $0x2788] sm:$0xff]  ;;  %v13085_v28 = vcombine.low %v1500_v14, %v1504_v15 }
 0x2c5   : > { %10052 = vmatprep.subr.bf16.mxu0 %v13012_v35  ;;  %10544 = vmatprep.subr.bf16.mxu1 %v13014_v36  ;;  %v1475_v35 = vld [vmem:[%s13997_s22 + $0x2680] sm:$0xff]  ;;  %v1512_v25 = vld [vmem:[%s13997_s22 + $0x27a8] sm:$0xff] }
 0x2c6   : > { %v1479_v36 = vld [vmem:[%s13997_s22 + $0x26a0] sm:$0xff] }
 0x2c7   : > { %v13059_v54 = vcombine.low %v1475_v35, %v1479_v36 }
 0x2c8   : > { %10053 = vmatpush1.bf16.msra.mxu0 %v13011_v45  ;;  %10545 = vmatpush1.bf16.msra.mxu1 %v13013_v46  ;;  %v13060_v45 = vcombine.high %v1475_v35, %v1479_v36  ;;  %v13062_v46 = vcombine.high %v1476_v39, %v1480_v40  ;;  %v1922_v35 = vcombine.high %v14636_v34, %v14636_v34  ;;  %v1516_v36 = vld [vmem:[%s13997_s22 + $0x27c8] sm:$0xff] }
 0x2c9   : > { %10054 = vmatprep.subr.bf16.mxu0 %v13020_v47  ;;  %10546 = vmatprep.subr.bf16.mxu1 %v13022_v49  ;;  %v1483_v47 = vld [vmem:[%s13997_s22 + $0x26c0] sm:$0xff]  ;;  %v1520_v39 = vld [vmem:[%s13997_s22 + $0x27e8] sm:$0xff] }
 0x2ca   : > { %v1487_v49 = vld [vmem:[%s13997_s22 + $0x26e0] sm:$0xff]  ;;  %v1524_v34 = vld [vmem:[%s13997_s22 + $0x2808] sm:$0xff] }
 0x2cb   : > { %v13067_v4 = vcombine.low %v1483_v47, %v1487_v49 }
 0x2cc   : > { %10055 = vmatpush1.bf16.msra.mxu0 %v13019_v60  ;;  %10547 = vmatpush1.bf16.msra.mxu1 %v13021_v61  ;;  %v13068_v60 = vcombine.high %v1483_v47, %v1487_v49  ;;  %v13070_v61 = vcombine.high %v1484_v50, %v1488_v52  ;;  %v1527_v47 = vld [vmem:[%s13997_s22 + $0x2820] sm:$0xff]  ;;  %v14800_v49 = vrot.slane %v1922_v35, %v14032_v53  ;;  %v1528_v50 = vld [vmem:[%s13997_s22 + $0x2828] sm:$0xff] }
 0x2cd   : > { %10056 = vmatprep.subr.bf16.mxu0 %v13028_v62  ;;  %10548 = vmatprep.subr.bf16.mxu1 %v13030_v8  ;;  %v1491_v62 = vld [vmem:[%s13997_s22 + $0x2700] sm:$0xff] }
 0x2ce   : > { %v1495_v8 = vld [vmem:[%s13997_s22 + $0x2720] sm:$0xff] }
 0x2cf   : > { %v13075_v1 = vcombine.low %v1491_v62, %v1495_v8  ;;  %v1555_v35 = vld [vmem:[%s13997_s22 + $0x2900] sm:$0xff] }
 0x2d0   : > { %10057 = vmatpush1.bf16.msra.mxu0 %v13027_v44  ;;  %10549 = vmatpush1.bf16.msra.mxu1 %v13029_v11  ;;  %v13076_v44 = vcombine.high %v1491_v62, %v1495_v8  ;;  %v13078_v11 = vcombine.high %v1492_v2, %v1496_v3  ;;  %v1535_v62 = vld [vmem:[%s13997_s22 + $0x2860] sm:$0xff]  ;;  %v1938_v8 = vcombine.high %v14800_v49, %v14800_v49  ;;  %v1532_v3 = vld [vmem:[%s13997_s22 + $0x2848] sm:$0xff] }
 0x2d1   : > { %10058 = vmatprep.subr.bf16.mxu0 %v13036_v12  ;;  %10550 = vmatprep.subr.bf16.mxu1 %v13038_v13  ;;  %v1499_v12 = vld [vmem:[%s13997_s22 + $0x2740] sm:$0xff]  ;;  %v14810_v2 = vcombine.high %v14727_v56, %v14727_v56 }
 0x2d2   : > { %v1503_v13 = vld [vmem:[%s13997_s22 + $0x2760] sm:$0xff] }
 0x2d3   : > { %v13083_v26 = vcombine.low %v1499_v12, %v1503_v13 }
 0x2d4   : > { %10059 = vmatpush1.bf16.msra.mxu0 %v13035_v16  ;;  %10551 = vmatpush1.bf16.msra.mxu1 %v13037_v20  ;;  %v13084_v16 = vcombine.high %v1499_v12, %v1503_v13  ;;  %v13086_v20 = vcombine.high %v1500_v14, %v1504_v15  ;;  %v1539_v13 = vld [vmem:[%s13997_s22 + $0x2880] sm:$0xff]  ;;  %v14817_v15 = vrot.slane %v1938_v8, %v14032_v53 }
 0x2d5   : > { %10060 = vmatprep.subr.bf16.mxu0 %v13044_v21  ;;  %10552 = vmatprep.subr.bf16.mxu1 %v13046_v22  ;;  %v1507_v21 = vld [vmem:[%s13997_s22 + $0x2780] sm:$0xff] }
 0x2d6   : > { %v1511_v22 = vld [vmem:[%s13997_s22 + $0x27a0] sm:$0xff] }
 0x2d7   : > { %v13091_v40 = vcombine.low %v1507_v21, %v1511_v22  ;;  %v1543_v14 = vld [vmem:[%s13997_s22 + $0x28a0] sm:$0xff] }
 0x2d8   : > { %10061 = vmatpush1.bf16.msra.mxu0 %v13043_v30  ;;  %10553 = vmatpush1.bf16.msra.mxu1 %v13045_v31  ;;  %v13092_v30 = vcombine.high %v1507_v21, %v1511_v22  ;;  %v13094_v31 = vcombine.high %v1508_v24, %v1512_v25  ;;  %v13124_v21 = vcombine.high %v1539_v13, %v1543_v14  ;;  %v1575_v8 = vld [vmem:[%s13997_s22 + $0x29a0] sm:$0xff] }
 0x2d9   : > { %10062 = vmatprep.subr.bf16.mxu0 %v13052_v63  ;;  %10554 = vmatprep.subr.bf16.mxu1 %v13054_v33  ;;  %v1515_v63 = vld [vmem:[%s13997_s22 + $0x27c0] sm:$0xff] }
 0x2da   : > { %v1519_v33 = vld [vmem:[%s13997_s22 + $0x27e0] sm:$0xff] }
 0x2db   : > { %v13099_v52 = vcombine.low %v1515_v63, %v1519_v33 }
 0x2dc   : > { %10063 = vmatpush1.bf16.msra.mxu0 %v13051_v41  ;;  %10555 = vmatpush1.bf16.msra.mxu1 %v13053_v42  ;;  %v13093_v41 = vcombine.low %v1508_v24, %v1512_v25  ;;  %v13100_v42 = vcombine.high %v1515_v63, %v1519_v33  ;;  %v1547_v24 = vld [vmem:[%s13997_s22 + $0x28c0] sm:$0xff] }
 0x2dd   : > { %10064 = vmatprep.subr.bf16.mxu0 %v13060_v45  ;;  %10556 = vmatprep.subr.bf16.mxu1 %v13062_v46  ;;  %v13102_v45 = vcombine.high %v1516_v36, %v1520_v39  ;;  %v1523_v46 = vld [vmem:[%s13997_s22 + $0x2800] sm:$0xff] }
 0x2de   : > { %v1551_v25 = vld [vmem:[%s13997_s22 + $0x28e0] sm:$0xff] }
 0x2df   : > { %v13132_v63 = vcombine.high %v1547_v24, %v1551_v25 }
 0x2e0   : > { %10065 = vmatpush1.bf16.msra.mxu0 %v13059_v54  ;;  %10557 = vmatpush1.bf16.msra.mxu1 %v13061_v55  ;;  %v13101_v54 = vcombine.low %v1516_v36, %v1520_v39  ;;  %v13108_v55 = vcombine.high %v1523_v46, %v1527_v47  ;;  %v1559_v36 = vld [vmem:[%s13997_s22 + $0x2920] sm:$0xff]  ;;  %v1556_v39 = vld [vmem:[%s13997_s22 + $0x2908] sm:$0xff] }
 0x2e1   : > { %10066 = vmatprep.subr.bf16.mxu0 %v13068_v60  ;;  %10558 = vmatprep.subr.bf16.mxu1 %v13070_v61  ;;  %v13110_v60 = vcombine.high %v1524_v34, %v1528_v50  ;;  %v1531_v61 = vld [vmem:[%s13997_s22 + $0x2840] sm:$0xff] }
 0x2e4   : > { %10067 = vmatpush1.bf16.msra.mxu0 %v13067_v4  ;;  %10559 = vmatpush1.bf16.msra.mxu1 %v13069_v29  ;;  %v1536_v4 = vld [vmem:[%s13997_s22 + $0x2868] sm:$0xff]  ;;  %v13107_v29 = vcombine.low %v1523_v46, %v1527_v47  ;;  %v1563_v47 = vld [vmem:[%s13997_s22 + $0x2940] sm:$0xff] }
 0x2e5   : > { %10068 = vmatprep.subr.bf16.mxu0 %v13076_v44  ;;  %10560 = vmatprep.subr.bf16.mxu1 %v13078_v11  ;;  %v13109_v44 = vcombine.low %v1524_v34, %v1528_v50  ;;  %v13116_v11 = vcombine.high %v1531_v61, %v1535_v62  ;;  %v13118_v12 = vcombine.high %v1532_v3, %v1536_v4  ;;  %v1567_v34 = vld [vmem:[%s13997_s22 + $0x2960] sm:$0xff]  ;;  %v1564_v50 = vld [vmem:[%s13997_s22 + $0x2948] sm:$0xff] }
 0x2e8   : > { %10069 = vmatpush1.bf16.msra.mxu0 %v13075_v1  ;;  %10561 = vmatpush1.bf16.msra.mxu1 %v13077_v17  ;;  %v1540_v1 = vld [vmem:[%s13997_s22 + $0x2888] sm:$0xff] }
 0x2e9   : > { %10070 = vmatprep.subr.bf16.mxu0 %v13084_v16  ;;  %10562 = vmatprep.subr.bf16.mxu1 %v13086_v20  ;;  %v1544_v17 = vld [vmem:[%s13997_s22 + $0x28a8] sm:$0xff]  ;;  %v13115_v16 = vcombine.low %v1531_v61, %v1535_v62  ;;  %v13117_v20 = vcombine.low %v1532_v3, %v1536_v4  ;;  %v1571_v62 = vld [vmem:[%s13997_s22 + $0x2980] sm:$0xff] }
 0x2ea   : > { %v13126_v22 = vcombine.high %v1540_v1, %v1544_v17  ;;  %v1572_v3 = vld [vmem:[%s13997_s22 + $0x2988] sm:$0xff] }
 0x2eb   : > { %v1576_v4 = vld [vmem:[%s13997_s22 + $0x29a8] sm:$0xff] }
 0x2ec   : > { %10071 = vmatpush1.bf16.msra.mxu0 %v13083_v26  ;;  %10563 = vmatpush1.bf16.msra.mxu1 %v13085_v28  ;;  %v1548_v26 = vld [vmem:[%s13997_s22 + $0x28c8] sm:$0xff] }
 0x2ed   : > { %10072 = vmatprep.subr.bf16.mxu0 %v13092_v30  ;;  %10564 = vmatprep.subr.bf16.mxu1 %v13094_v31  ;;  %v1552_v28 = vld [vmem:[%s13997_s22 + $0x28e8] sm:$0xff]  ;;  %v13123_v30 = vcombine.low %v1539_v13, %v1543_v14  ;;  %v13125_v31 = vcombine.low %v1540_v1, %v1544_v17  ;;  %v1579_v13 = vld [vmem:[%s13997_s22 + $0x29c0] sm:$0xff] }
 0x2ee   : > { %v13134_v33 = vcombine.high %v1548_v26, %v1552_v28  ;;  %v1583_v14 = vld [vmem:[%s13997_s22 + $0x29e0] sm:$0xff]  ;;  %v1580_v1 = vld [vmem:[%s13997_s22 + $0x29c8] sm:$0xff] }
 0x2ef   : > { %v1584_v17 = vld [vmem:[%s13997_s22 + $0x29e8] sm:$0xff] }
 0x2f0   : > { %10073 = vmatpush1.bf16.msra.mxu0 %v13091_v40  ;;  %10565 = vmatpush1.bf16.msra.mxu1 %v13093_v41  ;;  %v1560_v40 = vld [vmem:[%s13997_s22 + $0x2928] sm:$0xff]  ;;  %v13131_v41 = vcombine.low %v1547_v24, %v1551_v25  ;;  %v1587_v24 = vld [vmem:[%s13997_s22 + $0x2a00] sm:$0xff] }
 0x2f1   : > { %10074 = vmatprep.subr.bf16.mxu0 %v13100_v42  ;;  %10566 = vmatprep.subr.bf16.mxu1 %v13102_v45  ;;  %v13133_v42 = vcombine.low %v1548_v26, %v1552_v28  ;;  %v13140_v45 = vcombine.high %v1555_v35, %v1559_v36  ;;  %v13142_v46 = vcombine.high %v1556_v39, %v1560_v40  ;;  %v1591_v25 = vld [vmem:[%s13997_s22 + $0x2a20] sm:$0xff]  ;;  %v1588_v26 = vld [vmem:[%s13997_s22 + $0x2a08] sm:$0xff] }
 0x2f2   : > { %v1592_v28 = vld [vmem:[%s13997_s22 + $0x2a28] sm:$0xff] }
 0x2f4   : > { %10075 = vmatpush1.bf16.msra.mxu0 %v13099_v52  ;;  %10567 = vmatpush1.bf16.msra.mxu1 %v13101_v54  ;;  %v1568_v52 = vld [vmem:[%s13997_s22 + $0x2968] sm:$0xff]  ;;  %v13139_v54 = vcombine.low %v1555_v35, %v1559_v36  ;;  %v1595_v35 = vld [vmem:[%s13997_s22 + $0x2a40] sm:$0xff] }
 0x2f5   : > { %10085 = vmatprep.subr.bf16.mxu0 %v13108_v55  ;;  %10577 = vmatprep.subr.bf16.mxu1 %v13110_v60  ;;  %v13141_v55 = vcombine.low %v1556_v39, %v1560_v40  ;;  %v13148_v60 = vcombine.high %v1563_v47, %v1567_v34  ;;  %v13150_v61 = vcombine.high %v1564_v50, %v1568_v52  ;;  %v1599_v36 = vld [vmem:[%s13997_s22 + $0x2a60] sm:$0xff]  ;;  %v1596_v39 = vld [vmem:[%s13997_s22 + $0x2a48] sm:$0xff] }
 0x2f6   : > { %v1600_v40 = vld [vmem:[%s13997_s22 + $0x2a68] sm:$0xff] }
 0x2f7   : > { %10077 = vmatmul.mubr.bf16.vlgmr.msra.gmra.mrb[0].mxu0 %v14810_v2  ;;  %10569 = vmatmul.mubr.bf16.vlgmr.msra.gmra.mrb[0].mxu1 %v14810_v2 }
 0x2f8   : > { %10086 = vmatpush1.bf16.msra.mxu0 %v13107_v29  ;;  %10578 = vmatpush1.bf16.msra.mxu1 %v13109_v44  ;;  %v13147_v29 = vcombine.low %v1563_v47, %v1567_v34  ;;  %v13149_v44 = vcombine.low %v1564_v50, %v1568_v52  ;;  %v1603_v47 = vld [vmem:[%s13997_s22 + $0x2a80] sm:$0xff]  ;;  %v1604_v50 = vld [vmem:[%s13997_s22 + $0x2a88] sm:$0xff] }
 0x2f9   : > { %10087 = vmatprep.subr.bf16.mxu0 %v13116_v11  ;;  %10579 = vmatprep.subr.bf16.mxu1 %v13118_v12  ;;  %v13156_v11 = vcombine.high %v1571_v62, %v1575_v8  ;;  %v13158_v12 = vcombine.high %v1572_v3, %v1576_v4  ;;  %v1607_v34 = vld [vmem:[%s13997_s22 + $0x2aa0] sm:$0xff]  ;;  %v1608_v52 = vld [vmem:[%s13997_s22 + $0x2aa8] sm:$0xff] }
 0x2fa   : > { %10117 = vmatprep.mubr.bf16.mxu0 %v14817_v15  ;;  %10609 = vmatprep.mubr.bf16.mxu1 %v14817_v15 }
 0x2fc   : > { %10088 = vmatpush1.bf16.msra.mxu0 %v13115_v16  ;;  %10580 = vmatpush1.bf16.msra.mxu1 %v13117_v20  ;;  %v13155_v16 = vcombine.low %v1571_v62, %v1575_v8  ;;  %v13157_v20 = vcombine.low %v1572_v3, %v1576_v4  ;;  %v1611_v62 = vld [vmem:[%s13997_s22 + $0x2ac0] sm:$0xff]  ;;  %v1612_v3 = vld [vmem:[%s13997_s22 + $0x2ac8] sm:$0xff] }
 0x2fd   : > { %10089 = vmatprep.subr.bf16.mxu0 %v13124_v21  ;;  %10581 = vmatprep.subr.bf16.mxu1 %v13126_v22  ;;  %v13164_v21 = vcombine.high %v1579_v13, %v1583_v14  ;;  %v13166_v22 = vcombine.high %v1580_v1, %v1584_v17  ;;  %v1615_v8 = vld [vmem:[%s13997_s22 + $0x2ae0] sm:$0xff]  ;;  %v1616_v4 = vld [vmem:[%s13997_s22 + $0x2ae8] sm:$0xff] }
 0x300   : > { %10090 = vmatpush1.bf16.msra.mxu0 %v13123_v30  ;;  %10582 = vmatpush1.bf16.msra.mxu1 %v13125_v31  ;;  %v13163_v30 = vcombine.low %v1579_v13, %v1583_v14  ;;  %v13165_v31 = vcombine.low %v1580_v1, %v1584_v17  ;;  %v1619_v13 = vld [vmem:[%s13997_s22 + $0x2b00] sm:$0xff]  ;;  %v1620_v1 = vld [vmem:[%s13997_s22 + $0x2b08] sm:$0xff] }
 0x301   : > { %10091 = vmatprep.subr.bf16.mxu0 %v13132_v63  ;;  %10583 = vmatprep.subr.bf16.mxu1 %v13134_v33  ;;  %v13172_v63 = vcombine.high %v1587_v24, %v1591_v25  ;;  %v13174_v33 = vcombine.high %v1588_v26, %v1592_v28  ;;  %v1623_v14 = vld [vmem:[%s13997_s22 + $0x2b20] sm:$0xff]  ;;  %v1624_v17 = vld [vmem:[%s13997_s22 + $0x2b28] sm:$0xff] }
 0x304   : > { %10092 = vmatpush1.bf16.msra.mxu0 %v13131_v41  ;;  %10584 = vmatpush1.bf16.msra.mxu1 %v13133_v42  ;;  %v13171_v41 = vcombine.low %v1587_v24, %v1591_v25  ;;  %v13173_v42 = vcombine.low %v1588_v26, %v1592_v28  ;;  %v1627_v24 = vld [vmem:[%s13997_s22 + $0x2b40] sm:$0xff]  ;;  %v1628_v26 = vld [vmem:[%s13997_s22 + $0x2b48] sm:$0xff] }
 0x305   : > { %10093 = vmatprep.subr.bf16.mxu0 %v13140_v45  ;;  %10585 = vmatprep.subr.bf16.mxu1 %v13142_v46  ;;  %v13180_v45 = vcombine.high %v1595_v35, %v1599_v36  ;;  %v13182_v46 = vcombine.high %v1596_v39, %v1600_v40  ;;  %v1631_v25 = vld [vmem:[%s13997_s22 + $0x2b60] sm:$0xff]  ;;  %v1632_v28 = vld [vmem:[%s13997_s22 + $0x2b68] sm:$0xff] }
 0x308   : > { %10094 = vmatpush1.bf16.msra.mxu0 %v13139_v54  ;;  %10586 = vmatpush1.bf16.msra.mxu1 %v13141_v55  ;;  %v13179_v54 = vcombine.low %v1595_v35, %v1599_v36  ;;  %v13181_v55 = vcombine.low %v1596_v39, %v1600_v40  ;;  %v1635_v35 = vld [vmem:[%s13997_s22 + $0x2b80] sm:$0xff]  ;;  %v1636_v39 = vld [vmem:[%s13997_s22 + $0x2b88] sm:$0xff] }
 0x309   : > { %10095 = vmatprep.subr.bf16.mxu0 %v13148_v60  ;;  %10587 = vmatprep.subr.bf16.mxu1 %v13150_v61  ;;  %v13188_v60 = vcombine.high %v1603_v47, %v1607_v34  ;;  %v13190_v61 = vcombine.high %v1604_v50, %v1608_v52  ;;  %v1639_v36 = vld [vmem:[%s13997_s22 + $0x2ba0] sm:$0xff]  ;;  %v1640_v40 = vld [vmem:[%s13997_s22 + $0x2ba8] sm:$0xff] }
 0x30c   : > { %10096 = vmatpush1.bf16.msra.mxu0 %v13147_v29  ;;  %10588 = vmatpush1.bf16.msra.mxu1 %v13149_v44  ;;  %v13187_v29 = vcombine.low %v1603_v47, %v1607_v34  ;;  %v13189_v44 = vcombine.low %v1604_v50, %v1608_v52  ;;  %v1643_v47 = vld [vmem:[%s13997_s22 + $0x2bc0] sm:$0xff]  ;;  %v1644_v50 = vld [vmem:[%s13997_s22 + $0x2bc8] sm:$0xff] }
 0x30d   : > { %10097 = vmatprep.subr.bf16.mxu0 %v13156_v11  ;;  %10589 = vmatprep.subr.bf16.mxu1 %v13158_v12  ;;  %v13196_v11 = vcombine.high %v1611_v62, %v1615_v8  ;;  %v13198_v12 = vcombine.high %v1612_v3, %v1616_v4  ;;  %v1647_v34 = vld [vmem:[%s13997_s22 + $0x2be0] sm:$0xff]  ;;  %v1648_v52 = vld [vmem:[%s13997_s22 + $0x2be8] sm:$0xff] }
 0x310   : > { %10098 = vmatpush1.bf16.msra.mxu0 %v13155_v16  ;;  %10590 = vmatpush1.bf16.msra.mxu1 %v13157_v20  ;;  %v13195_v16 = vcombine.low %v1611_v62, %v1615_v8  ;;  %v13197_v20 = vcombine.low %v1612_v3, %v1616_v4  ;;  %v1651_v62 = vld [vmem:[%s13997_s22 + $0x2c00] sm:$0xff]  ;;  %v1652_v3 = vld [vmem:[%s13997_s22 + $0x2c08] sm:$0xff] }
 0x311   : > { %10099 = vmatprep.subr.bf16.mxu0 %v13164_v21  ;;  %10591 = vmatprep.subr.bf16.mxu1 %v13166_v22  ;;  %v13204_v21 = vcombine.high %v1619_v13, %v1623_v14  ;;  %v13206_v22 = vcombine.high %v1620_v1, %v1624_v17  ;;  %v1655_v8 = vld [vmem:[%s13997_s22 + $0x2c20] sm:$0xff]  ;;  %v1656_v4 = vld [vmem:[%s13997_s22 + $0x2c28] sm:$0xff] }
 0x314   : > { %10100 = vmatpush1.bf16.msra.mxu0 %v13163_v30  ;;  %10592 = vmatpush1.bf16.msra.mxu1 %v13165_v31  ;;  %v13203_v30 = vcombine.low %v1619_v13, %v1623_v14  ;;  %v13205_v31 = vcombine.low %v1620_v1, %v1624_v17  ;;  %v1659_v13 = vld [vmem:[%s13997_s22 + $0x2c40] sm:$0xff]  ;;  %v14885_v1 = vrot.slane %v14800_v49, %v14032_v53  ;;  %v1660_v17 = vld [vmem:[%s13997_s22 + $0x2c48] sm:$0xff] }
 0x315   : > { %10101 = vmatprep.subr.bf16.mxu0 %v13172_v63  ;;  %10593 = vmatprep.subr.bf16.mxu1 %v13174_v33  ;;  %v13212_v63 = vcombine.high %v1627_v24, %v1631_v25  ;;  %v13214_v33 = vcombine.high %v1628_v26, %v1632_v28  ;;  %v1663_v14 = vld [vmem:[%s13997_s22 + $0x2c60] sm:$0xff]  ;;  %v1668_v53 = vld [vmem:[%s13997_s22 + $0x2c88] sm:$0xff] }
 0x316   : > { %v1672_v49 = vld [vmem:[%s13997_s22 + $0x2ca8] sm:$0xff] }
 0x318   : > { %10102 = vmatpush1.bf16.msra.mxu0 %v13171_v41  ;;  %10594 = vmatpush1.bf16.msra.mxu1 %v13173_v42  ;;  %v13211_v41 = vcombine.low %v1627_v24, %v1631_v25  ;;  %v13213_v42 = vcombine.low %v1628_v26, %v1632_v28  ;;  %v1667_v25 = vld [vmem:[%s13997_s22 + $0x2c80] sm:$0xff]  ;;  %v14893_v28 = vcombine.high %v14817_v15, %v14817_v15 }
 0x319   : > { %10103 = vmatprep.subr.bf16.mxu0 %v13180_v45  ;;  %10595 = vmatprep.subr.bf16.mxu1 %v13182_v46  ;;  %v13220_v45 = vcombine.high %v1635_v35, %v1639_v36  ;;  %v13222_v46 = vcombine.high %v1636_v39, %v1640_v40  ;;  %v1671_v26 = vld [vmem:[%s13997_s22 + $0x2ca0] sm:$0xff] }
 0x31c   : > { %10104 = vmatpush1.bf16.msra.mxu0 %v13179_v54  ;;  %10596 = vmatpush1.bf16.msra.mxu1 %v13181_v55  ;;  %v13219_v54 = vcombine.low %v1635_v35, %v1639_v36  ;;  %v13221_v55 = vcombine.low %v1636_v39, %v1640_v40  ;;  %v1675_v35 = vld [vmem:[%s13997_s22 + $0x2cc0] sm:$0xff]  ;;  %v1676_v39 = vld [vmem:[%s13997_s22 + $0x2cc8] sm:$0xff] }
 0x31d   : > { %10105 = vmatprep.subr.bf16.mxu0 %v13188_v60  ;;  %10597 = vmatprep.subr.bf16.mxu1 %v13190_v61  ;;  %v13228_v60 = vcombine.high %v1643_v47, %v1647_v34  ;;  %v13230_v61 = vcombine.high %v1644_v50, %v1648_v52  ;;  %v1679_v36 = vld [vmem:[%s13997_s22 + $0x2ce0] sm:$0xff]  ;;  %v1680_v40 = vld [vmem:[%s13997_s22 + $0x2ce8] sm:$0xff] }
 0x320   : > { %10106 = vmatpush1.bf16.msra.mxu0 %v13187_v29  ;;  %10598 = vmatpush1.bf16.msra.mxu1 %v13189_v44  ;;  %v13227_v29 = vcombine.low %v1643_v47, %v1647_v34  ;;  %v13229_v44 = vcombine.low %v1644_v50, %v1648_v52  ;;  %v1683_v47 = vld [vmem:[%s13997_s22 + $0x2d00] sm:$0xff]  ;;  %v1684_v50 = vld [vmem:[%s13997_s22 + $0x2d08] sm:$0xff] }
 0x321   : > { %10107 = vmatprep.subr.bf16.mxu0 %v13196_v11  ;;  %10599 = vmatprep.subr.bf16.mxu1 %v13198_v12  ;;  %v13236_v11 = vcombine.high %v1651_v62, %v1655_v8  ;;  %v13238_v12 = vcombine.high %v1652_v3, %v1656_v4  ;;  %v1687_v34 = vld [vmem:[%s13997_s22 + $0x2d20] sm:$0xff]  ;;  %v1688_v52 = vld [vmem:[%s13997_s22 + $0x2d28] sm:$0xff] }
 0x324   : > { %10108 = vmatpush1.bf16.msra.mxu0 %v13195_v16  ;;  %10600 = vmatpush1.bf16.msra.mxu1 %v13197_v20  ;;  %v1664_v16 = vld [vmem:[%s13997_s22 + $0x2c68] sm:$0xff]  ;;  %v13235_v20 = vcombine.low %v1651_v62, %v1655_v8  ;;  %v1691_v62 = vld [vmem:[%s13997_s22 + $0x2d40] sm:$0xff] }
 0x325   : > { %10109 = vmatprep.subr.bf16.mxu0 %v13204_v21  ;;  %10601 = vmatprep.subr.bf16.mxu1 %v13206_v22  ;;  %v13237_v21 = vcombine.low %v1652_v3, %v1656_v4  ;;  %v13244_v22 = vcombine.high %v1659_v13, %v1663_v14  ;;  %v13246_v24 = vcombine.high %v1660_v17, %v1664_v16  ;;  %v1695_v8 = vld [vmem:[%s13997_s22 + $0x2d60] sm:$0xff]  ;;  %v1692_v3 = vld [vmem:[%s13997_s22 + $0x2d48] sm:$0xff] }
 0x326   : > { %v1696_v4 = vld [vmem:[%s13997_s22 + $0x2d68] sm:$0xff] }
 0x328   : > { %10110 = vmatpush1.bf16.msra.mxu0 %v13203_v30  ;;  %10602 = vmatpush1.bf16.msra.mxu1 %v13205_v31  ;;  %v13243_v30 = vcombine.low %v1659_v13, %v1663_v14  ;;  %v13245_v31 = vcombine.low %v1660_v17, %v1664_v16  ;;  %v1699_v13 = vld [vmem:[%s13997_s22 + $0x2d80] sm:$0xff]  ;;  %v1700_v17 = vld [vmem:[%s13997_s22 + $0x2d88] sm:$0xff] }
 0x329   : > { %10111 = vmatprep.subr.bf16.mxu0 %v13212_v63  ;;  %10603 = vmatprep.subr.bf16.mxu1 %v13214_v33  ;;  %v13252_v63 = vcombine.high %v1667_v25, %v1671_v26  ;;  %v13254_v33 = vcombine.high %v1668_v53, %v1672_v49  ;;  %v1703_v14 = vld [vmem:[%s13997_s22 + $0x2da0] sm:$0xff]  ;;  %v1704_v16 = vld [vmem:[%s13997_s22 + $0x2da8] sm:$0xff] }
 0x32c   : > { %10112 = vmatpush1.bf16.msra.mxu0 %v13211_v41  ;;  %10604 = vmatpush1.bf16.msra.mxu1 %v13213_v42  ;;  %v13251_v41 = vcombine.low %v1667_v25, %v1671_v26  ;;  %v13253_v42 = vcombine.low %v1668_v53, %v1672_v49  ;;  %v1707_v25 = vld [vmem:[%s13997_s22 + $0x2dc0] sm:$0xff]  ;;  %v1708_v53 = vld [vmem:[%s13997_s22 + $0x2dc8] sm:$0xff] }
 0x32d   : > { %10113 = vmatprep.subr.bf16.mxu0 %v13220_v45  ;;  %10605 = vmatprep.subr.bf16.mxu1 %v13222_v46  ;;  %v13260_v45 = vcombine.high %v1675_v35, %v1679_v36  ;;  %v13262_v46 = vcombine.high %v1676_v39, %v1680_v40  ;;  %v1711_v26 = vld [vmem:[%s13997_s22 + $0x2de0] sm:$0xff]  ;;  %v1712_v49 = vld [vmem:[%s13997_s22 + $0x2de8] sm:$0xff] }
 0x330   : > { %10114 = vmatpush1.bf16.msra.mxu0 %v13219_v54  ;;  %10606 = vmatpush1.bf16.msra.mxu1 %v13221_v55  ;;  %v13259_v54 = vcombine.low %v1675_v35, %v1679_v36  ;;  %v13261_v55 = vcombine.low %v1676_v39, %v1680_v40  ;;  %v1715_v35 = vld [vmem:[%s13997_s22 + $0x2e00] sm:$0xff]  ;;  %v1716_v39 = vld [vmem:[%s13997_s22 + $0x2e08] sm:$0xff] }
 0x331   : > { %10115 = vmatprep.subr.bf16.mxu0 %v13228_v60  ;;  %10607 = vmatprep.subr.bf16.mxu1 %v13230_v61  ;;  %v13268_v60 = vcombine.high %v1683_v47, %v1687_v34  ;;  %v13270_v61 = vcombine.high %v1684_v50, %v1688_v52  ;;  %v1719_v36 = vld [vmem:[%s13997_s22 + $0x2e20] sm:$0xff]  ;;  %v1720_v40 = vld [vmem:[%s13997_s22 + $0x2e28] sm:$0xff] }
 0x334   : > { %10116 = vmatpush1.bf16.msra.mxu0 %v13227_v29  ;;  %10608 = vmatpush1.bf16.msra.mxu1 %v13229_v44  ;;  %v13267_v29 = vcombine.low %v1683_v47, %v1687_v34  ;;  %v13269_v44 = vcombine.low %v1684_v50, %v1688_v52  ;;  %v1723_v47 = vld [vmem:[%s13997_s22 + $0x2e40] sm:$0xff]  ;;  %v1724_v50 = vld [vmem:[%s13997_s22 + $0x2e48] sm:$0xff] }
 0x335   : > { %10126 = vmatprep.subr.bf16.mxu0 %v13236_v11  ;;  %10618 = vmatprep.subr.bf16.mxu1 %v13238_v12  ;;  %v13276_v11 = vcombine.high %v1691_v62, %v1695_v8  ;;  %v13278_v12 = vcombine.high %v1692_v3, %v1696_v4  ;;  %v1727_v34 = vld [vmem:[%s13997_s22 + $0x2e60] sm:$0xff]  ;;  %v1728_v52 = vld [vmem:[%s13997_s22 + $0x2e68] sm:$0xff] }
 0x337   : > { %10118 = vmatmul.mubr.bf16.vlgmr.msra.gmra.mrb[0].mxu0 %v14885_v1  ;;  %10610 = vmatmul.mubr.bf16.vlgmr.msra.gmra.mrb[0].mxu1 %v14885_v1 }
 0x338   : > { %10127 = vmatpush1.bf16.msra.mxu0 %v13235_v20  ;;  %10619 = vmatpush1.bf16.msra.mxu1 %v13237_v21  ;;  %v13275_v20 = vcombine.low %v1691_v62, %v1695_v8  ;;  %v13277_v21 = vcombine.low %v1692_v3, %v1696_v4  ;;  %v1731_v62 = vld [vmem:[%s13997_s22 + $0x2e80] sm:$0xff]  ;;  %v1732_v3 = vld [vmem:[%s13997_s22 + $0x2e88] sm:$0xff] }
 0x339   : > { %10128 = vmatprep.subr.bf16.mxu0 %v13244_v22  ;;  %10620 = vmatprep.subr.bf16.mxu1 %v13246_v24  ;;  %v13284_v22 = vcombine.high %v1699_v13, %v1703_v14  ;;  %v13286_v24 = vcombine.high %v1700_v17, %v1704_v16  ;;  %v1735_v8 = vld [vmem:[%s13997_s22 + $0x2ea0] sm:$0xff]  ;;  %v1736_v4 = vld [vmem:[%s13997_s22 + $0x2ea8] sm:$0xff] }
 0x33a   : > { %10158 = vmatprep.mubr.bf16.mxu0 %v14893_v28  ;;  %10650 = vmatprep.mubr.bf16.mxu1 %v14893_v28 }
 0x33c   : > { %10129 = vmatpush1.bf16.msra.mxu0 %v13243_v30  ;;  %10621 = vmatpush1.bf16.msra.mxu1 %v13245_v31  ;;  %v13283_v30 = vcombine.low %v1699_v13, %v1703_v14  ;;  %v13285_v31 = vcombine.low %v1700_v17, %v1704_v16  ;;  %v1739_v13 = vld [vmem:[%s13997_s22 + $0x2ec0] sm:$0xff]  ;;  %v1740_v17 = vld [vmem:[%s13997_s22 + $0x2ec8] sm:$0xff] }
 0x33d   : > { %10130 = vmatprep.subr.bf16.mxu0 %v13252_v63  ;;  %10622 = vmatprep.subr.bf16.mxu1 %v13254_v33  ;;  %v13292_v63 = vcombine.high %v1707_v25, %v1711_v26  ;;  %v13294_v33 = vcombine.high %v1708_v53, %v1712_v49  ;;  %v1743_v14 = vld [vmem:[%s13997_s22 + $0x2ee0] sm:$0xff]  ;;  %v1744_v16 = vld [vmem:[%s13997_s22 + $0x2ee8] sm:$0xff] }
 0x340   : > { %10131 = vmatpush1.bf16.msra.mxu0 %v13251_v41  ;;  %10623 = vmatpush1.bf16.msra.mxu1 %v13253_v42  ;;  %v13291_v41 = vcombine.low %v1707_v25, %v1711_v26  ;;  %v13293_v42 = vcombine.low %v1708_v53, %v1712_v49  ;;  %v1747_v25 = vld [vmem:[%s13997_s22 + $0x2f00] sm:$0xff]  ;;  %v1748_v53 = vld [vmem:[%s13997_s22 + $0x2f08] sm:$0xff] }
 0x341   : > { %10132 = vmatprep.subr.bf16.mxu0 %v13260_v45  ;;  %10624 = vmatprep.subr.bf16.mxu1 %v13262_v46  ;;  %v13300_v45 = vcombine.high %v1715_v35, %v1719_v36  ;;  %v13302_v46 = vcombine.high %v1716_v39, %v1720_v40  ;;  %v1751_v26 = vld [vmem:[%s13997_s22 + $0x2f20] sm:$0xff]  ;;  %v1752_v49 = vld [vmem:[%s13997_s22 + $0x2f28] sm:$0xff] }
 0x344   : > { %10133 = vmatpush1.bf16.msra.mxu0 %v13259_v54  ;;  %10625 = vmatpush1.bf16.msra.mxu1 %v13261_v55  ;;  %v13299_v54 = vcombine.low %v1715_v35, %v1719_v36  ;;  %v13301_v55 = vcombine.low %v1716_v39, %v1720_v40  ;;  %v1755_v35 = vld [vmem:[%s13997_s22 + $0x2f40] sm:$0xff]  ;;  %v1756_v39 = vld [vmem:[%s13997_s22 + $0x2f48] sm:$0xff] }
 0x345   : > { %10134 = vmatprep.subr.bf16.mxu0 %v13268_v60  ;;  %10626 = vmatprep.subr.bf16.mxu1 %v13270_v61  ;;  %v13308_v60 = vcombine.high %v1723_v47, %v1727_v34  ;;  %v13310_v61 = vcombine.high %v1724_v50, %v1728_v52  ;;  %v1759_v36 = vld [vmem:[%s13997_s22 + $0x2f60] sm:$0xff]  ;;  %v1760_v40 = vld [vmem:[%s13997_s22 + $0x2f68] sm:$0xff] }
 0x348   : > { %10135 = vmatpush1.bf16.msra.mxu0 %v13267_v29  ;;  %10627 = vmatpush1.bf16.msra.mxu1 %v13269_v44  ;;  %v13307_v29 = vcombine.low %v1723_v47, %v1727_v34  ;;  %v13309_v44 = vcombine.low %v1724_v50, %v1728_v52  ;;  %v1763_v47 = vld [vmem:[%s13997_s22 + $0x2f80] sm:$0xff]  ;;  %v1764_v50 = vld [vmem:[%s13997_s22 + $0x2f88] sm:$0xff] }
 0x349   : > { %10136 = vmatprep.subr.bf16.mxu0 %v13276_v11  ;;  %10628 = vmatprep.subr.bf16.mxu1 %v13278_v12  ;;  %v13316_v11 = vcombine.high %v1731_v62, %v1735_v8  ;;  %v13318_v12 = vcombine.high %v1732_v3, %v1736_v4  ;;  %v1767_v34 = vld [vmem:[%s13997_s22 + $0x2fa0] sm:$0xff]  ;;  %v1768_v52 = vld [vmem:[%s13997_s22 + $0x2fa8] sm:$0xff] }
 0x34c   : > { %10137 = vmatpush1.bf16.msra.mxu0 %v13275_v20  ;;  %10629 = vmatpush1.bf16.msra.mxu1 %v13277_v21  ;;  %v13315_v20 = vcombine.low %v1731_v62, %v1735_v8  ;;  %v13317_v21 = vcombine.low %v1732_v3, %v1736_v4  ;;  %v1771_v62 = vld [vmem:[%s13997_s22 + $0x2fc0] sm:$0xff]  ;;  %v1772_v3 = vld [vmem:[%s13997_s22 + $0x2fc8] sm:$0xff] }
 0x34d   : > { %10138 = vmatprep.subr.bf16.mxu0 %v13284_v22  ;;  %10630 = vmatprep.subr.bf16.mxu1 %v13286_v24  ;;  %v13324_v22 = vcombine.high %v1739_v13, %v1743_v14  ;;  %v13326_v24 = vcombine.high %v1740_v17, %v1744_v16  ;;  %v1775_v8 = vld [vmem:[%s13997_s22 + $0x2fe0] sm:$0xff]  ;;  %v1776_v4 = vld [vmem:[%s13997_s22 + $0x2fe8] sm:$0xff] }
 0x350   : > { %10139 = vmatpush1.bf16.msra.mxu0 %v13283_v30  ;;  %10631 = vmatpush1.bf16.msra.mxu1 %v13285_v31  ;;  %v13323_v30 = vcombine.low %v1739_v13, %v1743_v14  ;;  %v13325_v31 = vcombine.low %v1740_v17, %v1744_v16  ;;  %v245_v13 = vld [vmem:[%s13997_s22 + $0x10] sm:$0xff]  ;;  %v246_v17 = vld [vmem:[%s13997_s22 + $0x18] sm:$0xff] }
 0x351   : > { %10140 = vmatprep.subr.bf16.mxu0 %v13292_v63  ;;  %10632 = vmatprep.subr.bf16.mxu1 %v13294_v33  ;;  %v13332_v63 = vcombine.high %v1747_v25, %v1751_v26  ;;  %v13334_v33 = vcombine.high %v1748_v53, %v1752_v49  ;;  %v249_v14 = vld [vmem:[%s13997_s22 + $0x30] sm:$0xff]  ;;  %v250_v16 = vld [vmem:[%s13997_s22 + $0x38] sm:$0xff] }
 0x354   : > { %10141 = vmatpush1.bf16.msra.mxu0 %v13291_v41  ;;  %10633 = vmatpush1.bf16.msra.mxu1 %v13293_v42  ;;  %v13331_v41 = vcombine.low %v1747_v25, %v1751_v26  ;;  %v13333_v42 = vcombine.low %v1748_v53, %v1752_v49  ;;  %v253_v25 = vld [vmem:[%s13997_s22 + $0x50] sm:$0xff]  ;;  %v14961_v53 = vcombine.high %v14885_v1, %v14885_v1  ;;  %v254_v49 = vld [vmem:[%s13997_s22 + $0x58] sm:$0xff] }
 0x355   : > { %10142 = vmatprep.subr.bf16.mxu0 %v13300_v45  ;;  %10634 = vmatprep.subr.bf16.mxu1 %v13302_v46  ;;  %v13340_v45 = vcombine.high %v1755_v35, %v1759_v36  ;;  %v13342_v46 = vcombine.high %v1756_v39, %v1760_v40  ;;  %v257_v26 = vld [vmem:[%s13997_s22 + $0x70] sm:$0xff] }
 0x358   : > { %10143 = vmatpush1.bf16.msra.mxu0 %v13299_v54  ;;  %10635 = vmatpush1.bf16.msra.mxu1 %v13301_v55  ;;  %v13339_v54 = vcombine.low %v1755_v35, %v1759_v36  ;;  %v13341_v55 = vcombine.low %v1756_v39, %v1760_v40  ;;  %v261_v36 = vld [vmem:[%s13997_s22 + $0x90] sm:$0xff]  ;;  %v262_v40 = vld [vmem:[%s13997_s22 + $0x98] sm:$0xff] }
 0x359   : > { %10144 = vmatprep.subr.bf16.mxu0 %v13308_v60  ;;  %10636 = vmatprep.subr.bf16.mxu1 %v13310_v61  ;;  %v13348_v60 = vcombine.high %v1763_v47, %v1767_v34  ;;  %v13350_v61 = vcombine.high %v1764_v50, %v1768_v52  ;;  %v265_v39 = vld [vmem:[%s13997_s22 + $0xb0] sm:$0xff] }
 0x35c   : > { %10145 = vmatpush1.bf16.msra.mxu0 %v13307_v29  ;;  %10637 = vmatpush1.bf16.msra.mxu1 %v13309_v44  ;;  %v13347_v29 = vcombine.low %v1763_v47, %v1767_v34  ;;  %v13349_v44 = vcombine.low %v1764_v50, %v1768_v52  ;;  %v269_v34 = vld [vmem:[%s13997_s22 + $0xd0] sm:$0xff]  ;;  %v270_v52 = vld [vmem:[%s13997_s22 + $0xd8] sm:$0xff] }
 0x35d   : > { %10146 = vmatprep.subr.bf16.mxu0 %v13316_v11  ;;  %10638 = vmatprep.subr.bf16.mxu1 %v13318_v12  ;;  %v13356_v11 = vcombine.high %v1771_v62, %v1775_v8  ;;  %v13358_v12 = vcombine.high %v1772_v3, %v1776_v4  ;;  %v273_v50 = vld [vmem:[%s13997_s22 + $0xf0] sm:$0xff] }
 0x360   : > { %10147 = vmatpush1.bf16.msra.mxu0 %v13315_v20  ;;  %10639 = vmatpush1.bf16.msra.mxu1 %v13317_v21  ;;  %v13355_v20 = vcombine.low %v1771_v62, %v1775_v8  ;;  %v13357_v21 = vcombine.low %v1772_v3, %v1776_v4  ;;  %v277_v8 = vld [vmem:[%s13997_s22 + $0x110] sm:$0xff]  ;;  %v278_v4 = vld [vmem:[%s13997_s22 + $0x118] sm:$0xff] }
 0x361   : > { %10148 = vmatprep.subr.bf16.mxu0 %v13324_v22  ;;  %10640 = vmatprep.subr.bf16.mxu1 %v13326_v24  ;;  %v11832_v22 = vcombine.high %v245_v13, %v249_v14  ;;  %v11834_v24 = vcombine.high %v246_v17, %v250_v16  ;;  %v281_v3 = vld [vmem:[%s13997_s22 + $0x130] sm:$0xff] }
 0x364   : > { %10149 = vmatpush1.bf16.msra.mxu0 %v13323_v30  ;;  %10641 = vmatpush1.bf16.msra.mxu1 %v13325_v31  ;;  %v258_v30 = vld [vmem:[%s13997_s22 + $0x78] sm:$0xff]  ;;  %v11831_v31 = vcombine.low %v245_v13, %v249_v14  ;;  %v285_v13 = vld [vmem:[%s13997_s22 + $0x150] sm:$0xff] }
 0x365   : > { %10150 = vmatprep.subr.bf16.mxu0 %v13332_v63  ;;  %10642 = vmatprep.subr.bf16.mxu1 %v13334_v33  ;;  %v11833_v63 = vcombine.low %v246_v17, %v250_v16  ;;  %v11840_v33 = vcombine.high %v253_v25, %v257_v26  ;;  %v11842_v35 = vcombine.high %v254_v49, %v258_v30  ;;  %v289_v14 = vld [vmem:[%s13997_s22 + $0x170] sm:$0xff]  ;;  %v286_v17 = vld [vmem:[%s13997_s22 + $0x158] sm:$0xff] }
 0x366   : > { %v290_v16 = vld [vmem:[%s13997_s22 + $0x178] sm:$0xff] }
 0x368   : > { %10151 = vmatpush1.bf16.msra.mxu0 %v13331_v41  ;;  %10643 = vmatpush1.bf16.msra.mxu1 %v13333_v42  ;;  %v266_v41 = vld [vmem:[%s13997_s22 + $0xb8] sm:$0xff]  ;;  %v11839_v42 = vcombine.low %v253_v25, %v257_v26  ;;  %v293_v25 = vld [vmem:[%s13997_s22 + $0x190] sm:$0xff] }
 0x369   : > { %10152 = vmatprep.subr.bf16.mxu0 %v13340_v45  ;;  %10644 = vmatprep.subr.bf16.mxu1 %v13342_v46  ;;  %v11841_v45 = vcombine.low %v254_v49, %v258_v30  ;;  %v11848_v46 = vcombine.high %v261_v36, %v265_v39  ;;  %v11850_v47 = vcombine.high %v262_v40, %v266_v41  ;;  %v297_v26 = vld [vmem:[%s13997_s22 + $0x1b0] sm:$0xff]  ;;  %v294_v49 = vld [vmem:[%s13997_s22 + $0x198] sm:$0xff] }
 0x36a   : > { %v298_v30 = vld [vmem:[%s13997_s22 + $0x1b8] sm:$0xff] }
 0x36c   : > { %10153 = vmatpush1.bf16.msra.mxu0 %v13339_v54  ;;  %10645 = vmatpush1.bf16.msra.mxu1 %v13341_v55  ;;  %v274_v54 = vld [vmem:[%s13997_s22 + $0xf8] sm:$0xff]  ;;  %v11847_v55 = vcombine.low %v261_v36, %v265_v39  ;;  %v301_v36 = vld [vmem:[%s13997_s22 + $0x1d0] sm:$0xff] }
 0x36d   : > { %10154 = vmatprep.subr.bf16.mxu0 %v13348_v60  ;;  %10646 = vmatprep.subr.bf16.mxu1 %v13350_v61  ;;  %v11849_v60 = vcombine.low %v262_v40, %v266_v41  ;;  %v11856_v61 = vcombine.high %v269_v34, %v273_v50  ;;  %v11858_v62 = vcombine.high %v270_v52, %v274_v54  ;;  %v305_v39 = vld [vmem:[%s13997_s22 + $0x1f0] sm:$0xff]  ;;  %v302_v40 = vld [vmem:[%s13997_s22 + $0x1d8] sm:$0xff] }
 0x36e   : > { %v306_v41 = vld [vmem:[%s13997_s22 + $0x1f8] sm:$0xff] }
 0x370   : > { %10155 = vmatpush1.bf16.msra.mxu0 %v13347_v29  ;;  %10647 = vmatpush1.bf16.msra.mxu1 %v13349_v44  ;;  %v282_v29 = vld [vmem:[%s13997_s22 + $0x138] sm:$0xff]  ;;  %v11855_v44 = vcombine.low %v269_v34, %v273_v50  ;;  %v309_v34 = vld [vmem:[%s13997_s22 + $0x210] sm:$0xff] }
 0x371   : > { %10156 = vmatprep.subr.bf16.mxu0 %v13356_v11  ;;  %10648 = vmatprep.subr.bf16.mxu1 %v13358_v12  ;;  %v11864_v11 = vcombine.high %v277_v8, %v281_v3  ;;  %v11866_v12 = vcombine.high %v278_v4, %v282_v29  ;;  %v313_v50 = vld [vmem:[%s13997_s22 + $0x230] sm:$0xff] }
 0x374   : > { %10157 = vmatpush1.bf16.msra.mxu0 %v13355_v20  ;;  %10649 = vmatpush1.bf16.msra.mxu1 %v13357_v21  ;;  %v11863_v20 = vcombine.low %v277_v8, %v281_v3  ;;  %v11865_v21 = vcombine.low %v278_v4, %v282_v29  ;;  %v317_v8 = vld [vmem:[%s13997_s22 + $0x250] sm:$0xff]  ;;  %v318_v4 = vld [vmem:[%s13997_s22 + $0x258] sm:$0xff] }
 0x375   : > { %10659 = vmatprep.subr.bf16.mxu0 %v11832_v22  ;;  %11151 = vmatprep.subr.bf16.mxu1 %v11834_v24  ;;  %v11872_v22 = vcombine.high %v285_v13, %v289_v14  ;;  %v11874_v24 = vcombine.high %v286_v17, %v290_v16  ;;  %v321_v3 = vld [vmem:[%s13997_s22 + $0x270] sm:$0xff]  ;;  %v322_v29 = vld [vmem:[%s13997_s22 + $0x278] sm:$0xff] }
 0x377   : > { %10159 = vmatmul.mubr.bf16.vlgmr.msra.gmra.mrb[0].mxu0 %v14961_v53  ;;  %10651 = vmatmul.mubr.bf16.vlgmr.msra.gmra.mrb[0].mxu1 %v14961_v53 }
 0x378   : > { %10660 = vmatpush1.bf16.msra.mxu0 %v11831_v31  ;;  %11152 = vmatpush1.bf16.msra.mxu1 %v11833_v63  ;;  %v11871_v31 = vcombine.low %v285_v13, %v289_v14  ;;  %v11873_v63 = vcombine.low %v286_v17, %v290_v16  ;;  %v325_v13 = vld [vmem:[%s13997_s22 + $0x290] sm:$0xff]  ;;  %v326_v17 = vld [vmem:[%s13997_s22 + $0x298] sm:$0xff] }
 0x379   : > { %10661 = vmatprep.subr.bf16.mxu0 %v11840_v33  ;;  %11153 = vmatprep.subr.bf16.mxu1 %v11842_v35  ;;  %v11880_v33 = vcombine.high %v293_v25, %v297_v26  ;;  %v11882_v35 = vcombine.high %v294_v49, %v298_v30  ;;  %v329_v14 = vld [vmem:[%s13997_s22 + $0x2b0] sm:$0xff]  ;;  %v330_v16 = vld [vmem:[%s13997_s22 + $0x2b8] sm:$0xff] }
 0x37a   : > { %10691 = vmatprep.mubr.bf16.mxu0 %v14051_v9  ;;  %11183 = vmatprep.mubr.bf16.mxu1 %v14051_v9  ;;  %v11857_v9 = vcombine.low %v270_v52, %v274_v54  ;;  %v310_v52 = vld [vmem:[%s13997_s22 + $0x218] sm:$0xff] }
 0x37b   : > { %v314_v54 = vld [vmem:[%s13997_s22 + $0x238] sm:$0xff] }
 0x37c   : > { %10662 = vmatpush1.bf16.msra.mxu0 %v11839_v42  ;;  %11154 = vmatpush1.bf16.msra.mxu1 %v11841_v45  ;;  %v11879_v42 = vcombine.low %v293_v25, %v297_v26  ;;  %v11881_v45 = vcombine.low %v294_v49, %v298_v30  ;;  %v333_v25 = vld [vmem:[%s13997_s22 + $0x2d0] sm:$0xff]  ;;  %v334_v49 = vld [vmem:[%s13997_s22 + $0x2d8] sm:$0xff] }
 0x37d   : > { %10663 = vmatprep.subr.bf16.mxu0 %v11848_v46  ;;  %11155 = vmatprep.subr.bf16.mxu1 %v11850_v47  ;;  %v11888_v46 = vcombine.high %v301_v36, %v305_v39  ;;  %v11890_v47 = vcombine.high %v302_v40, %v306_v41  ;;  %v337_v26 = vld [vmem:[%s13997_s22 + $0x2f0] sm:$0xff]  ;;  %v338_v30 = vld [vmem:[%s13997_s22 + $0x2f8] sm:$0xff] }
 0x380   : > { %10664 = vmatpush1.bf16.msra.mxu0 %v11847_v55  ;;  %11156 = vmatpush1.bf16.msra.mxu1 %v11849_v60  ;;  %v11887_v55 = vcombine.low %v301_v36, %v305_v39  ;;  %v11889_v60 = vcombine.low %v302_v40, %v306_v41  ;;  %v341_v36 = vld [vmem:[%s13997_s22 + $0x310] sm:$0xff]  ;;  %v342_v40 = vld [vmem:[%s13997_s22 + $0x318] sm:$0xff] }
 0x381   : > { %10665 = vmatprep.subr.bf16.mxu0 %v11856_v61  ;;  %11157 = vmatprep.subr.bf16.mxu1 %v11858_v62  ;;  %v11896_v61 = vcombine.high %v309_v34, %v313_v50  ;;  %v11898_v62 = vcombine.high %v310_v52, %v314_v54  ;;  %v345_v39 = vld [vmem:[%s13997_s22 + $0x330] sm:$0xff]  ;;  %v346_v41 = vld [vmem:[%s13997_s22 + $0x338] sm:$0xff] }
 0x384   : > { %10666 = vmatpush1.bf16.msra.mxu0 %v11855_v44  ;;  %11158 = vmatpush1.bf16.msra.mxu1 %v11857_v9  ;;  %v11895_v44 = vcombine.low %v309_v34, %v313_v50  ;;  %v11897_v9 = vcombine.low %v310_v52, %v314_v54  ;;  %v349_v34 = vld [vmem:[%s13997_s22 + $0x350] sm:$0xff]  ;;  %v350_v52 = vld [vmem:[%s13997_s22 + $0x358] sm:$0xff] }
 0x385   : > { %10667 = vmatprep.subr.bf16.mxu0 %v11864_v11  ;;  %11159 = vmatprep.subr.bf16.mxu1 %v11866_v12  ;;  %v11904_v11 = vcombine.high %v317_v8, %v321_v3  ;;  %v11906_v12 = vcombine.high %v318_v4, %v322_v29  ;;  %v353_v50 = vld [vmem:[%s13997_s22 + $0x370] sm:$0xff]  ;;  %v354_v54 = vld [vmem:[%s13997_s22 + $0x378] sm:$0xff] }
 0x388   : > { %10668 = vmatpush1.bf16.msra.mxu0 %v11863_v20  ;;  %11160 = vmatpush1.bf16.msra.mxu1 %v11865_v21  ;;  %v11903_v20 = vcombine.low %v317_v8, %v321_v3  ;;  %v11905_v21 = vcombine.low %v318_v4, %v322_v29  ;;  %v357_v8 = vld [vmem:[%s13997_s22 + $0x390] sm:$0xff]  ;;  %v358_v4 = vld [vmem:[%s13997_s22 + $0x398] sm:$0xff] }
 0x389   : > { %10669 = vmatprep.subr.bf16.mxu0 %v11872_v22  ;;  %11161 = vmatprep.subr.bf16.mxu1 %v11874_v24  ;;  %v11912_v22 = vcombine.high %v325_v13, %v329_v14  ;;  %v11914_v24 = vcombine.high %v326_v17, %v330_v16  ;;  %v361_v3 = vld [vmem:[%s13997_s22 + $0x3b0] sm:$0xff]  ;;  %v362_v29 = vld [vmem:[%s13997_s22 + $0x3b8] sm:$0xff] }
 0x38c   : > { %10670 = vmatpush1.bf16.msra.mxu0 %v11871_v31  ;;  %11162 = vmatpush1.bf16.msra.mxu1 %v11873_v63  ;;  %v11911_v31 = vcombine.low %v325_v13, %v329_v14  ;;  %v11913_v63 = vcombine.low %v326_v17, %v330_v16  ;;  %v365_v13 = vld [vmem:[%s13997_s22 + $0x3d0] sm:$0xff]  ;;  %v366_v17 = vld [vmem:[%s13997_s22 + $0x3d8] sm:$0xff] }
 0x38d   : > { %10671 = vmatprep.subr.bf16.mxu0 %v11880_v33  ;;  %11163 = vmatprep.subr.bf16.mxu1 %v11882_v35  ;;  %v11920_v33 = vcombine.high %v333_v25, %v337_v26  ;;  %v11922_v35 = vcombine.high %v334_v49, %v338_v30  ;;  %v369_v14 = vld [vmem:[%s13997_s22 + $0x3f0] sm:$0xff]  ;;  %v370_v16 = vld [vmem:[%s13997_s22 + $0x3f8] sm:$0xff] }
 0x390   : > { %10672 = vmatpush1.bf16.msra.mxu0 %v11879_v42  ;;  %11164 = vmatpush1.bf16.msra.mxu1 %v11881_v45  ;;  %v11919_v42 = vcombine.low %v333_v25, %v337_v26  ;;  %v11921_v45 = vcombine.low %v334_v49, %v338_v30  ;;  %v373_v25 = vld [vmem:[%s13997_s22 + $0x410] sm:$0xff]  ;;  %v374_v49 = vld [vmem:[%s13997_s22 + $0x418] sm:$0xff] }
 0x391   : > { %10673 = vmatprep.subr.bf16.mxu0 %v11888_v46  ;;  %11165 = vmatprep.subr.bf16.mxu1 %v11890_v47  ;;  %v11928_v46 = vcombine.high %v341_v36, %v345_v39  ;;  %v11930_v47 = vcombine.high %v342_v40, %v346_v41  ;;  %v377_v26 = vld [vmem:[%s13997_s22 + $0x430] sm:$0xff]  ;;  %v378_v30 = vld [vmem:[%s13997_s22 + $0x438] sm:$0xff] }
 0x394   : > { %10674 = vmatpush1.bf16.msra.mxu0 %v11887_v55  ;;  %11166 = vmatpush1.bf16.msra.mxu1 %v11889_v60  ;;  %v11927_v55 = vcombine.low %v341_v36, %v345_v39  ;;  %v11929_v60 = vcombine.low %v342_v40, %v346_v41  ;;  %v381_v36 = vld [vmem:[%s13997_s22 + $0x450] sm:$0xff]  ;;  %v382_v40 = vld [vmem:[%s13997_s22 + $0x458] sm:$0xff] }
 0x395   : > { %10675 = vmatprep.subr.bf16.mxu0 %v11896_v61  ;;  %11167 = vmatprep.subr.bf16.mxu1 %v11898_v62  ;;  %v11936_v61 = vcombine.high %v349_v34, %v353_v50  ;;  %v11938_v62 = vcombine.high %v350_v52, %v354_v54  ;;  %v385_v39 = vld [vmem:[%s13997_s22 + $0x470] sm:$0xff]  ;;  %v386_v41 = vld [vmem:[%s13997_s22 + $0x478] sm:$0xff] }
 0x398   : > { %10676 = vmatpush1.bf16.msra.mxu0 %v11895_v44  ;;  %11168 = vmatpush1.bf16.msra.mxu1 %v11897_v9  ;;  %v11935_v44 = vcombine.low %v349_v34, %v353_v50  ;;  %v11937_v9 = vcombine.low %v350_v52, %v354_v54  ;;  %v389_v34 = vld [vmem:[%s13997_s22 + $0x490] sm:$0xff]  ;;  %v390_v52 = vld [vmem:[%s13997_s22 + $0x498] sm:$0xff] }
 0x399   : > { %10677 = vmatprep.subr.bf16.mxu0 %v11904_v11  ;;  %11169 = vmatprep.subr.bf16.mxu1 %v11906_v12  ;;  %v11944_v11 = vcombine.high %v357_v8, %v361_v3  ;;  %v11946_v12 = vcombine.high %v358_v4, %v362_v29  ;;  %v393_v50 = vld [vmem:[%s13997_s22 + $0x4b0] sm:$0xff]  ;;  %v394_v54 = vld [vmem:[%s13997_s22 + $0x4b8] sm:$0xff] }
 0x39c   : > { %10678 = vmatpush1.bf16.msra.mxu0 %v11903_v20  ;;  %11170 = vmatpush1.bf16.msra.mxu1 %v11905_v21  ;;  %v11943_v20 = vcombine.low %v357_v8, %v361_v3  ;;  %v11945_v21 = vcombine.low %v358_v4, %v362_v29  ;;  %v397_v8 = vld [vmem:[%s13997_s22 + $0x4d0] sm:$0xff]  ;;  %v398_v4 = vld [vmem:[%s13997_s22 + $0x4d8] sm:$0xff] }
 0x39d   : > { %10679 = vmatprep.subr.bf16.mxu0 %v11912_v22  ;;  %11171 = vmatprep.subr.bf16.mxu1 %v11914_v24  ;;  %v11952_v22 = vcombine.high %v365_v13, %v369_v14  ;;  %v11954_v24 = vcombine.high %v366_v17, %v370_v16  ;;  %v401_v3 = vld [vmem:[%s13997_s22 + $0x4f0] sm:$0xff]  ;;  %v402_v29 = vld [vmem:[%s13997_s22 + $0x4f8] sm:$0xff] }
 0x3a0   : > { %10680 = vmatpush1.bf16.msra.mxu0 %v11911_v31  ;;  %11172 = vmatpush1.bf16.msra.mxu1 %v11913_v63  ;;  %v11951_v31 = vcombine.low %v365_v13, %v369_v14  ;;  %v11953_v63 = vcombine.low %v366_v17, %v370_v16  ;;  %v409_v13 = vld [vmem:[%s13997_s22 + $0x530] sm:$0xff]  ;;  %v406_v14 = vld [vmem:[%s13997_s22 + $0x518] sm:$0xff]  ;;  %v11983_v16 = vcombine.low %v397_v8, %v401_v3 }
 0x3a1   : > { %10681 = vmatprep.subr.bf16.mxu0 %v11920_v33  ;;  %11173 = vmatprep.subr.bf16.mxu1 %v11922_v35  ;;  %v11960_v33 = vcombine.high %v373_v25, %v377_v26  ;;  %v11962_v35 = vcombine.high %v374_v49, %v378_v30  ;;  %v410_v17 = vld [vmem:[%s13997_s22 + $0x538] sm:$0xff] }
 0x3a4   : > { %10682 = vmatpush1.bf16.msra.mxu0 %v11919_v42  ;;  %11174 = vmatpush1.bf16.msra.mxu1 %v11921_v45  ;;  %v11959_v42 = vcombine.low %v373_v25, %v377_v26  ;;  %v11961_v45 = vcombine.low %v374_v49, %v378_v30  ;;  %v414_v25 = vld [vmem:[%s13997_s22 + $0x558] sm:$0xff]  ;;  %v11993_v30 = vcombine.low %v406_v14, %v410_v17 }
 0x3a5   : > { %10683 = vmatprep.subr.bf16.mxu0 %v11928_v46  ;;  %11175 = vmatprep.subr.bf16.mxu1 %v11930_v47  ;;  %v11968_v46 = vcombine.high %v381_v36, %v385_v39  ;;  %v11970_v47 = vcombine.high %v382_v40, %v386_v41  ;;  %v418_v26 = vld [vmem:[%s13997_s22 + $0x578] sm:$0xff] }
 0x3a8   : > { %10684 = vmatpush1.bf16.msra.mxu0 %v11927_v55  ;;  %11176 = vmatpush1.bf16.msra.mxu1 %v11929_v60  ;;  %v11967_v55 = vcombine.low %v381_v36, %v385_v39  ;;  %v11969_v60 = vcombine.low %v382_v40, %v386_v41  ;;  %v422_v36 = vld [vmem:[%s13997_s22 + $0x598] sm:$0xff]  ;;  %v12001_v41 = vcombine.low %v414_v25, %v418_v26 }
 0x3a9   : > { %10685 = vmatprep.subr.bf16.mxu0 %v11936_v61  ;;  %11177 = vmatprep.subr.bf16.mxu1 %v11938_v62  ;;  %v11976_v61 = vcombine.high %v389_v34, %v393_v50  ;;  %v11978_v62 = vcombine.high %v390_v52, %v394_v54  ;;  %v426_v39 = vld [vmem:[%s13997_s22 + $0x5b8] sm:$0xff] }
 0x3ac   : > { %10686 = vmatpush1.bf16.msra.mxu0 %v11935_v44  ;;  %11178 = vmatpush1.bf16.msra.mxu1 %v11937_v9  ;;  %v11977_v44 = vcombine.low %v390_v52, %v394_v54  ;;  %v11984_v9 = vcombine.high %v397_v8, %v401_v3  ;;  %v12009_v54 = vcombine.low %v422_v36, %v426_v39  ;;  %v438_v8 = vld [vmem:[%s13997_s22 + $0x618] sm:$0xff] }
 0x3ad   : > { %10687 = vmatprep.subr.bf16.mxu0 %v11944_v11  ;;  %11179 = vmatprep.subr.bf16.mxu1 %v11946_v12  ;;  %v11986_v11 = vcombine.high %v398_v4, %v402_v29  ;;  %v405_v12 = vld [vmem:[%s13997_s22 + $0x510] sm:$0xff]  ;;  %v442_v3 = vld [vmem:[%s13997_s22 + $0x638] sm:$0xff] }
 0x3ae   : > { %v11991_v49 = vcombine.low %v405_v12, %v409_v13 }
 0x3b0   : > { %10688 = vmatpush1.bf16.msra.mxu0 %v11943_v20  ;;  %11180 = vmatpush1.bf16.msra.mxu1 %v11945_v21  ;;  %v11992_v20 = vcombine.high %v405_v12, %v409_v13  ;;  %v11994_v21 = vcombine.high %v406_v14, %v410_v17  ;;  %v446_v12 = vld [vmem:[%s13997_s22 + $0x658] sm:$0xff]  ;;  %v12025_v17 = vcombine.low %v438_v8, %v442_v3 }
 0x3b1   : > { %10689 = vmatprep.subr.bf16.mxu0 %v11952_v22  ;;  %11181 = vmatprep.subr.bf16.mxu1 %v11954_v24  ;;  %v413_v22 = vld [vmem:[%s13997_s22 + $0x550] sm:$0xff]  ;;  %v450_v13 = vld [vmem:[%s13997_s22 + $0x678] sm:$0xff] }
 0x3b2   : > { %v417_v24 = vld [vmem:[%s13997_s22 + $0x570] sm:$0xff] }
 0x3b3   : > { %v11999_v40 = vcombine.low %v413_v22, %v417_v24 }
 0x3b4   : > { %10690 = vmatpush1.bf16.msra.mxu0 %v11951_v31  ;;  %11182 = vmatpush1.bf16.msra.mxu1 %v11953_v63  ;;  %v12000_v31 = vcombine.high %v413_v22, %v417_v24  ;;  %v12002_v63 = vcombine.high %v414_v25, %v418_v26  ;;  %v454_v22 = vld [vmem:[%s13997_s22 + $0x698] sm:$0xff]  ;;  %v12033_v26 = vcombine.low %v446_v12, %v450_v13 }
 0x3b5   : > { %10700 = vmatprep.subr.bf16.mxu0 %v11960_v33  ;;  %11192 = vmatprep.subr.bf16.mxu1 %v11962_v35  ;;  %v421_v33 = vld [vmem:[%s13997_s22 + $0x590] sm:$0xff]  ;;  %v458_v24 = vld [vmem:[%s13997_s22 + $0x6b8] sm:$0xff] }
 0x3b6   : > { %v425_v35 = vld [vmem:[%s13997_s22 + $0x5b0] sm:$0xff] }
 0x3b7   : > { %10692 = vmatmul.mubr.bf16.vlgmr.msra.gmra.mrb[4].mxu0 %v14093_v23  ;;  %11184 = vmatmul.mubr.bf16.vlgmr.msra.gmra.mrb[4].mxu1 %v14093_v23  ;;  %v11975_v23 = vcombine.low %v389_v34, %v393_v50  ;;  %v430_v34 = vld [vmem:[%s13997_s22 + $0x5d8] sm:$0xff]  ;;  %v12007_v52 = vcombine.low %v421_v33, %v425_v35 }
 0x3b8   : > { %10701 = vmatpush1.bf16.msra.mxu0 %v11959_v42  ;;  %11193 = vmatpush1.bf16.msra.mxu1 %v11961_v45  ;;  %v12008_v42 = vcombine.high %v421_v33, %v425_v35  ;;  %v12010_v45 = vcombine.high %v422_v36, %v426_v39  ;;  %v434_v50 = vld [vmem:[%s13997_s22 + $0x5f8] sm:$0xff]  ;;  %v12041_v39 = vcombine.low %v454_v22, %v458_v24 }
 0x3b9   : > { %10702 = vmatprep.subr.bf16.mxu0 %v11968_v46  ;;  %11194 = vmatprep.subr.bf16.mxu1 %v11970_v47  ;;  %v429_v46 = vld [vmem:[%s13997_s22 + $0x5d0] sm:$0xff]  ;;  %v462_v33 = vld [vmem:[%s13997_s22 + $0x6d8] sm:$0xff] }
 0x3ba   : > { %10732 = vmatprep.mubr.bf16.mxu0 %v14101_v32  ;;  %11224 = vmatprep.mubr.bf16.mxu1 %v14101_v32  ;;  %v11985_v32 = vcombine.low %v398_v4, %v402_v29  ;;  %v433_v47 = vld [vmem:[%s13997_s22 + $0x5f0] sm:$0xff]  ;;  %v12017_v29 = vcombine.low %v430_v34, %v434_v50  ;;  %v466_v35 = vld [vmem:[%s13997_s22 + $0x6f8] sm:$0xff] }
 0x3bb   : > { %v12015_v4 = vcombine.low %v429_v46, %v433_v47 }
 0x3bc   : > { %10703 = vmatpush1.bf16.msra.mxu0 %v11967_v55  ;;  %11195 = vmatpush1.bf16.msra.mxu1 %v11969_v60  ;;  %v12016_v55 = vcombine.high %v429_v46, %v433_v47  ;;  %v12018_v60 = vcombine.high %v430_v34, %v434_v50  ;;  %v470_v46 = vld [vmem:[%s13997_s22 + $0x718] sm:$0xff]  ;;  %v12049_v50 = vcombine.low %v462_v33, %v466_v35 }
 0x3bd   : > { %10704 = vmatprep.subr.bf16.mxu0 %v11976_v61  ;;  %11196 = vmatprep.subr.bf16.mxu1 %v11978_v62  ;;  %v437_v61 = vld [vmem:[%s13997_s22 + $0x610] sm:$0xff]  ;;  %v474_v47 = vld [vmem:[%s13997_s22 + $0x738] sm:$0xff] }
 0x3be   : > { %v441_v62 = vld [vmem:[%s13997_s22 + $0x630] sm:$0xff] }
 0x3bf   : > { %v12023_v14 = vcombine.low %v437_v61, %v441_v62 }
 0x3c0   : > { %10705 = vmatpush1.bf16.msra.mxu0 %v11975_v23  ;;  %11197 = vmatpush1.bf16.msra.mxu1 %v11977_v44  ;;  %v12024_v23 = vcombine.high %v437_v61, %v441_v62  ;;  %v12026_v44 = vcombine.high %v438_v8, %v442_v3  ;;  %v478_v61 = vld [vmem:[%s13997_s22 + $0x758] sm:$0xff]  ;;  %v12057_v3 = vcombine.low %v470_v46, %v474_v47 }
 0x3c1   : > { %10706 = vmatprep.subr.bf16.mxu0 %v11984_v9  ;;  %11198 = vmatprep.subr.bf16.mxu1 %v11986_v11  ;;  %v445_v9 = vld [vmem:[%s13997_s22 + $0x650] sm:$0xff]  ;;  %v482_v62 = vld [vmem:[%s13997_s22 + $0x778] sm:$0xff] }
 0x3c2   : > { %v449_v11 = vld [vmem:[%s13997_s22 + $0x670] sm:$0xff] }
 0x3c3   : > { %v12031_v25 = vcombine.low %v445_v9, %v449_v11 }
 0x3c4   : > { %10707 = vmatpush1.bf16.msra.mxu0 %v11983_v16  ;;  %11199 = vmatpush1.bf16.msra.mxu1 %v11985_v32  ;;  %v12032_v16 = vcombine.high %v445_v9, %v449_v11  ;;  %v12034_v32 = vcombine.high %v446_v12, %v450_v13  ;;  %v486_v9 = vld [vmem:[%s13997_s22 + $0x798] sm:$0xff]  ;;  %v12065_v13 = vcombine.low %v478_v61, %v482_v62 }
 0x3c5   : > { %10708 = vmatprep.subr.bf16.mxu0 %v11992_v20  ;;  %11200 = vmatprep.subr.bf16.mxu1 %v11994_v21  ;;  %v453_v20 = vld [vmem:[%s13997_s22 + $0x690] sm:$0xff]  ;;  %v490_v11 = vld [vmem:[%s13997_s22 + $0x7b8] sm:$0xff] }
 0x3c6   : > { %v457_v21 = vld [vmem:[%s13997_s22 + $0x6b0] sm:$0xff] }
 0x3c7   : > { %v12039_v36 = vcombine.low %v453_v20, %v457_v21 }
 0x3c8   : > { %10709 = vmatpush1.bf16.msra.mxu0 %v11991_v49  ;;  %11201 = vmatpush1.bf16.msra.mxu1 %v11993_v30  ;;  %v12040_v49 = vcombine.high %v453_v20, %v457_v21  ;;  %v12042_v30 = vcombine.high %v454_v22, %v458_v24  ;;  %v494_v20 = vld [vmem:[%s13997_s22 + $0x7d8] sm:$0xff]  ;;  %v12073_v24 = vcombine.low %v486_v9, %v490_v11 }
 0x3c9   : > { %10710 = vmatprep.subr.bf16.mxu0 %v12000_v31  ;;  %11202 = vmatprep.subr.bf16.mxu1 %v12002_v63  ;;  %v461_v31 = vld [vmem:[%s13997_s22 + $0x6d0] sm:$0xff]  ;;  %v498_v21 = vld [vmem:[%s13997_s22 + $0x7f8] sm:$0xff] }
 0x3ca   : > { %v465_v63 = vld [vmem:[%s13997_s22 + $0x6f0] sm:$0xff] }
 0x3cb   : > { %v12047_v34 = vcombine.low %v461_v31, %v465_v63 }
 0x3cc   : > { %10711 = vmatpush1.bf16.msra.mxu0 %v11999_v40  ;;  %11203 = vmatpush1.bf16.msra.mxu1 %v12001_v41  ;;  %v12048_v40 = vcombine.high %v461_v31, %v465_v63  ;;  %v12050_v41 = vcombine.high %v462_v33, %v466_v35  ;;  %v502_v31 = vld [vmem:[%s13997_s22 + $0x818] sm:$0xff]  ;;  %v12081_v35 = vcombine.low %v494_v20, %v498_v21 }
 0x3cd   : > { %10712 = vmatprep.subr.bf16.mxu0 %v12008_v42  ;;  %11204 = vmatprep.subr.bf16.mxu1 %v12010_v45  ;;  %v469_v42 = vld [vmem:[%s13997_s22 + $0x710] sm:$0xff]  ;;  %v506_v63 = vld [vmem:[%s13997_s22 + $0x838] sm:$0xff] }
 0x3ce   : > { %v473_v45 = vld [vmem:[%s13997_s22 + $0x730] sm:$0xff] }
 0x3cf   : > { %v12055_v8 = vcombine.low %v469_v42, %v473_v45 }
 0x3d0   : > { %10713 = vmatpush1.bf16.msra.mxu0 %v12007_v52  ;;  %11205 = vmatpush1.bf16.msra.mxu1 %v12009_v54  ;;  %v12056_v52 = vcombine.high %v469_v42, %v473_v45  ;;  %v12058_v54 = vcombine.high %v470_v46, %v474_v47  ;;  %v510_v42 = vld [vmem:[%s13997_s22 + $0x858] sm:$0xff]  ;;  %v12089_v47 = vcombine.low %v502_v31, %v506_v63 }
 0x3d1   : > { %10714 = vmatprep.subr.bf16.mxu0 %v12016_v55  ;;  %11206 = vmatprep.subr.bf16.mxu1 %v12018_v60  ;;  %v477_v55 = vld [vmem:[%s13997_s22 + $0x750] sm:$0xff]  ;;  %v514_v45 = vld [vmem:[%s13997_s22 + $0x878] sm:$0xff] }
 0x3d2   : > { %v481_v60 = vld [vmem:[%s13997_s22 + $0x770] sm:$0xff] }
 0x3d3   : > { %v12063_v12 = vcombine.low %v477_v55, %v481_v60 }
 0x3d4   : > { %10715 = vmatpush1.bf16.msra.mxu0 %v12015_v4  ;;  %11207 = vmatpush1.bf16.msra.mxu1 %v12017_v29  ;;  %v12064_v4 = vcombine.high %v477_v55, %v481_v60  ;;  %v12066_v29 = vcombine.high %v478_v61, %v482_v62  ;;  %v518_v55 = vld [vmem:[%s13997_s22 + $0x898] sm:$0xff]  ;;  %v12097_v62 = vcombine.low %v510_v42, %v514_v45 }
 0x3d5   : > { %10716 = vmatprep.subr.bf16.mxu0 %v12024_v23  ;;  %11208 = vmatprep.subr.bf16.mxu1 %v12026_v44  ;;  %v485_v23 = vld [vmem:[%s13997_s22 + $0x790] sm:$0xff]  ;;  %v522_v60 = vld [vmem:[%s13997_s22 + $0x8b8] sm:$0xff] }
 0x3d6   : > { %v489_v44 = vld [vmem:[%s13997_s22 + $0x7b0] sm:$0xff] }
 0x3d7   : > { %v12071_v22 = vcombine.low %v485_v23, %v489_v44 }
 0x3d8   : > { %10717 = vmatpush1.bf16.msra.mxu0 %v12023_v14  ;;  %11209 = vmatpush1.bf16.msra.mxu1 %v12025_v17  ;;  %v12072_v14 = vcombine.high %v485_v23, %v489_v44  ;;  %v12074_v17 = vcombine.high %v486_v9, %v490_v11  ;;  %v526_v23 = vld [vmem:[%s13997_s22 + $0x8d8] sm:$0xff]  ;;  %v12105_v9 = vcombine.low %v518_v55, %v522_v60 }
 0x3d9   : > { %10718 = vmatprep.subr.bf16.mxu0 %v12032_v16  ;;  %11210 = vmatprep.subr.bf16.mxu1 %v12034_v32  ;;  %v493_v16 = vld [vmem:[%s13997_s22 + $0x7d0] sm:$0xff]  ;;  %v530_v44 = vld [vmem:[%s13997_s22 + $0x8f8] sm:$0xff] }
 0x3da   : > { %v497_v32 = vld [vmem:[%s13997_s22 + $0x7f0] sm:$0xff] }
 0x3db   : > { %v12079_v33 = vcombine.low %v493_v16, %v497_v32 }
 0x3dc   : > { %10719 = vmatpush1.bf16.msra.mxu0 %v12031_v25  ;;  %11211 = vmatpush1.bf16.msra.mxu1 %v12033_v26  ;;  %v12080_v25 = vcombine.high %v493_v16, %v497_v32  ;;  %v12082_v26 = vcombine.high %v494_v20, %v498_v21  ;;  %v538_v16 = vld [vmem:[%s13997_s22 + $0x938] sm:$0xff] }
 0x3dd   : > { %10720 = vmatprep.subr.bf16.mxu0 %v12040_v49  ;;  %11212 = vmatprep.subr.bf16.mxu1 %v12042_v30  ;;  %v501_v49 = vld [vmem:[%s13997_s22 + $0x810] sm:$0xff] }
 0x3de   : > { %v505_v30 = vld [vmem:[%s13997_s22 + $0x830] sm:$0xff] }
 0x3df   : > { %v12087_v46 = vcombine.low %v501_v49, %v505_v30 }
 0x3e0   : > { %10721 = vmatpush1.bf16.msra.mxu0 %v12039_v36  ;;  %11213 = vmatpush1.bf16.msra.mxu1 %v12041_v39  ;;  %v12088_v36 = vcombine.high %v501_v49, %v505_v30  ;;  %v12090_v39 = vcombine.high %v502_v31, %v506_v63 }
 0x3e1   : > { %10722 = vmatprep.subr.bf16.mxu0 %v12048_v40  ;;  %11214 = vmatprep.subr.bf16.mxu1 %v12050_v41  ;;  %v509_v40 = vld [vmem:[%s13997_s22 + $0x850] sm:$0xff] }
 0x3e2   : > { %v513_v41 = vld [vmem:[%s13997_s22 + $0x870] sm:$0xff] }
 0x3e3   : > { %v12095_v61 = vcombine.low %v509_v40, %v513_v41 }
 0x3e4   : > { %10723 = vmatpush1.bf16.msra.mxu0 %v12047_v34  ;;  %11215 = vmatpush1.bf16.msra.mxu1 %v12049_v50  ;;  %v12096_v34 = vcombine.high %v509_v40, %v513_v41  ;;  %v12098_v50 = vcombine.high %v510_v42, %v514_v45 }
 0x3e5   : > { %10724 = vmatprep.subr.bf16.mxu0 %v12056_v52  ;;  %11216 = vmatprep.subr.bf16.mxu1 %v12058_v54  ;;  %v517_v52 = vld [vmem:[%s13997_s22 + $0x890] sm:$0xff] }
 0x3e6   : > { %v521_v54 = vld [vmem:[%s13997_s22 + $0x8b0] sm:$0xff] }
 0x3e8   : > { %10725 = vmatpush1.bf16.msra.mxu0 %v12055_v8  ;;  %11217 = vmatpush1.bf16.msra.mxu1 %v12057_v3  ;;  %v12104_v8 = vcombine.high %v517_v52, %v521_v54  ;;  %v12106_v3 = vcombine.high %v518_v55, %v522_v60 }
 0x3e9   : > { %10726 = vmatprep.subr.bf16.mxu0 %v12064_v4  ;;  %11218 = vmatprep.subr.bf16.mxu1 %v12066_v29  ;;  %v525_v4 = vld [vmem:[%s13997_s22 + $0x8d0] sm:$0xff] }
 0x3ea   : > { %v529_v29 = vld [vmem:[%s13997_s22 + $0x8f0] sm:$0xff] }
 0x3eb   : > { %v12112_v11 = vcombine.high %v525_v4, %v529_v29  ;;  %v12111_v32 = vcombine.low %v525_v4, %v529_v29 }
 0x3ec   : > { %10727 = vmatpush1.bf16.msra.mxu0 %v12063_v12  ;;  %11219 = vmatpush1.bf16.msra.mxu1 %v12065_v13  ;;  %v12114_v12 = vcombine.high %v526_v23, %v530_v44  ;;  %v533_v13 = vld [vmem:[%s13997_s22 + $0x910] sm:$0xff] }
 0x3ed   : > { %10728 = vmatprep.subr.bf16.mxu0 %v12072_v14  ;;  %11220 = vmatprep.subr.bf16.mxu1 %v12074_v17  ;;  %v537_v14 = vld [vmem:[%s13997_s22 + $0x930] sm:$0xff]  ;;  %v534_v17 = vld [vmem:[%s13997_s22 + $0x918] sm:$0xff] }
 0x3ee   : > { %v12120_v20 = vcombine.high %v533_v13, %v537_v14  ;;  %v12122_v21 = vcombine.high %v534_v17, %v538_v16  ;;  %v12119_v49 = vcombine.low %v533_v13, %v537_v14  ;;  %v12121_v30 = vcombine.low %v534_v17, %v538_v16 }
 0x3f0   : > { %10729 = vmatpush1.bf16.msra.mxu0 %v12071_v22  ;;  %11221 = vmatpush1.bf16.msra.mxu1 %v12073_v24  ;;  %v541_v22 = vld [vmem:[%s13997_s22 + $0x950] sm:$0xff] }
 0x3f1   : > { %10730 = vmatprep.subr.bf16.mxu0 %v12080_v25  ;;  %11222 = vmatprep.subr.bf16.mxu1 %v12082_v26  ;;  %v545_v24 = vld [vmem:[%s13997_s22 + $0x970] sm:$0xff]  ;;  %v542_v25 = vld [vmem:[%s13997_s22 + $0x958] sm:$0xff] }
 0x3f2   : > { %v546_v26 = vld [vmem:[%s13997_s22 + $0x978] sm:$0xff]  ;;  %v12128_v31 = vcombine.high %v541_v22, %v545_v24  ;;  %v12127_v40 = vcombine.low %v541_v22, %v545_v24 }
 0x3f3   : > { %v12130_v63 = vcombine.high %v542_v25, %v546_v26  ;;  %v12129_v41 = vcombine.low %v542_v25, %v546_v26 }
 0x3f4   : > { %10731 = vmatpush1.bf16.msra.mxu0 %v12079_v33  ;;  %11223 = vmatpush1.bf16.msra.mxu1 %v12081_v35  ;;  %v549_v33 = vld [vmem:[%s13997_s22 + $0x990] sm:$0xff] }
 0x3f5   : > { %10741 = vmatprep.subr.bf16.mxu0 %v12088_v36  ;;  %11233 = vmatprep.subr.bf16.mxu1 %v12090_v39  ;;  %v553_v35 = vld [vmem:[%s13997_s22 + $0x9b0] sm:$0xff]  ;;  %v550_v36 = vld [vmem:[%s13997_s22 + $0x998] sm:$0xff] }
 0x3f6   : > { %v554_v39 = vld [vmem:[%s13997_s22 + $0x9b8] sm:$0xff]  ;;  %v12136_v42 = vcombine.high %v549_v33, %v553_v35 }
 0x3f7   : > { %10733 = vmatmul.mubr.bf16.vlgmr.msra.gmra.mrb[4].mxu0 %v14176_v38  ;;  %11225 = vmatmul.mubr.bf16.vlgmr.msra.gmra.mrb[4].mxu1 %v14176_v38  ;;  %v12103_v38 = vcombine.low %v517_v52, %v521_v54  ;;  %v12138_v45 = vcombine.high %v550_v36, %v554_v39  ;;  %v12135_v52 = vcombine.low %v549_v33, %v553_v35 }
 0x3f8   : > { %10742 = vmatpush1.bf16.msra.mxu0 %v12087_v46  ;;  %11234 = vmatpush1.bf16.msra.mxu1 %v12089_v47  ;;  %v557_v46 = vld [vmem:[%s13997_s22 + $0x9d0] sm:$0xff]  ;;  %v12137_v54 = vcombine.low %v550_v36, %v554_v39 }
 0x3f9   : > { %10743 = vmatprep.subr.bf16.mxu0 %v12096_v34  ;;  %11235 = vmatprep.subr.bf16.mxu1 %v12098_v50  ;;  %v561_v47 = vld [vmem:[%s13997_s22 + $0x9f0] sm:$0xff]  ;;  %v558_v34 = vld [vmem:[%s13997_s22 + $0x9d8] sm:$0xff] }
 0x3fa   : > { %10773 = vmatprep.mubr.bf16.mxu0 %v14183_v48  ;;  %11265 = vmatprep.mubr.bf16.mxu1 %v14183_v48  ;;  %v12113_v48 = vcombine.low %v526_v23, %v530_v44  ;;  %v562_v50 = vld [vmem:[%s13997_s22 + $0x9f8] sm:$0xff]  ;;  %v12144_v55 = vcombine.high %v557_v46, %v561_v47  ;;  %v12143_v4 = vcombine.low %v557_v46, %v561_v47 }
 0x3fb   : > { %v12146_v60 = vcombine.high %v558_v34, %v562_v50  ;;  %v12145_v29 = vcombine.low %v558_v34, %v562_v50 }
 0x3fc   : > { %10744 = vmatpush1.bf16.msra.mxu0 %v12095_v61  ;;  %11236 = vmatpush1.bf16.msra.mxu1 %v12097_v62  ;;  %v565_v61 = vld [vmem:[%s13997_s22 + $0xa10] sm:$0xff] }
 0x3fd   : > { %10745 = vmatprep.subr.bf16.mxu0 %v12104_v8  ;;  %11237 = vmatprep.subr.bf16.mxu1 %v12106_v3  ;;  %v569_v62 = vld [vmem:[%s13997_s22 + $0xa30] sm:$0xff]  ;;  %v566_v8 = vld [vmem:[%s13997_s22 + $0xa18] sm:$0xff] }
 0x3fe   : > { %v570_v3 = vld [vmem:[%s13997_s22 + $0xa38] sm:$0xff]  ;;  %v12152_v23 = vcombine.high %v565_v61, %v569_v62  ;;  %v12151_v13 = vcombine.low %v565_v61, %v569_v62 }
 0x3ff   : > { %v12154_v44 = vcombine.high %v566_v8, %v570_v3  ;;  %v12153_v14 = vcombine.low %v566_v8, %v570_v3 }
 0x400   : > { %10746 = vmatpush1.bf16.msra.mxu0 %v12103_v38  ;;  %11238 = vmatpush1.bf16.msra.mxu1 %v12105_v9  ;;  %v573_v38 = vld [vmem:[%s13997_s22 + $0xa50] sm:$0xff] }
 0x401   : > { %10747 = vmatprep.subr.bf16.mxu0 %v12112_v11  ;;  %11239 = vmatprep.subr.bf16.mxu1 %v12114_v12  ;;  %v577_v9 = vld [vmem:[%s13997_s22 + $0xa70] sm:$0xff]  ;;  %v574_v11 = vld [vmem:[%s13997_s22 + $0xa58] sm:$0xff] }
 0x402   : > { %v578_v12 = vld [vmem:[%s13997_s22 + $0xa78] sm:$0xff]  ;;  %v12160_v17 = vcombine.high %v573_v38, %v577_v9  ;;  %v12159_v22 = vcombine.low %v573_v38, %v577_v9 }
 0x403   : > { %v12162_v16 = vcombine.high %v574_v11, %v578_v12  ;;  %v12161_v24 = vcombine.low %v574_v11, %v578_v12 }
 0x404   : > { %10748 = vmatpush1.bf16.msra.mxu0 %v12111_v32  ;;  %11240 = vmatpush1.bf16.msra.mxu1 %v12113_v48  ;;  %v581_v32 = vld [vmem:[%s13997_s22 + $0xa90] sm:$0xff] }
 0x405   : > { %10749 = vmatprep.subr.bf16.mxu0 %v12120_v20  ;;  %11241 = vmatprep.subr.bf16.mxu1 %v12122_v21  ;;  %v585_v48 = vld [vmem:[%s13997_s22 + $0xab0] sm:$0xff]  ;;  %v582_v20 = vld [vmem:[%s13997_s22 + $0xa98] sm:$0xff] }
 0x406   : > { %v586_v21 = vld [vmem:[%s13997_s22 + $0xab8] sm:$0xff]  ;;  %v12168_v25 = vcombine.high %v581_v32, %v585_v48  ;;  %v12167_v33 = vcombine.low %v581_v32, %v585_v48 }
 0x407   : > { %v12170_v26 = vcombine.high %v582_v20, %v586_v21  ;;  %v12169_v35 = vcombine.low %v582_v20, %v586_v21 }
 0x408   : > { %10750 = vmatpush1.bf16.msra.mxu0 %v12119_v49  ;;  %11242 = vmatpush1.bf16.msra.mxu1 %v12121_v30  ;;  %v589_v49 = vld [vmem:[%s13997_s22 + $0xad0] sm:$0xff] }
 0x409   : > { %10751 = vmatprep.subr.bf16.mxu0 %v12128_v31  ;;  %11243 = vmatprep.subr.bf16.mxu1 %v12130_v63  ;;  %v593_v30 = vld [vmem:[%s13997_s22 + $0xaf0] sm:$0xff]  ;;  %v590_v31 = vld [vmem:[%s13997_s22 + $0xad8] sm:$0xff] }
 0x40a   : > { %v594_v63 = vld [vmem:[%s13997_s22 + $0xaf8] sm:$0xff]  ;;  %v12176_v36 = vcombine.high %v589_v49, %v593_v30  ;;  %v12175_v46 = vcombine.low %v589_v49, %v593_v30 }
 0x40b   : > { %v12178_v39 = vcombine.high %v590_v31, %v594_v63  ;;  %v12177_v47 = vcombine.low %v590_v31, %v594_v63 }
 0x40c   : > { %10752 = vmatpush1.bf16.msra.mxu0 %v12127_v40  ;;  %11244 = vmatpush1.bf16.msra.mxu1 %v12129_v41  ;;  %v597_v40 = vld [vmem:[%s13997_s22 + $0xb10] sm:$0xff] }
 0x40d   : > { %10753 = vmatprep.subr.bf16.mxu0 %v12136_v42  ;;  %11245 = vmatprep.subr.bf16.mxu1 %v12138_v45  ;;  %v601_v41 = vld [vmem:[%s13997_s22 + $0xb30] sm:$0xff]  ;;  %v598_v42 = vld [vmem:[%s13997_s22 + $0xb18] sm:$0xff] }
 0x40e   : > { %v602_v45 = vld [vmem:[%s13997_s22 + $0xb38] sm:$0xff]  ;;  %v12184_v34 = vcombine.high %v597_v40, %v601_v41  ;;  %v12183_v61 = vcombine.low %v597_v40, %v601_v41 }
 0x40f   : > { %v12186_v50 = vcombine.high %v598_v42, %v602_v45  ;;  %v12185_v62 = vcombine.low %v598_v42, %v602_v45 }
 0x410   : > { %10754 = vmatpush1.bf16.msra.mxu0 %v12135_v52  ;;  %11246 = vmatpush1.bf16.msra.mxu1 %v12137_v54  ;;  %v605_v52 = vld [vmem:[%s13997_s22 + $0xb50] sm:$0xff] }
 0x411   : > { %10755 = vmatprep.subr.bf16.mxu0 %v12144_v55  ;;  %11247 = vmatprep.subr.bf16.mxu1 %v12146_v60  ;;  %v609_v54 = vld [vmem:[%s13997_s22 + $0xb70] sm:$0xff]  ;;  %v606_v55 = vld [vmem:[%s13997_s22 + $0xb58] sm:$0xff] }
 0x412   : > { %v610_v60 = vld [vmem:[%s13997_s22 + $0xb78] sm:$0xff]  ;;  %v12192_v8 = vcombine.high %v605_v52, %v609_v54  ;;  %v12191_v38 = vcombine.low %v605_v52, %v609_v54 }
 0x413   : > { %v12194_v3 = vcombine.high %v606_v55, %v610_v60  ;;  %v12193_v9 = vcombine.low %v606_v55, %v610_v60 }
 0x414   : > { %10756 = vmatpush1.bf16.msra.mxu0 %v12143_v4  ;;  %11248 = vmatpush1.bf16.msra.mxu1 %v12145_v29  ;;  %v613_v4 = vld [vmem:[%s13997_s22 + $0xb90] sm:$0xff] }
 0x415   : > { %10757 = vmatprep.subr.bf16.mxu0 %v12152_v23  ;;  %11249 = vmatprep.subr.bf16.mxu1 %v12154_v44  ;;  %v617_v29 = vld [vmem:[%s13997_s22 + $0xbb0] sm:$0xff]  ;;  %v614_v23 = vld [vmem:[%s13997_s22 + $0xb98] sm:$0xff] }
 0x416   : > { %v618_v44 = vld [vmem:[%s13997_s22 + $0xbb8] sm:$0xff]  ;;  %v12200_v11 = vcombine.high %v613_v4, %v617_v29  ;;  %v12199_v32 = vcombine.low %v613_v4, %v617_v29 }
 0x417   : > { %v12202_v12 = vcombine.high %v614_v23, %v618_v44  ;;  %v12201_v48 = vcombine.low %v614_v23, %v618_v44  ;;  %v661_v44 = vld [vmem:[%s13997_s22 + $0xd10] sm:$0xff] }
 0x418   : > { %10758 = vmatpush1.bf16.msra.mxu0 %v12151_v13  ;;  %11250 = vmatpush1.bf16.msra.mxu1 %v12153_v14  ;;  %v621_v13 = vld [vmem:[%s13997_s22 + $0xbd0] sm:$0xff] }
 0x419   : > { %10759 = vmatprep.subr.bf16.mxu0 %v12160_v17  ;;  %11251 = vmatprep.subr.bf16.mxu1 %v12162_v16  ;;  %v625_v14 = vld [vmem:[%s13997_s22 + $0xbf0] sm:$0xff]  ;;  %v622_v17 = vld [vmem:[%s13997_s22 + $0xbd8] sm:$0xff] }
 0x41a   : > { %v626_v16 = vld [vmem:[%s13997_s22 + $0xbf8] sm:$0xff]  ;;  %v12208_v20 = vcombine.high %v621_v13, %v625_v14  ;;  %v12207_v49 = vcombine.low %v621_v13, %v625_v14 }
 0x41b   : > { %v12210_v21 = vcombine.high %v622_v17, %v626_v16  ;;  %v12209_v30 = vcombine.low %v622_v17, %v626_v16  ;;  %v669_v17 = vld [vmem:[%s13997_s22 + $0xd50] sm:$0xff] }
 0x41c   : > { %10760 = vmatpush1.bf16.msra.mxu0 %v12159_v22  ;;  %11252 = vmatpush1.bf16.msra.mxu1 %v12161_v24  ;;  %v629_v22 = vld [vmem:[%s13997_s22 + $0xc10] sm:$0xff] }
 0x41d   : > { %10761 = vmatprep.subr.bf16.mxu0 %v12168_v25  ;;  %11253 = vmatprep.subr.bf16.mxu1 %v12170_v26  ;;  %v633_v24 = vld [vmem:[%s13997_s22 + $0xc30] sm:$0xff]  ;;  %v630_v25 = vld [vmem:[%s13997_s22 + $0xc18] sm:$0xff] }
 0x41e   : > { %v634_v26 = vld [vmem:[%s13997_s22 + $0xc38] sm:$0xff]  ;;  %v12216_v31 = vcombine.high %v629_v22, %v633_v24  ;;  %v12215_v40 = vcombine.low %v629_v22, %v633_v24  ;;  %v673_v16 = vld [vmem:[%s13997_s22 + $0xd70] sm:$0xff]  ;;  %v1779_v22 = vld [vmem:[%s15191_s28] sm:$0xff]  ;;  %v1791_v24 = vsub.s32 2, %v14025_v43 }
 0x41f   : > { %v12218_v63 = vcombine.high %v630_v25, %v634_v26  ;;  %v12217_v41 = vcombine.low %v630_v25, %v634_v26  ;;  %v1787_v25 = vsub.s32 1, %v14025_v43 }
 0x420   : > { %10762 = vmatpush1.bf16.msra.mxu0 %v12167_v33  ;;  %11254 = vmatpush1.bf16.msra.mxu1 %v12169_v35  ;;  %v637_v33 = vld [vmem:[%s13997_s22 + $0xc50] sm:$0xff] }
 0x421   : > { %10763 = vmatprep.subr.bf16.mxu0 %v12176_v36  ;;  %11255 = vmatprep.subr.bf16.mxu1 %v12178_v39  ;;  %v641_v35 = vld [vmem:[%s13997_s22 + $0xc70] sm:$0xff]  ;;  %v638_v36 = vld [vmem:[%s13997_s22 + $0xc58] sm:$0xff] }
 0x422   : > { %v642_v39 = vld [vmem:[%s13997_s22 + $0xc78] sm:$0xff]  ;;  %v12224_v42 = vcombine.high %v637_v33, %v641_v35  ;;  %v12223_v52 = vcombine.low %v637_v33, %v641_v35  ;;  %v677_v35 = vld [vmem:[%s13997_s22 + $0xd90] sm:$0xff] }
 0x423   : > { %v12226_v45 = vcombine.high %v638_v36, %v642_v39  ;;  %v12225_v54 = vcombine.low %v638_v36, %v642_v39  ;;  %v681_v36 = vld [vmem:[%s13997_s22 + $0xdb0] sm:$0xff] }
 0x424   : > { %10764 = vmatpush1.bf16.msra.mxu0 %v12175_v46  ;;  %11256 = vmatpush1.bf16.msra.mxu1 %v12177_v47  ;;  %v645_v46 = vld [vmem:[%s13997_s22 + $0xc90] sm:$0xff] }
 0x425   : > { %10765 = vmatprep.subr.bf16.mxu0 %v12184_v34  ;;  %11257 = vmatprep.subr.bf16.mxu1 %v12186_v50  ;;  %v649_v47 = vld [vmem:[%s13997_s22 + $0xcb0] sm:$0xff]  ;;  %v646_v34 = vld [vmem:[%s13997_s22 + $0xc98] sm:$0xff] }
 0x426   : > { %v650_v50 = vld [vmem:[%s13997_s22 + $0xcb8] sm:$0xff]  ;;  %v12232_v55 = vcombine.high %v645_v46, %v649_v47 }
 0x427   : > { %v12234_v60 = vcombine.high %v646_v34, %v650_v50  ;;  %v12233_v4 = vcombine.low %v646_v34, %v650_v50  ;;  %v12264_v50 = vcombine.high %v677_v35, %v681_v36 }
 0x428   : > { %10766 = vmatpush1.bf16.msra.mxu0 %v12183_v61  ;;  %11258 = vmatpush1.bf16.msra.mxu1 %v12185_v62  ;;  %v653_v61 = vld [vmem:[%s13997_s22 + $0xcd0] sm:$0xff] }
 0x429   : > { %10767 = vmatprep.subr.bf16.mxu0 %v12192_v8  ;;  %11259 = vmatprep.subr.bf16.mxu1 %v12194_v3  ;;  %v657_v62 = vld [vmem:[%s13997_s22 + $0xcf0] sm:$0xff]  ;;  %v654_v8 = vld [vmem:[%s13997_s22 + $0xcd8] sm:$0xff] }
 0x42a   : > { %v658_v3 = vld [vmem:[%s13997_s22 + $0xcf8] sm:$0xff]  ;;  %v12240_v29 = vcombine.high %v653_v61, %v657_v62 }
 0x42b   : > { %v12242_v23 = vcombine.high %v654_v8, %v658_v3 }
 0x42c   : > { %10768 = vmatpush1.bf16.msra.mxu0 %v12191_v38  ;;  %11260 = vmatpush1.bf16.msra.mxu1 %v12193_v9  ;;  %v665_v38 = vld [vmem:[%s13997_s22 + $0xd30] sm:$0xff]  ;;  %v662_v9 = vld [vmem:[%s13997_s22 + $0xd18] sm:$0xff] }
 0x42d   : > { %10769 = vmatprep.subr.bf16.mxu0 %v12200_v11  ;;  %11261 = vmatprep.subr.bf16.mxu1 %v12202_v12  ;;  %v666_v11 = vld [vmem:[%s13997_s22 + $0xd38] sm:$0xff]  ;;  %v12239_v12 = vcombine.low %v653_v61, %v657_v62  ;;  %v12248_v13 = vcombine.high %v661_v44, %v665_v38  ;;  %v689_v61 = vld [vmem:[%s13997_s22 + $0xdf0] sm:$0xff] }
 0x42e   : > { %v12250_v14 = vcombine.high %v662_v9, %v666_v11  ;;  %v12249_v26 = vcombine.low %v662_v9, %v666_v11  ;;  %v12263_v9 = vcombine.low %v677_v35, %v681_v36 }
 0x430   : > { %10770 = vmatpush1.bf16.msra.mxu0 %v12199_v32  ;;  %11262 = vmatpush1.bf16.msra.mxu1 %v12201_v48  ;;  %v1783_v32 = vsub.s32 0, %v14025_v43  ;;  %v670_v48 = vld [vmem:[%s13997_s22 + $0xd58] sm:$0xff] }
 0x431   : > { %10771 = vmatprep.subr.bf16.mxu0 %v12208_v20  ;;  %11263 = vmatprep.subr.bf16.mxu1 %v12210_v21  ;;  %v674_v20 = vld [vmem:[%s13997_s22 + $0xd78] sm:$0xff]  ;;  %v12247_v21 = vcombine.low %v661_v44, %v665_v38 }
 0x432   : > { %v12258_v33 = vcombine.high %v670_v48, %v674_v20  ;;  %v1784_v39 = vrot.slane %v1779_v22, %v1783_v32  ;;  %v12257_v34 = vcombine.low %v670_v48, %v674_v20 }
 0x434   : > { %10772 = vmatpush1.bf16.msra.mxu0 %v12207_v49  ;;  %11264 = vmatpush1.bf16.msra.mxu1 %v12209_v30  ;;  %v1795_v49 = vsub.s32 3, %v14025_v43  ;;  %v12256_v30 = vcombine.high %v669_v17, %v673_v16 }
 0x435   : > { %10782 = vmatprep.subr.bf16.mxu0 %v12216_v31  ;;  %11274 = vmatprep.subr.bf16.mxu1 %v12218_v63  ;;  %v13795_v31 = vmov 1983009808  }
 0x436   : > { %v11662_v63 = vunpack.c.l.s4 %v13795_v31 }
 0x437   : > { %10774 = vmatmul.mubr.bf16.vlgmr.msra.gmra.mrb[4].mxu0 %v14251_v58  ;;  %11266 = vmatmul.mubr.bf16.vlgmr.msra.gmra.mrb[4].mxu1 %v14251_v58  ;;  %v12231_v58 = vcombine.low %v645_v46, %v649_v47  ;;  %v12255_v46 = vcombine.low %v669_v17, %v673_v16  ;;  %v1796_v47 = vrot.slane %v1779_v22, %v1795_v49  ;;  %v698_v49 = vld [vmem:[%s13997_s22 + $0xe38] sm:$0xff] }
 0x438   : > { %10783 = vmatpush1.bf16.msra.mxu0 %v12215_v40  ;;  %11275 = vmatpush1.bf16.msra.mxu1 %v12217_v41  ;;  %v678_v40 = vld [vmem:[%s13997_s22 + $0xd98] sm:$0xff] }
 0x439   : > { %10784 = vmatprep.subr.bf16.mxu0 %v12224_v42  ;;  %11276 = vmatprep.subr.bf16.mxu1 %v12226_v45  ;;  %v682_v41 = vld [vmem:[%s13997_s22 + $0xdb8] sm:$0xff]  ;;  %v1792_v42 = vrot.slane %v1779_v22, %v1791_v24  ;;  %v1788_v45 = vrot.slane %v1779_v22, %v1787_v25  ;;  %v693_v22 = vld [vmem:[%s13997_s22 + $0xe10] sm:$0xff] }
 0x43a   : > { %10814 = vmatprep.mubr.bf16.mxu0 %v14259_v5  ;;  %11306 = vmatprep.mubr.bf16.mxu1 %v14259_v5  ;;  %v12241_v5 = vcombine.low %v654_v8, %v658_v3  ;;  %v697_v24 = vld [vmem:[%s13997_s22 + $0xe30] sm:$0xff] }
 0x43b   : > { %v12280_v35 = vcombine.high %v693_v22, %v697_v24 }
 0x43c   : > { %10785 = vmatpush1.bf16.msra.mxu0 %v12223_v52  ;;  %11277 = vmatpush1.bf16.msra.mxu1 %v12225_v54  ;;  %v11663_v54 = vunpack.c.0.s8 %v11662_v63 }
 0x43d   : > { %10786 = vmatprep.subr.bf16.mxu0 %v12232_v55  ;;  %11278 = vmatprep.subr.bf16.mxu1 %v12234_v60  ;;  %v12266_v55 = vcombine.high %v678_v40, %v682_v41  ;;  %v685_v60 = vld [vmem:[%s13997_s22 + $0xdd0] sm:$0xff] }
 0x43e   : > { %v12272_v17 = vcombine.high %v685_v60, %v689_v61  ;;  %v15206_v48 = vsub.s32 %v11663_v54, %v14025_v43  ;;  %v12271_v31 = vcombine.low %v685_v60, %v689_v61  ;;  %v713_v60 = vld [vmem:[%s13997_s22 + $0xeb0] sm:$0xff]  ;;  %v710_v61 = vld [vmem:[%s13997_s22 + $0xe98] sm:$0xff] }
 0x440   : > { %10787 = vmatpush1.bf16.msra.mxu0 %v12231_v58  ;;  %11279 = vmatpush1.bf16.msra.mxu1 %v12233_v4  ;;  %v686_v58 = vld [vmem:[%s13997_s22 + $0xdd8] sm:$0xff] }
 0x441   : > { %10788 = vmatprep.subr.bf16.mxu0 %v12240_v29  ;;  %11280 = vmatprep.subr.bf16.mxu1 %v12242_v23  ;;  %v690_v4 = vld [vmem:[%s13997_s22 + $0xdf8] sm:$0xff] }
 0x444   : > { %10789 = vmatpush1.bf16.msra.mxu0 %v12239_v12  ;;  %11281 = vmatpush1.bf16.msra.mxu1 %v12241_v5 }
 0x445   : > { %10790 = vmatprep.subr.bf16.mxu0 %v12248_v13  ;;  %11282 = vmatprep.subr.bf16.mxu1 %v12250_v14  ;;  %v12265_v14 = vcombine.low %v678_v40, %v682_v41  ;;  %v701_v40 = vld [vmem:[%s13997_s22 + $0xe50] sm:$0xff] }
 0x446   : > { %v705_v41 = vld [vmem:[%s13997_s22 + $0xe70] sm:$0xff] }
 0x448   : > { %10791 = vmatpush1.bf16.msra.mxu0 %v12247_v21  ;;  %11283 = vmatpush1.bf16.msra.mxu1 %v12249_v26  ;;  %v12274_v21 = vcombine.high %v686_v58, %v690_v4  ;;  %v694_v26 = vld [vmem:[%s13997_s22 + $0xe18] sm:$0xff] }
 0x449   : > { %10792 = vmatprep.subr.bf16.mxu0 %v12256_v30  ;;  %11284 = vmatprep.subr.bf16.mxu1 %v12258_v33  ;;  %v12273_v33 = vcombine.low %v686_v58, %v690_v4 }
 0x44a   : > { %v10160_v52 = vpop.f32.mrb[0].mxu0  ;;  %v10652_v8 = vpop.f32.mrb[0].mxu1 }
 0x44b   : > { %v13371_v62 = vadd.f32 %v10160_v52, %v1784_v39  ;;  %v10162_v3 = vpop.f32.mrb[1].mxu0  ;;  %v13373_v29 = vadd.f32 %v10652_v8, %v1792_v42  ;;  %v10654_v44 = vpop.f32.mrb[1].mxu1  ;;  %v12282_v39 = vcombine.high %v694_v26, %v698_v49  ;;  %v12288_v52 = vcombine.high %v701_v40, %v705_v41 }
 0x44c   : > { %v13372_v23 = vadd.f32 %v10162_v3, %v1788_v45  ;;  %v10164_v38 = vpop.f32.mrb[2].mxu0  ;;  %10793 = vmatpush1.bf16.msra.mxu0 %v12255_v46  ;;  %v13374_v12 = vadd.f32 %v10654_v44, %v1796_v47  ;;  %v10656_v5 = vpop.f32.mrb[2].mxu1  ;;  %11285 = vmatpush1.bf16.msra.mxu1 %v12257_v34  ;;  %v702_v45 = vld [vmem:[%s13997_s22 + $0xe58] sm:$0xff]  ;;  %v12279_v47 = vcombine.low %v693_v22, %v697_v24  ;;  %v733_v24 = vld [vmem:[%s13997_s22 + $0xf50] sm:$0xff] }
 0x44d   : > { %v11643_v11 = vmax.f32 %v13371_v62, 0.0  ;;  %v10165_v13 = vpop.f32.mrb[3].mxu0  ;;  %10794 = vmatprep.subr.bf16.mxu0 %v12264_v50  ;;  %v11645_v16 = vmax.f32 %v13373_v29, 0.0  ;;  %v10657_v20 = vpop.f32.mrb[3].mxu1  ;;  %11286 = vmatprep.subr.bf16.mxu1 %v12266_v55  ;;  %v706_v46 = vld [vmem:[%s13997_s22 + $0xe78] sm:$0xff]  ;;  %v12281_v50 = vcombine.low %v694_v26, %v698_v49  ;;  %v709_v55 = vld [vmem:[%s13997_s22 + $0xe90] sm:$0xff]  ;;  %v12287_v8 = vcombine.low %v701_v40, %v705_v41 }
 0x44e   : > { %v11644_v32 = vmax.f32 %v13372_v23, 0.0  ;;  %v11646_v25 = vmax.f32 %v13374_v12, 0.0  ;;  %v12290_v54 = vcombine.high %v702_v45, %v706_v46  ;;  %v714_v62 = vld [vmem:[%s13997_s22 + $0xeb8] sm:$0xff]  ;;  %v12289_v3 = vcombine.low %v702_v45, %v706_v46  ;;  %v717_v29 = vld [vmem:[%s13997_s22 + $0xed0] sm:$0xff] }
 0x44f   : > { %v12296_v58 = vcombine.high %v709_v55, %v713_v60  ;;  %v12298_v4 = vcombine.high %v710_v61, %v714_v62  ;;  %v721_v23 = vld [vmem:[%s13997_s22 + $0xef0] sm:$0xff]  ;;  %v718_v44 = vld [vmem:[%s13997_s22 + $0xed8] sm:$0xff] }
 0x450   : > { %v11659_v30 = vcombine.low %v11643_v11, %v11644_v32  ;;  %10795 = vmatpush1.bf16.msra.mxu0 %v12263_v9  ;;  %v11660_v63 = vcombine.low %v11645_v16, %v11646_v25  ;;  %11287 = vmatpush1.bf16.msra.mxu1 %v12265_v14  ;;  %v722_v38 = vld [vmem:[%s13997_s22 + $0xef8] sm:$0xff]  ;;  %v12295_v9 = vcombine.low %v709_v55, %v713_v60  ;;  %v725_v13 = vld [vmem:[%s13997_s22 + $0xf10] sm:$0xff] }
 0x451   : > { %10796 = vmatprep.subr.bf16.mxu0 %v12272_v17  ;;  %11288 = vmatprep.subr.bf16.mxu1 %v12274_v21  ;;  %v12297_v11 = vcombine.low %v710_v61, %v714_v62  ;;  %v12304_v12 = vcombine.high %v717_v29, %v721_v23  ;;  %v12306_v5 = vcombine.high %v718_v44, %v722_v38  ;;  %v729_v14 = vld [vmem:[%s13997_s22 + $0xf30] sm:$0xff]  ;;  %v726_v17 = vld [vmem:[%s13997_s22 + $0xf18] sm:$0xff] }
 0x452   : > { %v11667_v36 = vrot.slane %v11659_v30, %v15206_v48  ;;  %v11674_v42 = vrot.slane %v11660_v63, %v15206_v48  ;;  %v730_v16 = vld [vmem:[%s13997_s22 + $0xf38] sm:$0xff]  ;;  %v12303_v32 = vcombine.low %v717_v29, %v721_v23  ;;  %v12305_v20 = vcombine.low %v718_v44, %v722_v38  ;;  %v737_v25 = vld [vmem:[%s13997_s22 + $0xf70] sm:$0xff] }
 0x453   : > { %v12312_v21 = vcombine.high %v725_v13, %v729_v14  ;;  %v12314_v22 = vcombine.high %v726_v17, %v730_v16  ;;  %v734_v26 = vld [vmem:[%s13997_s22 + $0xf58] sm:$0xff]  ;;  %v12311_v30 = vcombine.low %v725_v13, %v729_v14  ;;  %v12320_v63 = vcombine.high %v733_v24, %v737_v25  ;;  %v757_v62 = vld [vmem:[%s13997_s22 + $0x1010] sm:$0xff] }
 0x454   : > { %10797 = vmatpush1.bf16.msra.mxu0 %v12271_v31  ;;  %v11675_v34 = vcombine.low %v11667_v36, %v11674_v42  ;;  %11289 = vmatpush1.bf16.msra.mxu1 %v12273_v33  ;;  %v738_v49 = vld [vmem:[%s13997_s22 + $0xf78] sm:$0xff]  ;;  %v12313_v31 = vcombine.low %v726_v17, %v730_v16  ;;  %v745_v36 = vld [vmem:[%s13997_s22 + $0xfb0] sm:$0xff]  ;;  %v12319_v41 = vcombine.low %v733_v24, %v737_v25 }
 0x455   : > { %10798 = vmatprep.subr.bf16.mxu0 %v12280_v35  ;;  %11290 = vmatprep.subr.bf16.mxu1 %v12282_v39  ;;  %v12322_v33 = vcombine.high %v734_v26, %v738_v49  ;;  %v741_v35 = vld [vmem:[%s13997_s22 + $0xf90] sm:$0xff]  ;;  %v742_v39 = vld [vmem:[%s13997_s22 + $0xf98] sm:$0xff]  ;;  %v12321_v42 = vcombine.low %v734_v26, %v738_v49 }
 0x456   : > { %11695 = vst [vmem:[%s15223_s10] sm:$0xff] %v11675_v34  ;;  %v746_v40 = vld [vmem:[%s13997_s22 + $0xfb8] sm:$0xff]  ;;  %v12328_v45 = vcombine.high %v741_v35, %v745_v36  ;;  %v753_v34 = vld [vmem:[%s13997_s22 + $0xff0] sm:$0xff] }
 0x457   : > { %v12330_v46 = vcombine.high %v742_v39, %v746_v40  ;;  %v12329_v55 = vcombine.low %v742_v39, %v746_v40  ;;  %v765_v38 = vld [vmem:[%s13997_s22 + $0x1050] sm:$0xff] }
 0x458   : > { %10799 = vmatpush1.bf16.msra.mxu0 %v12279_v47  ;;  %11291 = vmatpush1.bf16.msra.mxu1 %v12281_v50  ;;  %v749_v47 = vld [vmem:[%s13997_s22 + $0xfd0] sm:$0xff]  ;;  %v750_v50 = vld [vmem:[%s13997_s22 + $0xfd8] sm:$0xff] }
 0x459   : > { %10800 = vmatprep.subr.bf16.mxu0 %v12288_v52  ;;  %11292 = vmatprep.subr.bf16.mxu1 %v12290_v54  ;;  %v754_v52 = vld [vmem:[%s13997_s22 + $0xff8] sm:$0xff]  ;;  %v12327_v54 = vcombine.low %v741_v35, %v745_v36  ;;  %v12336_v60 = vcombine.high %v749_v47, %v753_v34  ;;  %v773_v16 = vld [vmem:[%s13997_s22 + $0x1090] sm:$0xff] }
 0x45a   : > { %v12338_v61 = vcombine.high %v750_v50, %v754_v52  ;;  %v12337_v29 = vcombine.low %v750_v50, %v754_v52  ;;  %v781_v49 = vld [vmem:[%s13997_s22 + $0x10d0] sm:$0xff]  ;;  %v798_v52 = vld [vmem:[%s13997_s22 + $0x1158] sm:$0xff] }
 0x45b   : > { %v789_v39 = vld [vmem:[%s13997_s22 + $0x1110] sm:$0xff] }
 0x45c   : > { %10801 = vmatpush1.bf16.msra.mxu0 %v12287_v8  ;;  %11293 = vmatpush1.bf16.msra.mxu1 %v12289_v3  ;;  %v761_v8 = vld [vmem:[%s13997_s22 + $0x1030] sm:$0xff]  ;;  %v758_v3 = vld [vmem:[%s13997_s22 + $0x1018] sm:$0xff] }
 0x45d   : > { %10802 = vmatprep.subr.bf16.mxu0 %v12296_v58  ;;  %11294 = vmatprep.subr.bf16.mxu1 %v12298_v4  ;;  %v762_v58 = vld [vmem:[%s13997_s22 + $0x1038] sm:$0xff]  ;;  %v12335_v4 = vcombine.low %v749_v47, %v753_v34  ;;  %v12344_v23 = vcombine.high %v757_v62, %v761_v8  ;;  %v793_v40 = vld [vmem:[%s13997_s22 + $0x1130] sm:$0xff] }
 0x45e   : > { %v12346_v44 = vcombine.high %v758_v3, %v762_v58  ;;  %v12345_v13 = vcombine.low %v758_v3, %v762_v58  ;;  %v797_v34 = vld [vmem:[%s13997_s22 + $0x1150] sm:$0xff]  ;;  %v806_v58 = vld [vmem:[%s13997_s22 + $0x1198] sm:$0xff] }
 0x45f   : > { %v801_v50 = vld [vmem:[%s13997_s22 + $0x1170] sm:$0xff] }
 0x460   : > { %10803 = vmatpush1.bf16.msra.mxu0 %v12295_v9  ;;  %11295 = vmatpush1.bf16.msra.mxu1 %v12297_v11  ;;  %v769_v9 = vld [vmem:[%s13997_s22 + $0x1070] sm:$0xff]  ;;  %v766_v11 = vld [vmem:[%s13997_s22 + $0x1058] sm:$0xff] }
 0x461   : > { %10804 = vmatprep.subr.bf16.mxu0 %v12304_v12  ;;  %11296 = vmatprep.subr.bf16.mxu1 %v12306_v5  ;;  %v770_v12 = vld [vmem:[%s13997_s22 + $0x1078] sm:$0xff]  ;;  %v12343_v5 = vcombine.low %v757_v62, %v761_v8  ;;  %v12352_v14 = vcombine.high %v765_v38, %v769_v9  ;;  %v805_v8 = vld [vmem:[%s13997_s22 + $0x1190] sm:$0xff] }
 0x462   : > { %v12354_v17 = vcombine.high %v766_v11, %v770_v12  ;;  %v12353_v24 = vcombine.low %v766_v11, %v770_v12  ;;  %v809_v3 = vld [vmem:[%s13997_s22 + $0x11b0] sm:$0xff]  ;;  %v814_v12 = vld [vmem:[%s13997_s22 + $0x11d8] sm:$0xff] }
 0x463   : > { %v817_v11 = vld [vmem:[%s13997_s22 + $0x11f0] sm:$0xff] }
 0x464   : > { %10805 = vmatpush1.bf16.msra.mxu0 %v12303_v32  ;;  %11297 = vmatpush1.bf16.msra.mxu1 %v12305_v20  ;;  %v777_v32 = vld [vmem:[%s13997_s22 + $0x10b0] sm:$0xff]  ;;  %v774_v20 = vld [vmem:[%s13997_s22 + $0x1098] sm:$0xff] }
 0x465   : > { %10806 = vmatprep.subr.bf16.mxu0 %v12312_v21  ;;  %11298 = vmatprep.subr.bf16.mxu1 %v12314_v22  ;;  %v778_v21 = vld [vmem:[%s13997_s22 + $0x10b8] sm:$0xff]  ;;  %v12351_v22 = vcombine.low %v765_v38, %v769_v9  ;;  %v12360_v25 = vcombine.high %v773_v16, %v777_v32  ;;  %v813_v9 = vld [vmem:[%s13997_s22 + $0x11d0] sm:$0xff] }
 0x466   : > { %v12362_v26 = vcombine.high %v774_v20, %v778_v21 }
 0x468   : > { %10807 = vmatpush1.bf16.msra.mxu0 %v12311_v30  ;;  %11299 = vmatpush1.bf16.msra.mxu1 %v12313_v31  ;;  %v785_v30 = vld [vmem:[%s13997_s22 + $0x10f0] sm:$0xff]  ;;  %v782_v31 = vld [vmem:[%s13997_s22 + $0x10d8] sm:$0xff] }
 0x469   : > { %10808 = vmatprep.subr.bf16.mxu0 %v12320_v63  ;;  %11300 = vmatprep.subr.bf16.mxu1 %v12322_v33  ;;  %v786_v63 = vld [vmem:[%s13997_s22 + $0x10f8] sm:$0xff]  ;;  %v12361_v33 = vcombine.low %v774_v20, %v778_v21  ;;  %v12368_v35 = vcombine.high %v781_v49, %v785_v30  ;;  %v825_v20 = vld [vmem:[%s13997_s22 + $0x1230] sm:$0xff] }
 0x46a   : > { %v12370_v36 = vcombine.high %v782_v31, %v786_v63  ;;  %v822_v21 = vld [vmem:[%s13997_s22 + $0x1218] sm:$0xff] }
 0x46c   : > { %10809 = vmatpush1.bf16.msra.mxu0 %v12319_v41  ;;  %11301 = vmatpush1.bf16.msra.mxu1 %v12321_v42  ;;  %v790_v41 = vld [vmem:[%s13997_s22 + $0x1118] sm:$0xff] }
 0x46d   : > { %10810 = vmatprep.subr.bf16.mxu0 %v12328_v45  ;;  %11302 = vmatprep.subr.bf16.mxu1 %v12330_v46  ;;  %v794_v42 = vld [vmem:[%s13997_s22 + $0x1138] sm:$0xff]  ;;  %v12367_v45 = vcombine.low %v781_v49, %v785_v30  ;;  %v12376_v46 = vcombine.high %v789_v39, %v793_v40  ;;  %v829_v30 = vld [vmem:[%s13997_s22 + $0x1250] sm:$0xff] }
 0x46e   : > { %v12378_v47 = vcombine.high %v790_v41, %v794_v42 }
 0x470   : > { %10811 = vmatpush1.bf16.msra.mxu0 %v12327_v54  ;;  %11303 = vmatpush1.bf16.msra.mxu1 %v12329_v55  ;;  %v802_v54 = vld [vmem:[%s13997_s22 + $0x1178] sm:$0xff]  ;;  %v12375_v55 = vcombine.low %v789_v39, %v793_v40  ;;  %v837_v40 = vld [vmem:[%s13997_s22 + $0x1290] sm:$0xff] }
 0x471   : > { %10812 = vmatprep.subr.bf16.mxu0 %v12336_v60  ;;  %11304 = vmatprep.subr.bf16.mxu1 %v12338_v61  ;;  %v12377_v60 = vcombine.low %v790_v41, %v794_v42  ;;  %v12384_v61 = vcombine.high %v797_v34, %v801_v50  ;;  %v12386_v62 = vcombine.high %v798_v52, %v802_v54  ;;  %v841_v41 = vld [vmem:[%s13997_s22 + $0x12b0] sm:$0xff]  ;;  %v838_v42 = vld [vmem:[%s13997_s22 + $0x1298] sm:$0xff] }
 0x474   : > { %10813 = vmatpush1.bf16.msra.mxu0 %v12335_v4  ;;  %11305 = vmatpush1.bf16.msra.mxu1 %v12337_v29  ;;  %v810_v4 = vld [vmem:[%s13997_s22 + $0x11b8] sm:$0xff]  ;;  %v12383_v29 = vcombine.low %v797_v34, %v801_v50  ;;  %v845_v50 = vld [vmem:[%s13997_s22 + $0x12d0] sm:$0xff] }
 0x475   : > { %10823 = vmatprep.subr.bf16.mxu0 %v12344_v23  ;;  %11315 = vmatprep.subr.bf16.mxu1 %v12346_v44  ;;  %v12385_v23 = vcombine.low %v798_v52, %v802_v54  ;;  %v12392_v44 = vcombine.high %v805_v8, %v809_v3  ;;  %v12394_v38 = vcombine.high %v806_v58, %v810_v4  ;;  %v849_v52 = vld [vmem:[%s13997_s22 + $0x12f0] sm:$0xff]  ;;  %v846_v54 = vld [vmem:[%s13997_s22 + $0x12d8] sm:$0xff] }
 0x477   : > { %10815 = vmatmul.mubr.bf16.vlgmr.msra.gmra.mrb[4].mxu0 %v14335_v19  ;;  %11307 = vmatmul.mubr.bf16.vlgmr.msra.gmra.mrb[4].mxu1 %v14335_v19  ;;  %v12359_v19 = vcombine.low %v773_v16, %v777_v32  ;;  %v821_v32 = vld [vmem:[%s13997_s22 + $0x1210] sm:$0xff] }
 0x478   : > { %10824 = vmatpush1.bf16.msra.mxu0 %v12343_v5  ;;  %11316 = vmatpush1.bf16.msra.mxu1 %v12345_v13  ;;  %v818_v5 = vld [vmem:[%s13997_s22 + $0x11f8] sm:$0xff]  ;;  %v12391_v13 = vcombine.low %v805_v8, %v809_v3  ;;  %v853_v3 = vld [vmem:[%s13997_s22 + $0x1310] sm:$0xff] }
 0x479   : > { %10825 = vmatprep.subr.bf16.mxu0 %v12352_v14  ;;  %11317 = vmatprep.subr.bf16.mxu1 %v12354_v17  ;;  %v12393_v14 = vcombine.low %v806_v58, %v810_v4  ;;  %v12400_v17 = vcombine.high %v813_v9, %v817_v11  ;;  %v12402_v16 = vcombine.high %v814_v12, %v818_v5  ;;  %v857_v58 = vld [vmem:[%s13997_s22 + $0x1330] sm:$0xff]  ;;  %v854_v4 = vld [vmem:[%s13997_s22 + $0x1318] sm:$0xff] }
 0x47a   : > { %10855 = vmatprep.mubr.bf16.mxu0 %v14342_v59  ;;  %11347 = vmatprep.mubr.bf16.mxu1 %v14342_v59  ;;  %v12369_v59 = vcombine.low %v782_v31, %v786_v63  ;;  %v833_v31 = vld [vmem:[%s13997_s22 + $0x1270] sm:$0xff]  ;;  %v830_v63 = vld [vmem:[%s13997_s22 + $0x1258] sm:$0xff] }
 0x47c   : > { %10826 = vmatpush1.bf16.msra.mxu0 %v12351_v22  ;;  %11318 = vmatpush1.bf16.msra.mxu1 %v12353_v24  ;;  %v826_v22 = vld [vmem:[%s13997_s22 + $0x1238] sm:$0xff]  ;;  %v12399_v24 = vcombine.low %v813_v9, %v817_v11  ;;  %v861_v11 = vld [vmem:[%s13997_s22 + $0x1350] sm:$0xff] }
 0x47d   : > { %10827 = vmatprep.subr.bf16.mxu0 %v12360_v25  ;;  %11319 = vmatprep.subr.bf16.mxu1 %v12362_v26  ;;  %v12401_v25 = vcombine.low %v814_v12, %v818_v5  ;;  %v12408_v26 = vcombine.high %v821_v32, %v825_v20  ;;  %v12410_v49 = vcombine.high %v822_v21, %v826_v22  ;;  %v865_v12 = vld [vmem:[%s13997_s22 + $0x1370] sm:$0xff]  ;;  %v862_v5 = vld [vmem:[%s13997_s22 + $0x1358] sm:$0xff] }
 0x480   : > { %10828 = vmatpush1.bf16.msra.mxu0 %v12359_v19  ;;  %11320 = vmatpush1.bf16.msra.mxu1 %v12361_v33  ;;  %v834_v19 = vld [vmem:[%s13997_s22 + $0x1278] sm:$0xff]  ;;  %v12407_v33 = vcombine.low %v821_v32, %v825_v20  ;;  %v869_v20 = vld [vmem:[%s13997_s22 + $0x1390] sm:$0xff] }
 0x481   : > { %10829 = vmatprep.subr.bf16.mxu0 %v12368_v35  ;;  %11321 = vmatprep.subr.bf16.mxu1 %v12370_v36  ;;  %v12409_v35 = vcombine.low %v822_v21, %v826_v22  ;;  %v12416_v36 = vcombine.high %v829_v30, %v833_v31  ;;  %v12418_v39 = vcombine.high %v830_v63, %v834_v19  ;;  %v873_v21 = vld [vmem:[%s13997_s22 + $0x13b0] sm:$0xff]  ;;  %v870_v22 = vld [vmem:[%s13997_s22 + $0x1398] sm:$0xff] }
 0x484   : > { %10830 = vmatpush1.bf16.msra.mxu0 %v12367_v45  ;;  %11322 = vmatpush1.bf16.msra.mxu1 %v12369_v59  ;;  %v842_v45 = vld [vmem:[%s13997_s22 + $0x12b8] sm:$0xff]  ;;  %v12415_v59 = vcombine.low %v829_v30, %v833_v31  ;;  %v877_v31 = vld [vmem:[%s13997_s22 + $0x13d0] sm:$0xff] }
 0x485   : > { %10831 = vmatprep.subr.bf16.mxu0 %v12376_v46  ;;  %11323 = vmatprep.subr.bf16.mxu1 %v12378_v47  ;;  %v12417_v46 = vcombine.low %v830_v63, %v834_v19  ;;  %v12424_v47 = vcombine.high %v837_v40, %v841_v41  ;;  %v12426_v34 = vcombine.high %v838_v42, %v842_v45  ;;  %v881_v63 = vld [vmem:[%s13997_s22 + $0x13f0] sm:$0xff]  ;;  %v878_v19 = vld [vmem:[%s13997_s22 + $0x13d8] sm:$0xff] }
 0x488   : > { %10832 = vmatpush1.bf16.msra.mxu0 %v12375_v55  ;;  %11324 = vmatpush1.bf16.msra.mxu1 %v12377_v60  ;;  %v850_v55 = vld [vmem:[%s13997_s22 + $0x12f8] sm:$0xff]  ;;  %v12423_v60 = vcombine.low %v837_v40, %v841_v41  ;;  %v885_v41 = vld [vmem:[%s13997_s22 + $0x1410] sm:$0xff] }
 0x489   : > { %10833 = vmatprep.subr.bf16.mxu0 %v12384_v61  ;;  %11325 = vmatprep.subr.bf16.mxu1 %v12386_v62  ;;  %v12425_v61 = vcombine.low %v838_v42, %v842_v45  ;;  %v12432_v62 = vcombine.high %v845_v50, %v849_v52  ;;  %v12434_v8 = vcombine.high %v846_v54, %v850_v55  ;;  %v889_v42 = vld [vmem:[%s13997_s22 + $0x1430] sm:$0xff]  ;;  %v886_v45 = vld [vmem:[%s13997_s22 + $0x1418] sm:$0xff] }
 0x48c   : > { %10834 = vmatpush1.bf16.msra.mxu0 %v12383_v29  ;;  %11326 = vmatpush1.bf16.msra.mxu1 %v12385_v23  ;;  %v858_v29 = vld [vmem:[%s13997_s22 + $0x1338] sm:$0xff]  ;;  %v12431_v23 = vcombine.low %v845_v50, %v849_v52  ;;  %v893_v52 = vld [vmem:[%s13997_s22 + $0x1450] sm:$0xff] }
 0x48d   : > { %10835 = vmatprep.subr.bf16.mxu0 %v12392_v44  ;;  %11327 = vmatprep.subr.bf16.mxu1 %v12394_v38  ;;  %v12433_v44 = vcombine.low %v846_v54, %v850_v55  ;;  %v12440_v38 = vcombine.high %v853_v3, %v857_v58  ;;  %v12442_v9 = vcombine.high %v854_v4, %v858_v29  ;;  %v897_v54 = vld [vmem:[%s13997_s22 + $0x1470] sm:$0xff]  ;;  %v894_v55 = vld [vmem:[%s13997_s22 + $0x1458] sm:$0xff] }
 0x490   : > { %10836 = vmatpush1.bf16.msra.mxu0 %v12391_v13  ;;  %11328 = vmatpush1.bf16.msra.mxu1 %v12393_v14  ;;  %v866_v13 = vld [vmem:[%s13997_s22 + $0x1378] sm:$0xff]  ;;  %v12439_v14 = vcombine.low %v853_v3, %v857_v58  ;;  %v901_v58 = vld [vmem:[%s13997_s22 + $0x1490] sm:$0xff] }
 0x491   : > { %10837 = vmatprep.subr.bf16.mxu0 %v12400_v17  ;;  %11329 = vmatprep.subr.bf16.mxu1 %v12402_v16  ;;  %v12441_v17 = vcombine.low %v854_v4, %v858_v29  ;;  %v12448_v16 = vcombine.high %v861_v11, %v865_v12  ;;  %v12450_v32 = vcombine.high %v862_v5, %v866_v13  ;;  %v905_v4 = vld [vmem:[%s13997_s22 + $0x14b0] sm:$0xff]  ;;  %v902_v29 = vld [vmem:[%s13997_s22 + $0x1498] sm:$0xff] }
 0x494   : > { %10838 = vmatpush1.bf16.msra.mxu0 %v12399_v24  ;;  %11330 = vmatpush1.bf16.msra.mxu1 %v12401_v25  ;;  %v874_v24 = vld [vmem:[%s13997_s22 + $0x13b8] sm:$0xff]  ;;  %v12447_v25 = vcombine.low %v861_v11, %v865_v12  ;;  %v909_v12 = vld [vmem:[%s13997_s22 + $0x14d0] sm:$0xff] }
 0x495   : > { %10839 = vmatprep.subr.bf16.mxu0 %v12408_v26  ;;  %11331 = vmatprep.subr.bf16.mxu1 %v12410_v49  ;;  %v12449_v26 = vcombine.low %v862_v5, %v866_v13  ;;  %v12456_v49 = vcombine.high %v869_v20, %v873_v21  ;;  %v12458_v30 = vcombine.high %v870_v22, %v874_v24  ;;  %v913_v5 = vld [vmem:[%s13997_s22 + $0x14f0] sm:$0xff]  ;;  %v910_v13 = vld [vmem:[%s13997_s22 + $0x14d8] sm:$0xff] }
 0x498   : > { %10840 = vmatpush1.bf16.msra.mxu0 %v12407_v33  ;;  %11332 = vmatpush1.bf16.msra.mxu1 %v12409_v35  ;;  %v882_v33 = vld [vmem:[%s13997_s22 + $0x13f8] sm:$0xff]  ;;  %v12455_v35 = vcombine.low %v869_v20, %v873_v21  ;;  %v917_v20 = vld [vmem:[%s13997_s22 + $0x1510] sm:$0xff] }
 0x499   : > { %10841 = vmatprep.subr.bf16.mxu0 %v12416_v36  ;;  %11333 = vmatprep.subr.bf16.mxu1 %v12418_v39  ;;  %v12457_v36 = vcombine.low %v870_v22, %v874_v24  ;;  %v12464_v39 = vcombine.high %v877_v31, %v881_v63  ;;  %v12466_v40 = vcombine.high %v878_v19, %v882_v33  ;;  %v921_v21 = vld [vmem:[%s13997_s22 + $0x1530] sm:$0xff]  ;;  %v918_v22 = vld [vmem:[%s13997_s22 + $0x1518] sm:$0xff] }
 0x49a   : > { %v922_v24 = vld [vmem:[%s13997_s22 + $0x1538] sm:$0xff] }
 0x49c   : > { %10842 = vmatpush1.bf16.msra.mxu0 %v12415_v59  ;;  %11334 = vmatpush1.bf16.msra.mxu1 %v12417_v46  ;;  %v890_v59 = vld [vmem:[%s13997_s22 + $0x1438] sm:$0xff]  ;;  %v12463_v46 = vcombine.low %v877_v31, %v881_v63  ;;  %v929_v31 = vld [vmem:[%s13997_s22 + $0x1570] sm:$0xff] }
 0x49d   : > { %10843 = vmatprep.subr.bf16.mxu0 %v12424_v47  ;;  %11335 = vmatprep.subr.bf16.mxu1 %v12426_v34  ;;  %v12465_v47 = vcombine.low %v878_v19, %v882_v33  ;;  %v12472_v34 = vcombine.high %v885_v41, %v889_v42  ;;  %v12474_v50 = vcombine.high %v886_v45, %v890_v59  ;;  %v926_v63 = vld [vmem:[%s13997_s22 + $0x1558] sm:$0xff] }
 0x49e   : > { %v930_v19 = vld [vmem:[%s13997_s22 + $0x1578] sm:$0xff]  ;;  %v12503_v33 = vcombine.low %v917_v20, %v921_v21 }
 0x4a0   : > { %10844 = vmatpush1.bf16.msra.mxu0 %v12423_v60  ;;  %11336 = vmatpush1.bf16.msra.mxu1 %v12425_v61  ;;  %v898_v60 = vld [vmem:[%s13997_s22 + $0x1478] sm:$0xff]  ;;  %v12471_v61 = vcombine.low %v885_v41, %v889_v42  ;;  %v937_v41 = vld [vmem:[%s13997_s22 + $0x15b0] sm:$0xff] }
 0x4a1   : > { %10845 = vmatprep.subr.bf16.mxu0 %v12432_v62  ;;  %11337 = vmatprep.subr.bf16.mxu1 %v12434_v8  ;;  %v12473_v62 = vcombine.low %v886_v45, %v890_v59  ;;  %v12480_v8 = vcombine.high %v893_v52, %v897_v54  ;;  %v12482_v3 = vcombine.high %v894_v55, %v898_v60  ;;  %v934_v42 = vld [vmem:[%s13997_s22 + $0x1598] sm:$0xff] }
 0x4a2   : > { %v938_v45 = vld [vmem:[%s13997_s22 + $0x15b8] sm:$0xff] }
 0x4a4   : > { %10846 = vmatpush1.bf16.msra.mxu0 %v12431_v23  ;;  %11338 = vmatpush1.bf16.msra.mxu1 %v12433_v44  ;;  %v906_v23 = vld [vmem:[%s13997_s22 + $0x14b8] sm:$0xff]  ;;  %v12479_v44 = vcombine.low %v893_v52, %v897_v54  ;;  %v945_v52 = vld [vmem:[%s13997_s22 + $0x15f0] sm:$0xff] }
 0x4a5   : > { %10847 = vmatprep.subr.bf16.mxu0 %v12440_v38  ;;  %11339 = vmatprep.subr.bf16.mxu1 %v12442_v9  ;;  %v12481_v38 = vcombine.low %v894_v55, %v898_v60  ;;  %v12488_v9 = vcombine.high %v901_v58, %v905_v4  ;;  %v12490_v11 = vcombine.high %v902_v29, %v906_v23  ;;  %v942_v54 = vld [vmem:[%s13997_s22 + $0x15d8] sm:$0xff] }
 0x4a6   : > { %v946_v55 = vld [vmem:[%s13997_s22 + $0x15f8] sm:$0xff] }
 0x4a8   : > { %10848 = vmatpush1.bf16.msra.mxu0 %v12439_v14  ;;  %11340 = vmatpush1.bf16.msra.mxu1 %v12441_v17  ;;  %v914_v14 = vld [vmem:[%s13997_s22 + $0x14f8] sm:$0xff]  ;;  %v12489_v17 = vcombine.low %v902_v29, %v906_v23 }
 0x4a9   : > { %10849 = vmatprep.subr.bf16.mxu0 %v12448_v16  ;;  %11341 = vmatprep.subr.bf16.mxu1 %v12450_v32  ;;  %v12496_v16 = vcombine.high %v909_v12, %v913_v5  ;;  %v12498_v32 = vcombine.high %v910_v13, %v914_v14  ;;  %v954_v29 = vld [vmem:[%s13997_s22 + $0x1638] sm:$0xff] }
 0x4ac   : > { %10850 = vmatpush1.bf16.msra.mxu0 %v12447_v25  ;;  %11342 = vmatpush1.bf16.msra.mxu1 %v12449_v26  ;;  %v12495_v25 = vcombine.low %v909_v12, %v913_v5  ;;  %v12504_v26 = vcombine.high %v917_v20, %v921_v21  ;;  %v961_v12 = vld [vmem:[%s13997_s22 + $0x1670] sm:$0xff]  ;;  %v958_v5 = vld [vmem:[%s13997_s22 + $0x1658] sm:$0xff] }
 0x4ad   : > { %10851 = vmatprep.subr.bf16.mxu0 %v12456_v49  ;;  %11343 = vmatprep.subr.bf16.mxu1 %v12458_v30  ;;  %v12506_v49 = vcombine.high %v918_v22, %v922_v24  ;;  %v925_v30 = vld [vmem:[%s13997_s22 + $0x1550] sm:$0xff]  ;;  %v966_v21 = vld [vmem:[%s13997_s22 + $0x1698] sm:$0xff] }
 0x4ae   : > { %v12511_v59 = vcombine.low %v925_v30, %v929_v31  ;;  %v969_v20 = vld [vmem:[%s13997_s22 + $0x16b0] sm:$0xff] }
 0x4b0   : > { %10852 = vmatpush1.bf16.msra.mxu0 %v12455_v35  ;;  %11344 = vmatpush1.bf16.msra.mxu1 %v12457_v36  ;;  %v12505_v35 = vcombine.low %v918_v22, %v922_v24  ;;  %v12512_v36 = vcombine.high %v925_v30, %v929_v31  ;;  %v970_v22 = vld [vmem:[%s13997_s22 + $0x16b8] sm:$0xff]  ;;  %v977_v30 = vld [vmem:[%s13997_s22 + $0x16f0] sm:$0xff] }
 0x4b1   : > { %10853 = vmatprep.subr.bf16.mxu0 %v12464_v39  ;;  %11345 = vmatprep.subr.bf16.mxu1 %v12466_v40  ;;  %v12514_v39 = vcombine.high %v926_v63, %v930_v19  ;;  %v933_v40 = vld [vmem:[%s13997_s22 + $0x1590] sm:$0xff]  ;;  %v974_v31 = vld [vmem:[%s13997_s22 + $0x16d8] sm:$0xff] }
 0x4b2   : > { %v12519_v60 = vcombine.low %v933_v40, %v937_v41 }
 0x4b4   : > { %10854 = vmatpush1.bf16.msra.mxu0 %v12463_v46  ;;  %11346 = vmatpush1.bf16.msra.mxu1 %v12465_v47  ;;  %v12513_v46 = vcombine.low %v926_v63, %v930_v19  ;;  %v12520_v47 = vcombine.high %v933_v40, %v937_v41  ;;  %v978_v63 = vld [vmem:[%s13997_s22 + $0x16f8] sm:$0xff]  ;;  %v985_v40 = vld [vmem:[%s13997_s22 + $0x1730] sm:$0xff] }
 0x4b5   : > { %10864 = vmatprep.subr.bf16.mxu0 %v12472_v34  ;;  %11356 = vmatprep.subr.bf16.mxu1 %v12474_v50  ;;  %v12522_v34 = vcombine.high %v934_v42, %v938_v45  ;;  %v941_v50 = vld [vmem:[%s13997_s22 + $0x15d0] sm:$0xff]  ;;  %v982_v41 = vld [vmem:[%s13997_s22 + $0x1718] sm:$0xff] }
 0x4b6   : > { %v12527_v23 = vcombine.low %v941_v50, %v945_v52 }
 0x4b7   : > { %10856 = vmatmul.mubr.bf16.vlgmr.msra.gmra.mrb[4].mxu0 %v14410_v51  ;;  %11348 = vmatmul.mubr.bf16.vlgmr.msra.gmra.mrb[4].mxu1 %v14410_v51  ;;  %v12487_v51 = vcombine.low %v901_v58, %v905_v4  ;;  %v953_v58 = vld [vmem:[%s13997_s22 + $0x1630] sm:$0xff]  ;;  %v950_v4 = vld [vmem:[%s13997_s22 + $0x1618] sm:$0xff] }
 0x4b8   : > { %10865 = vmatpush1.bf16.msra.mxu0 %v12471_v61  ;;  %11357 = vmatpush1.bf16.msra.mxu1 %v12473_v62  ;;  %v12521_v61 = vcombine.low %v934_v42, %v938_v45  ;;  %v12528_v62 = vcombine.high %v941_v50, %v945_v52  ;;  %v986_v42 = vld [vmem:[%s13997_s22 + $0x1738] sm:$0xff]  ;;  %v993_v50 = vld [vmem:[%s13997_s22 + $0x1770] sm:$0xff] }
 0x4b9   : > { %10866 = vmatprep.subr.bf16.mxu0 %v12480_v8  ;;  %11358 = vmatprep.subr.bf16.mxu1 %v12482_v3  ;;  %v12530_v8 = vcombine.high %v942_v54, %v946_v55  ;;  %v949_v3 = vld [vmem:[%s13997_s22 + $0x1610] sm:$0xff]  ;;  %v990_v52 = vld [vmem:[%s13997_s22 + $0x1758] sm:$0xff] }
 0x4ba   : > { %10896 = vmatprep.mubr.bf16.mxu0 %v14418_v0  ;;  %11388 = vmatprep.mubr.bf16.mxu1 %v14418_v0  ;;  %v12497_v0 = vcombine.low %v910_v13, %v914_v14  ;;  %v962_v13 = vld [vmem:[%s13997_s22 + $0x1678] sm:$0xff]  ;;  %v12535_v14 = vcombine.low %v949_v3, %v953_v58 }
 0x4bc   : > { %10867 = vmatpush1.bf16.msra.mxu0 %v12479_v44  ;;  %11359 = vmatpush1.bf16.msra.mxu1 %v12481_v38  ;;  %v12529_v44 = vcombine.low %v942_v54, %v946_v55  ;;  %v12536_v38 = vcombine.high %v949_v3, %v953_v58  ;;  %v994_v54 = vld [vmem:[%s13997_s22 + $0x1778] sm:$0xff]  ;;  %v1001_v3 = vld [vmem:[%s13997_s22 + $0x17b0] sm:$0xff] }
 0x4bd   : > { %10868 = vmatprep.subr.bf16.mxu0 %v12488_v9  ;;  %11360 = vmatprep.subr.bf16.mxu1 %v12490_v11  ;;  %v12538_v9 = vcombine.high %v950_v4, %v954_v29  ;;  %v957_v11 = vld [vmem:[%s13997_s22 + $0x1650] sm:$0xff]  ;;  %v998_v58 = vld [vmem:[%s13997_s22 + $0x1798] sm:$0xff] }
 0x4be   : > { %v12543_v24 = vcombine.low %v957_v11, %v961_v12 }
 0x4c0   : > { %10869 = vmatpush1.bf16.msra.mxu0 %v12487_v51  ;;  %11361 = vmatpush1.bf16.msra.mxu1 %v12489_v17  ;;  %v12537_v51 = vcombine.low %v950_v4, %v954_v29  ;;  %v12544_v17 = vcombine.high %v957_v11, %v961_v12  ;;  %v1002_v4 = vld [vmem:[%s13997_s22 + $0x17b8] sm:$0xff]  ;;  %v1009_v11 = vld [vmem:[%s13997_s22 + $0x17f0] sm:$0xff] }
 0x4c1   : > { %10870 = vmatprep.subr.bf16.mxu0 %v12496_v16  ;;  %11362 = vmatprep.subr.bf16.mxu1 %v12498_v32  ;;  %v12546_v16 = vcombine.high %v958_v5, %v962_v13  ;;  %v965_v32 = vld [vmem:[%s13997_s22 + $0x1690] sm:$0xff]  ;;  %v1006_v12 = vld [vmem:[%s13997_s22 + $0x17d8] sm:$0xff] }
 0x4c2   : > { %v12551_v19 = vcombine.low %v965_v32, %v969_v20 }
 0x4c4   : > { %10871 = vmatpush1.bf16.msra.mxu0 %v12495_v25  ;;  %11363 = vmatpush1.bf16.msra.mxu1 %v12497_v0  ;;  %v12545_v25 = vcombine.low %v958_v5, %v962_v13  ;;  %v12552_v0 = vcombine.high %v965_v32, %v969_v20  ;;  %v1010_v5 = vld [vmem:[%s13997_s22 + $0x17f8] sm:$0xff]  ;;  %v1017_v32 = vld [vmem:[%s13997_s22 + $0x1830] sm:$0xff] }
 0x4c5   : > { %10872 = vmatprep.subr.bf16.mxu0 %v12504_v26  ;;  %11364 = vmatprep.subr.bf16.mxu1 %v12506_v49  ;;  %v12554_v26 = vcombine.high %v966_v21, %v970_v22  ;;  %v973_v49 = vld [vmem:[%s13997_s22 + $0x16d0] sm:$0xff]  ;;  %v1014_v20 = vld [vmem:[%s13997_s22 + $0x1818] sm:$0xff] }
 0x4c6   : > { %v12559_v45 = vcombine.low %v973_v49, %v977_v30 }
 0x4c8   : > { %10873 = vmatpush1.bf16.msra.mxu0 %v12503_v33  ;;  %11365 = vmatpush1.bf16.msra.mxu1 %v12505_v35  ;;  %v12553_v33 = vcombine.low %v966_v21, %v970_v22  ;;  %v12560_v35 = vcombine.high %v973_v49, %v977_v30  ;;  %v1018_v21 = vld [vmem:[%s13997_s22 + $0x1838] sm:$0xff]  ;;  %v1025_v49 = vld [vmem:[%s13997_s22 + $0x1870] sm:$0xff] }
 0x4c9   : > { %10874 = vmatprep.subr.bf16.mxu0 %v12512_v36  ;;  %11366 = vmatprep.subr.bf16.mxu1 %v12514_v39  ;;  %v12562_v36 = vcombine.high %v974_v31, %v978_v63  ;;  %v981_v39 = vld [vmem:[%s13997_s22 + $0x1710] sm:$0xff]  ;;  %v1022_v30 = vld [vmem:[%s13997_s22 + $0x1858] sm:$0xff] }
 0x4ca   : > { %v12567_v55 = vcombine.low %v981_v39, %v985_v40 }
 0x4cc   : > { %10875 = vmatpush1.bf16.msra.mxu0 %v12511_v59  ;;  %11367 = vmatpush1.bf16.msra.mxu1 %v12513_v46  ;;  %v12561_v59 = vcombine.low %v974_v31, %v978_v63  ;;  %v12568_v46 = vcombine.high %v981_v39, %v985_v40  ;;  %v1026_v31 = vld [vmem:[%s13997_s22 + $0x1878] sm:$0xff]  ;;  %v1033_v39 = vld [vmem:[%s13997_s22 + $0x18b0] sm:$0xff] }
 0x4cd   : > { %10876 = vmatprep.subr.bf16.mxu0 %v12520_v47  ;;  %11368 = vmatprep.subr.bf16.mxu1 %v12522_v34  ;;  %v12570_v47 = vcombine.high %v982_v41, %v986_v42  ;;  %v989_v34 = vld [vmem:[%s13997_s22 + $0x1750] sm:$0xff]  ;;  %v1030_v40 = vld [vmem:[%s13997_s22 + $0x1898] sm:$0xff] }
 0x4ce   : > { %v12575_v29 = vcombine.low %v989_v34, %v993_v50 }
 0x4d0   : > { %10877 = vmatpush1.bf16.msra.mxu0 %v12519_v60  ;;  %11369 = vmatpush1.bf16.msra.mxu1 %v12521_v61  ;;  %v12569_v60 = vcombine.low %v982_v41, %v986_v42  ;;  %v12576_v61 = vcombine.high %v989_v34, %v993_v50  ;;  %v1034_v41 = vld [vmem:[%s13997_s22 + $0x18b8] sm:$0xff]  ;;  %v1041_v34 = vld [vmem:[%s13997_s22 + $0x18f0] sm:$0xff] }
 0x4d1   : > { %10878 = vmatprep.subr.bf16.mxu0 %v12528_v62  ;;  %11370 = vmatprep.subr.bf16.mxu1 %v12530_v8  ;;  %v12578_v62 = vcombine.high %v990_v52, %v994_v54  ;;  %v997_v8 = vld [vmem:[%s13997_s22 + $0x1790] sm:$0xff]  ;;  %v1038_v50 = vld [vmem:[%s13997_s22 + $0x18d8] sm:$0xff] }
 0x4d2   : > { %v12583_v13 = vcombine.low %v997_v8, %v1001_v3 }
 0x4d4   : > { %10879 = vmatpush1.bf16.msra.mxu0 %v12527_v23  ;;  %11371 = vmatpush1.bf16.msra.mxu1 %v12529_v44  ;;  %v12577_v23 = vcombine.low %v990_v52, %v994_v54  ;;  %v12584_v44 = vcombine.high %v997_v8, %v1001_v3  ;;  %v1042_v52 = vld [vmem:[%s13997_s22 + $0x18f8] sm:$0xff]  ;;  %v12617_v54 = vcombine.low %v1030_v40, %v1034_v41 }
 0x4d5   : > { %10880 = vmatprep.subr.bf16.mxu0 %v12536_v38  ;;  %11372 = vmatprep.subr.bf16.mxu1 %v12538_v9  ;;  %v12586_v38 = vcombine.high %v998_v58, %v1002_v4  ;;  %v1005_v9 = vld [vmem:[%s13997_s22 + $0x17d0] sm:$0xff]  ;;  %v1046_v8 = vld [vmem:[%s13997_s22 + $0x1918] sm:$0xff] }
 0x4d6   : > { %v12591_v22 = vcombine.low %v1005_v9, %v1009_v11  ;;  %v1050_v3 = vld [vmem:[%s13997_s22 + $0x1938] sm:$0xff] }
 0x4d8   : > { %10881 = vmatpush1.bf16.msra.mxu0 %v12535_v14  ;;  %11373 = vmatpush1.bf16.msra.mxu1 %v12537_v51  ;;  %v12585_v14 = vcombine.low %v998_v58, %v1002_v4  ;;  %v12592_v51 = vcombine.high %v1005_v9, %v1009_v11  ;;  %v1058_v9 = vld [vmem:[%s13997_s22 + $0x1978] sm:$0xff] }
 0x4d9   : > { %10882 = vmatprep.subr.bf16.mxu0 %v12544_v17  ;;  %11374 = vmatprep.subr.bf16.mxu1 %v12546_v16  ;;  %v12594_v17 = vcombine.high %v1006_v12, %v1010_v5  ;;  %v1013_v16 = vld [vmem:[%s13997_s22 + $0x1810] sm:$0xff] }
 0x4da   : > { %v12599_v63 = vcombine.low %v1013_v16, %v1017_v32 }
 0x4dc   : > { %10883 = vmatpush1.bf16.msra.mxu0 %v12543_v24  ;;  %11375 = vmatpush1.bf16.msra.mxu1 %v12545_v25  ;;  %v12593_v24 = vcombine.low %v1006_v12, %v1010_v5  ;;  %v12600_v25 = vcombine.high %v1013_v16, %v1017_v32  ;;  %v12633_v12 = vcombine.low %v1046_v8, %v1050_v3  ;;  %v1066_v16 = vld [vmem:[%s13997_s22 + $0x19b8] sm:$0xff] }
 0x4dd   : > { %10884 = vmatprep.subr.bf16.mxu0 %v12552_v0  ;;  %11376 = vmatprep.subr.bf16.mxu1 %v12554_v26  ;;  %v12602_v0 = vcombine.high %v1014_v20, %v1018_v21  ;;  %v1021_v26 = vld [vmem:[%s13997_s22 + $0x1850] sm:$0xff] }
 0x4de   : > { %v12607_v42 = vcombine.low %v1021_v26, %v1025_v49 }
 0x4e0   : > { %10885 = vmatpush1.bf16.msra.mxu0 %v12551_v19  ;;  %11377 = vmatpush1.bf16.msra.mxu1 %v12553_v33  ;;  %v12601_v19 = vcombine.low %v1014_v20, %v1018_v21  ;;  %v12608_v33 = vcombine.high %v1021_v26, %v1025_v49  ;;  %v1074_v26 = vld [vmem:[%s13997_s22 + $0x19f8] sm:$0xff] }
 0x4e1   : > { %10886 = vmatprep.subr.bf16.mxu0 %v12560_v35  ;;  %11378 = vmatprep.subr.bf16.mxu1 %v12562_v36  ;;  %v12610_v35 = vcombine.high %v1022_v30, %v1026_v31  ;;  %v1029_v36 = vld [vmem:[%s13997_s22 + $0x1890] sm:$0xff] }
 0x4e4   : > { %10887 = vmatpush1.bf16.msra.mxu0 %v12559_v45  ;;  %11379 = vmatpush1.bf16.msra.mxu1 %v12561_v59  ;;  %v12609_v45 = vcombine.low %v1022_v30, %v1026_v31  ;;  %v12616_v59 = vcombine.high %v1029_v36, %v1033_v39 }
 0x4e5   : > { %10888 = vmatprep.subr.bf16.mxu0 %v12568_v46  ;;  %11380 = vmatprep.subr.bf16.mxu1 %v12570_v47  ;;  %v12618_v46 = vcombine.high %v1030_v40, %v1034_v41  ;;  %v1037_v47 = vld [vmem:[%s13997_s22 + $0x18d0] sm:$0xff] }
 0x4e6   : > { %v12623_v58 = vcombine.low %v1037_v47, %v1041_v34 }
 0x4e8   : > { %10889 = vmatpush1.bf16.msra.mxu0 %v12567_v55  ;;  %11381 = vmatpush1.bf16.msra.mxu1 %v12569_v60  ;;  %v12624_v55 = vcombine.high %v1037_v47, %v1041_v34  ;;  %v12626_v60 = vcombine.high %v1038_v50, %v1042_v52  ;;  %v1090_v47 = vld [vmem:[%s13997_s22 + $0x1a78] sm:$0xff] }
 0x4e9   : > { %10890 = vmatprep.subr.bf16.mxu0 %v12576_v61  ;;  %11382 = vmatprep.subr.bf16.mxu1 %v12578_v62  ;;  %v1045_v61 = vld [vmem:[%s13997_s22 + $0x1910] sm:$0xff] }
 0x4ea   : > { %v1049_v62 = vld [vmem:[%s13997_s22 + $0x1930] sm:$0xff] }
 0x4eb   : > { %v12632_v4 = vcombine.high %v1045_v61, %v1049_v62  ;;  %v12631_v11 = vcombine.low %v1045_v61, %v1049_v62  ;;  %v1098_v61 = vld [vmem:[%s13997_s22 + $0x1ab8] sm:$0xff] }
 0x4ec   : > { %10891 = vmatpush1.bf16.msra.mxu0 %v12575_v29  ;;  %11383 = vmatpush1.bf16.msra.mxu1 %v12577_v23  ;;  %v12634_v29 = vcombine.high %v1046_v8, %v1050_v3  ;;  %v1053_v23 = vld [vmem:[%s13997_s22 + $0x1950] sm:$0xff] }
 0x4ed   : > { %10892 = vmatprep.subr.bf16.mxu0 %v12584_v44  ;;  %11384 = vmatprep.subr.bf16.mxu1 %v12586_v38  ;;  %v1057_v44 = vld [vmem:[%s13997_s22 + $0x1970] sm:$0xff]  ;;  %v1054_v38 = vld [vmem:[%s13997_s22 + $0x1958] sm:$0xff] }
 0x4ee   : > { %v12640_v5 = vcombine.high %v1053_v23, %v1057_v44  ;;  %v12639_v32 = vcombine.low %v1053_v23, %v1057_v44  ;;  %v12641_v20 = vcombine.low %v1054_v38, %v1058_v9  ;;  %v1106_v23 = vld [vmem:[%s13997_s22 + $0x1af8] sm:$0xff] }
 0x4f0   : > { %10893 = vmatpush1.bf16.msra.mxu0 %v12583_v13  ;;  %11385 = vmatpush1.bf16.msra.mxu1 %v12585_v14  ;;  %v12642_v13 = vcombine.high %v1054_v38, %v1058_v9  ;;  %v1061_v14 = vld [vmem:[%s13997_s22 + $0x1990] sm:$0xff] }
 0x4f1   : > { %10894 = vmatprep.subr.bf16.mxu0 %v12592_v51  ;;  %11386 = vmatprep.subr.bf16.mxu1 %v12594_v17  ;;  %v1065_v51 = vld [vmem:[%s13997_s22 + $0x19b0] sm:$0xff]  ;;  %v1062_v17 = vld [vmem:[%s13997_s22 + $0x1998] sm:$0xff] }
 0x4f2   : > { %v12648_v21 = vcombine.high %v1061_v14, %v1065_v51  ;;  %v12647_v49 = vcombine.low %v1061_v14, %v1065_v51  ;;  %v12649_v30 = vcombine.low %v1062_v17, %v1066_v16  ;;  %v1114_v14 = vld [vmem:[%s13997_s22 + $0x1b38] sm:$0xff] }
 0x4f4   : > { %10895 = vmatpush1.bf16.msra.mxu0 %v12591_v22  ;;  %11387 = vmatpush1.bf16.msra.mxu1 %v12593_v24  ;;  %v12650_v22 = vcombine.high %v1062_v17, %v1066_v16  ;;  %v1069_v24 = vld [vmem:[%s13997_s22 + $0x19d0] sm:$0xff] }
 0x4f5   : > { %10905 = vmatprep.subr.bf16.mxu0 %v12600_v25  ;;  %11397 = vmatprep.subr.bf16.mxu1 %v12602_v0  ;;  %v1073_v25 = vld [vmem:[%s13997_s22 + $0x19f0] sm:$0xff]  ;;  %v1070_v0 = vld [vmem:[%s13997_s22 + $0x19d8] sm:$0xff] }
 0x4f6   : > { %v12656_v31 = vcombine.high %v1069_v24, %v1073_v25  ;;  %v12657_v40 = vcombine.low %v1070_v0, %v1074_v26 }
 0x4f7   : > { %10897 = vmatmul.mubr.bf16.vlgmr.msra.gmra.mrb[4].mxu0 %v14493_v27  ;;  %11389 = vmatmul.mubr.bf16.vlgmr.msra.gmra.mrb[4].mxu1 %v14493_v27  ;;  %v12615_v27 = vcombine.low %v1029_v36, %v1033_v39  ;;  %v1082_v36 = vld [vmem:[%s13997_s22 + $0x1a38] sm:$0xff]  ;;  %v12655_v39 = vcombine.low %v1069_v24, %v1073_v25 }
 0x4f8   : > { %10906 = vmatpush1.bf16.msra.mxu0 %v12599_v63  ;;  %11398 = vmatpush1.bf16.msra.mxu1 %v12601_v19  ;;  %v12658_v63 = vcombine.high %v1070_v0, %v1074_v26  ;;  %v1077_v19 = vld [vmem:[%s13997_s22 + $0x1a10] sm:$0xff]  ;;  %v1122_v24 = vld [vmem:[%s13997_s22 + $0x1b78] sm:$0xff] }
 0x4f9   : > { %10907 = vmatprep.subr.bf16.mxu0 %v12608_v33  ;;  %11399 = vmatprep.subr.bf16.mxu1 %v12610_v35  ;;  %v1081_v33 = vld [vmem:[%s13997_s22 + $0x1a30] sm:$0xff]  ;;  %v1078_v35 = vld [vmem:[%s13997_s22 + $0x1a18] sm:$0xff] }
 0x4fa   : > { %10937 = vmatprep.mubr.bf16.mxu0 %v14500_v37  ;;  %11429 = vmatprep.mubr.bf16.mxu1 %v14500_v37  ;;  %v12625_v37 = vcombine.low %v1038_v50, %v1042_v52  ;;  %v12664_v41 = vcombine.high %v1077_v19, %v1081_v33  ;;  %v12663_v34 = vcombine.low %v1077_v19, %v1081_v33  ;;  %v1130_v19 = vld [vmem:[%s13997_s22 + $0x1bb8] sm:$0xff] }
 0x4fb   : > { %v12665_v50 = vcombine.low %v1078_v35, %v1082_v36 }
 0x4fc   : > { %10908 = vmatpush1.bf16.msra.mxu0 %v12607_v42  ;;  %11400 = vmatpush1.bf16.msra.mxu1 %v12609_v45  ;;  %v12666_v42 = vcombine.high %v1078_v35, %v1082_v36  ;;  %v1085_v45 = vld [vmem:[%s13997_s22 + $0x1a50] sm:$0xff] }
 0x4fd   : > { %10909 = vmatprep.subr.bf16.mxu0 %v12616_v59  ;;  %11401 = vmatprep.subr.bf16.mxu1 %v12618_v46  ;;  %v1089_v59 = vld [vmem:[%s13997_s22 + $0x1a70] sm:$0xff]  ;;  %v1086_v46 = vld [vmem:[%s13997_s22 + $0x1a58] sm:$0xff] }
 0x4fe   : > { %v12672_v52 = vcombine.high %v1085_v45, %v1089_v59  ;;  %v12671_v62 = vcombine.low %v1085_v45, %v1089_v59  ;;  %v12673_v8 = vcombine.low %v1086_v46, %v1090_v47  ;;  %v1138_v45 = vld [vmem:[%s13997_s22 + $0x1bf8] sm:$0xff] }
 0x500   : > { %10910 = vmatpush1.bf16.msra.mxu0 %v12615_v27  ;;  %11402 = vmatpush1.bf16.msra.mxu1 %v12617_v54  ;;  %v12674_v27 = vcombine.high %v1086_v46, %v1090_v47  ;;  %v1093_v54 = vld [vmem:[%s13997_s22 + $0x1a90] sm:$0xff] }
 0x501   : > { %10911 = vmatprep.subr.bf16.mxu0 %v12624_v55  ;;  %11403 = vmatprep.subr.bf16.mxu1 %v12626_v60  ;;  %v1097_v55 = vld [vmem:[%s13997_s22 + $0x1ab0] sm:$0xff]  ;;  %v1094_v60 = vld [vmem:[%s13997_s22 + $0x1a98] sm:$0xff] }
 0x502   : > { %v12680_v3 = vcombine.high %v1093_v54, %v1097_v55  ;;  %v12679_v44 = vcombine.low %v1093_v54, %v1097_v55  ;;  %v12681_v38 = vcombine.low %v1094_v60, %v1098_v61  ;;  %v1146_v54 = vld [vmem:[%s13997_s22 + $0x1c38] sm:$0xff] }
 0x504   : > { %10912 = vmatpush1.bf16.msra.mxu0 %v12623_v58  ;;  %11404 = vmatpush1.bf16.msra.mxu1 %v12625_v37  ;;  %v12682_v58 = vcombine.high %v1094_v60, %v1098_v61  ;;  %v1101_v37 = vld [vmem:[%s13997_s22 + $0x1ad0] sm:$0xff] }
 0x505   : > { %10913 = vmatprep.subr.bf16.mxu0 %v12632_v4  ;;  %11405 = vmatprep.subr.bf16.mxu1 %v12634_v29  ;;  %v1105_v4 = vld [vmem:[%s13997_s22 + $0x1af0] sm:$0xff]  ;;  %v1102_v29 = vld [vmem:[%s13997_s22 + $0x1ad8] sm:$0xff] }
 0x506   : > { %v12688_v9 = vcombine.high %v1101_v37, %v1105_v4  ;;  %v12687_v51 = vcombine.low %v1101_v37, %v1105_v4  ;;  %v12689_v17 = vcombine.low %v1102_v29, %v1106_v23  ;;  %v1154_v37 = vld [vmem:[%s13997_s22 + $0x1c78] sm:$0xff] }
 0x508   : > { %10914 = vmatpush1.bf16.msra.mxu0 %v12631_v11  ;;  %11406 = vmatpush1.bf16.msra.mxu1 %v12633_v12  ;;  %v12690_v11 = vcombine.high %v1102_v29, %v1106_v23  ;;  %v1109_v12 = vld [vmem:[%s13997_s22 + $0x1b10] sm:$0xff] }
 0x509   : > { %10915 = vmatprep.subr.bf16.mxu0 %v12640_v5  ;;  %11407 = vmatprep.subr.bf16.mxu1 %v12642_v13  ;;  %v1113_v5 = vld [vmem:[%s13997_s22 + $0x1b30] sm:$0xff]  ;;  %v1110_v13 = vld [vmem:[%s13997_s22 + $0x1b18] sm:$0xff] }
 0x50a   : > { %v12696_v16 = vcombine.high %v1109_v12, %v1113_v5  ;;  %v12695_v25 = vcombine.low %v1109_v12, %v1113_v5  ;;  %v12697_v0 = vcombine.low %v1110_v13, %v1114_v14  ;;  %v1162_v12 = vld [vmem:[%s13997_s22 + $0x1cb8] sm:$0xff] }
 0x50c   : > { %10916 = vmatpush1.bf16.msra.mxu0 %v12639_v32  ;;  %11408 = vmatpush1.bf16.msra.mxu1 %v12641_v20  ;;  %v12698_v32 = vcombine.high %v1110_v13, %v1114_v14  ;;  %v1117_v20 = vld [vmem:[%s13997_s22 + $0x1b50] sm:$0xff] }
 0x50d   : > { %10917 = vmatprep.subr.bf16.mxu0 %v12648_v21  ;;  %11409 = vmatprep.subr.bf16.mxu1 %v12650_v22  ;;  %v1121_v21 = vld [vmem:[%s13997_s22 + $0x1b70] sm:$0xff]  ;;  %v1118_v22 = vld [vmem:[%s13997_s22 + $0x1b58] sm:$0xff] }
 0x50e   : > { %v12704_v26 = vcombine.high %v1117_v20, %v1121_v21  ;;  %v12703_v33 = vcombine.low %v1117_v20, %v1121_v21  ;;  %v12705_v35 = vcombine.low %v1118_v22, %v1122_v24  ;;  %v1170_v20 = vld [vmem:[%s13997_s22 + $0x1cf8] sm:$0xff] }
 0x510   : > { %10918 = vmatpush1.bf16.msra.mxu0 %v12647_v49  ;;  %11410 = vmatpush1.bf16.msra.mxu1 %v12649_v30  ;;  %v12706_v49 = vcombine.high %v1118_v22, %v1122_v24  ;;  %v1125_v30 = vld [vmem:[%s13997_s22 + $0x1b90] sm:$0xff] }
 0x511   : > { %10919 = vmatprep.subr.bf16.mxu0 %v12656_v31  ;;  %11411 = vmatprep.subr.bf16.mxu1 %v12658_v63  ;;  %v1129_v31 = vld [vmem:[%s13997_s22 + $0x1bb0] sm:$0xff]  ;;  %v1126_v63 = vld [vmem:[%s13997_s22 + $0x1b98] sm:$0xff] }
 0x512   : > { %v12712_v36 = vcombine.high %v1125_v30, %v1129_v31  ;;  %v12711_v59 = vcombine.low %v1125_v30, %v1129_v31  ;;  %v12713_v46 = vcombine.low %v1126_v63, %v1130_v19 }
 0x514   : > { %10920 = vmatpush1.bf16.msra.mxu0 %v12655_v39  ;;  %11412 = vmatpush1.bf16.msra.mxu1 %v12657_v40  ;;  %v12714_v39 = vcombine.high %v1126_v63, %v1130_v19  ;;  %v1133_v40 = vld [vmem:[%s13997_s22 + $0x1bd0] sm:$0xff] }
 0x515   : > { %10921 = vmatprep.subr.bf16.mxu0 %v12664_v41  ;;  %11413 = vmatprep.subr.bf16.mxu1 %v12666_v42  ;;  %v1137_v41 = vld [vmem:[%s13997_s22 + $0x1bf0] sm:$0xff]  ;;  %v1134_v42 = vld [vmem:[%s13997_s22 + $0x1bd8] sm:$0xff] }
 0x516   : > { %v12720_v47 = vcombine.high %v1133_v40, %v1137_v41  ;;  %v12719_v55 = vcombine.low %v1133_v40, %v1137_v41  ;;  %v12721_v60 = vcombine.low %v1134_v42, %v1138_v45  ;;  %v1181_v19 = vld [vmem:[%s13997_s22 + $0x1d50] sm:$0xff] }
 0x518   : > { %10922 = vmatpush1.bf16.msra.mxu0 %v12663_v34  ;;  %11414 = vmatpush1.bf16.msra.mxu1 %v12665_v50  ;;  %v12722_v34 = vcombine.high %v1134_v42, %v1138_v45  ;;  %v1141_v50 = vld [vmem:[%s13997_s22 + $0x1c10] sm:$0xff] }
 0x519   : > { %10923 = vmatprep.subr.bf16.mxu0 %v12672_v52  ;;  %11415 = vmatprep.subr.bf16.mxu1 %v12674_v27  ;;  %v1145_v52 = vld [vmem:[%s13997_s22 + $0x1c30] sm:$0xff]  ;;  %v1142_v27 = vld [vmem:[%s13997_s22 + $0x1c18] sm:$0xff] }
 0x51a   : > { %v12728_v61 = vcombine.high %v1141_v50, %v1145_v52  ;;  %v12727_v4 = vcombine.low %v1141_v50, %v1145_v52  ;;  %v12729_v29 = vcombine.low %v1142_v27, %v1146_v54  ;;  %v1189_v45 = vld [vmem:[%s13997_s22 + $0x1d90] sm:$0xff] }
 0x51c   : > { %10924 = vmatpush1.bf16.msra.mxu0 %v12671_v62  ;;  %11416 = vmatpush1.bf16.msra.mxu1 %v12673_v8  ;;  %v12730_v62 = vcombine.high %v1142_v27, %v1146_v54  ;;  %v1149_v8 = vld [vmem:[%s13997_s22 + $0x1c50] sm:$0xff] }
 0x51d   : > { %10925 = vmatprep.subr.bf16.mxu0 %v12680_v3  ;;  %11417 = vmatprep.subr.bf16.mxu1 %v12682_v58  ;;  %v1153_v3 = vld [vmem:[%s13997_s22 + $0x1c70] sm:$0xff]  ;;  %v1150_v58 = vld [vmem:[%s13997_s22 + $0x1c58] sm:$0xff] }
 0x51e   : > { %v12736_v23 = vcombine.high %v1149_v8, %v1153_v3  ;;  %v12735_v5 = vcombine.low %v1149_v8, %v1153_v3  ;;  %v12737_v13 = vcombine.low %v1150_v58, %v1154_v37  ;;  %v1197_v54 = vld [vmem:[%s13997_s22 + $0x1dd0] sm:$0xff] }
 0x520   : > { %10926 = vmatpush1.bf16.msra.mxu0 %v12679_v44  ;;  %11418 = vmatpush1.bf16.msra.mxu1 %v12681_v38  ;;  %v12738_v44 = vcombine.high %v1150_v58, %v1154_v37  ;;  %v1157_v38 = vld [vmem:[%s13997_s22 + $0x1c90] sm:$0xff] }
 0x521   : > { %10927 = vmatprep.subr.bf16.mxu0 %v12688_v9  ;;  %11419 = vmatprep.subr.bf16.mxu1 %v12690_v11  ;;  %v1161_v9 = vld [vmem:[%s13997_s22 + $0x1cb0] sm:$0xff]  ;;  %v1158_v11 = vld [vmem:[%s13997_s22 + $0x1c98] sm:$0xff] }
 0x522   : > { %v12744_v14 = vcombine.high %v1157_v38, %v1161_v9  ;;  %v12745_v21 = vcombine.low %v1158_v11, %v1162_v12  ;;  %v1205_v37 = vld [vmem:[%s13997_s22 + $0x1e10] sm:$0xff] }
 0x524   : > { %10928 = vmatpush1.bf16.msra.mxu0 %v12687_v51  ;;  %11420 = vmatpush1.bf16.msra.mxu1 %v12689_v17  ;;  %v12746_v51 = vcombine.high %v1158_v11, %v1162_v12  ;;  %v1165_v17 = vld [vmem:[%s13997_s22 + $0x1cd0] sm:$0xff] }
 0x525   : > { %10929 = vmatprep.subr.bf16.mxu0 %v12696_v16  ;;  %11421 = vmatprep.subr.bf16.mxu1 %v12698_v32  ;;  %v1169_v16 = vld [vmem:[%s13997_s22 + $0x1cf0] sm:$0xff]  ;;  %v1166_v32 = vld [vmem:[%s13997_s22 + $0x1cd8] sm:$0xff] }
 0x526   : > { %v12752_v22 = vcombine.high %v1165_v17, %v1169_v16  ;;  %v12754_v24 = vcombine.high %v1166_v32, %v1170_v20  ;;  %v12751_v30 = vcombine.low %v1165_v17, %v1169_v16  ;;  %v1213_v12 = vld [vmem:[%s13997_s22 + $0x1e50] sm:$0xff] }
 0x528   : > { %10930 = vmatpush1.bf16.msra.mxu0 %v12695_v25  ;;  %11422 = vmatpush1.bf16.msra.mxu1 %v12697_v0  ;;  %v1173_v25 = vld [vmem:[%s13997_s22 + $0x1d10] sm:$0xff] }
 0x529   : > { %10931 = vmatprep.subr.bf16.mxu0 %v12704_v26  ;;  %11423 = vmatprep.subr.bf16.mxu1 %v12706_v49  ;;  %v1177_v0 = vld [vmem:[%s13997_s22 + $0x1d30] sm:$0xff]  ;;  %v1174_v26 = vld [vmem:[%s13997_s22 + $0x1d18] sm:$0xff] }
 0x52a   : > { %v1178_v49 = vld [vmem:[%s13997_s22 + $0x1d38] sm:$0xff]  ;;  %v12760_v31 = vcombine.high %v1173_v25, %v1177_v0 }
 0x52b   : > { %v12762_v63 = vcombine.high %v1174_v26, %v1178_v49  ;;  %v12761_v40 = vcombine.low %v1174_v26, %v1178_v49  ;;  %v1229_v49 = vld [vmem:[%s13997_s22 + $0x1ed0] sm:$0xff] }
 0x52c   : > { %10932 = vmatpush1.bf16.msra.mxu0 %v12703_v33  ;;  %11424 = vmatpush1.bf16.msra.mxu1 %v12705_v35  ;;  %v1185_v33 = vld [vmem:[%s13997_s22 + $0x1d70] sm:$0xff]  ;;  %v1182_v35 = vld [vmem:[%s13997_s22 + $0x1d58] sm:$0xff] }
 0x52d   : > { %10933 = vmatprep.subr.bf16.mxu0 %v12712_v36  ;;  %11425 = vmatprep.subr.bf16.mxu1 %v12714_v39  ;;  %v1186_v36 = vld [vmem:[%s13997_s22 + $0x1d78] sm:$0xff]  ;;  %v12759_v39 = vcombine.low %v1173_v25, %v1177_v0  ;;  %v12768_v41 = vcombine.high %v1181_v19, %v1185_v33 }
 0x52e   : > { %v12770_v42 = vcombine.high %v1182_v35, %v1186_v36  ;;  %v12769_v50 = vcombine.low %v1182_v35, %v1186_v36  ;;  %v1237_v36 = vld [vmem:[%s13997_s22 + $0x1f10] sm:$0xff] }
 0x530   : > { %10934 = vmatpush1.bf16.msra.mxu0 %v12711_v59  ;;  %11426 = vmatpush1.bf16.msra.mxu1 %v12713_v46  ;;  %v1193_v59 = vld [vmem:[%s13997_s22 + $0x1db0] sm:$0xff]  ;;  %v1190_v46 = vld [vmem:[%s13997_s22 + $0x1d98] sm:$0xff] }
 0x531   : > { %10935 = vmatprep.subr.bf16.mxu0 %v12720_v47  ;;  %11427 = vmatprep.subr.bf16.mxu1 %v12722_v34  ;;  %v1194_v47 = vld [vmem:[%s13997_s22 + $0x1db8] sm:$0xff]  ;;  %v12767_v34 = vcombine.low %v1181_v19, %v1185_v33  ;;  %v12776_v52 = vcombine.high %v1189_v45, %v1193_v59 }
 0x532   : > { %v12778_v27 = vcombine.high %v1190_v46, %v1194_v47  ;;  %v12777_v8 = vcombine.low %v1190_v46, %v1194_v47  ;;  %v1245_v47 = vld [vmem:[%s13997_s22 + $0x1f50] sm:$0xff] }
 0x534   : > { %10936 = vmatpush1.bf16.msra.mxu0 %v12719_v55  ;;  %11428 = vmatpush1.bf16.msra.mxu1 %v12721_v60  ;;  %v1201_v55 = vld [vmem:[%s13997_s22 + $0x1df0] sm:$0xff]  ;;  %v1198_v60 = vld [vmem:[%s13997_s22 + $0x1dd8] sm:$0xff] }
 0x535   : > { %10946 = vmatprep.subr.bf16.mxu0 %v12728_v61  ;;  %11438 = vmatprep.subr.bf16.mxu1 %v12730_v62  ;;  %v1202_v61 = vld [vmem:[%s13997_s22 + $0x1df8] sm:$0xff]  ;;  %v12775_v62 = vcombine.low %v1189_v45, %v1193_v59  ;;  %v12784_v3 = vcombine.high %v1197_v54, %v1201_v55 }
 0x536   : > { %v12786_v58 = vcombine.high %v1198_v60, %v1202_v61 }
 0x537   : > { %10938 = vmatmul.mubr.bf16.vlgmr.msra.gmra.mrb[4].mxu0 %v14568_v7  ;;  %11430 = vmatmul.mubr.bf16.vlgmr.msra.gmra.mrb[4].mxu1 %v14568_v7  ;;  %v12743_v7 = vcombine.low %v1157_v38, %v1161_v9  ;;  %v12785_v38 = vcombine.low %v1198_v60, %v1202_v61  ;;  %v1253_v61 = vld [vmem:[%s13997_s22 + $0x1f90] sm:$0xff] }
 0x538   : > { %10947 = vmatpush1.bf16.msra.mxu0 %v12727_v4  ;;  %11439 = vmatpush1.bf16.msra.mxu1 %v12729_v29  ;;  %v1209_v4 = vld [vmem:[%s13997_s22 + $0x1e30] sm:$0xff]  ;;  %v1206_v29 = vld [vmem:[%s13997_s22 + $0x1e18] sm:$0xff] }
 0x539   : > { %10948 = vmatprep.subr.bf16.mxu0 %v12736_v23  ;;  %11440 = vmatprep.subr.bf16.mxu1 %v12738_v44  ;;  %v1210_v23 = vld [vmem:[%s13997_s22 + $0x1e38] sm:$0xff]  ;;  %v12783_v44 = vcombine.low %v1197_v54, %v1201_v55  ;;  %v12792_v9 = vcombine.high %v1205_v37, %v1209_v4 }
 0x53a   : > { %10978 = vmatprep.mubr.bf16.mxu0 %v14576_v18  ;;  %11470 = vmatprep.mubr.bf16.mxu1 %v14576_v18  ;;  %v12753_v18 = vcombine.low %v1166_v32, %v1170_v20  ;;  %v12794_v11 = vcombine.high %v1206_v29, %v1210_v23  ;;  %v12793_v17 = vcombine.low %v1206_v29, %v1210_v23  ;;  %v1221_v20 = vld [vmem:[%s13997_s22 + $0x1e90] sm:$0xff] }
 0x53b   : > { %v1261_v23 = vld [vmem:[%s13997_s22 + $0x1fd0] sm:$0xff] }
 0x53c   : > { %10949 = vmatpush1.bf16.msra.mxu0 %v12735_v5  ;;  %11441 = vmatpush1.bf16.msra.mxu1 %v12737_v13  ;;  %v1217_v5 = vld [vmem:[%s13997_s22 + $0x1e70] sm:$0xff]  ;;  %v1214_v13 = vld [vmem:[%s13997_s22 + $0x1e58] sm:$0xff] }
 0x53d   : > { %10950 = vmatprep.subr.bf16.mxu0 %v12744_v14  ;;  %11442 = vmatprep.subr.bf16.mxu1 %v12746_v51  ;;  %v1218_v14 = vld [vmem:[%s13997_s22 + $0x1e78] sm:$0xff]  ;;  %v12791_v51 = vcombine.low %v1205_v37, %v1209_v4  ;;  %v12800_v16 = vcombine.high %v1213_v12, %v1217_v5 }
 0x53e   : > { %v12802_v32 = vcombine.high %v1214_v13, %v1218_v14  ;;  %v12801_v25 = vcombine.low %v1214_v13, %v1218_v14  ;;  %v1269_v14 = vld [vmem:[%s13997_s22 + $0x2010] sm:$0xff] }
 0x540   : > { %10951 = vmatpush1.bf16.msra.mxu0 %v12743_v7  ;;  %11443 = vmatpush1.bf16.msra.mxu1 %v12745_v21  ;;  %v1225_v7 = vld [vmem:[%s13997_s22 + $0x1eb0] sm:$0xff]  ;;  %v1222_v21 = vld [vmem:[%s13997_s22 + $0x1e98] sm:$0xff] }
 0x541   : > { %10952 = vmatprep.subr.bf16.mxu0 %v12752_v22  ;;  %11444 = vmatprep.subr.bf16.mxu1 %v12754_v24  ;;  %v1226_v22 = vld [vmem:[%s13997_s22 + $0x1eb8] sm:$0xff]  ;;  %v12799_v24 = vcombine.low %v1213_v12, %v1217_v5  ;;  %v12808_v0 = vcombine.high %v1221_v20, %v1225_v7 }
 0x542   : > { %v12810_v26 = vcombine.high %v1222_v21, %v1226_v22  ;;  %v12809_v19 = vcombine.low %v1222_v21, %v1226_v22  ;;  %v1277_v22 = vld [vmem:[%s13997_s22 + $0x2050] sm:$0xff] }
 0x544   : > { %10953 = vmatpush1.bf16.msra.mxu0 %v12751_v30  ;;  %11445 = vmatpush1.bf16.msra.mxu1 %v12753_v18  ;;  %v1233_v30 = vld [vmem:[%s13997_s22 + $0x1ef0] sm:$0xff]  ;;  %v1230_v18 = vld [vmem:[%s13997_s22 + $0x1ed8] sm:$0xff] }
 0x545   : > { %10954 = vmatprep.subr.bf16.mxu0 %v12760_v31  ;;  %11446 = vmatprep.subr.bf16.mxu1 %v12762_v63  ;;  %v1234_v31 = vld [vmem:[%s13997_s22 + $0x1ef8] sm:$0xff]  ;;  %v12807_v63 = vcombine.low %v1221_v20, %v1225_v7  ;;  %v12816_v33 = vcombine.high %v1229_v49, %v1233_v30 }
 0x546   : > { %v12818_v35 = vcombine.high %v1230_v18, %v1234_v31  ;;  %v12817_v45 = vcombine.low %v1230_v18, %v1234_v31  ;;  %v1285_v31 = vld [vmem:[%s13997_s22 + $0x2090] sm:$0xff] }
 0x548   : > { %10955 = vmatpush1.bf16.msra.mxu0 %v12759_v39  ;;  %11447 = vmatpush1.bf16.msra.mxu1 %v12761_v40  ;;  %v1241_v39 = vld [vmem:[%s13997_s22 + $0x1f30] sm:$0xff]  ;;  %v1238_v40 = vld [vmem:[%s13997_s22 + $0x1f18] sm:$0xff] }
 0x549   : > { %10956 = vmatprep.subr.bf16.mxu0 %v12768_v41  ;;  %11448 = vmatprep.subr.bf16.mxu1 %v12770_v42  ;;  %v1242_v41 = vld [vmem:[%s13997_s22 + $0x1f38] sm:$0xff]  ;;  %v12815_v42 = vcombine.low %v1229_v49, %v1233_v30  ;;  %v12824_v59 = vcombine.high %v1237_v36, %v1241_v39 }
 0x54a   : > { %v12826_v46 = vcombine.high %v1238_v40, %v1242_v41  ;;  %v12825_v54 = vcombine.low %v1238_v40, %v1242_v41  ;;  %v1293_v41 = vld [vmem:[%s13997_s22 + $0x20d0] sm:$0xff] }
 0x54c   : > { %10957 = vmatpush1.bf16.msra.mxu0 %v12767_v34  ;;  %11449 = vmatpush1.bf16.msra.mxu1 %v12769_v50  ;;  %v1249_v34 = vld [vmem:[%s13997_s22 + $0x1f70] sm:$0xff]  ;;  %v1246_v50 = vld [vmem:[%s13997_s22 + $0x1f58] sm:$0xff] }
 0x54d   : > { %10958 = vmatprep.subr.bf16.mxu0 %v12776_v52  ;;  %11450 = vmatprep.subr.bf16.mxu1 %v12778_v27  ;;  %v1250_v52 = vld [vmem:[%s13997_s22 + $0x1f78] sm:$0xff]  ;;  %v12823_v27 = vcombine.low %v1237_v36, %v1241_v39  ;;  %v12832_v55 = vcombine.high %v1245_v47, %v1249_v34 }
 0x54e   : > { %v12834_v60 = vcombine.high %v1246_v50, %v1250_v52  ;;  %v12833_v37 = vcombine.low %v1246_v50, %v1250_v52  ;;  %v1301_v50 = vld [vmem:[%s13997_s22 + $0x2110] sm:$0xff] }
 0x54f   : > { %v1305_v52 = vld [vmem:[%s13997_s22 + $0x2130] sm:$0xff] }
 0x550   : > { %10959 = vmatpush1.bf16.msra.mxu0 %v12775_v62  ;;  %11451 = vmatpush1.bf16.msra.mxu1 %v12777_v8  ;;  %v1257_v62 = vld [vmem:[%s13997_s22 + $0x1fb0] sm:$0xff]  ;;  %v1254_v8 = vld [vmem:[%s13997_s22 + $0x1f98] sm:$0xff] }
 0x551   : > { %10960 = vmatprep.subr.bf16.mxu0 %v12784_v3  ;;  %11452 = vmatprep.subr.bf16.mxu1 %v12786_v58  ;;  %v1258_v3 = vld [vmem:[%s13997_s22 + $0x1fb8] sm:$0xff]  ;;  %v12831_v58 = vcombine.low %v1245_v47, %v1249_v34  ;;  %v12840_v4 = vcombine.high %v1253_v61, %v1257_v62 }
 0x552   : > { %v12842_v29 = vcombine.high %v1254_v8, %v1258_v3  ;;  %v12841_v12 = vcombine.low %v1254_v8, %v1258_v3  ;;  %v1313_v8 = vld [vmem:[%s13997_s22 + $0x2170] sm:$0xff]  ;;  %v1310_v3 = vld [vmem:[%s13997_s22 + $0x2158] sm:$0xff] }
 0x554   : > { %10961 = vmatpush1.bf16.msra.mxu0 %v12783_v44  ;;  %11453 = vmatpush1.bf16.msra.mxu1 %v12785_v38  ;;  %v1265_v44 = vld [vmem:[%s13997_s22 + $0x1ff0] sm:$0xff]  ;;  %v1262_v38 = vld [vmem:[%s13997_s22 + $0x1fd8] sm:$0xff] }
 0x555   : > { %10962 = vmatprep.subr.bf16.mxu0 %v12792_v9  ;;  %11454 = vmatprep.subr.bf16.mxu1 %v12794_v11  ;;  %v1266_v9 = vld [vmem:[%s13997_s22 + $0x1ff8] sm:$0xff]  ;;  %v12839_v11 = vcombine.low %v1253_v61, %v1257_v62  ;;  %v12848_v5 = vcombine.high %v1261_v23, %v1265_v44  ;;  %v1309_v62 = vld [vmem:[%s13997_s22 + $0x2150] sm:$0xff] }
 0x556   : > { %v12850_v13 = vcombine.high %v1262_v38, %v1266_v9  ;;  %v12849_v20 = vcombine.low %v1262_v38, %v1266_v9  ;;  %v1321_v38 = vld [vmem:[%s13997_s22 + $0x21b0] sm:$0xff]  ;;  %v1318_v9 = vld [vmem:[%s13997_s22 + $0x2198] sm:$0xff] }
 0x558   : > { %10963 = vmatpush1.bf16.msra.mxu0 %v12791_v51  ;;  %11455 = vmatpush1.bf16.msra.mxu1 %v12793_v17  ;;  %v1273_v51 = vld [vmem:[%s13997_s22 + $0x2030] sm:$0xff]  ;;  %v1270_v17 = vld [vmem:[%s13997_s22 + $0x2018] sm:$0xff] }
 0x559   : > { %10964 = vmatprep.subr.bf16.mxu0 %v12800_v16  ;;  %11456 = vmatprep.subr.bf16.mxu1 %v12802_v32  ;;  %v1274_v16 = vld [vmem:[%s13997_s22 + $0x2038] sm:$0xff]  ;;  %v12847_v32 = vcombine.low %v1261_v23, %v1265_v44  ;;  %v12856_v7 = vcombine.high %v1269_v14, %v1273_v51  ;;  %v1317_v44 = vld [vmem:[%s13997_s22 + $0x2190] sm:$0xff] }
 0x55a   : > { %v12858_v21 = vcombine.high %v1270_v17, %v1274_v16  ;;  %v12857_v49 = vcombine.low %v1270_v17, %v1274_v16  ;;  %v1329_v17 = vld [vmem:[%s13997_s22 + $0x21f0] sm:$0xff]  ;;  %v1326_v16 = vld [vmem:[%s13997_s22 + $0x21d8] sm:$0xff] }
 0x55c   : > { %10965 = vmatpush1.bf16.msra.mxu0 %v12799_v24  ;;  %11457 = vmatpush1.bf16.msra.mxu1 %v12801_v25  ;;  %v1281_v24 = vld [vmem:[%s13997_s22 + $0x2070] sm:$0xff]  ;;  %v1278_v25 = vld [vmem:[%s13997_s22 + $0x2058] sm:$0xff] }
 0x55d   : > { %10966 = vmatprep.subr.bf16.mxu0 %v12808_v0  ;;  %11458 = vmatprep.subr.bf16.mxu1 %v12810_v26  ;;  %v1282_v0 = vld [vmem:[%s13997_s22 + $0x2078] sm:$0xff]  ;;  %v12855_v26 = vcombine.low %v1269_v14, %v1273_v51  ;;  %v12864_v30 = vcombine.high %v1277_v22, %v1281_v24  ;;  %v1325_v51 = vld [vmem:[%s13997_s22 + $0x21d0] sm:$0xff] }
 0x55e   : > { %v12866_v18 = vcombine.high %v1278_v25, %v1282_v0  ;;  %v12865_v36 = vcombine.low %v1278_v25, %v1282_v0  ;;  %v1337_v25 = vld [vmem:[%s13997_s22 + $0x2230] sm:$0xff]  ;;  %v1334_v0 = vld [vmem:[%s13997_s22 + $0x2218] sm:$0xff] }
 0x560   : > { %10967 = vmatpush1.bf16.msra.mxu0 %v12807_v63  ;;  %11459 = vmatpush1.bf16.msra.mxu1 %v12809_v19  ;;  %v1289_v63 = vld [vmem:[%s13997_s22 + $0x20b0] sm:$0xff]  ;;  %v1286_v19 = vld [vmem:[%s13997_s22 + $0x2098] sm:$0xff] }
 0x561   : > { %10968 = vmatprep.subr.bf16.mxu0 %v12816_v33  ;;  %11460 = vmatprep.subr.bf16.mxu1 %v12818_v35  ;;  %v1290_v33 = vld [vmem:[%s13997_s22 + $0x20b8] sm:$0xff]  ;;  %v12863_v35 = vcombine.low %v1277_v22, %v1281_v24  ;;  %v12872_v39 = vcombine.high %v1285_v31, %v1289_v63  ;;  %v1333_v24 = vld [vmem:[%s13997_s22 + $0x2210] sm:$0xff] }
 0x562   : > { %v12874_v40 = vcombine.high %v1286_v19, %v1290_v33 }
 0x564   : > { %10969 = vmatpush1.bf16.msra.mxu0 %v12815_v42  ;;  %11461 = vmatpush1.bf16.msra.mxu1 %v12817_v45  ;;  %v1297_v42 = vld [vmem:[%s13997_s22 + $0x20f0] sm:$0xff]  ;;  %v1294_v45 = vld [vmem:[%s13997_s22 + $0x20d8] sm:$0xff] }
 0x565   : > { %10970 = vmatprep.subr.bf16.mxu0 %v12824_v59  ;;  %11462 = vmatprep.subr.bf16.mxu1 %v12826_v46  ;;  %v1298_v59 = vld [vmem:[%s13997_s22 + $0x20f8] sm:$0xff]  ;;  %v12873_v46 = vcombine.low %v1286_v19, %v1290_v33  ;;  %v12880_v47 = vcombine.high %v1293_v41, %v1297_v42  ;;  %v1345_v19 = vld [vmem:[%s13997_s22 + $0x2270] sm:$0xff] }
 0x566   : > { %v12882_v34 = vcombine.high %v1294_v45, %v1298_v59  ;;  %v1342_v33 = vld [vmem:[%s13997_s22 + $0x2258] sm:$0xff] }
 0x568   : > { %10971 = vmatpush1.bf16.msra.mxu0 %v12823_v27  ;;  %11463 = vmatpush1.bf16.msra.mxu1 %v12825_v54  ;;  %v1302_v27 = vld [vmem:[%s13997_s22 + $0x2118] sm:$0xff] }
 0x569   : > { %10972 = vmatprep.subr.bf16.mxu0 %v12832_v55  ;;  %11464 = vmatprep.subr.bf16.mxu1 %v12834_v60  ;;  %v1306_v54 = vld [vmem:[%s13997_s22 + $0x2138] sm:$0xff]  ;;  %v12879_v55 = vcombine.low %v1293_v41, %v1297_v42  ;;  %v12888_v60 = vcombine.high %v1301_v50, %v1305_v52  ;;  %v1349_v42 = vld [vmem:[%s13997_s22 + $0x2290] sm:$0xff] }
 0x56a   : > { %v12890_v61 = vcombine.high %v1302_v27, %v1306_v54 }
 0x56c   : > { %10973 = vmatpush1.bf16.msra.mxu0 %v12831_v58  ;;  %11465 = vmatpush1.bf16.msra.mxu1 %v12833_v37  ;;  %v1314_v58 = vld [vmem:[%s13997_s22 + $0x2178] sm:$0xff]  ;;  %v12887_v37 = vcombine.low %v1301_v50, %v1305_v52  ;;  %v1357_v52 = vld [vmem:[%s13997_s22 + $0x22d0] sm:$0xff] }
 0x56d   : > { %10974 = vmatprep.subr.bf16.mxu0 %v12840_v4  ;;  %11466 = vmatprep.subr.bf16.mxu1 %v12842_v29  ;;  %v12889_v4 = vcombine.low %v1302_v27, %v1306_v54  ;;  %v12896_v29 = vcombine.high %v1309_v62, %v1313_v8  ;;  %v12898_v23 = vcombine.high %v1310_v3, %v1314_v58  ;;  %v1361_v27 = vld [vmem:[%s13997_s22 + $0x22f0] sm:$0xff]  ;;  %v1358_v54 = vld [vmem:[%s13997_s22 + $0x22d8] sm:$0xff] }
 0x570   : > { %10975 = vmatpush1.bf16.msra.mxu0 %v12839_v11  ;;  %11467 = vmatpush1.bf16.msra.mxu1 %v12841_v12  ;;  %v1322_v11 = vld [vmem:[%s13997_s22 + $0x21b8] sm:$0xff]  ;;  %v12895_v12 = vcombine.low %v1309_v62, %v1313_v8  ;;  %v1365_v8 = vld [vmem:[%s13997_s22 + $0x2310] sm:$0xff] }
 0x571   : > { %10976 = vmatprep.subr.bf16.mxu0 %v12848_v5  ;;  %11468 = vmatprep.subr.bf16.mxu1 %v12850_v13  ;;  %v12897_v5 = vcombine.low %v1310_v3, %v1314_v58  ;;  %v12904_v13 = vcombine.high %v1317_v44, %v1321_v38  ;;  %v12906_v14 = vcombine.high %v1318_v9, %v1322_v11  ;;  %v1369_v3 = vld [vmem:[%s13997_s22 + $0x2330] sm:$0xff]  ;;  %v1366_v58 = vld [vmem:[%s13997_s22 + $0x2318] sm:$0xff] }
 0x574   : > { %10977 = vmatpush1.bf16.msra.mxu0 %v12847_v32  ;;  %11469 = vmatpush1.bf16.msra.mxu1 %v12849_v20  ;;  %v1330_v32 = vld [vmem:[%s13997_s22 + $0x21f8] sm:$0xff]  ;;  %v12903_v20 = vcombine.low %v1317_v44, %v1321_v38  ;;  %v1373_v38 = vld [vmem:[%s13997_s22 + $0x2350] sm:$0xff] }
 0x575   : > { %10987 = vmatprep.subr.bf16.mxu0 %v12856_v7  ;;  %11479 = vmatprep.subr.bf16.mxu1 %v12858_v21  ;;  %v12905_v7 = vcombine.low %v1318_v9, %v1322_v11  ;;  %v12912_v21 = vcombine.high %v1325_v51, %v1329_v17  ;;  %v12914_v22 = vcombine.high %v1326_v16, %v1330_v32  ;;  %v1377_v9 = vld [vmem:[%s13997_s22 + $0x2370] sm:$0xff]  ;;  %v1374_v11 = vld [vmem:[%s13997_s22 + $0x2358] sm:$0xff] }
 0x577   : > { %10979 = vmatmul.mubr.bf16.vlgmr.msra.gmra.mrb[4].mxu0 %v14652_v57  ;;  %11471 = vmatmul.mubr.bf16.vlgmr.msra.gmra.mrb[4].mxu1 %v14652_v57  ;;  %v12871_v57 = vcombine.low %v1285_v31, %v1289_v63  ;;  %v1341_v63 = vld [vmem:[%s13997_s22 + $0x2250] sm:$0xff] }
 0x578   : > { %10988 = vmatpush1.bf16.msra.mxu0 %v12855_v26  ;;  %11480 = vmatpush1.bf16.msra.mxu1 %v12857_v49  ;;  %v1338_v26 = vld [vmem:[%s13997_s22 + $0x2238] sm:$0xff]  ;;  %v12911_v49 = vcombine.low %v1325_v51, %v1329_v17  ;;  %v1381_v17 = vld [vmem:[%s13997_s22 + $0x2390] sm:$0xff] }
 0x579   : > { %10989 = vmatprep.subr.bf16.mxu0 %v12864_v30  ;;  %11481 = vmatprep.subr.bf16.mxu1 %v12866_v18  ;;  %v12913_v30 = vcombine.low %v1326_v16, %v1330_v32  ;;  %v12920_v18 = vcombine.high %v1333_v24, %v1337_v25  ;;  %v12922_v31 = vcombine.high %v1334_v0, %v1338_v26  ;;  %v1385_v16 = vld [vmem:[%s13997_s22 + $0x23b0] sm:$0xff]  ;;  %v1382_v32 = vld [vmem:[%s13997_s22 + $0x2398] sm:$0xff] }
 0x57a   : > { %11019 = vmatprep.mubr.bf16.mxu0 %v14659_v6  ;;  %11511 = vmatprep.mubr.bf16.mxu1 %v14659_v6  ;;  %v12881_v6 = vcombine.low %v1294_v45, %v1298_v59  ;;  %v1353_v45 = vld [vmem:[%s13997_s22 + $0x22b0] sm:$0xff]  ;;  %v1350_v59 = vld [vmem:[%s13997_s22 + $0x2298] sm:$0xff] }
 0x57c   : > { %10990 = vmatpush1.bf16.msra.mxu0 %v12863_v35  ;;  %11482 = vmatpush1.bf16.msra.mxu1 %v12865_v36  ;;  %v1346_v35 = vld [vmem:[%s13997_s22 + $0x2278] sm:$0xff]  ;;  %v12919_v36 = vcombine.low %v1333_v24, %v1337_v25  ;;  %v1389_v25 = vld [vmem:[%s13997_s22 + $0x23d0] sm:$0xff] }
 0x57d   : > { %10991 = vmatprep.subr.bf16.mxu0 %v12872_v39  ;;  %11483 = vmatprep.subr.bf16.mxu1 %v12874_v40  ;;  %v12921_v39 = vcombine.low %v1334_v0, %v1338_v26  ;;  %v12928_v40 = vcombine.high %v1341_v63, %v1345_v19  ;;  %v12930_v41 = vcombine.high %v1342_v33, %v1346_v35  ;;  %v1393_v0 = vld [vmem:[%s13997_s22 + $0x23f0] sm:$0xff]  ;;  %v1390_v26 = vld [vmem:[%s13997_s22 + $0x23d8] sm:$0xff] }
 0x580   : > { %10992 = vmatpush1.bf16.msra.mxu0 %v12871_v57  ;;  %11484 = vmatpush1.bf16.msra.mxu1 %v12873_v46  ;;  %v1354_v57 = vld [vmem:[%s13997_s22 + $0x22b8] sm:$0xff]  ;;  %v12927_v46 = vcombine.low %v1341_v63, %v1345_v19  ;;  %v1397_v19 = vld [vmem:[%s13997_s22 + $0x2410] sm:$0xff] }
 0x581   : > { %10993 = vmatprep.subr.bf16.mxu0 %v12880_v47  ;;  %11485 = vmatprep.subr.bf16.mxu1 %v12882_v34  ;;  %v12929_v47 = vcombine.low %v1342_v33, %v1346_v35  ;;  %v12936_v34 = vcombine.high %v1349_v42, %v1353_v45  ;;  %v12938_v50 = vcombine.high %v1350_v59, %v1354_v57  ;;  %v1401_v33 = vld [vmem:[%s13997_s22 + $0x2430] sm:$0xff]  ;;  %v1398_v35 = vld [vmem:[%s13997_s22 + $0x2418] sm:$0xff] }
 0x584   : > { %10994 = vmatpush1.bf16.msra.mxu0 %v12879_v55  ;;  %11486 = vmatpush1.bf16.msra.mxu1 %v12881_v6  ;;  %v1362_v55 = vld [vmem:[%s13997_s22 + $0x22f8] sm:$0xff]  ;;  %v12935_v6 = vcombine.low %v1349_v42, %v1353_v45  ;;  %v1405_v45 = vld [vmem:[%s13997_s22 + $0x2450] sm:$0xff] }
 0x585   : > { %10995 = vmatprep.subr.bf16.mxu0 %v12888_v60  ;;  %11487 = vmatprep.subr.bf16.mxu1 %v12890_v61  ;;  %v12937_v60 = vcombine.low %v1350_v59, %v1354_v57  ;;  %v12944_v61 = vcombine.high %v1357_v52, %v1361_v27  ;;  %v12946_v62 = vcombine.high %v1358_v54, %v1362_v55  ;;  %v1409_v59 = vld [vmem:[%s13997_s22 + $0x2470] sm:$0xff]  ;;  %v1406_v57 = vld [vmem:[%s13997_s22 + $0x2458] sm:$0xff] }
 0x588   : > { %10996 = vmatpush1.bf16.msra.mxu0 %v12887_v37  ;;  %11488 = vmatpush1.bf16.msra.mxu1 %v12889_v4  ;;  %v1370_v37 = vld [vmem:[%s13997_s22 + $0x2338] sm:$0xff]  ;;  %v12943_v4 = vcombine.low %v1357_v52, %v1361_v27  ;;  %v1413_v27 = vld [vmem:[%s13997_s22 + $0x2490] sm:$0xff] }
 0x589   : > { %10997 = vmatprep.subr.bf16.mxu0 %v12896_v29  ;;  %11489 = vmatprep.subr.bf16.mxu1 %v12898_v23  ;;  %v12945_v29 = vcombine.low %v1358_v54, %v1362_v55  ;;  %v12952_v23 = vcombine.high %v1365_v8, %v1369_v3  ;;  %v12954_v44 = vcombine.high %v1366_v58, %v1370_v37  ;;  %v1417_v54 = vld [vmem:[%s13997_s22 + $0x24b0] sm:$0xff]  ;;  %v1414_v55 = vld [vmem:[%s13997_s22 + $0x2498] sm:$0xff] }
 0x58c   : > { %10998 = vmatpush1.bf16.msra.mxu0 %v12895_v12  ;;  %11490 = vmatpush1.bf16.msra.mxu1 %v12897_v5  ;;  %v1378_v12 = vld [vmem:[%s13997_s22 + $0x2378] sm:$0xff]  ;;  %v12951_v5 = vcombine.low %v1365_v8, %v1369_v3  ;;  %v1421_v3 = vld [vmem:[%s13997_s22 + $0x24d0] sm:$0xff] }
 0x58d   : > { %10999 = vmatprep.subr.bf16.mxu0 %v12904_v13  ;;  %11491 = vmatprep.subr.bf16.mxu1 %v12906_v14  ;;  %v12953_v13 = vcombine.low %v1366_v58, %v1370_v37  ;;  %v12960_v14 = vcombine.high %v1373_v38, %v1377_v9  ;;  %v12962_v51 = vcombine.high %v1374_v11, %v1378_v12  ;;  %v1425_v58 = vld [vmem:[%s13997_s22 + $0x24f0] sm:$0xff]  ;;  %v1422_v37 = vld [vmem:[%s13997_s22 + $0x24d8] sm:$0xff] }
 0x590   : > { %11000 = vmatpush1.bf16.msra.mxu0 %v12903_v20  ;;  %11492 = vmatpush1.bf16.msra.mxu1 %v12905_v7  ;;  %v1386_v20 = vld [vmem:[%s13997_s22 + $0x23b8] sm:$0xff]  ;;  %v12959_v7 = vcombine.low %v1373_v38, %v1377_v9  ;;  %v1429_v38 = vld [vmem:[%s13997_s22 + $0x2510] sm:$0xff] }
 0x591   : > { %11001 = vmatprep.subr.bf16.mxu0 %v12912_v21  ;;  %11493 = vmatprep.subr.bf16.mxu1 %v12914_v22  ;;  %v12961_v21 = vcombine.low %v1374_v11, %v1378_v12  ;;  %v12968_v22 = vcombine.high %v1381_v17, %v1385_v16  ;;  %v12970_v24 = vcombine.high %v1382_v32, %v1386_v20  ;;  %v1433_v9 = vld [vmem:[%s13997_s22 + $0x2530] sm:$0xff]  ;;  %v1430_v11 = vld [vmem:[%s13997_s22 + $0x2518] sm:$0xff] }
 0x592   : > { %v1434_v12 = vld [vmem:[%s13997_s22 + $0x2538] sm:$0xff] }
 0x594   : > { %11002 = vmatpush1.bf16.msra.mxu0 %v12911_v49  ;;  %11494 = vmatpush1.bf16.msra.mxu1 %v12913_v30  ;;  %v1394_v49 = vld [vmem:[%s13997_s22 + $0x23f8] sm:$0xff]  ;;  %v12967_v30 = vcombine.low %v1381_v17, %v1385_v16  ;;  %v1441_v17 = vld [vmem:[%s13997_s22 + $0x2570] sm:$0xff] }
 0x595   : > { %11003 = vmatprep.subr.bf16.mxu0 %v12920_v18  ;;  %11495 = vmatprep.subr.bf16.mxu1 %v12922_v31  ;;  %v12969_v18 = vcombine.low %v1382_v32, %v1386_v20  ;;  %v12976_v31 = vcombine.high %v1389_v25, %v1393_v0  ;;  %v12978_v63 = vcombine.high %v1390_v26, %v1394_v49  ;;  %v1438_v16 = vld [vmem:[%s13997_s22 + $0x2558] sm:$0xff] }
 0x596   : > { %v1442_v32 = vld [vmem:[%s13997_s22 + $0x2578] sm:$0xff]  ;;  %v13015_v20 = vcombine.low %v1429_v38, %v1433_v9 }
 0x598   : > { %11004 = vmatpush1.bf16.msra.mxu0 %v12919_v36  ;;  %11496 = vmatpush1.bf16.msra.mxu1 %v12921_v39  ;;  %v1402_v36 = vld [vmem:[%s13997_s22 + $0x2438] sm:$0xff]  ;;  %v12975_v39 = vcombine.low %v1389_v25, %v1393_v0  ;;  %v1449_v25 = vld [vmem:[%s13997_s22 + $0x25b0] sm:$0xff] }
 0x599   : > { %11005 = vmatprep.subr.bf16.mxu0 %v12928_v40  ;;  %11497 = vmatprep.subr.bf16.mxu1 %v12930_v41  ;;  %v12977_v40 = vcombine.low %v1390_v26, %v1394_v49  ;;  %v12984_v41 = vcombine.high %v1397_v19, %v1401_v33  ;;  %v12986_v42 = vcombine.high %v1398_v35, %v1402_v36  ;;  %v1446_v0 = vld [vmem:[%s13997_s22 + $0x2598] sm:$0xff] }
 0x59a   : > { %v1450_v26 = vld [vmem:[%s13997_s22 + $0x25b8] sm:$0xff] }
 0x59c   : > { %11006 = vmatpush1.bf16.msra.mxu0 %v12927_v46  ;;  %11498 = vmatpush1.bf16.msra.mxu1 %v12929_v47  ;;  %v1410_v46 = vld [vmem:[%s13997_s22 + $0x2478] sm:$0xff]  ;;  %v12983_v47 = vcombine.low %v1397_v19, %v1401_v33  ;;  %v1457_v19 = vld [vmem:[%s13997_s22 + $0x25f0] sm:$0xff] }
 0x59d   : > { %11007 = vmatprep.subr.bf16.mxu0 %v12936_v34  ;;  %11499 = vmatprep.subr.bf16.mxu1 %v12938_v50  ;;  %v12985_v34 = vcombine.low %v1398_v35, %v1402_v36  ;;  %v12992_v50 = vcombine.high %v1405_v45, %v1409_v59  ;;  %v12994_v52 = vcombine.high %v1406_v57, %v1410_v46  ;;  %v1454_v33 = vld [vmem:[%s13997_s22 + $0x25d8] sm:$0xff] }
 0x59e   : > { %v1458_v35 = vld [vmem:[%s13997_s22 + $0x25f8] sm:$0xff] }
 0x5a0   : > { %11008 = vmatpush1.bf16.msra.mxu0 %v12935_v6  ;;  %11500 = vmatpush1.bf16.msra.mxu1 %v12937_v60  ;;  %v1418_v6 = vld [vmem:[%s13997_s22 + $0x24b8] sm:$0xff]  ;;  %v12991_v60 = vcombine.low %v1405_v45, %v1409_v59  ;;  %v1465_v45 = vld [vmem:[%s13997_s22 + $0x2630] sm:$0xff] }
 0x5a1   : > { %11009 = vmatprep.subr.bf16.mxu0 %v12944_v61  ;;  %11501 = vmatprep.subr.bf16.mxu1 %v12946_v62  ;;  %v12993_v61 = vcombine.low %v1406_v57, %v1410_v46  ;;  %v13000_v62 = vcombine.high %v1413_v27, %v1417_v54  ;;  %v13002_v8 = vcombine.high %v1414_v55, %v1418_v6  ;;  %v1462_v59 = vld [vmem:[%s13997_s22 + $0x2618] sm:$0xff] }
 0x5a2   : > { %v1466_v57 = vld [vmem:[%s13997_s22 + $0x2638] sm:$0xff] }
 0x5a4   : > { %11010 = vmatpush1.bf16.msra.mxu0 %v12943_v4  ;;  %11502 = vmatpush1.bf16.msra.mxu1 %v12945_v29  ;;  %v1426_v4 = vld [vmem:[%s13997_s22 + $0x24f8] sm:$0xff]  ;;  %v13001_v29 = vcombine.low %v1414_v55, %v1418_v6 }
 0x5a5   : > { %11011 = vmatprep.subr.bf16.mxu0 %v12952_v23  ;;  %11503 = vmatprep.subr.bf16.mxu1 %v12954_v44  ;;  %v13008_v23 = vcombine.high %v1421_v3, %v1425_v58  ;;  %v13010_v44 = vcombine.high %v1422_v37, %v1426_v4  ;;  %v1474_v55 = vld [vmem:[%s13997_s22 + $0x2678] sm:$0xff] }
 0x5a8   : > { %11012 = vmatpush1.bf16.msra.mxu0 %v12951_v5  ;;  %11504 = vmatpush1.bf16.msra.mxu1 %v12953_v13  ;;  %v13007_v5 = vcombine.low %v1421_v3, %v1425_v58  ;;  %v13016_v13 = vcombine.high %v1429_v38, %v1433_v9  ;;  %v1481_v3 = vld [vmem:[%s13997_s22 + $0x26b0] sm:$0xff]  ;;  %v1478_v58 = vld [vmem:[%s13997_s22 + $0x2698] sm:$0xff] }
 0x5a9   : > { %11013 = vmatprep.subr.bf16.mxu0 %v12960_v14  ;;  %11505 = vmatprep.subr.bf16.mxu1 %v12962_v51  ;;  %v13018_v14 = vcombine.high %v1430_v11, %v1434_v12  ;;  %v1437_v51 = vld [vmem:[%s13997_s22 + $0x2550] sm:$0xff]  ;;  %v1486_v9 = vld [vmem:[%s13997_s22 + $0x26d8] sm:$0xff] }
 0x5aa   : > { %v13023_v49 = vcombine.low %v1437_v51, %v1441_v17  ;;  %v1489_v38 = vld [vmem:[%s13997_s22 + $0x26f0] sm:$0xff] }
 0x5ac   : > { %11014 = vmatpush1.bf16.msra.mxu0 %v12959_v7  ;;  %11506 = vmatpush1.bf16.msra.mxu1 %v12961_v21  ;;  %v13017_v7 = vcombine.low %v1430_v11, %v1434_v12  ;;  %v13024_v21 = vcombine.high %v1437_v51, %v1441_v17  ;;  %v1490_v11 = vld [vmem:[%s13997_s22 + $0x26f8] sm:$0xff]  ;;  %v1497_v51 = vld [vmem:[%s13997_s22 + $0x2730] sm:$0xff] }
 0x5ad   : > { %11015 = vmatprep.subr.bf16.mxu0 %v12968_v22  ;;  %11507 = vmatprep.subr.bf16.mxu1 %v12970_v24  ;;  %v13026_v22 = vcombine.high %v1438_v16, %v1442_v32  ;;  %v1445_v24 = vld [vmem:[%s13997_s22 + $0x2590] sm:$0xff]  ;;  %v1494_v17 = vld [vmem:[%s13997_s22 + $0x2718] sm:$0xff] }
 0x5ae   : > { %v13031_v36 = vcombine.low %v1445_v24, %v1449_v25 }
 0x5b0   : > { %11016 = vmatpush1.bf16.msra.mxu0 %v12967_v30  ;;  %11508 = vmatpush1.bf16.msra.mxu1 %v12969_v18  ;;  %v13025_v30 = vcombine.low %v1438_v16, %v1442_v32  ;;  %v13032_v18 = vcombine.high %v1445_v24, %v1449_v25  ;;  %v1498_v16 = vld [vmem:[%s13997_s22 + $0x2738] sm:$0xff]  ;;  %v1505_v24 = vld [vmem:[%s13997_s22 + $0x2770] sm:$0xff] }
 0x5b1   : > { %11017 = vmatprep.subr.bf16.mxu0 %v12976_v31  ;;  %11509 = vmatprep.subr.bf16.mxu1 %v12978_v63  ;;  %v13034_v31 = vcombine.high %v1446_v0, %v1450_v26  ;;  %v1453_v63 = vld [vmem:[%s13997_s22 + $0x25d0] sm:$0xff]  ;;  %v1502_v25 = vld [vmem:[%s13997_s22 + $0x2758] sm:$0xff] }
 0x5b2   : > { %v13039_v46 = vcombine.low %v1453_v63, %v1457_v19 }
 0x5b4   : > { %11018 = vmatpush1.bf16.msra.mxu0 %v12975_v39  ;;  %11510 = vmatpush1.bf16.msra.mxu1 %v12977_v40  ;;  %v13033_v39 = vcombine.low %v1446_v0, %v1450_v26  ;;  %v13040_v40 = vcombine.high %v1453_v63, %v1457_v19  ;;  %v1506_v0 = vld [vmem:[%s13997_s22 + $0x2778] sm:$0xff]  ;;  %v1513_v63 = vld [vmem:[%s13997_s22 + $0x27b0] sm:$0xff] }
 0x5b5   : > { %11028 = vmatprep.subr.bf16.mxu0 %v12984_v41  ;;  %11520 = vmatprep.subr.bf16.mxu1 %v12986_v42  ;;  %v13042_v41 = vcombine.high %v1454_v33, %v1458_v35  ;;  %v1461_v42 = vld [vmem:[%s13997_s22 + $0x2610] sm:$0xff]  ;;  %v1510_v19 = vld [vmem:[%s13997_s22 + $0x2798] sm:$0xff] }
 0x5b6   : > { %v13047_v6 = vcombine.low %v1461_v42, %v1465_v45 }
 0x5b7   : > { %11020 = vmatmul.mubr.bf16.vlgmr.msra.gmra.mrb[4].mxu0 %v14727_v56  ;;  %11512 = vmatmul.mubr.bf16.vlgmr.msra.gmra.mrb[4].mxu1 %v14727_v56  ;;  %v12999_v56 = vcombine.low %v1413_v27, %v1417_v54  ;;  %v1473_v27 = vld [vmem:[%s13997_s22 + $0x2670] sm:$0xff]  ;;  %v1470_v54 = vld [vmem:[%s13997_s22 + $0x2658] sm:$0xff] }
 0x5b8   : > { %11029 = vmatpush1.bf16.msra.mxu0 %v12983_v47  ;;  %11521 = vmatpush1.bf16.msra.mxu1 %v12985_v34  ;;  %v13041_v47 = vcombine.low %v1454_v33, %v1458_v35  ;;  %v13048_v34 = vcombine.high %v1461_v42, %v1465_v45  ;;  %v1514_v33 = vld [vmem:[%s13997_s22 + $0x27b8] sm:$0xff]  ;;  %v1521_v42 = vld [vmem:[%s13997_s22 + $0x27f0] sm:$0xff] }
 0x5b9   : > { %11030 = vmatprep.subr.bf16.mxu0 %v12992_v50  ;;  %11522 = vmatprep.subr.bf16.mxu1 %v12994_v52  ;;  %v13050_v50 = vcombine.high %v1462_v59, %v1466_v57  ;;  %v1469_v52 = vld [vmem:[%s13997_s22 + $0x2650] sm:$0xff]  ;;  %v1518_v45 = vld [vmem:[%s13997_s22 + $0x27d8] sm:$0xff] }
 0x5ba   : > { %11060 = vmatprep.mubr.bf16.mxu0 %v14735_v10  ;;  %11552 = vmatprep.mubr.bf16.mxu1 %v14735_v10  ;;  %v13009_v10 = vcombine.low %v1422_v37, %v1426_v4  ;;  %v1482_v37 = vld [vmem:[%s13997_s22 + $0x26b8] sm:$0xff]  ;;  %v13055_v4 = vcombine.low %v1469_v52, %v1473_v27 }
 0x5bc   : > { %11031 = vmatpush1.bf16.msra.mxu0 %v12991_v60  ;;  %11523 = vmatpush1.bf16.msra.mxu1 %v12993_v61  ;;  %v13049_v60 = vcombine.low %v1462_v59, %v1466_v57  ;;  %v13056_v61 = vcombine.high %v1469_v52, %v1473_v27  ;;  %v1522_v59 = vld [vmem:[%s13997_s22 + $0x27f8] sm:$0xff]  ;;  %v1529_v52 = vld [vmem:[%s13997_s22 + $0x2830] sm:$0xff] }
 0x5bd   : > { %11032 = vmatprep.subr.bf16.mxu0 %v13000_v62  ;;  %11524 = vmatprep.subr.bf16.mxu1 %v13002_v8  ;;  %v13058_v62 = vcombine.high %v1470_v54, %v1474_v55  ;;  %v1477_v8 = vld [vmem:[%s13997_s22 + $0x2690] sm:$0xff]  ;;  %v1526_v27 = vld [vmem:[%s13997_s22 + $0x2818] sm:$0xff] }
 0x5be   : > { %v13063_v12 = vcombine.low %v1477_v8, %v1481_v3 }
 0x5c0   : > { %11033 = vmatpush1.bf16.msra.mxu0 %v12999_v56  ;;  %11525 = vmatpush1.bf16.msra.mxu1 %v13001_v29  ;;  %v13057_v56 = vcombine.low %v1470_v54, %v1474_v55  ;;  %v13064_v29 = vcombine.high %v1477_v8, %v1481_v3  ;;  %v1530_v54 = vld [vmem:[%s13997_s22 + $0x2838] sm:$0xff]  ;;  %v1537_v8 = vld [vmem:[%s13997_s22 + $0x2870] sm:$0xff] }
 0x5c1   : > { %11034 = vmatprep.subr.bf16.mxu0 %v13008_v23  ;;  %11526 = vmatprep.subr.bf16.mxu1 %v13010_v44  ;;  %v13066_v23 = vcombine.high %v1478_v58, %v1482_v37  ;;  %v1485_v44 = vld [vmem:[%s13997_s22 + $0x26d0] sm:$0xff]  ;;  %v1534_v3 = vld [vmem:[%s13997_s22 + $0x2858] sm:$0xff] }
 0x5c2   : > { %v13071_v32 = vcombine.low %v1485_v44, %v1489_v38 }
 0x5c4   : > { %11035 = vmatpush1.bf16.msra.mxu0 %v13007_v5  ;;  %11527 = vmatpush1.bf16.msra.mxu1 %v13009_v10  ;;  %v13065_v5 = vcombine.low %v1478_v58, %v1482_v37  ;;  %v13072_v10 = vcombine.high %v1485_v44, %v1489_v38  ;;  %v1538_v58 = vld [vmem:[%s13997_s22 + $0x2878] sm:$0xff]  ;;  %v1545_v44 = vld [vmem:[%s13997_s22 + $0x28b0] sm:$0xff] }
 0x5c5   : > { %11036 = vmatprep.subr.bf16.mxu0 %v13016_v13  ;;  %11528 = vmatprep.subr.bf16.mxu1 %v13018_v14  ;;  %v13074_v13 = vcombine.high %v1486_v9, %v1490_v11  ;;  %v1493_v14 = vld [vmem:[%s13997_s22 + $0x2710] sm:$0xff]  ;;  %v1542_v38 = vld [vmem:[%s13997_s22 + $0x2898] sm:$0xff] }
 0x5c6   : > { %v13079_v26 = vcombine.low %v1493_v14, %v1497_v51 }
 0x5c8   : > { %11037 = vmatpush1.bf16.msra.mxu0 %v13015_v20  ;;  %11529 = vmatpush1.bf16.msra.mxu1 %v13017_v7  ;;  %v13073_v20 = vcombine.low %v1486_v9, %v1490_v11  ;;  %v13080_v7 = vcombine.high %v1493_v14, %v1497_v51  ;;  %v1546_v9 = vld [vmem:[%s13997_s22 + $0x28b8] sm:$0xff]  ;;  %v1553_v14 = vld [vmem:[%s13997_s22 + $0x28f0] sm:$0xff] }
 0x5c9   : > { %11038 = vmatprep.subr.bf16.mxu0 %v13024_v21  ;;  %11530 = vmatprep.subr.bf16.mxu1 %v13026_v22  ;;  %v13082_v21 = vcombine.high %v1494_v17, %v1498_v16  ;;  %v1501_v22 = vld [vmem:[%s13997_s22 + $0x2750] sm:$0xff]  ;;  %v1550_v51 = vld [vmem:[%s13997_s22 + $0x28d8] sm:$0xff] }
 0x5ca   : > { %v13087_v35 = vcombine.low %v1501_v22, %v1505_v24 }
 0x5cc   : > { %11039 = vmatpush1.bf16.msra.mxu0 %v13023_v49  ;;  %11531 = vmatpush1.bf16.msra.mxu1 %v13025_v30  ;;  %v13081_v49 = vcombine.low %v1494_v17, %v1498_v16  ;;  %v13088_v30 = vcombine.high %v1501_v22, %v1505_v24  ;;  %v1554_v17 = vld [vmem:[%s13997_s22 + $0x28f8] sm:$0xff]  ;;  %v13129_v16 = vcombine.low %v1542_v38, %v1546_v9 }
 0x5cd   : > { %11040 = vmatprep.subr.bf16.mxu0 %v13032_v18  ;;  %11532 = vmatprep.subr.bf16.mxu1 %v13034_v31  ;;  %v13090_v18 = vcombine.high %v1502_v25, %v1506_v0  ;;  %v1509_v31 = vld [vmem:[%s13997_s22 + $0x2790] sm:$0xff]  ;;  %v1558_v22 = vld [vmem:[%s13997_s22 + $0x2918] sm:$0xff] }
 0x5ce   : > { %v13095_v57 = vcombine.low %v1509_v31, %v1513_v63  ;;  %v1562_v24 = vld [vmem:[%s13997_s22 + $0x2938] sm:$0xff] }
 0x5d0   : > { %11041 = vmatpush1.bf16.msra.mxu0 %v13031_v36  ;;  %11533 = vmatpush1.bf16.msra.mxu1 %v13033_v39  ;;  %v13089_v36 = vcombine.low %v1502_v25, %v1506_v0  ;;  %v13096_v39 = vcombine.high %v1509_v31, %v1513_v63  ;;  %v1570_v31 = vld [vmem:[%s13997_s22 + $0x2978] sm:$0xff] }
 0x5d1   : > { %11042 = vmatprep.subr.bf16.mxu0 %v13040_v40  ;;  %11534 = vmatprep.subr.bf16.mxu1 %v13042_v41  ;;  %v13098_v40 = vcombine.high %v1510_v19, %v1514_v33  ;;  %v1517_v41 = vld [vmem:[%s13997_s22 + $0x27d0] sm:$0xff] }
 0x5d2   : > { %v13103_v55 = vcombine.low %v1517_v41, %v1521_v42 }
 0x5d4   : > { %11043 = vmatpush1.bf16.msra.mxu0 %v13039_v46  ;;  %11535 = vmatpush1.bf16.msra.mxu1 %v13041_v47  ;;  %v13097_v46 = vcombine.low %v1510_v19, %v1514_v33  ;;  %v13104_v47 = vcombine.high %v1517_v41, %v1521_v42  ;;  %v13145_v19 = vcombine.low %v1558_v22, %v1562_v24  ;;  %v1578_v41 = vld [vmem:[%s13997_s22 + $0x29b8] sm:$0xff] }
 0x5d5   : > { %11044 = vmatprep.subr.bf16.mxu0 %v13048_v34  ;;  %11536 = vmatprep.subr.bf16.mxu1 %v13050_v50  ;;  %v13106_v34 = vcombine.high %v1518_v45, %v1522_v59  ;;  %v1525_v50 = vld [vmem:[%s13997_s22 + $0x2810] sm:$0xff] }
 0x5d6   : > { %v13111_v37 = vcombine.low %v1525_v50, %v1529_v52 }
 0x5d8   : > { %11045 = vmatpush1.bf16.msra.mxu0 %v13047_v6  ;;  %11537 = vmatpush1.bf16.msra.mxu1 %v13049_v60  ;;  %v13105_v6 = vcombine.low %v1518_v45, %v1522_v59  ;;  %v13112_v60 = vcombine.high %v1525_v50, %v1529_v52  ;;  %v1586_v50 = vld [vmem:[%s13997_s22 + $0x29f8] sm:$0xff] }
 0x5d9   : > { %11046 = vmatprep.subr.bf16.mxu0 %v13056_v61  ;;  %11538 = vmatprep.subr.bf16.mxu1 %v13058_v62  ;;  %v13114_v61 = vcombine.high %v1526_v27, %v1530_v54  ;;  %v1533_v62 = vld [vmem:[%s13997_s22 + $0x2850] sm:$0xff] }
 0x5da   : > { %v13119_v11 = vcombine.low %v1533_v62, %v1537_v8 }
 0x5dc   : > { %11047 = vmatpush1.bf16.msra.mxu0 %v13055_v4  ;;  %11539 = vmatpush1.bf16.msra.mxu1 %v13057_v56  ;;  %v13113_v4 = vcombine.low %v1526_v27, %v1530_v54  ;;  %v13120_v56 = vcombine.high %v1533_v62, %v1537_v8  ;;  %v1594_v62 = vld [vmem:[%s13997_s22 + $0x2a38] sm:$0xff] }
 0x5dd   : > { %11048 = vmatprep.subr.bf16.mxu0 %v13064_v29  ;;  %11540 = vmatprep.subr.bf16.mxu1 %v13066_v23  ;;  %v13122_v29 = vcombine.high %v1534_v3, %v1538_v58  ;;  %v1541_v23 = vld [vmem:[%s13997_s22 + $0x2890] sm:$0xff] }
 0x5e0   : > { %11049 = vmatpush1.bf16.msra.mxu0 %v13063_v12  ;;  %11541 = vmatpush1.bf16.msra.mxu1 %v13065_v5  ;;  %v13121_v12 = vcombine.low %v1534_v3, %v1538_v58  ;;  %v13128_v5 = vcombine.high %v1541_v23, %v1545_v44 }
 0x5e1   : > { %11050 = vmatprep.subr.bf16.mxu0 %v13072_v10  ;;  %11542 = vmatprep.subr.bf16.mxu1 %v13074_v13  ;;  %v13130_v10 = vcombine.high %v1542_v38, %v1546_v9  ;;  %v1549_v13 = vld [vmem:[%s13997_s22 + $0x28d0] sm:$0xff] }
 0x5e2   : > { %v13135_v25 = vcombine.low %v1549_v13, %v1553_v14 }
 0x5e4   : > { %11051 = vmatpush1.bf16.msra.mxu0 %v13071_v32  ;;  %11543 = vmatpush1.bf16.msra.mxu1 %v13073_v20  ;;  %v13136_v32 = vcombine.high %v1549_v13, %v1553_v14  ;;  %v13138_v20 = vcombine.high %v1550_v51, %v1554_v17  ;;  %v1610_v13 = vld [vmem:[%s13997_s22 + $0x2ab8] sm:$0xff] }
 0x5e5   : > { %11052 = vmatprep.subr.bf16.mxu0 %v13080_v7  ;;  %11544 = vmatprep.subr.bf16.mxu1 %v13082_v21  ;;  %v1557_v7 = vld [vmem:[%s13997_s22 + $0x2910] sm:$0xff] }
 0x5e6   : > { %v1561_v21 = vld [vmem:[%s13997_s22 + $0x2930] sm:$0xff] }
 0x5e7   : > { %v13144_v0 = vcombine.high %v1557_v7, %v1561_v21  ;;  %v13143_v63 = vcombine.low %v1557_v7, %v1561_v21  ;;  %v1618_v7 = vld [vmem:[%s13997_s22 + $0x2af8] sm:$0xff] }
 0x5e8   : > { %11053 = vmatpush1.bf16.msra.mxu0 %v13079_v26  ;;  %11545 = vmatpush1.bf16.msra.mxu1 %v13081_v49  ;;  %v13146_v26 = vcombine.high %v1558_v22, %v1562_v24  ;;  %v1565_v49 = vld [vmem:[%s13997_s22 + $0x2950] sm:$0xff] }
 0x5e9   : > { %11054 = vmatprep.subr.bf16.mxu0 %v13088_v30  ;;  %11546 = vmatprep.subr.bf16.mxu1 %v13090_v18  ;;  %v1569_v30 = vld [vmem:[%s13997_s22 + $0x2970] sm:$0xff]  ;;  %v1566_v18 = vld [vmem:[%s13997_s22 + $0x2958] sm:$0xff] }
 0x5ea   : > { %v13152_v33 = vcombine.high %v1565_v49, %v1569_v30  ;;  %v13151_v42 = vcombine.low %v1565_v49, %v1569_v30  ;;  %v13153_v45 = vcombine.low %v1566_v18, %v1570_v31  ;;  %v1626_v49 = vld [vmem:[%s13997_s22 + $0x2b38] sm:$0xff] }
 0x5ec   : > { %11055 = vmatpush1.bf16.msra.mxu0 %v13087_v35  ;;  %11547 = vmatpush1.bf16.msra.mxu1 %v13089_v36  ;;  %v13154_v35 = vcombine.high %v1566_v18, %v1570_v31  ;;  %v1573_v36 = vld [vmem:[%s13997_s22 + $0x2990] sm:$0xff] }
 0x5ed   : > { %11056 = vmatprep.subr.bf16.mxu0 %v13096_v39  ;;  %11548 = vmatprep.subr.bf16.mxu1 %v13098_v40  ;;  %v1577_v39 = vld [vmem:[%s13997_s22 + $0x29b0] sm:$0xff]  ;;  %v1574_v40 = vld [vmem:[%s13997_s22 + $0x2998] sm:$0xff] }
 0x5ee   : > { %v13160_v59 = vcombine.high %v1573_v36, %v1577_v39  ;;  %v13159_v52 = vcombine.low %v1573_v36, %v1577_v39  ;;  %v13161_v27 = vcombine.low %v1574_v40, %v1578_v41  ;;  %v1634_v36 = vld [vmem:[%s13997_s22 + $0x2b78] sm:$0xff] }
 0x5f0   : > { %11057 = vmatpush1.bf16.msra.mxu0 %v13095_v57  ;;  %11549 = vmatpush1.bf16.msra.mxu1 %v13097_v46  ;;  %v13162_v57 = vcombine.high %v1574_v40, %v1578_v41  ;;  %v1581_v46 = vld [vmem:[%s13997_s22 + $0x29d0] sm:$0xff] }
 0x5f1   : > { %11058 = vmatprep.subr.bf16.mxu0 %v13104_v47  ;;  %11550 = vmatprep.subr.bf16.mxu1 %v13106_v34  ;;  %v1585_v47 = vld [vmem:[%s13997_s22 + $0x29f0] sm:$0xff]  ;;  %v1582_v34 = vld [vmem:[%s13997_s22 + $0x29d8] sm:$0xff] }
 0x5f2   : > { %v13168_v54 = vcombine.high %v1581_v46, %v1585_v47  ;;  %v13167_v8 = vcombine.low %v1581_v46, %v1585_v47  ;;  %v13169_v3 = vcombine.low %v1582_v34, %v1586_v50  ;;  %v1642_v46 = vld [vmem:[%s13997_s22 + $0x2bb8] sm:$0xff] }
 0x5f4   : > { %11059 = vmatpush1.bf16.msra.mxu0 %v13103_v55  ;;  %11551 = vmatpush1.bf16.msra.mxu1 %v13105_v6  ;;  %v13170_v55 = vcombine.high %v1582_v34, %v1586_v50  ;;  %v1589_v6 = vld [vmem:[%s13997_s22 + $0x2a10] sm:$0xff] }
 0x5f5   : > { %11069 = vmatprep.subr.bf16.mxu0 %v13112_v60  ;;  %11561 = vmatprep.subr.bf16.mxu1 %v13114_v61  ;;  %v1593_v60 = vld [vmem:[%s13997_s22 + $0x2a30] sm:$0xff]  ;;  %v1590_v61 = vld [vmem:[%s13997_s22 + $0x2a18] sm:$0xff] }
 0x5f6   : > { %v13176_v58 = vcombine.high %v1589_v6, %v1593_v60  ;;  %v13177_v38 = vcombine.low %v1590_v61, %v1594_v62 }
 0x5f7   : > { %11061 = vmatmul.mubr.bf16.vlgmr.msra.gmra.mrb[4].mxu0 %v14810_v2  ;;  %11553 = vmatmul.mubr.bf16.vlgmr.msra.gmra.mrb[4].mxu1 %v14810_v2  ;;  %v13127_v2 = vcombine.low %v1541_v23, %v1545_v44  ;;  %v1602_v23 = vld [vmem:[%s13997_s22 + $0x2a78] sm:$0xff]  ;;  %v13175_v44 = vcombine.low %v1589_v6, %v1593_v60 }
 0x5f8   : > { %11070 = vmatpush1.bf16.msra.mxu0 %v13111_v37  ;;  %11562 = vmatpush1.bf16.msra.mxu1 %v13113_v4  ;;  %v13178_v37 = vcombine.high %v1590_v61, %v1594_v62  ;;  %v1597_v4 = vld [vmem:[%s13997_s22 + $0x2a50] sm:$0xff]  ;;  %v1650_v6 = vld [vmem:[%s13997_s22 + $0x2bf8] sm:$0xff] }
 0x5f9   : > { %11071 = vmatprep.subr.bf16.mxu0 %v13120_v56  ;;  %11563 = vmatprep.subr.bf16.mxu1 %v13122_v29  ;;  %v1601_v56 = vld [vmem:[%s13997_s22 + $0x2a70] sm:$0xff]  ;;  %v1598_v29 = vld [vmem:[%s13997_s22 + $0x2a58] sm:$0xff] }
 0x5fa   : > { %11101 = vmatprep.mubr.bf16.mxu0 %v14817_v15  ;;  %11593 = vmatprep.mubr.bf16.mxu1 %v14817_v15  ;;  %v13137_v15 = vcombine.low %v1550_v51, %v1554_v17  ;;  %v13184_v9 = vcombine.high %v1597_v4, %v1601_v56  ;;  %v13183_v14 = vcombine.low %v1597_v4, %v1601_v56  ;;  %v1658_v4 = vld [vmem:[%s13997_s22 + $0x2c38] sm:$0xff] }
 0x5fb   : > { %v13185_v51 = vcombine.low %v1598_v29, %v1602_v23 }
 0x5fc   : > { %11072 = vmatpush1.bf16.msra.mxu0 %v13119_v11  ;;  %11564 = vmatpush1.bf16.msra.mxu1 %v13121_v12  ;;  %v13186_v11 = vcombine.high %v1598_v29, %v1602_v23  ;;  %v1605_v12 = vld [vmem:[%s13997_s22 + $0x2a90] sm:$0xff] }
 0x5fd   : > { %11073 = vmatprep.subr.bf16.mxu0 %v13128_v5  ;;  %11565 = vmatprep.subr.bf16.mxu1 %v13130_v10  ;;  %v1609_v5 = vld [vmem:[%s13997_s22 + $0x2ab0] sm:$0xff]  ;;  %v1606_v10 = vld [vmem:[%s13997_s22 + $0x2a98] sm:$0xff] }
 0x5fe   : > { %v13192_v17 = vcombine.high %v1605_v12, %v1609_v5  ;;  %v13191_v21 = vcombine.low %v1605_v12, %v1609_v5  ;;  %v13193_v22 = vcombine.low %v1606_v10, %v1610_v13  ;;  %v1666_v12 = vld [vmem:[%s13997_s22 + $0x2c78] sm:$0xff] }
 0x600   : > { %11074 = vmatpush1.bf16.msra.mxu0 %v13127_v2  ;;  %11566 = vmatpush1.bf16.msra.mxu1 %v13129_v16  ;;  %v13194_v2 = vcombine.high %v1606_v10, %v1610_v13  ;;  %v1613_v16 = vld [vmem:[%s13997_s22 + $0x2ad0] sm:$0xff] }
 0x601   : > { %11075 = vmatprep.subr.bf16.mxu0 %v13136_v32  ;;  %11567 = vmatprep.subr.bf16.mxu1 %v13138_v20  ;;  %v1617_v32 = vld [vmem:[%s13997_s22 + $0x2af0] sm:$0xff]  ;;  %v1614_v20 = vld [vmem:[%s13997_s22 + $0x2ad8] sm:$0xff] }
 0x602   : > { %v13200_v24 = vcombine.high %v1613_v16, %v1617_v32  ;;  %v13199_v30 = vcombine.low %v1613_v16, %v1617_v32  ;;  %v13201_v18 = vcombine.low %v1614_v20, %v1618_v7  ;;  %v1674_v16 = vld [vmem:[%s13997_s22 + $0x2cb8] sm:$0xff] }
 0x604   : > { %11076 = vmatpush1.bf16.msra.mxu0 %v13135_v25  ;;  %11568 = vmatpush1.bf16.msra.mxu1 %v13137_v15  ;;  %v13202_v25 = vcombine.high %v1614_v20, %v1618_v7  ;;  %v1621_v15 = vld [vmem:[%s13997_s22 + $0x2b10] sm:$0xff] }
 0x605   : > { %11077 = vmatprep.subr.bf16.mxu0 %v13144_v0  ;;  %11569 = vmatprep.subr.bf16.mxu1 %v13146_v26  ;;  %v1625_v0 = vld [vmem:[%s13997_s22 + $0x2b30] sm:$0xff]  ;;  %v1622_v26 = vld [vmem:[%s13997_s22 + $0x2b18] sm:$0xff] }
 0x606   : > { %v13208_v31 = vcombine.high %v1621_v15, %v1625_v0  ;;  %v13207_v39 = vcombine.low %v1621_v15, %v1625_v0  ;;  %v13209_v40 = vcombine.low %v1622_v26, %v1626_v49  ;;  %v1682_v15 = vld [vmem:[%s13997_s22 + $0x2cf8] sm:$0xff] }
 0x608   : > { %11078 = vmatpush1.bf16.msra.mxu0 %v13143_v63  ;;  %11570 = vmatpush1.bf16.msra.mxu1 %v13145_v19  ;;  %v13210_v63 = vcombine.high %v1622_v26, %v1626_v49  ;;  %v1629_v19 = vld [vmem:[%s13997_s22 + $0x2b50] sm:$0xff] }
 0x609   : > { %11079 = vmatprep.subr.bf16.mxu0 %v13152_v33  ;;  %11571 = vmatprep.subr.bf16.mxu1 %v13154_v35  ;;  %v1633_v33 = vld [vmem:[%s13997_s22 + $0x2b70] sm:$0xff]  ;;  %v1630_v35 = vld [vmem:[%s13997_s22 + $0x2b58] sm:$0xff] }
 0x60a   : > { %v13216_v41 = vcombine.high %v1629_v19, %v1633_v33  ;;  %v13215_v47 = vcombine.low %v1629_v19, %v1633_v33  ;;  %v13217_v34 = vcombine.low %v1630_v35, %v1634_v36 }
 0x60c   : > { %11080 = vmatpush1.bf16.msra.mxu0 %v13151_v42  ;;  %11572 = vmatpush1.bf16.msra.mxu1 %v13153_v45  ;;  %v13218_v42 = vcombine.high %v1630_v35, %v1634_v36  ;;  %v1637_v45 = vld [vmem:[%s13997_s22 + $0x2b90] sm:$0xff] }
 0x60d   : > { %11081 = vmatprep.subr.bf16.mxu0 %v13160_v59  ;;  %11573 = vmatprep.subr.bf16.mxu1 %v13162_v57  ;;  %v1641_v59 = vld [vmem:[%s13997_s22 + $0x2bb0] sm:$0xff]  ;;  %v1638_v57 = vld [vmem:[%s13997_s22 + $0x2b98] sm:$0xff] }
 0x60e   : > { %v13224_v50 = vcombine.high %v1637_v45, %v1641_v59  ;;  %v13223_v60 = vcombine.low %v1637_v45, %v1641_v59  ;;  %v13225_v61 = vcombine.low %v1638_v57, %v1642_v46  ;;  %v1693_v36 = vld [vmem:[%s13997_s22 + $0x2d50] sm:$0xff] }
 0x610   : > { %11082 = vmatpush1.bf16.msra.mxu0 %v13159_v52  ;;  %11574 = vmatpush1.bf16.msra.mxu1 %v13161_v27  ;;  %v13226_v52 = vcombine.high %v1638_v57, %v1642_v46  ;;  %v1645_v27 = vld [vmem:[%s13997_s22 + $0x2bd0] sm:$0xff] }
 0x611   : > { %11083 = vmatprep.subr.bf16.mxu0 %v13168_v54  ;;  %11575 = vmatprep.subr.bf16.mxu1 %v13170_v55  ;;  %v1649_v54 = vld [vmem:[%s13997_s22 + $0x2bf0] sm:$0xff]  ;;  %v1646_v55 = vld [vmem:[%s13997_s22 + $0x2bd8] sm:$0xff] }
 0x612   : > { %v13232_v62 = vcombine.high %v1645_v27, %v1649_v54  ;;  %v13231_v56 = vcombine.low %v1645_v27, %v1649_v54  ;;  %v13233_v29 = vcombine.low %v1646_v55, %v1650_v6  ;;  %v1701_v46 = vld [vmem:[%s13997_s22 + $0x2d90] sm:$0xff] }
 0x614   : > { %11084 = vmatpush1.bf16.msra.mxu0 %v13167_v8  ;;  %11576 = vmatpush1.bf16.msra.mxu1 %v13169_v3  ;;  %v13234_v8 = vcombine.high %v1646_v55, %v1650_v6  ;;  %v1653_v3 = vld [vmem:[%s13997_s22 + $0x2c10] sm:$0xff] }
 0x615   : > { %11085 = vmatprep.subr.bf16.mxu0 %v13176_v58  ;;  %11577 = vmatprep.subr.bf16.mxu1 %v13178_v37  ;;  %v1657_v58 = vld [vmem:[%s13997_s22 + $0x2c30] sm:$0xff]  ;;  %v1654_v37 = vld [vmem:[%s13997_s22 + $0x2c18] sm:$0xff] }
 0x616   : > { %v13240_v23 = vcombine.high %v1653_v3, %v1657_v58  ;;  %v13239_v5 = vcombine.low %v1653_v3, %v1657_v58  ;;  %v13241_v10 = vcombine.low %v1654_v37, %v1658_v4  ;;  %v1709_v6 = vld [vmem:[%s13997_s22 + $0x2dd0] sm:$0xff] }
 0x618   : > { %11086 = vmatpush1.bf16.msra.mxu0 %v13175_v44  ;;  %11578 = vmatpush1.bf16.msra.mxu1 %v13177_v38  ;;  %v13242_v44 = vcombine.high %v1654_v37, %v1658_v4  ;;  %v1661_v38 = vld [vmem:[%s13997_s22 + $0x2c50] sm:$0xff] }
 0x619   : > { %11087 = vmatprep.subr.bf16.mxu0 %v13184_v9  ;;  %11579 = vmatprep.subr.bf16.mxu1 %v13186_v11  ;;  %v1665_v9 = vld [vmem:[%s13997_s22 + $0x2c70] sm:$0xff]  ;;  %v1662_v11 = vld [vmem:[%s13997_s22 + $0x2c58] sm:$0xff] }
 0x61a   : > { %v13248_v13 = vcombine.high %v1661_v38, %v1665_v9  ;;  %v13247_v32 = vcombine.low %v1661_v38, %v1665_v9  ;;  %v13249_v20 = vcombine.low %v1662_v11, %v1666_v12  ;;  %v1717_v4 = vld [vmem:[%s13997_s22 + $0x2e10] sm:$0xff] }
 0x61c   : > { %11088 = vmatpush1.bf16.msra.mxu0 %v13183_v14  ;;  %11580 = vmatpush1.bf16.msra.mxu1 %v13185_v51  ;;  %v13250_v14 = vcombine.high %v1662_v11, %v1666_v12  ;;  %v1669_v51 = vld [vmem:[%s13997_s22 + $0x2c90] sm:$0xff] }
 0x61d   : > { %11089 = vmatprep.subr.bf16.mxu0 %v13192_v17  ;;  %11581 = vmatprep.subr.bf16.mxu1 %v13194_v2  ;;  %v1673_v17 = vld [vmem:[%s13997_s22 + $0x2cb0] sm:$0xff]  ;;  %v1670_v2 = vld [vmem:[%s13997_s22 + $0x2c98] sm:$0xff] }
 0x61e   : > { %v13256_v7 = vcombine.high %v1669_v51, %v1673_v17  ;;  %v13257_v0 = vcombine.low %v1670_v2, %v1674_v16  ;;  %v1725_v12 = vld [vmem:[%s13997_s22 + $0x2e50] sm:$0xff] }
 0x620   : > { %11090 = vmatpush1.bf16.msra.mxu0 %v13191_v21  ;;  %11582 = vmatpush1.bf16.msra.mxu1 %v13193_v22  ;;  %v13258_v21 = vcombine.high %v1670_v2, %v1674_v16  ;;  %v1677_v22 = vld [vmem:[%s13997_s22 + $0x2cd0] sm:$0xff] }
 0x621   : > { %11091 = vmatprep.subr.bf16.mxu0 %v13200_v24  ;;  %11583 = vmatprep.subr.bf16.mxu1 %v13202_v25  ;;  %v1681_v24 = vld [vmem:[%s13997_s22 + $0x2cf0] sm:$0xff]  ;;  %v1678_v25 = vld [vmem:[%s13997_s22 + $0x2cd8] sm:$0xff] }
 0x622   : > { %v13264_v26 = vcombine.high %v1677_v22, %v1681_v24  ;;  %v13266_v49 = vcombine.high %v1678_v25, %v1682_v15  ;;  %v13263_v19 = vcombine.low %v1677_v22, %v1681_v24  ;;  %v1733_v16 = vld [vmem:[%s13997_s22 + $0x2e90] sm:$0xff] }
 0x624   : > { %11092 = vmatpush1.bf16.msra.mxu0 %v13199_v30  ;;  %11584 = vmatpush1.bf16.msra.mxu1 %v13201_v18  ;;  %v1685_v30 = vld [vmem:[%s13997_s22 + $0x2d10] sm:$0xff] }
 0x625   : > { %11093 = vmatprep.subr.bf16.mxu0 %v13208_v31  ;;  %11585 = vmatprep.subr.bf16.mxu1 %v13210_v63  ;;  %v1689_v18 = vld [vmem:[%s13997_s22 + $0x2d30] sm:$0xff]  ;;  %v1686_v31 = vld [vmem:[%s13997_s22 + $0x2d18] sm:$0xff] }
 0x626   : > { %v1690_v63 = vld [vmem:[%s13997_s22 + $0x2d38] sm:$0xff]  ;;  %v13272_v33 = vcombine.high %v1685_v30, %v1689_v18 }
 0x627   : > { %v13274_v35 = vcombine.high %v1686_v31, %v1690_v63  ;;  %v13273_v45 = vcombine.low %v1686_v31, %v1690_v63  ;;  %v1749_v63 = vld [vmem:[%s13997_s22 + $0x2f10] sm:$0xff] }
 0x628   : > { %11094 = vmatpush1.bf16.msra.mxu0 %v13207_v39  ;;  %11586 = vmatpush1.bf16.msra.mxu1 %v13209_v40  ;;  %v1697_v39 = vld [vmem:[%s13997_s22 + $0x2d70] sm:$0xff]  ;;  %v1694_v40 = vld [vmem:[%s13997_s22 + $0x2d58] sm:$0xff] }
 0x629   : > { %11095 = vmatprep.subr.bf16.mxu0 %v13216_v41  ;;  %11587 = vmatprep.subr.bf16.mxu1 %v13218_v42  ;;  %v1698_v41 = vld [vmem:[%s13997_s22 + $0x2d78] sm:$0xff]  ;;  %v13271_v42 = vcombine.low %v1685_v30, %v1689_v18  ;;  %v13280_v59 = vcombine.high %v1693_v36, %v1697_v39 }
 0x62a   : > { %v13282_v57 = vcombine.high %v1694_v40, %v1698_v41  ;;  %v13281_v27 = vcombine.low %v1694_v40, %v1698_v41  ;;  %v1757_v41 = vld [vmem:[%s13997_s22 + $0x2f50] sm:$0xff] }
 0x62c   : > { %11096 = vmatpush1.bf16.msra.mxu0 %v13215_v47  ;;  %11588 = vmatpush1.bf16.msra.mxu1 %v13217_v34  ;;  %v1705_v47 = vld [vmem:[%s13997_s22 + $0x2db0] sm:$0xff]  ;;  %v1702_v34 = vld [vmem:[%s13997_s22 + $0x2d98] sm:$0xff] }
 0x62d   : > { %11097 = vmatprep.subr.bf16.mxu0 %v13224_v50  ;;  %11589 = vmatprep.subr.bf16.mxu1 %v13226_v52  ;;  %v1706_v50 = vld [vmem:[%s13997_s22 + $0x2db8] sm:$0xff]  ;;  %v13279_v52 = vcombine.low %v1693_v36, %v1697_v39  ;;  %v13288_v54 = vcombine.high %v1701_v46, %v1705_v47 }
 0x62e   : > { %v13290_v55 = vcombine.high %v1702_v34, %v1706_v50  ;;  %v13289_v3 = vcombine.low %v1702_v34, %v1706_v50  ;;  %v1765_v50 = vld [vmem:[%s13997_s22 + $0x2f90] sm:$0xff] }
 0x630   : > { %11098 = vmatpush1.bf16.msra.mxu0 %v13223_v60  ;;  %11590 = vmatpush1.bf16.msra.mxu1 %v13225_v61  ;;  %v1713_v60 = vld [vmem:[%s13997_s22 + $0x2df0] sm:$0xff]  ;;  %v1710_v61 = vld [vmem:[%s13997_s22 + $0x2dd8] sm:$0xff] }
 0x631   : > { %11099 = vmatprep.subr.bf16.mxu0 %v13232_v62  ;;  %11591 = vmatprep.subr.bf16.mxu1 %v13234_v8  ;;  %v1714_v62 = vld [vmem:[%s13997_s22 + $0x2df8] sm:$0xff]  ;;  %v13287_v8 = vcombine.low %v1701_v46, %v1705_v47  ;;  %v13296_v58 = vcombine.high %v1709_v6, %v1713_v60 }
 0x632   : > { %v13298_v37 = vcombine.high %v1710_v61, %v1714_v62  ;;  %v13297_v38 = vcombine.low %v1710_v61, %v1714_v62  ;;  %v1773_v62 = vld [vmem:[%s13997_s22 + $0x2fd0] sm:$0xff] }
 0x634   : > { %11100 = vmatpush1.bf16.msra.mxu0 %v13231_v56  ;;  %11592 = vmatpush1.bf16.msra.mxu1 %v13233_v29  ;;  %v1721_v56 = vld [vmem:[%s13997_s22 + $0x2e30] sm:$0xff]  ;;  %v1718_v29 = vld [vmem:[%s13997_s22 + $0x2e18] sm:$0xff] }
 0x635   : > { %11110 = vmatprep.subr.bf16.mxu0 %v13240_v23  ;;  %11602 = vmatprep.subr.bf16.mxu1 %v13242_v44  ;;  %v1722_v23 = vld [vmem:[%s13997_s22 + $0x2e38] sm:$0xff]  ;;  %v13295_v44 = vcombine.low %v1709_v6, %v1713_v60  ;;  %v13304_v9 = vcombine.high %v1717_v4, %v1721_v56 }
 0x636   : > { %v13306_v11 = vcombine.high %v1718_v29, %v1722_v23 }
 0x637   : > { %11102 = vmatmul.mubr.bf16.vlgmr.msra.gmra.mrb[4].mxu0 %v14885_v1  ;;  %11594 = vmatmul.mubr.bf16.vlgmr.msra.gmra.mrb[4].mxu1 %v14885_v1  ;;  %v13255_v1 = vcombine.low %v1669_v51, %v1673_v17  ;;  %v13305_v51 = vcombine.low %v1718_v29, %v1722_v23 }
 0x638   : > { %11111 = vmatpush1.bf16.msra.mxu0 %v13239_v5  ;;  %11603 = vmatpush1.bf16.msra.mxu1 %v13241_v10  ;;  %v1729_v5 = vld [vmem:[%s13997_s22 + $0x2e70] sm:$0xff]  ;;  %v1726_v10 = vld [vmem:[%s13997_s22 + $0x2e58] sm:$0xff] }
 0x639   : > { %11112 = vmatprep.subr.bf16.mxu0 %v13248_v13  ;;  %11604 = vmatprep.subr.bf16.mxu1 %v13250_v14  ;;  %v1730_v13 = vld [vmem:[%s13997_s22 + $0x2e78] sm:$0xff]  ;;  %v13303_v14 = vcombine.low %v1717_v4, %v1721_v56  ;;  %v13312_v17 = vcombine.high %v1725_v12, %v1729_v5 }
 0x63a   : > { %11142 = vmatprep.mubr.bf16.mxu0 %v14893_v28  ;;  %11634 = vmatprep.mubr.bf16.mxu1 %v14893_v28  ;;  %v13265_v28 = vcombine.low %v1678_v25, %v1682_v15  ;;  %v13314_v2 = vcombine.high %v1726_v10, %v1730_v13  ;;  %v13313_v22 = vcombine.low %v1726_v10, %v1730_v13  ;;  %v1741_v15 = vld [vmem:[%s13997_s22 + $0x2ed0] sm:$0xff] }
 0x63c   : > { %11113 = vmatpush1.bf16.msra.mxu0 %v13247_v32  ;;  %11605 = vmatpush1.bf16.msra.mxu1 %v13249_v20  ;;  %v1737_v32 = vld [vmem:[%s13997_s22 + $0x2eb0] sm:$0xff]  ;;  %v1734_v20 = vld [vmem:[%s13997_s22 + $0x2e98] sm:$0xff] }
 0x63d   : > { %11114 = vmatprep.subr.bf16.mxu0 %v13256_v7  ;;  %11606 = vmatprep.subr.bf16.mxu1 %v13258_v21  ;;  %v1738_v7 = vld [vmem:[%s13997_s22 + $0x2eb8] sm:$0xff]  ;;  %v13311_v21 = vcombine.low %v1725_v12, %v1729_v5  ;;  %v13320_v24 = vcombine.high %v1733_v16, %v1737_v32  ;;  %v1811_v12 = vsub.s32 7, %v14025_v43  ;;  %v13627_v5 = vld [vmem:[%s15191_s28] sm:$0xff] }
 0x63e   : > { %v13322_v25 = vcombine.high %v1734_v20, %v1738_v7  ;;  %v13321_v30 = vcombine.low %v1734_v20, %v1738_v7 }
 0x640   : > { %11115 = vmatpush1.bf16.msra.mxu0 %v13255_v1  ;;  %11607 = vmatpush1.bf16.msra.mxu1 %v13257_v0  ;;  %v1745_v1 = vld [vmem:[%s13997_s22 + $0x2ef0] sm:$0xff]  ;;  %v1742_v0 = vld [vmem:[%s13997_s22 + $0x2ed8] sm:$0xff] }
 0x641   : > { %11116 = vmatprep.subr.bf16.mxu0 %v13264_v26  ;;  %11608 = vmatprep.subr.bf16.mxu1 %v13266_v49  ;;  %v1746_v26 = vld [vmem:[%s13997_s22 + $0x2ef8] sm:$0xff]  ;;  %v13319_v49 = vcombine.low %v1733_v16, %v1737_v32  ;;  %v13328_v18 = vcombine.high %v1741_v15, %v1745_v1 }
 0x642   : > { %v13330_v31 = vcombine.high %v1742_v0, %v1746_v26  ;;  %v13329_v36 = vcombine.low %v1742_v0, %v1746_v26 }
 0x644   : > { %11117 = vmatpush1.bf16.msra.mxu0 %v13263_v19  ;;  %11609 = vmatpush1.bf16.msra.mxu1 %v13265_v28  ;;  %v1753_v19 = vld [vmem:[%s13997_s22 + $0x2f30] sm:$0xff]  ;;  %v1750_v28 = vld [vmem:[%s13997_s22 + $0x2f18] sm:$0xff] }
 0x645   : > { %11118 = vmatprep.subr.bf16.mxu0 %v13272_v33  ;;  %11610 = vmatprep.subr.bf16.mxu1 %v13274_v35  ;;  %v1754_v33 = vld [vmem:[%s13997_s22 + $0x2f38] sm:$0xff]  ;;  %v13327_v35 = vcombine.low %v1741_v15, %v1745_v1  ;;  %v13336_v39 = vcombine.high %v1749_v63, %v1753_v19 }
 0x646   : > { %v13338_v40 = vcombine.high %v1750_v28, %v1754_v33  ;;  %v13337_v46 = vcombine.low %v1750_v28, %v1754_v33 }
 0x648   : > { %11119 = vmatpush1.bf16.msra.mxu0 %v13271_v42  ;;  %11611 = vmatpush1.bf16.msra.mxu1 %v13273_v45  ;;  %v1761_v42 = vld [vmem:[%s13997_s22 + $0x2f70] sm:$0xff]  ;;  %v1758_v45 = vld [vmem:[%s13997_s22 + $0x2f58] sm:$0xff] }
 0x649   : > { %11120 = vmatprep.subr.bf16.mxu0 %v13280_v59  ;;  %11612 = vmatprep.subr.bf16.mxu1 %v13282_v57  ;;  %v1762_v59 = vld [vmem:[%s13997_s22 + $0x2f78] sm:$0xff]  ;;  %v13335_v57 = vcombine.low %v1749_v63, %v1753_v19  ;;  %v13344_v47 = vcombine.high %v1757_v41, %v1761_v42 }
 0x64a   : > { %v13346_v34 = vcombine.high %v1758_v45, %v1762_v59  ;;  %v13345_v6 = vcombine.low %v1758_v45, %v1762_v59 }
 0x64c   : > { %11121 = vmatpush1.bf16.msra.mxu0 %v13279_v52  ;;  %11613 = vmatpush1.bf16.msra.mxu1 %v13281_v27  ;;  %v1769_v52 = vld [vmem:[%s13997_s22 + $0x2fb0] sm:$0xff]  ;;  %v1766_v27 = vld [vmem:[%s13997_s22 + $0x2f98] sm:$0xff] }
 0x64d   : > { %11122 = vmatprep.subr.bf16.mxu0 %v13288_v54  ;;  %11614 = vmatprep.subr.bf16.mxu1 %v13290_v55  ;;  %v1770_v54 = vld [vmem:[%s13997_s22 + $0x2fb8] sm:$0xff]  ;;  %v13343_v55 = vcombine.low %v1757_v41, %v1761_v42  ;;  %v13352_v60 = vcombine.high %v1765_v50, %v1769_v52 }
 0x64e   : > { %v13354_v61 = vcombine.high %v1766_v27, %v1770_v54  ;;  %v13353_v4 = vcombine.low %v1766_v27, %v1770_v54 }
 0x650   : > { %11123 = vmatpush1.bf16.msra.mxu0 %v13287_v8  ;;  %11615 = vmatpush1.bf16.msra.mxu1 %v13289_v3  ;;  %v1777_v8 = vld [vmem:[%s13997_s22 + $0x2ff0] sm:$0xff]  ;;  %v1774_v3 = vld [vmem:[%s13997_s22 + $0x2fd8] sm:$0xff] }
 0x651   : > { %11124 = vmatprep.subr.bf16.mxu0 %v13296_v58  ;;  %11616 = vmatprep.subr.bf16.mxu1 %v13298_v37  ;;  %v1778_v58 = vld [vmem:[%s13997_s22 + $0x2ff8] sm:$0xff]  ;;  %v13351_v37 = vcombine.low %v1765_v50, %v1769_v52  ;;  %v13360_v56 = vcombine.high %v1773_v62, %v1777_v8  ;;  %v13359_v23 = vcombine.low %v1773_v62, %v1777_v8 }
 0x652   : > { %v13362_v29 = vcombine.high %v1774_v3, %v1778_v58 }
 0x654   : > { %11125 = vmatpush1.bf16.msra.mxu0 %v13295_v44  ;;  %11617 = vmatpush1.bf16.msra.mxu1 %v13297_v38  ;;  %v13361_v44 = vcombine.low %v1774_v3, %v1778_v58  ;;  %v1799_v38 = vsub.s32 4, %v14025_v43 }
 0x655   : > { %11126 = vmatprep.subr.bf16.mxu0 %v13304_v9  ;;  %11618 = vmatprep.subr.bf16.mxu1 %v13306_v11  ;;  %v1807_v9 = vsub.s32 6, %v14025_v43  ;;  %v1803_v11 = vsub.s32 5, %v14025_v43 }
 0x656   : > { %v1800_v10 = vrot.slane %v13627_v5, %v1799_v38 }
 0x657   : > { %v1808_v13 = vrot.slane %v13627_v5, %v1807_v9 }
 0x658   : > { %11127 = vmatpush1.bf16.msra.mxu0 %v13303_v14  ;;  %11619 = vmatpush1.bf16.msra.mxu1 %v13305_v51  ;;  %v1804_v14 = vrot.slane %v13627_v5, %v1803_v11  ;;  %v1812_v51 = vrot.slane %v13627_v5, %v1811_v12 }
 0x659   : > { %11128 = vmatprep.subr.bf16.mxu0 %v13312_v17  ;;  %11620 = vmatprep.subr.bf16.mxu1 %v13314_v2 }
 0x65c   : > { %11129 = vmatpush1.bf16.msra.mxu0 %v13311_v21  ;;  %11621 = vmatpush1.bf16.msra.mxu1 %v13313_v22 }
 0x65d   : > { %11130 = vmatprep.subr.bf16.mxu0 %v13320_v24  ;;  %11622 = vmatprep.subr.bf16.mxu1 %v13322_v25 }
 0x660   : > { %11131 = vmatpush1.bf16.msra.mxu0 %v13319_v49  ;;  %11623 = vmatpush1.bf16.msra.mxu1 %v13321_v30 }
 0x661   : > { %11132 = vmatprep.subr.bf16.mxu0 %v13328_v18  ;;  %11624 = vmatprep.subr.bf16.mxu1 %v13330_v31 }
 0x664   : > { %11133 = vmatpush1.bf16.msra.mxu0 %v13327_v35  ;;  %11625 = vmatpush1.bf16.msra.mxu1 %v13329_v36 }
 0x665   : > { %11134 = vmatprep.subr.bf16.mxu0 %v13336_v39  ;;  %11626 = vmatprep.subr.bf16.mxu1 %v13338_v40 }
 0x668   : > { %11135 = vmatpush1.bf16.msra.mxu0 %v13335_v57  ;;  %11627 = vmatpush1.bf16.msra.mxu1 %v13337_v46 }
 0x669   : > { %11136 = vmatprep.subr.bf16.mxu0 %v13344_v47  ;;  %11628 = vmatprep.subr.bf16.mxu1 %v13346_v34 }
 0x66c   : > { %11137 = vmatpush1.bf16.msra.mxu0 %v13343_v55  ;;  %11629 = vmatpush1.bf16.msra.mxu1 %v13345_v6 }
 0x66d   : > { %11138 = vmatprep.subr.bf16.mxu0 %v13352_v60  ;;  %11630 = vmatprep.subr.bf16.mxu1 %v13354_v61 }
 0x670   : > { %11139 = vmatpush1.bf16.msra.mxu0 %v13351_v37  ;;  %11631 = vmatpush1.bf16.msra.mxu1 %v13353_v4 }
 0x671   : > { %11140 = vmatprep.subr.bf16.mxu0 %v13360_v56  ;;  %11632 = vmatprep.subr.bf16.mxu1 %v13362_v29 }
 0x674   : > { %11141 = vmatpush1.bf16.msra.mxu0 %v13359_v23  ;;  %11633 = vmatpush1.bf16.msra.mxu1 %v13361_v44 }
 0x677   : > { %11143 = vmatmul.mubr.bf16.vlgmr.msra.gmra.mrb[4].mxu0 %v14961_v53  ;;  %11635 = vmatmul.mubr.bf16.vlgmr.msra.gmra.mrb[4].mxu1 %v14961_v53 }
 0x74a   : > { %v11144_v17 = vpop.f32.mrb[4].mxu0  ;;  %v11636_v16 = vpop.f32.mrb[4].mxu1 }
 0x74b   : > { %v13375_v2 = vadd.f32 %v11144_v17, %v1800_v10  ;;  %v11146_v32 = vpop.f32.mrb[5].mxu0  ;;  %v13377_v20 = vadd.f32 %v11636_v16, %v1808_v13  ;;  %v11638_v7 = vpop.f32.mrb[5].mxu1 }
 0x74c   : > { %v13376_v53 = vadd.f32 %v11146_v32, %v1804_v14  ;;  %v11148_v21 = vpop.f32.mrb[6].mxu0  ;;  %v13378_v24 = vadd.f32 %v11638_v7, %v1812_v51  ;;  %v11640_v25 = vpop.f32.mrb[6].mxu1 }
 0x74d   : > { %v11647_v22 = vmax.f32 %v13375_v2, 0.0  ;;  %v11149_v43 = vpop.f32.mrb[7].mxu0  ;;  %v11649_v15 = vmax.f32 %v13377_v20, 0.0  ;;  %v11641_v0 = vpop.f32.mrb[7].mxu1 }
 0x74e   : > { %v11648_v1 = vmax.f32 %v13376_v53, 0.0  ;;  %v11650_v26 = vmax.f32 %v13378_v24, 0.0 }
 0x750   : > { %v11676_v49 = vcombine.low %v11647_v22, %v11648_v1  ;;  %v11677_v30 = vcombine.low %v11649_v15, %v11650_v26 }
 0x752   : > { %v11684_v18 = vrot.slane %v11676_v49, %v15206_v48  ;;  %v11691_v31 = vrot.slane %v11677_v30, %v15206_v48 }
 0x754   : > { %v11692_v63 = vcombine.low %v11684_v18, %v11691_v31 }
 0x756   : > { %11696 = vst [vmem:[%s15223_s10 + $0x8] sm:$0xff] %v11692_v63 }
 0x757   : > { %13729 = shalt.err (!%p13726_p1)
}
 0x758   : > { %s13730_s17 = scalar_lea.hbm %s15804_s5, 256  ;;  %s13734_s21 = scalar_lea.hbm %s15851_s3, 1024 }
 0x759   : > { %p13731_p5 = scmp.ne.s32.totalorder %s15804_s5, %s13730_s17  ;;  %p13735_p6 = scmp.lt.u32.totalorder %s15804_s5, %s15851_s3 }
 0x75a   : > { %p13736_p8 = scmp.lt.u32.totalorder %s13734_s21, %s13730_s17  ;;  %p13738_p11 = scmp.lt.u32.totalorder %s13730_s17, %s15804_s5 }
 0x75b   : > { %p13732_p4 = pnand %p13731_p5, %p15872_p3 }
 0x75c   : > { %p13737_p13 = por %p13736_p8, %p13735_p6 }
 0x75d   : > { %p13733_p2 = pneg %p13732_p4 }
 0x75e   : > { %p13739_p0 = por %p13738_p11, %p13737_p13 }
 0x760   : > { %p13740_p10 = pnand %p13739_p0, %p13733_p2 }
 0x762   : > { %13743 = shalt.err (!%p13740_p10)
}
 0x763   : > { %13565 = dma.vmem_to_hbm [thread:$0]  (%p15872_p3), %s15806_s23, 256, %s15804_s5, %s11698_s6  }
 0x764 PF: > { %p13585_p12 = scmp.ge.s32.totalorder %s13786_s15, 2  ;;  %s11724_s28 = sand.u32 1, %s13774_s12  }
 0x765   : > { %p15873_p9 = scmp.ne.s32.totalorder %s15862_s29, 0  ;;  %s11725_s4 = scalar_lea.sflag [#allocation4], %s11724_s28 }
 0x767   : > { %p13579_p7 = pnand %p13585_p12, %p15873_p9 }
 0x769   : > { %13769 = dma.done.wait (!%p13579_p7), %s11725_s4, 256  }
 0x76a   : > { %13771 = vsyncadd (!%p13579_p7), %s11725_s4, 4294967040  ;;  %p17_p1 = scmp.ge.s32.totalorder %s13838_s16, 6   ;;  %s15874_s12 = smov %s13778_s13 }
 0x76b   : > { %s15875_s13 = smov %s13782_s14  ;;  %s15876_s14 = smov %s13848_s19 }
 0x76c   : > { %s15877_s15 = smov %s13838_s16  ;;  %19 = sbr.rel (!%p17_p1) target bundleno = 6 (0x6), region = 93 }
 0x773   :  { %11730 = vsyncpa [#allocation3], 1 }
 0x774   :  { %11732 = vsyncpa [#allocation3 + $0x1], 1 }
 0x775   :  { %11733 = vsyncpa [#allocation6], 1 }
 0x776   :  { %11735 = vsyncpa [#allocation6 + $0x1], 1 }
 0x777   :  { %11736 = vsyncpa [#allocation4], 1 }
 0x778   :  { %11738 = vsyncpa [#allocation4 + $0x1], 1 }

</bundles_post_ra>
